<compile_context>
chip_gen: v7x
topology: tpu7x:2x2x1
jax: 0.10.0
libtpu: 0.0.40
codegen_flags: <defaults>
</compile_context>

<pallas_src>
import functools
from typing import NamedTuple

import jax
import jax.numpy as jnp
import numpy as np
from jax.experimental import pallas as pl
from jax.experimental.pallas import tpu as pltpu

BN_EPS = 1e-5
NEG_BIG = -1e30          # bias for padded softmax lanes -> exp() underflows to 0 (f32 only)


def _round_up(x, m):
    return ((x + m - 1) // m) * m


class PreparedMonteCNN(NamedTuple):
    arrays: dict          # combined / padded device arrays (pytree)
    num_heads: int
    num_classes: int
    input_hw: tuple


# ----------------------------------------------------------------------------
# The single fused kernel: conv1+BN+ReLU -> conv2+BN+ReLU -> conv3+BN+ReLU
#                          -> fc1+ReLU -> fc2 (+ per-head softmax)
# Row layout everywhere: (spatial position, batch padded to BP), so the
# second-minor dim of every value is a multiple of 8 and all reshapes are
# tile-preserving.  Channel (lane) dims are multiples of 128.
# ----------------------------------------------------------------------------
def _monte_fused_kernel(p1_ref, w1_ref, g1_ref, b1_ref,
                        w2_ref, g2_ref, b2_ref,
                        w3_ref, g3_ref, b3_ref,
                        w4_ref, b4_ref, w5_ref, b5_ref,
                        o_ref, *, b_true, bp, oh1, ow1, num_heads, n_pad, logits):
    f32 = jnp.float32
    oh2, ow2 = oh1 // 2 - 1, ow1 // 2 - 1
    oh3, ow3 = oh2 - 2, ow2 - 2
    c1p = w1_ref.shape[1]
    c2p = w2_ref.shape[2]
    c3p = w3_ref.shape[2]
    d1t = w4_ref.shape[2]

    def row_mask(m):
        # valid iff (row % BP) < true batch size; BP is a power of two.
        rows = jax.lax.broadcasted_iota(jnp.int32, (m, 1), 0)
        return (jnp.bitwise_and(rows, bp - 1) < b_true).astype(f32)

    def bn_relu(y, gamma, beta, m_true, msk):
        # Training-mode BatchNorm (biased variance), two-pass stats with the
        # batch-pad rows masked out of the sums.  Pad rows are exactly zero on
        # entry (zero patches / masked previous layer), so the mean sum is
        # already correct; the mask keeps them out of the variance sum and
        # re-zeroes them on exit so the next layer's stats stay clean.
        inv_m = 1.0 / m_true
        mean = jnp.sum(y, axis=0, keepdims=True) * inv_m
        d = (y - mean) * msk
        var = jnp.sum(d * d, axis=0, keepdims=True) * inv_m
        y = (y - mean) * jax.lax.rsqrt(var + BN_EPS) * gamma + beta
        return jnp.maximum(y, 0.0) * msk

    # ---------------- conv1 (8x8 stride 4): patches prebuilt in the wrapper --
    m1 = oh1 * ow1 * bp
    y1 = jnp.dot(p1_ref[...], w1_ref[...], preferred_element_type=f32)
    y1 = bn_relu(y1, g1_ref[...], b1_ref[...], b_true * oh1 * ow1, row_mask(m1))

    # ---------------- conv2 (4x4 stride 2): blocked in-kernel window extract --
    # oh1 = 2*q + r  =>  output oh2 reads q in {oh2, oh2+1}; tile-preserving
    # 6-D view (qh, rh, qw, rw, batch, chan) of the (m1, c1p) value.
    m2 = oh2 * ow2 * bp
    y1v = y1.reshape(oh1 // 2, 2, ow1 // 2, 2, bp, c1p)
    y2 = jnp.zeros((m2, c2p), f32)
    for di in range(4):
        for dj in range(4):
            dqh, rh = di // 2, di % 2
            dqw, rw = dj // 2, dj % 2
            xs = y1v[dqh:dqh + oh2, rh, dqw:dqw + ow2, rw, :, :]
            xs = xs.reshape(m2, c1p)
            y2 = y2 + jnp.dot(xs, w2_ref[di * 4 + dj],
                              preferred_element_type=f32)
    y2 = bn_relu(y2, g2_ref[...], b2_ref[...], b_true * oh2 * ow2, row_mask(m2))

    # ---------------- conv3 (3x3 stride 1): shifted-window accumulation -------
    m3 = oh3 * ow3 * bp
    y2v = y2.reshape(oh2, ow2, bp, c2p)
    y3 = jnp.zeros((m3, c3p), f32)
    for di in range(3):
        for dj in range(3):
            xs = y2v[di:di + oh3, dj:dj + ow3, :, :].reshape(m3, c2p)
            y3 = y3 + jnp.dot(xs, w3_ref[di * 3 + dj],
                              preferred_element_type=f32)
    y3 = bn_relu(y3, g3_ref[...], b3_ref[...], b_true * oh3 * ow3, row_mask(m3))

    # ---------------- fc1 + ReLU (NCHW-flatten permutation baked into w4) -----
    h = jnp.zeros((bp, d1t), f32)
    for p in range(oh3 * ow3):
        h = h + jnp.dot(y3[p * bp:(p + 1) * bp, :], w4_ref[p],
                        preferred_element_type=f32)
    h = jnp.maximum(h + b4_ref[...], 0.0)

    # ---------------- fc2 (+ per-head softmax over padded 128-class lanes) ----
    z = jnp.dot(h, w5_ref[...], preferred_element_type=f32) + b5_ref[...]
    for hd in range(num_heads):
        lo = hd * n_pad
        zs = z[:, lo:lo + n_pad]
        if logits:
            o_ref[:, lo:lo + n_pad] = zs
        else:
            zm = jnp.max(zs, axis=-1, keepdims=True)
            e = jnp.exp(zs - zm)            # pad lanes: exp(-1e30 - zm) == 0
            inv = pl.reciprocal(jnp.sum(e, axis=-1, keepdims=True), approx=True)
            o_ref[:, lo:lo + n_pad] = e * inv


# ----------------------------------------------------------------------------
# One-time parameter preparation (hoisted out of the forward pass).
# All heads are merged with head-block-diagonal weights; channel dims are
# padded to multiples of 128 (zero filters, gamma=1, beta=0 -> pad channels
# stay exactly zero and carry zero downstream weights).
# ----------------------------------------------------------------------------
def prepare_params(head_params, input_hw):
    H, W = input_hw
    nh = len(head_params)
    p0 = head_params[0]
    c_in = p0["w1"].shape[1]
    c1 = p0["w1"].shape[0]
    c2 = p0["w2"].shape[0]
    c3 = p0["w3"].shape[0]
    d1 = p0["fc1_w"].shape[1]
    ncls = p0["fc2_w"].shape[1]

    assert H % 4 == 0 and W % 4 == 0, "input H/W must be multiples of 4"
    oh1, ow1 = H // 4 - 1, W // 4 - 1
    assert oh1 >= 4 and ow1 >= 4 and oh1 % 2 == 0 and ow1 % 2 == 0, (
        "fused kernel needs H, W congruent to 4 mod 8 and >= 36")
    oh2, ow2 = oh1 // 2 - 1, ow1 // 2 - 1
    assert oh2 >= 3 and ow2 >= 3, "input too small for the 3-conv stack"
    oh3, ow3 = oh2 - 2, ow2 - 2
    P = oh3 * ow3

    c1p = _round_up(nh * c1, 128)
    c2p = _round_up(nh * c2, 128)
    c3p = _round_up(nh * c3, 128)
    npad = _round_up(ncls, 128)
    f32 = jnp.float32

    w1c = jnp.zeros((64 * c_in, c1p), f32)
    g1c = jnp.ones((1, c1p), f32)
    b1c = jnp.zeros((1, c1p), f32)
    w2c = jnp.zeros((16, c1p, c2p), f32)
    g2c = jnp.ones((1, c2p), f32)
    b2c = jnp.zeros((1, c2p), f32)
    w3c = jnp.zeros((9, c2p, c3p), f32)
    g3c = jnp.ones((1, c3p), f32)
    b3c = jnp.zeros((1, c3p), f32)
    w4c = jnp.zeros((P, c3p, nh * d1), f32)
    b4c = jnp.zeros((1, nh * d1), f32)
    w5c = jnp.zeros((nh * d1, nh * npad), f32)
    b5c = jnp.full((1, nh * npad), NEG_BIG, f32)

    for h, p in enumerate(head_params):
        # conv1 rows ordered (dq_pair, r_h, r_w, cin): kh = 4*dqh + r_h,
        # kw = 4*dqw + r_w -- matches the wrapper's blocked im2col columns.
        w = p["w1"].astype(f32).reshape(c1, c_in, 2, 4, 2, 4)
        w = jnp.transpose(w, (2, 4, 3, 5, 1, 0)).reshape(64 * c_in, c1)
        w1c = w1c.at[:, h * c1:(h + 1) * c1].set(w)
        g1c = g1c.at[0, h * c1:(h + 1) * c1].set(p["g1"].astype(f32))
        b1c = b1c.at[0, h * c1:(h + 1) * c1].set(p["b1"].astype(f32))
        # conv2: per kernel-offset (cin, cout) blocks, head-block-diagonal.
        w = jnp.transpose(p["w2"].astype(f32), (2, 3, 1, 0)).reshape(16, c1, c2)
        w2c = w2c.at[:, h * c1:(h + 1) * c1, h * c2:(h + 1) * c2].set(w)
        g2c = g2c.at[0, h * c2:(h + 1) * c2].set(p["g2"].astype(f32))
        b2c = b2c.at[0, h * c2:(h + 1) * c2].set(p["b2"].astype(f32))
        # conv3
        w = jnp.transpose(p["w3"].astype(f32), (2, 3, 1, 0)).reshape(9, c2, c3)
        w3c = w3c.at[:, h * c2:(h + 1) * c2, h * c3:(h + 1) * c3].set(w)
        g3c = g3c.at[0, h * c3:(h + 1) * c3].set(p["g3"].astype(f32))
        b3c = b3c.at[0, h * c3:(h + 1) * c3].set(p["b3"].astype(f32))
        # fc1: PyTorch NCHW flatten index is c3*P + p; reorder to the kernel's
        # (spatial position, channel) layout and place head-block-diagonally.
        w = p["fc1_w"].astype(f32).reshape(c3, P, d1).transpose(1, 0, 2)
        w4c = w4c.at[:, h * c3:(h + 1) * c3, h * d1:(h + 1) * d1].set(w)
        b4c = b4c.at[0, h * d1:(h + 1) * d1].set(p["fc1_b"].astype(f32))
        # fc2: pad classes to 128 lanes per head; pad bias = NEG_BIG so the
        # in-kernel softmax assigns the pad lanes ~0 probability.
        w5c = w5c.at[h * d1:(h + 1) * d1,
                     h * npad:h * npad + ncls].set(p["fc2_w"].astype(f32))
        b5c = b5c.at[0, h * npad:h * npad + ncls].set(p["fc2_b"].astype(f32))

    arrays = dict(w1c=w1c, g1c=g1c, b1c=b1c, w2c=w2c, g2c=g2c, b2c=b2c,
                  w3c=w3c, g3c=g3c, b3c=b3c, w4c=w4c, b4c=b4c,
                  w5c=w5c, b5c=b5c)
    return PreparedMonteCNN(arrays=arrays, num_heads=nh, num_classes=ncls,
                            input_hw=(H, W))


# ----------------------------------------------------------------------------
# Jitted forward: ~10 XLA glue ops (blocked conv1 patch build) + ONE pallas_call.
# ----------------------------------------------------------------------------
@functools.partial(jax.jit, static_argnames=("num_heads", "num_classes", "logits"))
def _forward_impl(x_nchw, arrays, *, num_heads, num_classes, logits):
    b, c_in, hh, ww = x_nchw.shape
    oh1, ow1 = hh // 4 - 1, ww // 4 - 1
    oh2, ow2 = oh1 // 2 - 1, ow1 // 2 - 1
    bp = max(8, 1 << (b - 1).bit_length())            # power-of-two batch pad
    npad = arrays["w5c"].shape[1] // num_heads

    assert arrays["w4c"].shape[0] == (oh2 - 2) * (ow2 - 2), (
        "prepared params were built for a different input spatial size")
    assert arrays["w1c"].shape[0] == 64 * c_in, "input channel mismatch"

    # Blocked conv1 im2col (kernel 8 = 2 * stride 4): rows (oh1, ow1, batch),
    # columns (dq_pair, r_h, r_w, cin); only 4 contiguous slices + 1 transpose.
    x = x_nchw.astype(jnp.float32)
    xb = jnp.transpose(x, (2, 3, 0, 1))                          # (H, W, B, C)
    xb = jnp.pad(xb, ((0, 0), (0, 0), (0, bp - b), (0, 0)))      # zero pad rows
    xq = xb.reshape(hh // 4, 4, ww // 4, 4, bp, c_in)
    parts = [xq[dh:dh + oh1, :, dw:dw + ow1, :, :, :]
             for dh in (0, 1) for dw in (0, 1)]
    p1 = jnp.stack(parts, axis=0)                     # (4, oh1, 4, ow1, 4, bp, C)
    p1 = jnp.transpose(p1, (1, 3, 5, 0, 2, 4, 6))
    p1 = p1.reshape(oh1 * ow1 * bp, 64 * c_in)

    kern = functools.partial(
        _monte_fused_kernel, b_true=b, bp=bp, oh1=oh1, ow1=ow1,
        num_heads=num_heads, n_pad=npad, logits=logits)
    vmem = pl.BlockSpec(memory_space=pltpu.MemorySpace.VMEM)

    out = pl.pallas_call(
        kern,
        out_shape=jax.ShapeDtypeStruct((bp, num_heads * npad), jnp.float32),
        in_specs=[vmem] * 14,
        out_specs=vmem,
    )(p1, arrays["w1c"], arrays["g1c"], arrays["b1c"],
      arrays["w2c"], arrays["g2c"], arrays["b2c"],
      arrays["w3c"], arrays["g3c"], arrays["b3c"],
      arrays["w4c"], arrays["b4c"], arrays["w5c"], arrays["b5c"])

    out = out.reshape(bp, num_heads, npad)
    return out[:b, :, :num_classes]                   # strip batch/class padding


def monte_cnn_forward(x_nchw, prepared, logits=False):
    return _forward_impl(x_nchw, prepared.arrays,
                         num_heads=prepared.num_heads,
                         num_classes=prepared.num_classes,
                         logits=logits)


# ----------------------------------------------------------------------------
# Pure-JAX reference (correctness check only)
# ----------------------------------------------------------------------------
def _ref_head(x_nhwc, p, logits=False):
    hi = jax.lax.Precision.HIGHEST

    def cbr(x, w_pt, g, b, stride):
        w_hwio = jnp.transpose(w_pt, (2, 3, 1, 0))
        y = jax.lax.conv_general_dilated(
            x, w_hwio, (stride, stride), "VALID",
            dimension_numbers=("NHWC", "HWIO", "NHWC"), precision=hi)
        mean = jnp.mean(y, axis=(0, 1, 2), keepdims=True)
        var = jnp.mean((y - mean) ** 2, axis=(0, 1, 2), keepdims=True)
        y = (y - mean) * jax.lax.rsqrt(var + BN_EPS) * g + b
        return jnp.maximum(y, 0.0)

    h = cbr(x_nhwc, p["w1"], p["g1"], p["b1"], 4)
    h = cbr(h, p["w2"], p["g2"], p["b2"], 2)
    h = cbr(h, p["w3"], p["g3"], p["b3"], 1)
    n, oh, ow, c = h.shape
    flat = jnp.transpose(h, (0, 3, 1, 2)).reshape(n, c * oh * ow)
    h = jnp.maximum(jnp.dot(flat, p["fc1_w"], precision=hi) + p["fc1_b"], 0.0)
    y = jnp.dot(h, p["fc2_w"], precision=hi) + p["fc2_b"]
    return y if logits else jax.nn.softmax(y, axis=-1)


def _ref_forward(x_nchw, head_params, logits=False):
    x_nhwc = jnp.transpose(x_nchw, (0, 2, 3, 1))
    return jnp.stack([_ref_head(x_nhwc, p, logits) for p in head_params], axis=1)


# ----------------------------------------------------------------------------
# Deterministic parameter init (shapes from MonteCNN.__init__ with Lazy modules)
# ----------------------------------------------------------------------------
def init_head_params(key, in_channels, flat_dim, num_classes):
    ks = jax.random.split(key, 12)
    f32 = jnp.float32
    return {
        "w1": 0.05 * jax.random.normal(ks[0], (32, in_channels, 8, 8), f32),
        "g1": 1.0 + 0.1 * jax.random.normal(ks[1], (32,), f32),
        "b1": 0.1 * jax.random.normal(ks[2], (32,), f32),
        "w2": 0.05 * jax.random.normal(ks[3], (64, 32, 4, 4), f32),
        "g2": 1.0 + 0.1 * jax.random.normal(ks[4], (64,), f32),
        "b2": 0.1 * jax.random.normal(ks[5], (64,), f32),
        "w3": 0.05 * jax.random.normal(ks[6], (64, 64, 3, 3), f32),
        "g3": 1.0 + 0.1 * jax.random.normal(ks[7], (64,), f32),
        "b3": 0.1 * jax.random.normal(ks[8], (64,), f32),
        # Linear weights stored as (in, out) == PyTorch (out, in) transposed.
        "fc1_w": 0.05 * jax.random.normal(ks[9], (flat_dim, 512), f32),
        "fc1_b": 0.05 * jax.random.normal(ks[10], (512,), f32),
        "fc2_w": 0.05 * jax.random.normal(ks[11], (512, num_classes), f32),
        "fc2_b": jnp.zeros((num_classes,), f32),
    }


if __name__ == "__main__":
    def run_case(spatial):
        B, C = 2, 4
        num_classes, num_heads = 3, 2
        s1 = (spatial - 8) // 4 + 1
        s2 = (s1 - 4) // 2 + 1
        s3 = (s2 - 3) // 1 + 1
        flat_dim = 64 * s3 * s3                      # LazyLinear in_features

        root = jax.random.PRNGKey(0)
        kx, kp = jax.random.split(root)
        x = jax.random.normal(kx, (B, C, spatial, spatial), jnp.float32)
        head_params = [init_head_params(k, C, flat_dim, num_classes)
                       for k in jax.random.split(kp, num_heads)]
        prepared = prepare_params(head_params, (spatial, spatial))  # hoisted once

        for logits in (False, True):
            out = jax.block_until_ready(
                monte_cnn_forward(x, prepared, logits=logits))
            assert out.shape == (B, num_heads, num_classes), out.shape
            ref = jax.block_until_ready(
                _ref_forward(x, head_params, logits=logits))
            np.testing.assert_allclose(np.asarray(out), np.asarray(ref),
                                       rtol=2e-3, atol=2e-3)

    run_case(36)   # conv stack -> 1x1 spatial (Atari-minimal case)
    run_case(52)   # conv stack -> 3x3 spatial (general fused path)
    print("KERNEL_OK")
</pallas_src>

<mosaic_0001>
module attributes {stable_mosaic.version = 11 : i64} {
  func.func @_monte_fused_kernel(%arg0: memref<512x256xf32, #tpu.memory_space<vmem>>, %arg1: memref<256x128xf32, #tpu.memory_space<vmem>>, %arg2: memref<1x128xf32, #tpu.memory_space<vmem>>, %arg3: memref<1x128xf32, #tpu.memory_space<vmem>>, %arg4: memref<16x128x128xf32, #tpu.memory_space<vmem>>, %arg5: memref<1x128xf32, #tpu.memory_space<vmem>>, %arg6: memref<1x128xf32, #tpu.memory_space<vmem>>, %arg7: memref<9x128x128xf32, #tpu.memory_space<vmem>>, %arg8: memref<1x128xf32, #tpu.memory_space<vmem>>, %arg9: memref<1x128xf32, #tpu.memory_space<vmem>>, %arg10: memref<1x128x1024xf32, #tpu.memory_space<vmem>>, %arg11: memref<1x1024xf32, #tpu.memory_space<vmem>>, %arg12: memref<1024x256xf32, #tpu.memory_space<vmem>>, %arg13: memref<1x256xf32, #tpu.memory_space<vmem>>, %arg14: memref<8x256xf32, #tpu.memory_space<vmem>>) attributes {dimension_semantics = [], scalar_prefetch = 0 : i64, scratch_operands = 0 : i64, tpu.core_type = #tpu.core_type<tc>} {
    %c0 = arith.constant 0 : index
    %c0_0 = arith.constant 0 : index
    %0 = vector.load %arg0[%c0, %c0_0] : memref<512x256xf32, #tpu.memory_space<vmem>>, vector<512x256xf32>
    %c0_1 = arith.constant 0 : index
    %c0_2 = arith.constant 0 : index
    %1 = vector.load %arg1[%c0_1, %c0_2] : memref<256x128xf32, #tpu.memory_space<vmem>>, vector<256x128xf32>
    %cst = arith.constant dense<0.000000e+00> : vector<512x128xf32>
    %2 = tpu.matmul %0, %1, %cst {dimension_numbers = #tpu.dot_dimension_numbers<[1], [0], [0], [1], [0, 0, 1, 1], [], []>} : vector<512x256xf32>, vector<256x128xf32>, vector<512x128xf32> -> vector<512x128xf32>
    %c0_3 = arith.constant 0 : index
    %c0_4 = arith.constant 0 : index
    %3 = vector.load %arg2[%c0_3, %c0_4] : memref<1x128xf32, #tpu.memory_space<vmem>>, vector<1x128xf32>
    %c0_5 = arith.constant 0 : index
    %c0_6 = arith.constant 0 : index
    %4 = vector.load %arg3[%c0_5, %c0_6] : memref<1x128xf32, #tpu.memory_space<vmem>>, vector<1x128xf32>
    %5 = tpu.iota {dimensions = array<i32: 0>} : vector<512x1xi32>
    %c7_i32 = arith.constant 7 : i32
    %6 = vector.broadcast %c7_i32 : i32 to vector<512x1xi32>
    %7 = arith.andi %5, %6 : vector<512x1xi32>
    %c2_i32 = arith.constant 2 : i32
    %8 = vector.broadcast %c2_i32 : i32 to vector<512x1xi32>
    %9 = arith.cmpi slt, %7, %8 : vector<512x1xi32>
    %10 = arith.extui %9 : vector<512x1xi1> to vector<512x1xi32>
    %11 = arith.sitofp %10 : vector<512x1xi32> to vector<512x1xf32>
    %cst_7 = arith.constant dense<0.000000e+00> : vector<128xf32>
    %12 = vector.multi_reduction <add>, %2, %cst_7 [0] : vector<512x128xf32> to vector<128xf32>
    %13 = vector.shape_cast %12 : vector<128xf32> to vector<1x128xf32>
    %cst_8 = arith.constant 7.812500e-03 : f32
    %14 = vector.broadcast %cst_8 : f32 to vector<1x128xf32>
    %15 = arith.mulf %13, %14 : vector<1x128xf32>
    %16 = vector.broadcast %15 : vector<1x128xf32> to vector<512x128xf32>
    %17 = arith.subf %2, %16 : vector<512x128xf32>
    %18 = vector.broadcast %11 : vector<512x1xf32> to vector<512x128xf32>
    %19 = arith.mulf %17, %18 : vector<512x128xf32>
    %20 = arith.mulf %19, %19 : vector<512x128xf32>
    %cst_9 = arith.constant dense<0.000000e+00> : vector<128xf32>
    %21 = vector.multi_reduction <add>, %20, %cst_9 [0] : vector<512x128xf32> to vector<128xf32>
    %22 = vector.shape_cast %21 : vector<128xf32> to vector<1x128xf32>
    %cst_10 = arith.constant 7.812500e-03 : f32
    %23 = vector.broadcast %cst_10 : f32 to vector<1x128xf32>
    %24 = arith.mulf %22, %23 : vector<1x128xf32>
    %25 = vector.broadcast %15 : vector<1x128xf32> to vector<512x128xf32>
    %26 = arith.subf %2, %25 : vector<512x128xf32>
    %cst_11 = arith.constant 9.99999974E-6 : f32
    %27 = vector.broadcast %cst_11 : f32 to vector<1x128xf32>
    %28 = arith.addf %24, %27 : vector<1x128xf32>
    %29 = math.rsqrt %28 : vector<1x128xf32>
    %30 = vector.broadcast %29 : vector<1x128xf32> to vector<512x128xf32>
    %31 = arith.mulf %26, %30 : vector<512x128xf32>
    %32 = vector.broadcast %3 : vector<1x128xf32> to vector<512x128xf32>
    %33 = arith.mulf %31, %32 : vector<512x128xf32>
    %34 = vector.broadcast %4 : vector<1x128xf32> to vector<512x128xf32>
    %35 = arith.addf %33, %34 : vector<512x128xf32>
    %cst_12 = arith.constant 0.000000e+00 : f32
    %36 = vector.broadcast %cst_12 : f32 to vector<512x128xf32>
    %37 = arith.maximumf %35, %36 : vector<512x128xf32>
    %38 = vector.broadcast %11 : vector<512x1xf32> to vector<512x128xf32>
    %39 = arith.mulf %37, %38 : vector<512x128xf32>
    %40 = vector.shape_cast %39 : vector<512x128xf32> to vector<4x2x4x2x8x128xf32>
    %cst_13 = arith.constant 0.000000e+00 : f32
    %41 = vector.broadcast %cst_13 : f32 to vector<72x128xf32>
    %42 = vector.extract_strided_slice %40 {offsets = [0, 0, 0, 0, 0, 0], sizes = [3, 1, 3, 1, 8, 128], strides = [1, 1, 1, 1, 1, 1]} : vector<4x2x4x2x8x128xf32> to vector<3x1x3x1x8x128xf32>
    %43 = vector.shape_cast %42 : vector<3x1x3x1x8x128xf32> to vector<3x3x8x128xf32>
    %44 = vector.shape_cast %43 : vector<3x3x8x128xf32> to vector<72x128xf32>
    %c0_14 = arith.constant 0 : index
    %c0_15 = arith.constant 0 : index
    %c0_16 = arith.constant 0 : index
    %45 = vector.load %arg4[%c0_14, %c0_15, %c0_16] : memref<16x128x128xf32, #tpu.memory_space<vmem>>, vector<1x128x128xf32>
    %46 = vector.shape_cast %45 : vector<1x128x128xf32> to vector<128x128xf32>
    %cst_17 = arith.constant dense<0.000000e+00> : vector<72x128xf32>
    %47 = tpu.matmul %44, %46, %cst_17 {dimension_numbers = #tpu.dot_dimension_numbers<[1], [0], [0], [1], [0, 0, 1, 1], [], []>} : vector<72x128xf32>, vector<128x128xf32>, vector<72x128xf32> -> vector<72x128xf32>
    %48 = arith.addf %41, %47 : vector<72x128xf32>
    %49 = vector.extract_strided_slice %40 {offsets = [0, 0, 0, 1, 0, 0], sizes = [3, 1, 3, 1, 8, 128], strides = [1, 1, 1, 1, 1, 1]} : vector<4x2x4x2x8x128xf32> to vector<3x1x3x1x8x128xf32>
    %50 = vector.shape_cast %49 : vector<3x1x3x1x8x128xf32> to vector<3x3x8x128xf32>
    %51 = vector.shape_cast %50 : vector<3x3x8x128xf32> to vector<72x128xf32>
    %c1 = arith.constant 1 : index
    %c0_18 = arith.constant 0 : index
    %c0_19 = arith.constant 0 : index
    %52 = vector.load %arg4[%c1, %c0_18, %c0_19] : memref<16x128x128xf32, #tpu.memory_space<vmem>>, vector<1x128x128xf32>
    %53 = vector.shape_cast %52 : vector<1x128x128xf32> to vector<128x128xf32>
    %cst_20 = arith.constant dense<0.000000e+00> : vector<72x128xf32>
    %54 = tpu.matmul %51, %53, %cst_20 {dimension_numbers = #tpu.dot_dimension_numbers<[1], [0], [0], [1], [0, 0, 1, 1], [], []>} : vector<72x128xf32>, vector<128x128xf32>, vector<72x128xf32> -> vector<72x128xf32>
    %55 = arith.addf %48, %54 : vector<72x128xf32>
    %56 = vector.extract_strided_slice %40 {offsets = [0, 0, 1, 0, 0, 0], sizes = [3, 1, 3, 1, 8, 128], strides = [1, 1, 1, 1, 1, 1]} : vector<4x2x4x2x8x128xf32> to vector<3x1x3x1x8x128xf32>
    %57 = vector.shape_cast %56 : vector<3x1x3x1x8x128xf32> to vector<3x3x8x128xf32>
    %58 = vector.shape_cast %57 : vector<3x3x8x128xf32> to vector<72x128xf32>
    %c2 = arith.constant 2 : index
    %c0_21 = arith.constant 0 : index
    %c0_22 = arith.constant 0 : index
    %59 = vector.load %arg4[%c2, %c0_21, %c0_22] : memref<16x128x128xf32, #tpu.memory_space<vmem>>, vector<1x128x128xf32>
    %60 = vector.shape_cast %59 : vector<1x128x128xf32> to vector<128x128xf32>
    %cst_23 = arith.constant dense<0.000000e+00> : vector<72x128xf32>
    %61 = tpu.matmul %58, %60, %cst_23 {dimension_numbers = #tpu.dot_dimension_numbers<[1], [0], [0], [1], [0, 0, 1, 1], [], []>} : vector<72x128xf32>, vector<128x128xf32>, vector<72x128xf32> -> vector<72x128xf32>
    %62 = arith.addf %55, %61 : vector<72x128xf32>
    %63 = vector.extract_strided_slice %40 {offsets = [0, 0, 1, 1, 0, 0], sizes = [3, 1, 3, 1, 8, 128], strides = [1, 1, 1, 1, 1, 1]} : vector<4x2x4x2x8x128xf32> to vector<3x1x3x1x8x128xf32>
    %64 = vector.shape_cast %63 : vector<3x1x3x1x8x128xf32> to vector<3x3x8x128xf32>
    %65 = vector.shape_cast %64 : vector<3x3x8x128xf32> to vector<72x128xf32>
    %c3 = arith.constant 3 : index
    %c0_24 = arith.constant 0 : index
    %c0_25 = arith.constant 0 : index
    %66 = vector.load %arg4[%c3, %c0_24, %c0_25] : memref<16x128x128xf32, #tpu.memory_space<vmem>>, vector<1x128x128xf32>
    %67 = vector.shape_cast %66 : vector<1x128x128xf32> to vector<128x128xf32>
    %cst_26 = arith.constant dense<0.000000e+00> : vector<72x128xf32>
    %68 = tpu.matmul %65, %67, %cst_26 {dimension_numbers = #tpu.dot_dimension_numbers<[1], [0], [0], [1], [0, 0, 1, 1], [], []>} : vector<72x128xf32>, vector<128x128xf32>, vector<72x128xf32> -> vector<72x128xf32>
    %69 = arith.addf %62, %68 : vector<72x128xf32>
    %70 = vector.extract_strided_slice %40 {offsets = [0, 1, 0, 0, 0, 0], sizes = [3, 1, 3, 1, 8, 128], strides = [1, 1, 1, 1, 1, 1]} : vector<4x2x4x2x8x128xf32> to vector<3x1x3x1x8x128xf32>
    %71 = vector.shape_cast %70 : vector<3x1x3x1x8x128xf32> to vector<3x3x8x128xf32>
    %72 = vector.shape_cast %71 : vector<3x3x8x128xf32> to vector<72x128xf32>
    %c4 = arith.constant 4 : index
    %c0_27 = arith.constant 0 : index
    %c0_28 = arith.constant 0 : index
    %73 = vector.load %arg4[%c4, %c0_27, %c0_28] : memref<16x128x128xf32, #tpu.memory_space<vmem>>, vector<1x128x128xf32>
    %74 = vector.shape_cast %73 : vector<1x128x128xf32> to vector<128x128xf32>
    %cst_29 = arith.constant dense<0.000000e+00> : vector<72x128xf32>
    %75 = tpu.matmul %72, %74, %cst_29 {dimension_numbers = #tpu.dot_dimension_numbers<[1], [0], [0], [1], [0, 0, 1, 1], [], []>} : vector<72x128xf32>, vector<128x128xf32>, vector<72x128xf32> -> vector<72x128xf32>
    %76 = arith.addf %69, %75 : vector<72x128xf32>
    %77 = vector.extract_strided_slice %40 {offsets = [0, 1, 0, 1, 0, 0], sizes = [3, 1, 3, 1, 8, 128], strides = [1, 1, 1, 1, 1, 1]} : vector<4x2x4x2x8x128xf32> to vector<3x1x3x1x8x128xf32>
    %78 = vector.shape_cast %77 : vector<3x1x3x1x8x128xf32> to vector<3x3x8x128xf32>
    %79 = vector.shape_cast %78 : vector<3x3x8x128xf32> to vector<72x128xf32>
    %c5 = arith.constant 5 : index
    %c0_30 = arith.constant 0 : index
    %c0_31 = arith.constant 0 : index
    %80 = vector.load %arg4[%c5, %c0_30, %c0_31] : memref<16x128x128xf32, #tpu.memory_space<vmem>>, vector<1x128x128xf32>
    %81 = vector.shape_cast %80 : vector<1x128x128xf32> to vector<128x128xf32>
    %cst_32 = arith.constant dense<0.000000e+00> : vector<72x128xf32>
    %82 = tpu.matmul %79, %81, %cst_32 {dimension_numbers = #tpu.dot_dimension_numbers<[1], [0], [0], [1], [0, 0, 1, 1], [], []>} : vector<72x128xf32>, vector<128x128xf32>, vector<72x128xf32> -> vector<72x128xf32>
    %83 = arith.addf %76, %82 : vector<72x128xf32>
    %84 = vector.extract_strided_slice %40 {offsets = [0, 1, 1, 0, 0, 0], sizes = [3, 1, 3, 1, 8, 128], strides = [1, 1, 1, 1, 1, 1]} : vector<4x2x4x2x8x128xf32> to vector<3x1x3x1x8x128xf32>
    %85 = vector.shape_cast %84 : vector<3x1x3x1x8x128xf32> to vector<3x3x8x128xf32>
    %86 = vector.shape_cast %85 : vector<3x3x8x128xf32> to vector<72x128xf32>
    %c6 = arith.constant 6 : index
    %c0_33 = arith.constant 0 : index
    %c0_34 = arith.constant 0 : index
    %87 = vector.load %arg4[%c6, %c0_33, %c0_34] : memref<16x128x128xf32, #tpu.memory_space<vmem>>, vector<1x128x128xf32>
    %88 = vector.shape_cast %87 : vector<1x128x128xf32> to vector<128x128xf32>
    %cst_35 = arith.constant dense<0.000000e+00> : vector<72x128xf32>
    %89 = tpu.matmul %86, %88, %cst_35 {dimension_numbers = #tpu.dot_dimension_numbers<[1], [0], [0], [1], [0, 0, 1, 1], [], []>} : vector<72x128xf32>, vector<128x128xf32>, vector<72x128xf32> -> vector<72x128xf32>
    %90 = arith.addf %83, %89 : vector<72x128xf32>
    %91 = vector.extract_strided_slice %40 {offsets = [0, 1, 1, 1, 0, 0], sizes = [3, 1, 3, 1, 8, 128], strides = [1, 1, 1, 1, 1, 1]} : vector<4x2x4x2x8x128xf32> to vector<3x1x3x1x8x128xf32>
    %92 = vector.shape_cast %91 : vector<3x1x3x1x8x128xf32> to vector<3x3x8x128xf32>
    %93 = vector.shape_cast %92 : vector<3x3x8x128xf32> to vector<72x128xf32>
    %c7 = arith.constant 7 : index
    %c0_36 = arith.constant 0 : index
    %c0_37 = arith.constant 0 : index
    %94 = vector.load %arg4[%c7, %c0_36, %c0_37] : memref<16x128x128xf32, #tpu.memory_space<vmem>>, vector<1x128x128xf32>
    %95 = vector.shape_cast %94 : vector<1x128x128xf32> to vector<128x128xf32>
    %cst_38 = arith.constant dense<0.000000e+00> : vector<72x128xf32>
    %96 = tpu.matmul %93, %95, %cst_38 {dimension_numbers = #tpu.dot_dimension_numbers<[1], [0], [0], [1], [0, 0, 1, 1], [], []>} : vector<72x128xf32>, vector<128x128xf32>, vector<72x128xf32> -> vector<72x128xf32>
    %97 = arith.addf %90, %96 : vector<72x128xf32>
    %98 = vector.extract_strided_slice %40 {offsets = [1, 0, 0, 0, 0, 0], sizes = [3, 1, 3, 1, 8, 128], strides = [1, 1, 1, 1, 1, 1]} : vector<4x2x4x2x8x128xf32> to vector<3x1x3x1x8x128xf32>
    %99 = vector.shape_cast %98 : vector<3x1x3x1x8x128xf32> to vector<3x3x8x128xf32>
    %100 = vector.shape_cast %99 : vector<3x3x8x128xf32> to vector<72x128xf32>
    %c8 = arith.constant 8 : index
    %c0_39 = arith.constant 0 : index
    %c0_40 = arith.constant 0 : index
    %101 = vector.load %arg4[%c8, %c0_39, %c0_40] : memref<16x128x128xf32, #tpu.memory_space<vmem>>, vector<1x128x128xf32>
    %102 = vector.shape_cast %101 : vector<1x128x128xf32> to vector<128x128xf32>
    %cst_41 = arith.constant dense<0.000000e+00> : vector<72x128xf32>
    %103 = tpu.matmul %100, %102, %cst_41 {dimension_numbers = #tpu.dot_dimension_numbers<[1], [0], [0], [1], [0, 0, 1, 1], [], []>} : vector<72x128xf32>, vector<128x128xf32>, vector<72x128xf32> -> vector<72x128xf32>
    %104 = arith.addf %97, %103 : vector<72x128xf32>
    %105 = vector.extract_strided_slice %40 {offsets = [1, 0, 0, 1, 0, 0], sizes = [3, 1, 3, 1, 8, 128], strides = [1, 1, 1, 1, 1, 1]} : vector<4x2x4x2x8x128xf32> to vector<3x1x3x1x8x128xf32>
    %106 = vector.shape_cast %105 : vector<3x1x3x1x8x128xf32> to vector<3x3x8x128xf32>
    %107 = vector.shape_cast %106 : vector<3x3x8x128xf32> to vector<72x128xf32>
    %c9 = arith.constant 9 : index
    %c0_42 = arith.constant 0 : index
    %c0_43 = arith.constant 0 : index
    %108 = vector.load %arg4[%c9, %c0_42, %c0_43] : memref<16x128x128xf32, #tpu.memory_space<vmem>>, vector<1x128x128xf32>
    %109 = vector.shape_cast %108 : vector<1x128x128xf32> to vector<128x128xf32>
    %cst_44 = arith.constant dense<0.000000e+00> : vector<72x128xf32>
    %110 = tpu.matmul %107, %109, %cst_44 {dimension_numbers = #tpu.dot_dimension_numbers<[1], [0], [0], [1], [0, 0, 1, 1], [], []>} : vector<72x128xf32>, vector<128x128xf32>, vector<72x128xf32> -> vector<72x128xf32>
    %111 = arith.addf %104, %110 : vector<72x128xf32>
    %112 = vector.extract_strided_slice %40 {offsets = [1, 0, 1, 0, 0, 0], sizes = [3, 1, 3, 1, 8, 128], strides = [1, 1, 1, 1, 1, 1]} : vector<4x2x4x2x8x128xf32> to vector<3x1x3x1x8x128xf32>
    %113 = vector.shape_cast %112 : vector<3x1x3x1x8x128xf32> to vector<3x3x8x128xf32>
    %114 = vector.shape_cast %113 : vector<3x3x8x128xf32> to vector<72x128xf32>
    %c10 = arith.constant 10 : index
    %c0_45 = arith.constant 0 : index
    %c0_46 = arith.constant 0 : index
    %115 = vector.load %arg4[%c10, %c0_45, %c0_46] : memref<16x128x128xf32, #tpu.memory_space<vmem>>, vector<1x128x128xf32>
    %116 = vector.shape_cast %115 : vector<1x128x128xf32> to vector<128x128xf32>
    %cst_47 = arith.constant dense<0.000000e+00> : vector<72x128xf32>
    %117 = tpu.matmul %114, %116, %cst_47 {dimension_numbers = #tpu.dot_dimension_numbers<[1], [0], [0], [1], [0, 0, 1, 1], [], []>} : vector<72x128xf32>, vector<128x128xf32>, vector<72x128xf32> -> vector<72x128xf32>
    %118 = arith.addf %111, %117 : vector<72x128xf32>
    %119 = vector.extract_strided_slice %40 {offsets = [1, 0, 1, 1, 0, 0], sizes = [3, 1, 3, 1, 8, 128], strides = [1, 1, 1, 1, 1, 1]} : vector<4x2x4x2x8x128xf32> to vector<3x1x3x1x8x128xf32>
    %120 = vector.shape_cast %119 : vector<3x1x3x1x8x128xf32> to vector<3x3x8x128xf32>
    %121 = vector.shape_cast %120 : vector<3x3x8x128xf32> to vector<72x128xf32>
    %c11 = arith.constant 11 : index
    %c0_48 = arith.constant 0 : index
    %c0_49 = arith.constant 0 : index
    %122 = vector.load %arg4[%c11, %c0_48, %c0_49] : memref<16x128x128xf32, #tpu.memory_space<vmem>>, vector<1x128x128xf32>
    %123 = vector.shape_cast %122 : vector<1x128x128xf32> to vector<128x128xf32>
    %cst_50 = arith.constant dense<0.000000e+00> : vector<72x128xf32>
    %124 = tpu.matmul %121, %123, %cst_50 {dimension_numbers = #tpu.dot_dimension_numbers<[1], [0], [0], [1], [0, 0, 1, 1], [], []>} : vector<72x128xf32>, vector<128x128xf32>, vector<72x128xf32> -> vector<72x128xf32>
    %125 = arith.addf %118, %124 : vector<72x128xf32>
    %126 = vector.extract_strided_slice %40 {offsets = [1, 1, 0, 0, 0, 0], sizes = [3, 1, 3, 1, 8, 128], strides = [1, 1, 1, 1, 1, 1]} : vector<4x2x4x2x8x128xf32> to vector<3x1x3x1x8x128xf32>
    %127 = vector.shape_cast %126 : vector<3x1x3x1x8x128xf32> to vector<3x3x8x128xf32>
    %128 = vector.shape_cast %127 : vector<3x3x8x128xf32> to vector<72x128xf32>
    %c12 = arith.constant 12 : index
    %c0_51 = arith.constant 0 : index
    %c0_52 = arith.constant 0 : index
    %129 = vector.load %arg4[%c12, %c0_51, %c0_52] : memref<16x128x128xf32, #tpu.memory_space<vmem>>, vector<1x128x128xf32>
    %130 = vector.shape_cast %129 : vector<1x128x128xf32> to vector<128x128xf32>
    %cst_53 = arith.constant dense<0.000000e+00> : vector<72x128xf32>
    %131 = tpu.matmul %128, %130, %cst_53 {dimension_numbers = #tpu.dot_dimension_numbers<[1], [0], [0], [1], [0, 0, 1, 1], [], []>} : vector<72x128xf32>, vector<128x128xf32>, vector<72x128xf32> -> vector<72x128xf32>
    %132 = arith.addf %125, %131 : vector<72x128xf32>
    %133 = vector.extract_strided_slice %40 {offsets = [1, 1, 0, 1, 0, 0], sizes = [3, 1, 3, 1, 8, 128], strides = [1, 1, 1, 1, 1, 1]} : vector<4x2x4x2x8x128xf32> to vector<3x1x3x1x8x128xf32>
    %134 = vector.shape_cast %133 : vector<3x1x3x1x8x128xf32> to vector<3x3x8x128xf32>
    %135 = vector.shape_cast %134 : vector<3x3x8x128xf32> to vector<72x128xf32>
    %c13 = arith.constant 13 : index
    %c0_54 = arith.constant 0 : index
    %c0_55 = arith.constant 0 : index
    %136 = vector.load %arg4[%c13, %c0_54, %c0_55] : memref<16x128x128xf32, #tpu.memory_space<vmem>>, vector<1x128x128xf32>
    %137 = vector.shape_cast %136 : vector<1x128x128xf32> to vector<128x128xf32>
    %cst_56 = arith.constant dense<0.000000e+00> : vector<72x128xf32>
    %138 = tpu.matmul %135, %137, %cst_56 {dimension_numbers = #tpu.dot_dimension_numbers<[1], [0], [0], [1], [0, 0, 1, 1], [], []>} : vector<72x128xf32>, vector<128x128xf32>, vector<72x128xf32> -> vector<72x128xf32>
    %139 = arith.addf %132, %138 : vector<72x128xf32>
    %140 = vector.extract_strided_slice %40 {offsets = [1, 1, 1, 0, 0, 0], sizes = [3, 1, 3, 1, 8, 128], strides = [1, 1, 1, 1, 1, 1]} : vector<4x2x4x2x8x128xf32> to vector<3x1x3x1x8x128xf32>
    %141 = vector.shape_cast %140 : vector<3x1x3x1x8x128xf32> to vector<3x3x8x128xf32>
    %142 = vector.shape_cast %141 : vector<3x3x8x128xf32> to vector<72x128xf32>
    %c14 = arith.constant 14 : index
    %c0_57 = arith.constant 0 : index
    %c0_58 = arith.constant 0 : index
    %143 = vector.load %arg4[%c14, %c0_57, %c0_58] : memref<16x128x128xf32, #tpu.memory_space<vmem>>, vector<1x128x128xf32>
    %144 = vector.shape_cast %143 : vector<1x128x128xf32> to vector<128x128xf32>
    %cst_59 = arith.constant dense<0.000000e+00> : vector<72x128xf32>
    %145 = tpu.matmul %142, %144, %cst_59 {dimension_numbers = #tpu.dot_dimension_numbers<[1], [0], [0], [1], [0, 0, 1, 1], [], []>} : vector<72x128xf32>, vector<128x128xf32>, vector<72x128xf32> -> vector<72x128xf32>
    %146 = arith.addf %139, %145 : vector<72x128xf32>
    %147 = vector.extract_strided_slice %40 {offsets = [1, 1, 1, 1, 0, 0], sizes = [3, 1, 3, 1, 8, 128], strides = [1, 1, 1, 1, 1, 1]} : vector<4x2x4x2x8x128xf32> to vector<3x1x3x1x8x128xf32>
    %148 = vector.shape_cast %147 : vector<3x1x3x1x8x128xf32> to vector<3x3x8x128xf32>
    %149 = vector.shape_cast %148 : vector<3x3x8x128xf32> to vector<72x128xf32>
    %c15 = arith.constant 15 : index
    %c0_60 = arith.constant 0 : index
    %c0_61 = arith.constant 0 : index
    %150 = vector.load %arg4[%c15, %c0_60, %c0_61] : memref<16x128x128xf32, #tpu.memory_space<vmem>>, vector<1x128x128xf32>
    %151 = vector.shape_cast %150 : vector<1x128x128xf32> to vector<128x128xf32>
    %cst_62 = arith.constant dense<0.000000e+00> : vector<72x128xf32>
    %152 = tpu.matmul %149, %151, %cst_62 {dimension_numbers = #tpu.dot_dimension_numbers<[1], [0], [0], [1], [0, 0, 1, 1], [], []>} : vector<72x128xf32>, vector<128x128xf32>, vector<72x128xf32> -> vector<72x128xf32>
    %153 = arith.addf %146, %152 : vector<72x128xf32>
    %c0_63 = arith.constant 0 : index
    %c0_64 = arith.constant 0 : index
    %154 = vector.load %arg5[%c0_63, %c0_64] : memref<1x128xf32, #tpu.memory_space<vmem>>, vector<1x128xf32>
    %c0_65 = arith.constant 0 : index
    %c0_66 = arith.constant 0 : index
    %155 = vector.load %arg6[%c0_65, %c0_66] : memref<1x128xf32, #tpu.memory_space<vmem>>, vector<1x128xf32>
    %156 = tpu.iota {dimensions = array<i32: 0>} : vector<72x1xi32>
    %c7_i32_67 = arith.constant 7 : i32
    %157 = vector.broadcast %c7_i32_67 : i32 to vector<72x1xi32>
    %158 = arith.andi %156, %157 : vector<72x1xi32>
    %c2_i32_68 = arith.constant 2 : i32
    %159 = vector.broadcast %c2_i32_68 : i32 to vector<72x1xi32>
    %160 = arith.cmpi slt, %158, %159 : vector<72x1xi32>
    %161 = arith.extui %160 : vector<72x1xi1> to vector<72x1xi32>
    %162 = arith.sitofp %161 : vector<72x1xi32> to vector<72x1xf32>
    %cst_69 = arith.constant dense<0.000000e+00> : vector<128xf32>
    %163 = vector.multi_reduction <add>, %153, %cst_69 [0] : vector<72x128xf32> to vector<128xf32>
    %164 = vector.shape_cast %163 : vector<128xf32> to vector<1x128xf32>
    %cst_70 = arith.constant 0.055555556 : f32
    %165 = vector.broadcast %cst_70 : f32 to vector<1x128xf32>
    %166 = arith.mulf %164, %165 : vector<1x128xf32>
    %167 = vector.broadcast %166 : vector<1x128xf32> to vector<72x128xf32>
    %168 = arith.subf %153, %167 : vector<72x128xf32>
    %169 = vector.broadcast %162 : vector<72x1xf32> to vector<72x128xf32>
    %170 = arith.mulf %168, %169 : vector<72x128xf32>
    %171 = arith.mulf %170, %170 : vector<72x128xf32>
    %cst_71 = arith.constant dense<0.000000e+00> : vector<128xf32>
    %172 = vector.multi_reduction <add>, %171, %cst_71 [0] : vector<72x128xf32> to vector<128xf32>
    %173 = vector.shape_cast %172 : vector<128xf32> to vector<1x128xf32>
    %cst_72 = arith.constant 0.055555556 : f32
    %174 = vector.broadcast %cst_72 : f32 to vector<1x128xf32>
    %175 = arith.mulf %173, %174 : vector<1x128xf32>
    %176 = vector.broadcast %166 : vector<1x128xf32> to vector<72x128xf32>
    %177 = arith.subf %153, %176 : vector<72x128xf32>
    %cst_73 = arith.constant 9.99999974E-6 : f32
    %178 = vector.broadcast %cst_73 : f32 to vector<1x128xf32>
    %179 = arith.addf %175, %178 : vector<1x128xf32>
    %180 = math.rsqrt %179 : vector<1x128xf32>
    %181 = vector.broadcast %180 : vector<1x128xf32> to vector<72x128xf32>
    %182 = arith.mulf %177, %181 : vector<72x128xf32>
    %183 = vector.broadcast %154 : vector<1x128xf32> to vector<72x128xf32>
    %184 = arith.mulf %182, %183 : vector<72x128xf32>
    %185 = vector.broadcast %155 : vector<1x128xf32> to vector<72x128xf32>
    %186 = arith.addf %184, %185 : vector<72x128xf32>
    %cst_74 = arith.constant 0.000000e+00 : f32
    %187 = vector.broadcast %cst_74 : f32 to vector<72x128xf32>
    %188 = arith.maximumf %186, %187 : vector<72x128xf32>
    %189 = vector.broadcast %162 : vector<72x1xf32> to vector<72x128xf32>
    %190 = arith.mulf %188, %189 : vector<72x128xf32>
    %191 = vector.shape_cast %190 : vector<72x128xf32> to vector<3x3x8x128xf32>
    %cst_75 = arith.constant 0.000000e+00 : f32
    %192 = vector.broadcast %cst_75 : f32 to vector<8x128xf32>
    %193 = vector.extract_strided_slice %191 {offsets = [0, 0, 0, 0], sizes = [1, 1, 8, 128], strides = [1, 1, 1, 1]} : vector<3x3x8x128xf32> to vector<1x1x8x128xf32>
    %194 = vector.shape_cast %193 : vector<1x1x8x128xf32> to vector<8x128xf32>
    %c0_76 = arith.constant 0 : index
    %c0_77 = arith.constant 0 : index
    %c0_78 = arith.constant 0 : index
    %195 = vector.load %arg7[%c0_76, %c0_77, %c0_78] : memref<9x128x128xf32, #tpu.memory_space<vmem>>, vector<1x128x128xf32>
    %196 = vector.shape_cast %195 : vector<1x128x128xf32> to vector<128x128xf32>
    %cst_79 = arith.constant dense<0.000000e+00> : vector<8x128xf32>
    %197 = tpu.matmul %194, %196, %cst_79 {dimension_numbers = #tpu.dot_dimension_numbers<[1], [0], [0], [1], [0, 0, 1, 1], [], []>} : vector<8x128xf32>, vector<128x128xf32>, vector<8x128xf32> -> vector<8x128xf32>
    %198 = arith.addf %192, %197 : vector<8x128xf32>
    %199 = vector.extract_strided_slice %191 {offsets = [0, 1, 0, 0], sizes = [1, 1, 8, 128], strides = [1, 1, 1, 1]} : vector<3x3x8x128xf32> to vector<1x1x8x128xf32>
    %200 = vector.shape_cast %199 : vector<1x1x8x128xf32> to vector<8x128xf32>
    %c1_80 = arith.constant 1 : index
    %c0_81 = arith.constant 0 : index
    %c0_82 = arith.constant 0 : index
    %201 = vector.load %arg7[%c1_80, %c0_81, %c0_82] : memref<9x128x128xf32, #tpu.memory_space<vmem>>, vector<1x128x128xf32>
    %202 = vector.shape_cast %201 : vector<1x128x128xf32> to vector<128x128xf32>
    %cst_83 = arith.constant dense<0.000000e+00> : vector<8x128xf32>
    %203 = tpu.matmul %200, %202, %cst_83 {dimension_numbers = #tpu.dot_dimension_numbers<[1], [0], [0], [1], [0, 0, 1, 1], [], []>} : vector<8x128xf32>, vector<128x128xf32>, vector<8x128xf32> -> vector<8x128xf32>
    %204 = arith.addf %198, %203 : vector<8x128xf32>
    %205 = vector.extract_strided_slice %191 {offsets = [0, 2, 0, 0], sizes = [1, 1, 8, 128], strides = [1, 1, 1, 1]} : vector<3x3x8x128xf32> to vector<1x1x8x128xf32>
    %206 = vector.shape_cast %205 : vector<1x1x8x128xf32> to vector<8x128xf32>
    %c2_84 = arith.constant 2 : index
    %c0_85 = arith.constant 0 : index
    %c0_86 = arith.constant 0 : index
    %207 = vector.load %arg7[%c2_84, %c0_85, %c0_86] : memref<9x128x128xf32, #tpu.memory_space<vmem>>, vector<1x128x128xf32>
    %208 = vector.shape_cast %207 : vector<1x128x128xf32> to vector<128x128xf32>
    %cst_87 = arith.constant dense<0.000000e+00> : vector<8x128xf32>
    %209 = tpu.matmul %206, %208, %cst_87 {dimension_numbers = #tpu.dot_dimension_numbers<[1], [0], [0], [1], [0, 0, 1, 1], [], []>} : vector<8x128xf32>, vector<128x128xf32>, vector<8x128xf32> -> vector<8x128xf32>
    %210 = arith.addf %204, %209 : vector<8x128xf32>
    %211 = vector.extract_strided_slice %191 {offsets = [1, 0, 0, 0], sizes = [1, 1, 8, 128], strides = [1, 1, 1, 1]} : vector<3x3x8x128xf32> to vector<1x1x8x128xf32>
    %212 = vector.shape_cast %211 : vector<1x1x8x128xf32> to vector<8x128xf32>
    %c3_88 = arith.constant 3 : index
    %c0_89 = arith.constant 0 : index
    %c0_90 = arith.constant 0 : index
    %213 = vector.load %arg7[%c3_88, %c0_89, %c0_90] : memref<9x128x128xf32, #tpu.memory_space<vmem>>, vector<1x128x128xf32>
    %214 = vector.shape_cast %213 : vector<1x128x128xf32> to vector<128x128xf32>
    %cst_91 = arith.constant dense<0.000000e+00> : vector<8x128xf32>
    %215 = tpu.matmul %212, %214, %cst_91 {dimension_numbers = #tpu.dot_dimension_numbers<[1], [0], [0], [1], [0, 0, 1, 1], [], []>} : vector<8x128xf32>, vector<128x128xf32>, vector<8x128xf32> -> vector<8x128xf32>
    %216 = arith.addf %210, %215 : vector<8x128xf32>
    %217 = vector.extract_strided_slice %191 {offsets = [1, 1, 0, 0], sizes = [1, 1, 8, 128], strides = [1, 1, 1, 1]} : vector<3x3x8x128xf32> to vector<1x1x8x128xf32>
    %218 = vector.shape_cast %217 : vector<1x1x8x128xf32> to vector<8x128xf32>
    %c4_92 = arith.constant 4 : index
    %c0_93 = arith.constant 0 : index
    %c0_94 = arith.constant 0 : index
    %219 = vector.load %arg7[%c4_92, %c0_93, %c0_94] : memref<9x128x128xf32, #tpu.memory_space<vmem>>, vector<1x128x128xf32>
    %220 = vector.shape_cast %219 : vector<1x128x128xf32> to vector<128x128xf32>
    %cst_95 = arith.constant dense<0.000000e+00> : vector<8x128xf32>
    %221 = tpu.matmul %218, %220, %cst_95 {dimension_numbers = #tpu.dot_dimension_numbers<[1], [0], [0], [1], [0, 0, 1, 1], [], []>} : vector<8x128xf32>, vector<128x128xf32>, vector<8x128xf32> -> vector<8x128xf32>
    %222 = arith.addf %216, %221 : vector<8x128xf32>
    %223 = vector.extract_strided_slice %191 {offsets = [1, 2, 0, 0], sizes = [1, 1, 8, 128], strides = [1, 1, 1, 1]} : vector<3x3x8x128xf32> to vector<1x1x8x128xf32>
    %224 = vector.shape_cast %223 : vector<1x1x8x128xf32> to vector<8x128xf32>
    %c5_96 = arith.constant 5 : index
    %c0_97 = arith.constant 0 : index
    %c0_98 = arith.constant 0 : index
    %225 = vector.load %arg7[%c5_96, %c0_97, %c0_98] : memref<9x128x128xf32, #tpu.memory_space<vmem>>, vector<1x128x128xf32>
    %226 = vector.shape_cast %225 : vector<1x128x128xf32> to vector<128x128xf32>
    %cst_99 = arith.constant dense<0.000000e+00> : vector<8x128xf32>
    %227 = tpu.matmul %224, %226, %cst_99 {dimension_numbers = #tpu.dot_dimension_numbers<[1], [0], [0], [1], [0, 0, 1, 1], [], []>} : vector<8x128xf32>, vector<128x128xf32>, vector<8x128xf32> -> vector<8x128xf32>
    %228 = arith.addf %222, %227 : vector<8x128xf32>
    %229 = vector.extract_strided_slice %191 {offsets = [2, 0, 0, 0], sizes = [1, 1, 8, 128], strides = [1, 1, 1, 1]} : vector<3x3x8x128xf32> to vector<1x1x8x128xf32>
    %230 = vector.shape_cast %229 : vector<1x1x8x128xf32> to vector<8x128xf32>
    %c6_100 = arith.constant 6 : index
    %c0_101 = arith.constant 0 : index
    %c0_102 = arith.constant 0 : index
    %231 = vector.load %arg7[%c6_100, %c0_101, %c0_102] : memref<9x128x128xf32, #tpu.memory_space<vmem>>, vector<1x128x128xf32>
    %232 = vector.shape_cast %231 : vector<1x128x128xf32> to vector<128x128xf32>
    %cst_103 = arith.constant dense<0.000000e+00> : vector<8x128xf32>
    %233 = tpu.matmul %230, %232, %cst_103 {dimension_numbers = #tpu.dot_dimension_numbers<[1], [0], [0], [1], [0, 0, 1, 1], [], []>} : vector<8x128xf32>, vector<128x128xf32>, vector<8x128xf32> -> vector<8x128xf32>
    %234 = arith.addf %228, %233 : vector<8x128xf32>
    %235 = vector.extract_strided_slice %191 {offsets = [2, 1, 0, 0], sizes = [1, 1, 8, 128], strides = [1, 1, 1, 1]} : vector<3x3x8x128xf32> to vector<1x1x8x128xf32>
    %236 = vector.shape_cast %235 : vector<1x1x8x128xf32> to vector<8x128xf32>
    %c7_104 = arith.constant 7 : index
    %c0_105 = arith.constant 0 : index
    %c0_106 = arith.constant 0 : index
    %237 = vector.load %arg7[%c7_104, %c0_105, %c0_106] : memref<9x128x128xf32, #tpu.memory_space<vmem>>, vector<1x128x128xf32>
    %238 = vector.shape_cast %237 : vector<1x128x128xf32> to vector<128x128xf32>
    %cst_107 = arith.constant dense<0.000000e+00> : vector<8x128xf32>
    %239 = tpu.matmul %236, %238, %cst_107 {dimension_numbers = #tpu.dot_dimension_numbers<[1], [0], [0], [1], [0, 0, 1, 1], [], []>} : vector<8x128xf32>, vector<128x128xf32>, vector<8x128xf32> -> vector<8x128xf32>
    %240 = arith.addf %234, %239 : vector<8x128xf32>
    %241 = vector.extract_strided_slice %191 {offsets = [2, 2, 0, 0], sizes = [1, 1, 8, 128], strides = [1, 1, 1, 1]} : vector<3x3x8x128xf32> to vector<1x1x8x128xf32>
    %242 = vector.shape_cast %241 : vector<1x1x8x128xf32> to vector<8x128xf32>
    %c8_108 = arith.constant 8 : index
    %c0_109 = arith.constant 0 : index
    %c0_110 = arith.constant 0 : index
    %243 = vector.load %arg7[%c8_108, %c0_109, %c0_110] : memref<9x128x128xf32, #tpu.memory_space<vmem>>, vector<1x128x128xf32>
    %244 = vector.shape_cast %243 : vector<1x128x128xf32> to vector<128x128xf32>
    %cst_111 = arith.constant dense<0.000000e+00> : vector<8x128xf32>
    %245 = tpu.matmul %242, %244, %cst_111 {dimension_numbers = #tpu.dot_dimension_numbers<[1], [0], [0], [1], [0, 0, 1, 1], [], []>} : vector<8x128xf32>, vector<128x128xf32>, vector<8x128xf32> -> vector<8x128xf32>
    %246 = arith.addf %240, %245 : vector<8x128xf32>
    %c0_112 = arith.constant 0 : index
    %c0_113 = arith.constant 0 : index
    %247 = vector.load %arg8[%c0_112, %c0_113] : memref<1x128xf32, #tpu.memory_space<vmem>>, vector<1x128xf32>
    %c0_114 = arith.constant 0 : index
    %c0_115 = arith.constant 0 : index
    %248 = vector.load %arg9[%c0_114, %c0_115] : memref<1x128xf32, #tpu.memory_space<vmem>>, vector<1x128xf32>
    %249 = tpu.iota {dimensions = array<i32: 0>} : vector<8x1xi32>
    %c7_i32_116 = arith.constant 7 : i32
    %250 = vector.broadcast %c7_i32_116 : i32 to vector<8x1xi32>
    %251 = arith.andi %249, %250 : vector<8x1xi32>
    %c2_i32_117 = arith.constant 2 : i32
    %252 = vector.broadcast %c2_i32_117 : i32 to vector<8x1xi32>
    %253 = arith.cmpi slt, %251, %252 : vector<8x1xi32>
    %254 = arith.extui %253 : vector<8x1xi1> to vector<8x1xi32>
    %255 = arith.sitofp %254 : vector<8x1xi32> to vector<8x1xf32>
    %cst_118 = arith.constant dense<0.000000e+00> : vector<128xf32>
    %256 = vector.multi_reduction <add>, %246, %cst_118 [0] : vector<8x128xf32> to vector<128xf32>
    %257 = vector.shape_cast %256 : vector<128xf32> to vector<1x128xf32>
    %cst_119 = arith.constant 5.000000e-01 : f32
    %258 = vector.broadcast %cst_119 : f32 to vector<1x128xf32>
    %259 = arith.mulf %257, %258 : vector<1x128xf32>
    %260 = vector.broadcast %259 : vector<1x128xf32> to vector<8x128xf32>
    %261 = arith.subf %246, %260 : vector<8x128xf32>
    %262 = vector.broadcast %255 : vector<8x1xf32> to vector<8x128xf32>
    %263 = arith.mulf %261, %262 : vector<8x128xf32>
    %264 = arith.mulf %263, %263 : vector<8x128xf32>
    %cst_120 = arith.constant dense<0.000000e+00> : vector<128xf32>
    %265 = vector.multi_reduction <add>, %264, %cst_120 [0] : vector<8x128xf32> to vector<128xf32>
    %266 = vector.shape_cast %265 : vector<128xf32> to vector<1x128xf32>
    %cst_121 = arith.constant 5.000000e-01 : f32
    %267 = vector.broadcast %cst_121 : f32 to vector<1x128xf32>
    %268 = arith.mulf %266, %267 : vector<1x128xf32>
    %269 = vector.broadcast %259 : vector<1x128xf32> to vector<8x128xf32>
    %270 = arith.subf %246, %269 : vector<8x128xf32>
    %cst_122 = arith.constant 9.99999974E-6 : f32
    %271 = vector.broadcast %cst_122 : f32 to vector<1x128xf32>
    %272 = arith.addf %268, %271 : vector<1x128xf32>
    %273 = math.rsqrt %272 : vector<1x128xf32>
    %274 = vector.broadcast %273 : vector<1x128xf32> to vector<8x128xf32>
    %275 = arith.mulf %270, %274 : vector<8x128xf32>
    %276 = vector.broadcast %247 : vector<1x128xf32> to vector<8x128xf32>
    %277 = arith.mulf %275, %276 : vector<8x128xf32>
    %278 = vector.broadcast %248 : vector<1x128xf32> to vector<8x128xf32>
    %279 = arith.addf %277, %278 : vector<8x128xf32>
    %cst_123 = arith.constant 0.000000e+00 : f32
    %280 = vector.broadcast %cst_123 : f32 to vector<8x128xf32>
    %281 = arith.maximumf %279, %280 : vector<8x128xf32>
    %282 = vector.broadcast %255 : vector<8x1xf32> to vector<8x128xf32>
    %283 = arith.mulf %281, %282 : vector<8x128xf32>
    %cst_124 = arith.constant 0.000000e+00 : f32
    %284 = vector.broadcast %cst_124 : f32 to vector<8x1024xf32>
    %c0_125 = arith.constant 0 : index
    %c0_126 = arith.constant 0 : index
    %c0_127 = arith.constant 0 : index
    %285 = vector.load %arg10[%c0_125, %c0_126, %c0_127] : memref<1x128x1024xf32, #tpu.memory_space<vmem>>, vector<1x128x1024xf32>
    %286 = vector.shape_cast %285 : vector<1x128x1024xf32> to vector<128x1024xf32>
    %cst_128 = arith.constant dense<0.000000e+00> : vector<8x1024xf32>
    %287 = tpu.matmul %283, %286, %cst_128 {dimension_numbers = #tpu.dot_dimension_numbers<[1], [0], [0], [1], [0, 0, 1, 1], [], []>} : vector<8x128xf32>, vector<128x1024xf32>, vector<8x1024xf32> -> vector<8x1024xf32>
    %288 = arith.addf %284, %287 : vector<8x1024xf32>
    %c0_129 = arith.constant 0 : index
    %c0_130 = arith.constant 0 : index
    %289 = vector.load %arg11[%c0_129, %c0_130] : memref<1x1024xf32, #tpu.memory_space<vmem>>, vector<1x1024xf32>
    %290 = vector.broadcast %289 : vector<1x1024xf32> to vector<8x1024xf32>
    %291 = arith.addf %288, %290 : vector<8x1024xf32>
    %cst_131 = arith.constant 0.000000e+00 : f32
    %292 = vector.broadcast %cst_131 : f32 to vector<8x1024xf32>
    %293 = arith.maximumf %291, %292 : vector<8x1024xf32>
    %c0_132 = arith.constant 0 : index
    %c0_133 = arith.constant 0 : index
    %294 = vector.load %arg12[%c0_132, %c0_133] : memref<1024x256xf32, #tpu.memory_space<vmem>>, vector<1024x256xf32>
    %cst_134 = arith.constant dense<0.000000e+00> : vector<8x256xf32>
    %295 = tpu.matmul %293, %294, %cst_134 {dimension_numbers = #tpu.dot_dimension_numbers<[1], [0], [0], [1], [0, 0, 1, 1], [], []>} : vector<8x1024xf32>, vector<1024x256xf32>, vector<8x256xf32> -> vector<8x256xf32>
    %c0_135 = arith.constant 0 : index
    %c0_136 = arith.constant 0 : index
    %296 = vector.load %arg13[%c0_135, %c0_136] : memref<1x256xf32, #tpu.memory_space<vmem>>, vector<1x256xf32>
    %297 = vector.broadcast %296 : vector<1x256xf32> to vector<8x256xf32>
    %298 = arith.addf %295, %297 : vector<8x256xf32>
    %299 = vector.extract_strided_slice %298 {offsets = [0, 0], sizes = [8, 128], strides = [1, 1]} : vector<8x256xf32> to vector<8x128xf32>
    %cst_137 = arith.constant dense<0xFF800000> : vector<8xf32>
    %300 = vector.multi_reduction <maximumf>, %299, %cst_137 [1] : vector<8x128xf32> to vector<8xf32>
    %301 = vector.shape_cast %300 : vector<8xf32> to vector<8x1xf32>
    %302 = vector.broadcast %301 : vector<8x1xf32> to vector<8x128xf32>
    %303 = arith.subf %299, %302 : vector<8x128xf32>
    %304 = math.exp %303 : vector<8x128xf32>
    %cst_138 = arith.constant dense<0.000000e+00> : vector<8xf32>
    %305 = vector.multi_reduction <add>, %304, %cst_138 [1] : vector<8x128xf32> to vector<8xf32>
    %306 = vector.shape_cast %305 : vector<8xf32> to vector<8x1xf32>
    %307 = tpu.reciprocal %306 {approx = true} : vector<8x1xf32> -> vector<8x1xf32>
    %308 = vector.broadcast %307 : vector<8x1xf32> to vector<8x128xf32>
    %309 = arith.mulf %304, %308 : vector<8x128xf32>
    %c0_139 = arith.constant 0 : index
    %c0_140 = arith.constant 0 : index
    %310 = vector.load %arg14[%c0_139, %c0_140] : memref<8x256xf32, #tpu.memory_space<vmem>>, vector<8x128xf32>
    tpu.vector_store %arg14[%c0_139, %c0_140], %309 {strides = array<i32>} : memref<8x256xf32, #tpu.memory_space<vmem>>, vector<8x128xf32>,
    %311 = vector.extract_strided_slice %298 {offsets = [0, 128], sizes = [8, 128], strides = [1, 1]} : vector<8x256xf32> to vector<8x128xf32>
    %cst_141 = arith.constant dense<0xFF800000> : vector<8xf32>
    %312 = vector.multi_reduction <maximumf>, %311, %cst_141 [1] : vector<8x128xf32> to vector<8xf32>
    %313 = vector.shape_cast %312 : vector<8xf32> to vector<8x1xf32>
    %314 = vector.broadcast %313 : vector<8x1xf32> to vector<8x128xf32>
    %315 = arith.subf %311, %314 : vector<8x128xf32>
    %316 = math.exp %315 : vector<8x128xf32>
    %cst_142 = arith.constant dense<0.000000e+00> : vector<8xf32>
    %317 = vector.multi_reduction <add>, %316, %cst_142 [1] : vector<8x128xf32> to vector<8xf32>
    %318 = vector.shape_cast %317 : vector<8xf32> to vector<8x1xf32>
    %319 = tpu.reciprocal %318 {approx = true} : vector<8x1xf32> -> vector<8x1xf32>
    %320 = vector.broadcast %319 : vector<8x1xf32> to vector<8x128xf32>
    %321 = arith.mulf %316, %320 : vector<8x128xf32>
    %c0_143 = arith.constant 0 : index
    %c128 = arith.constant 128 : index
    %322 = vector.load %arg14[%c0_143, %c128] : memref<8x256xf32, #tpu.memory_space<vmem>>, vector<8x128xf32>
    tpu.vector_store %arg14[%c0_143, %c128], %321 {strides = array<i32>} : memref<8x256xf32, #tpu.memory_space<vmem>>, vector<8x128xf32>,
    return
  }
}

</mosaic_0001>

<bundles_post_ra>
// kernel: _forward_impl.1
= control target key start
LH: loop header
LB: loop body
LE: loop exit
PB: predicated region body
PF: predicated region fallthrough
CT: control target
= control target key end

     0   :  { %v14690_v0 = vmov 0.0|0.0   ;;  %s14675_s1 = inlined_call_operand.vmem [shape: f32[256,128], index: 1, kind: input, shape index: {}]   ;;  %s14676_s0 = inlined_call_operand.vmem [shape: f32[512,256], index: 0, kind: input, shape index: {}]   ;;  %s14677_s4 = inlined_call_operand.vmem [shape: f32[16,128,128], index: 4, kind: input, shape index: {}]   ;;  %s14678_s2 = inlined_call_operand.vmem [shape: f32[1,128], index: 2, kind: input, shape index: {}]   ;;  %s14679_s3 = inlined_call_operand.vmem [shape: f32[1,128], index: 3, kind: input, shape index: {}]   ;;  %s14680_s7 = inlined_call_operand.vmem [shape: f32[9,128,128], index: 7, kind: input, shape index: {}]   ;;  %s14681_s5 = inlined_call_operand.vmem [shape: f32[1,128], index: 5, kind: input, shape index: {}]   ;;  %s14682_s6 = inlined_call_operand.vmem [shape: f32[1,128], index: 6, kind: input, shape index: {}]   ;;  %s14683_s10 = inlined_call_operand.vmem [shape: f32[1,128,1024], index: 10, kind: input, shape index: {}]   ;;  %s14684_s8 = inlined_call_operand.vmem [shape: f32[1,128], index: 8, kind: input, shape index: {}]   ;;  %s14685_s9 = inlined_call_operand.vmem [shape: f32[1,128], index: 9, kind: input, shape index: {}]   ;;  %s14686_s12 = inlined_call_operand.vmem [shape: f32[1024,256], index: 12, kind: input, shape index: {}]   ;;  %s14687_s11 = inlined_call_operand.vmem [shape: f32[1,1024], index: 11, kind: input, shape index: {}]   ;;  %s14688_s13 = inlined_call_operand.vmem [shape: f32[1,256], index: 13, kind: input, shape index: {}]   ;;  %s14689_s14 = inlined_call_operand.vmem [shape: f32[8,256], index: 14, kind: output, shape index: {}]  }
   0x1   :  { %7971 = vmatprep.subr.bf16.mxu0 %v14690_v0  ;;  %v175_v1 = vld [vmem:[%s14675_s1] sm:$0xff]  ;;  %v176_v2 = vld [vmem:[%s14675_s1 + $0x8] sm:$0xff]  ;;  %v177_v3 = vld [vmem:[%s14675_s1 + $0x10] sm:$0xff]  ;;  %9003 = vmatprep.subr.bf16.mxu1 %v14690_v0 }
   0x2   :  { %v7972_v4 = vpack.c.bf16 %v176_v2, %v175_v1  ;;  %v178_v5 = vld [vmem:[%s14675_s1 + $0x18] sm:$0xff]  ;;  %v179_v7 = vld [vmem:[%s14675_s1 + $0x20] sm:$0xff]  ;;  %v180_v8 = vld [vmem:[%s14675_s1 + $0x28] sm:$0xff] }
   0x3   :  { %v7975_v6 = vpack.c.bf16 %v178_v5, %v177_v3  ;;  %v7978_v9 = vpack.c.bf16 %v180_v8, %v179_v7  ;;  %v181_v10 = vld [vmem:[%s14675_s1 + $0x30] sm:$0xff]  ;;  %v182_v11 = vld [vmem:[%s14675_s1 + $0x38] sm:$0xff]  ;;  %v48_v12 = vld [vmem:[%s14676_s0 + $0x8] sm:$0xff] }
   0x4   :  { %7973 = vmatpush1.bf16.msra.mxu0 %v7972_v4  ;;  %9019 = vmatpush1.bf16.msra.mxu1 %v7972_v4  ;;  %v7981_v13 = vpack.c.bf16 %v182_v11, %v181_v10  ;;  %v183_v14 = vld [vmem:[%s14675_s1 + $0x40] sm:$0xff]  ;;  %v184_v15 = vld [vmem:[%s14675_s1 + $0x48] sm:$0xff]  ;;  %v185_v17 = vld [vmem:[%s14675_s1 + $0x50] sm:$0xff] }
   0x5   :  { %7974 = vmatprep.subr.bf16.mxu0 %v14690_v0  ;;  %9004 = vmatprep.subr.bf16.mxu1 %v14690_v0  ;;  %v7984_v16 = vpack.c.bf16 %v184_v15, %v183_v14  ;;  %v186_v18 = vld [vmem:[%s14675_s1 + $0x58] sm:$0xff]  ;;  %v187_v20 = vld [vmem:[%s14675_s1 + $0x60] sm:$0xff]  ;;  %v188_v21 = vld [vmem:[%s14675_s1 + $0x68] sm:$0xff] }
   0x6   :  { %271 = vmatprep.mubr.f32.mxu0 %v48_v12  ;;  %v7987_v19 = vpack.c.bf16 %v186_v18, %v185_v17  ;;  %v7990_v22 = vpack.c.bf16 %v188_v21, %v187_v20  ;;  %v189_v23 = vld [vmem:[%s14675_s1 + $0x70] sm:$0xff]  ;;  %v190_v24 = vld [vmem:[%s14675_s1 + $0x78] sm:$0xff]  ;;  %v120_v25 = vld [vmem:[%s14676_s0 + $0x248] sm:$0xff] }
   0x7   :  { %451 = vmatprep.mubr.f32.mxu1 %v120_v25  ;;  %v7993_v26 = vpack.c.bf16 %v190_v24, %v189_v23  ;;  %v191_v27 = vld [vmem:[%s14675_s1 + $0x80] sm:$0xff]  ;;  %v192_v28 = vld [vmem:[%s14675_s1 + $0x88] sm:$0xff]  ;;  %v193_v30 = vld [vmem:[%s14675_s1 + $0x90] sm:$0xff] }
   0x8   :  { %7976 = vmatpush1.bf16.msra.mxu0 %v7975_v6  ;;  %9020 = vmatpush1.bf16.msra.mxu1 %v7975_v6  ;;  %v7996_v29 = vpack.c.bf16 %v192_v28, %v191_v27  ;;  %v194_v31 = vld [vmem:[%s14675_s1 + $0x98] sm:$0xff]  ;;  %v195_v33 = vld [vmem:[%s14675_s1 + $0xa0] sm:$0xff]  ;;  %v196_v34 = vld [vmem:[%s14675_s1 + $0xa8] sm:$0xff] }
   0x9   :  { %7977 = vmatprep.subr.bf16.mxu0 %v14690_v0  ;;  %9005 = vmatprep.subr.bf16.mxu1 %v14690_v0  ;;  %v7999_v32 = vpack.c.bf16 %v194_v31, %v193_v30  ;;  %v8002_v35 = vpack.c.bf16 %v196_v34, %v195_v33  ;;  %v197_v36 = vld [vmem:[%s14675_s1 + $0xb0] sm:$0xff]  ;;  %v198_v37 = vld [vmem:[%s14675_s1 + $0xb8] sm:$0xff]  ;;  %v199_v39 = vld [vmem:[%s14675_s1 + $0xc0] sm:$0xff] }
   0xa   :  { %v8005_v38 = vpack.c.bf16 %v198_v37, %v197_v36  ;;  %v200_v40 = vld [vmem:[%s14675_s1 + $0xc8] sm:$0xff]  ;;  %v201_v42 = vld [vmem:[%s14675_s1 + $0xd0] sm:$0xff]  ;;  %v202_v43 = vld [vmem:[%s14675_s1 + $0xd8] sm:$0xff] }
   0xb   :  { %v8008_v41 = vpack.c.bf16 %v200_v40, %v199_v39  ;;  %v8011_v44 = vpack.c.bf16 %v202_v43, %v201_v42  ;;  %v203_v45 = vld [vmem:[%s14675_s1 + $0xe0] sm:$0xff]  ;;  %v204_v46 = vld [vmem:[%s14675_s1 + $0xe8] sm:$0xff]  ;;  %v205_v48 = vld [vmem:[%s14675_s1 + $0xf0] sm:$0xff] }
   0xc   :  { %7979 = vmatpush1.bf16.msra.mxu0 %v7978_v9  ;;  %9021 = vmatpush1.bf16.msra.mxu1 %v7978_v9  ;;  %v8014_v47 = vpack.c.bf16 %v204_v46, %v203_v45  ;;  %v206_v49 = vld [vmem:[%s14675_s1 + $0xf8] sm:$0xff]  ;;  %v47_v51 = vld [vmem:[%s14676_s0] sm:$0xff]  ;;  %v49_v55 = vld [vmem:[%s14676_s0 + $0x10] sm:$0xff] }
   0xd   :  { %7980 = vmatprep.subr.bf16.mxu0 %v14690_v0  ;;  %9006 = vmatprep.subr.bf16.mxu1 %v14690_v0  ;;  %v8017_v50 = vpack.c.bf16 %v206_v49, %v205_v48  ;;  %v50_v52 = vld [vmem:[%s14676_s0 + $0x18] sm:$0xff]  ;;  %v119_v53 = vld [vmem:[%s14676_s0 + $0x240] sm:$0xff]  ;;  %v52_v56 = vld [vmem:[%s14676_s0 + $0x28] sm:$0xff] }
   0xe   :  { %v122_v54 = vld [vmem:[%s14676_s0 + $0x258] sm:$0xff]  ;;  %v121_v57 = vld [vmem:[%s14676_s0 + $0x250] sm:$0xff]  ;;  %v124_v58 = vld [vmem:[%s14676_s0 + $0x268] sm:$0xff] }
   0xf   :  { %v51_v59 = vld [vmem:[%s14676_s0 + $0x20] sm:$0xff]  ;;  %v54_v60 = vld [vmem:[%s14676_s0 + $0x38] sm:$0xff]  ;;  %v53_v63 = vld [vmem:[%s14676_s0 + $0x30] sm:$0xff] }
  0x10   :  { %7982 = vmatpush1.bf16.msra.mxu0 %v7981_v13  ;;  %9022 = vmatpush1.bf16.msra.mxu1 %v7981_v13  ;;  %v123_v61 = vld [vmem:[%s14676_s0 + $0x260] sm:$0xff]  ;;  %v126_v62 = vld [vmem:[%s14676_s0 + $0x278] sm:$0xff]  ;;  %v56_v1 = vld [vmem:[%s14676_s0 + $0x48] sm:$0xff] }
  0x11   :  { %7983 = vmatprep.subr.bf16.mxu0 %v14690_v0  ;;  %9007 = vmatprep.subr.bf16.mxu1 %v14690_v0  ;;  %v125_v2 = vld [vmem:[%s14676_s0 + $0x270] sm:$0xff]  ;;  %v128_v3 = vld [vmem:[%s14676_s0 + $0x288] sm:$0xff]  ;;  %v55_v4 = vld [vmem:[%s14676_s0 + $0x40] sm:$0xff] }
  0x12   :  { %v58_v5 = vld [vmem:[%s14676_s0 + $0x58] sm:$0xff]  ;;  %v127_v6 = vld [vmem:[%s14676_s0 + $0x280] sm:$0xff]  ;;  %v57_v8 = vld [vmem:[%s14676_s0 + $0x50] sm:$0xff] }
  0x13   :  { %v130_v7 = vld [vmem:[%s14676_s0 + $0x298] sm:$0xff]  ;;  %v60_v9 = vld [vmem:[%s14676_s0 + $0x68] sm:$0xff]  ;;  %v129_v10 = vld [vmem:[%s14676_s0 + $0x290] sm:$0xff] }
  0x14   :  { %7985 = vmatpush1.bf16.msra.mxu0 %v7984_v16  ;;  %9023 = vmatpush1.bf16.msra.mxu1 %v7984_v16  ;;  %v132_v11 = vld [vmem:[%s14676_s0 + $0x2a8] sm:$0xff]  ;;  %v59_v12 = vld [vmem:[%s14676_s0 + $0x60] sm:$0xff]  ;;  %v62_v13 = vld [vmem:[%s14676_s0 + $0x78] sm:$0xff] }
  0x15   :  { %7986 = vmatprep.subr.bf16.mxu0 %v14690_v0  ;;  %9008 = vmatprep.subr.bf16.mxu1 %v14690_v0  ;;  %v131_v14 = vld [vmem:[%s14676_s0 + $0x2a0] sm:$0xff]  ;;  %v134_v15 = vld [vmem:[%s14676_s0 + $0x2b8] sm:$0xff]  ;;  %v61_v16 = vld [vmem:[%s14676_s0 + $0x70] sm:$0xff] }
  0x16   :  { %v64_v17 = vld [vmem:[%s14676_s0 + $0x88] sm:$0xff]  ;;  %v133_v18 = vld [vmem:[%s14676_s0 + $0x2b0] sm:$0xff]  ;;  %v63_v20 = vld [vmem:[%s14676_s0 + $0x80] sm:$0xff] }
  0x17   :  { %v66_v21 = vld [vmem:[%s14676_s0 + $0x98] sm:$0xff]  ;;  %v65_v24 = vld [vmem:[%s14676_s0 + $0x90] sm:$0xff]  ;;  %v68_v25 = vld [vmem:[%s14676_s0 + $0xa8] sm:$0xff] }
  0x18   :  { %7988 = vmatpush1.bf16.msra.mxu0 %v7987_v19  ;;  %9024 = vmatpush1.bf16.msra.mxu1 %v7987_v19  ;;  %v136_v19 = vld [vmem:[%s14676_s0 + $0x2c8] sm:$0xff]  ;;  %v138_v23 = vld [vmem:[%s14676_s0 + $0x2d8] sm:$0xff]  ;;  %v67_v28 = vld [vmem:[%s14676_s0 + $0xa0] sm:$0xff] }
  0x19   :  { %7989 = vmatprep.subr.bf16.mxu0 %v14690_v0  ;;  %9009 = vmatprep.subr.bf16.mxu1 %v14690_v0  ;;  %v140_v27 = vld [vmem:[%s14676_s0 + $0x2e8] sm:$0xff]  ;;  %v139_v30 = vld [vmem:[%s14676_s0 + $0x2e0] sm:$0xff]  ;;  %v142_v31 = vld [vmem:[%s14676_s0 + $0x2f8] sm:$0xff] }
  0x1a   :  { %v72_v33 = vld [vmem:[%s14676_s0 + $0xc8] sm:$0xff]  ;;  %v141_v34 = vld [vmem:[%s14676_s0 + $0x2f0] sm:$0xff]  ;;  %v71_v36 = vld [vmem:[%s14676_s0 + $0xc0] sm:$0xff] }
  0x1b   :  { %v74_v37 = vld [vmem:[%s14676_s0 + $0xd8] sm:$0xff]  ;;  %v73_v40 = vld [vmem:[%s14676_s0 + $0xd0] sm:$0xff]  ;;  %v148_v43 = vld [vmem:[%s14676_s0 + $0x328] sm:$0xff] }
  0x1c   :  { %7991 = vmatpush1.bf16.msra.mxu0 %v7990_v22  ;;  %9025 = vmatpush1.bf16.msra.mxu1 %v7990_v22  ;;  %v135_v22 = vld [vmem:[%s14676_s0 + $0x2c0] sm:$0xff]  ;;  %v146_v39 = vld [vmem:[%s14676_s0 + $0x318] sm:$0xff]  ;;  %v145_v42 = vld [vmem:[%s14676_s0 + $0x310] sm:$0xff] }
  0x1d   :  { %7992 = vmatprep.subr.bf16.mxu0 %v14690_v0  ;;  %9010 = vmatprep.subr.bf16.mxu1 %v14690_v0  ;;  %v78_v45 = vld [vmem:[%s14676_s0 + $0xf8] sm:$0xff]  ;;  %v147_v46 = vld [vmem:[%s14676_s0 + $0x320] sm:$0xff]  ;;  %v77_v48 = vld [vmem:[%s14676_s0 + $0xf0] sm:$0xff] }
  0x1e   :  { %v80_v49 = vld [vmem:[%s14676_s0 + $0x108] sm:$0xff] }
  0x20   :  { %7994 = vmatpush1.bf16.msra.mxu0 %v7993_v26  ;;  %9026 = vmatpush1.bf16.msra.mxu1 %v7993_v26  ;;  %v137_v26 = vld [vmem:[%s14676_s0 + $0x2d0] sm:$0xff] }
  0x21   :  { %7995 = vmatprep.subr.bf16.mxu0 %v14690_v0  ;;  %9011 = vmatprep.subr.bf16.mxu1 %v14690_v0 }
  0x24   :  { %7997 = vmatpush1.bf16.msra.mxu0 %v7996_v29  ;;  %9027 = vmatpush1.bf16.msra.mxu1 %v7996_v29  ;;  %v70_v29 = vld [vmem:[%s14676_s0 + $0xb8] sm:$0xff] }
  0x25   :  { %7998 = vmatprep.subr.bf16.mxu0 %v14690_v0  ;;  %9012 = vmatprep.subr.bf16.mxu1 %v14690_v0 }
  0x28   :  { %8000 = vmatpush1.bf16.msra.mxu0 %v7999_v32  ;;  %9028 = vmatpush1.bf16.msra.mxu1 %v7999_v32  ;;  %v69_v32 = vld [vmem:[%s14676_s0 + $0xb0] sm:$0xff] }
  0x29   :  { %8001 = vmatprep.subr.bf16.mxu0 %v14690_v0  ;;  %9013 = vmatprep.subr.bf16.mxu1 %v14690_v0 }
  0x2c   :  { %8003 = vmatpush1.bf16.msra.mxu0 %v8002_v35  ;;  %9029 = vmatpush1.bf16.msra.mxu1 %v8002_v35  ;;  %v144_v35 = vld [vmem:[%s14676_s0 + $0x308] sm:$0xff] }
  0x2d   :  { %8004 = vmatprep.subr.bf16.mxu0 %v14690_v0  ;;  %9014 = vmatprep.subr.bf16.mxu1 %v14690_v0 }
  0x30   :  { %8006 = vmatpush1.bf16.msra.mxu0 %v8005_v38  ;;  %9030 = vmatpush1.bf16.msra.mxu1 %v8005_v38  ;;  %v143_v38 = vld [vmem:[%s14676_s0 + $0x300] sm:$0xff] }
  0x31   :  { %8007 = vmatprep.subr.bf16.mxu0 %v14690_v0  ;;  %9015 = vmatprep.subr.bf16.mxu1 %v14690_v0 }
  0x34   :  { %8009 = vmatpush1.bf16.msra.mxu0 %v8008_v41  ;;  %9031 = vmatpush1.bf16.msra.mxu1 %v8008_v41  ;;  %v76_v41 = vld [vmem:[%s14676_s0 + $0xe8] sm:$0xff] }
  0x35   :  { %8010 = vmatprep.subr.bf16.mxu0 %v14690_v0  ;;  %9016 = vmatprep.subr.bf16.mxu1 %v14690_v0 }
  0x38   :  { %8012 = vmatpush1.bf16.msra.mxu0 %v8011_v44  ;;  %9032 = vmatpush1.bf16.msra.mxu1 %v8011_v44  ;;  %v75_v44 = vld [vmem:[%s14676_s0 + $0xe0] sm:$0xff] }
  0x39   :  { %8013 = vmatprep.subr.bf16.mxu0 %v14690_v0  ;;  %9017 = vmatprep.subr.bf16.mxu1 %v14690_v0 }
  0x3c   :  { %8015 = vmatpush1.bf16.msra.mxu0 %v8014_v47  ;;  %9033 = vmatpush1.bf16.msra.mxu1 %v8014_v47  ;;  %v150_v47 = vld [vmem:[%s14676_s0 + $0x338] sm:$0xff] }
  0x3d   :  { %8016 = vmatprep.subr.bf16.mxu0 %v14690_v0  ;;  %9018 = vmatprep.subr.bf16.mxu1 %v14690_v0 }
  0x40   :  { %8018 = vmatpush1.bf16.msra.mxu0 %v8017_v50  ;;  %9034 = vmatpush1.bf16.msra.mxu1 %v8017_v50  ;;  %v149_v50 = vld [vmem:[%s14676_s0 + $0x330] sm:$0xff] }
  0x41   :  { %8403 = vmatprep.subr.bf16.mxu0 %v14690_v0  ;;  %8019 = vmatprep.subr.bf16.mxu1 %v14690_v0 }
  0x43   :  { %272 = vmatmul.mubr.f32.vlgmr.msra.gmra.mrb[0].mxu0 %v47_v51  ;;  %452 = vmatmul.mubr.f32.vlgmr.msra.gmra.mrb[0].mxu1 %v119_v53  ;;  %v152_v51 = vld [vmem:[%s14676_s0 + $0x348] sm:$0xff]  ;;  %v82_v53 = vld [vmem:[%s14676_s0 + $0x118] sm:$0xff] }
  0x44   :  { %276 = vmatprep.mubr.f32.mxu0 %v50_v52  ;;  %456 = vmatprep.mubr.f32.mxu1 %v122_v54  ;;  %v79_v52 = vld [vmem:[%s14676_s0 + $0x100] sm:$0xff] }
  0x45   :  { %v151_v54 = vld [vmem:[%s14676_s0 + $0x340] sm:$0xff] }
  0x47   :  { %277 = vmatmul.mubr.f32.gmra.mrb[2].mxu0 %v49_v55  ;;  %457 = vmatmul.mubr.f32.gmra.mrb[2].mxu1 %v121_v57  ;;  %v154_v55 = vld [vmem:[%s14676_s0 + $0x358] sm:$0xff]  ;;  %v84_v57 = vld [vmem:[%s14676_s0 + $0x128] sm:$0xff] }
  0x48   :  { %281 = vmatprep.mubr.f32.mxu0 %v52_v56  ;;  %461 = vmatprep.mubr.f32.mxu1 %v124_v58  ;;  %v81_v56 = vld [vmem:[%s14676_s0 + $0x110] sm:$0xff] }
  0x49   :  { %v153_v58 = vld [vmem:[%s14676_s0 + $0x350] sm:$0xff] }
  0x4b   :  { %282 = vmatmul.mubr.f32.gmra.mrb[4].mxu0 %v51_v59  ;;  %462 = vmatmul.mubr.f32.gmra.mrb[4].mxu1 %v123_v61  ;;  %v156_v59 = vld [vmem:[%s14676_s0 + $0x368] sm:$0xff]  ;;  %v86_v61 = vld [vmem:[%s14676_s0 + $0x138] sm:$0xff] }
  0x4c   :  { %286 = vmatprep.mubr.f32.mxu0 %v54_v60  ;;  %466 = vmatprep.mubr.f32.mxu1 %v126_v62  ;;  %v83_v60 = vld [vmem:[%s14676_s0 + $0x120] sm:$0xff] }
  0x4d   :  { %v155_v62 = vld [vmem:[%s14676_s0 + $0x360] sm:$0xff] }
  0x4f   :  { %287 = vmatmul.mubr.f32.gmra.mrb[6].mxu0 %v53_v63  ;;  %467 = vmatmul.mubr.f32.gmra.mrb[6].mxu1 %v125_v2  ;;  %v158_v63 = vld [vmem:[%s14676_s0 + $0x378] sm:$0xff]  ;;  %v88_v2 = vld [vmem:[%s14676_s0 + $0x148] sm:$0xff] }
  0x50   :  { %291 = vmatprep.mubr.f32.mxu0 %v56_v1  ;;  %471 = vmatprep.mubr.f32.mxu1 %v128_v3  ;;  %v85_v1 = vld [vmem:[%s14676_s0 + $0x130] sm:$0xff] }
  0x51   :  { %v157_v3 = vld [vmem:[%s14676_s0 + $0x370] sm:$0xff] }
  0x53   :  { %292 = vmatmul.mubr.f32.gmra.mrb[8].mxu0 %v55_v4  ;;  %472 = vmatmul.mubr.f32.gmra.mrb[8].mxu1 %v127_v6  ;;  %v160_v4 = vld [vmem:[%s14676_s0 + $0x388] sm:$0xff]  ;;  %v90_v6 = vld [vmem:[%s14676_s0 + $0x158] sm:$0xff] }
  0x54   :  { %296 = vmatprep.mubr.f32.mxu0 %v58_v5  ;;  %476 = vmatprep.mubr.f32.mxu1 %v130_v7  ;;  %v87_v5 = vld [vmem:[%s14676_s0 + $0x140] sm:$0xff] }
  0x55   :  { %v159_v7 = vld [vmem:[%s14676_s0 + $0x380] sm:$0xff] }
  0x57   :  { %297 = vmatmul.mubr.f32.gmra.mrb[10].mxu0 %v57_v8  ;;  %477 = vmatmul.mubr.f32.gmra.mrb[10].mxu1 %v129_v10  ;;  %v162_v8 = vld [vmem:[%s14676_s0 + $0x398] sm:$0xff]  ;;  %v92_v10 = vld [vmem:[%s14676_s0 + $0x168] sm:$0xff] }
  0x58   :  { %301 = vmatprep.mubr.f32.mxu0 %v60_v9  ;;  %481 = vmatprep.mubr.f32.mxu1 %v132_v11  ;;  %v89_v9 = vld [vmem:[%s14676_s0 + $0x150] sm:$0xff] }
  0x59   :  { %v161_v11 = vld [vmem:[%s14676_s0 + $0x390] sm:$0xff] }
  0x5b   :  { %302 = vmatmul.mubr.f32.gmra.mrb[12].mxu0 %v59_v12  ;;  %482 = vmatmul.mubr.f32.gmra.mrb[12].mxu1 %v131_v14  ;;  %v164_v12 = vld [vmem:[%s14676_s0 + $0x3a8] sm:$0xff]  ;;  %v94_v14 = vld [vmem:[%s14676_s0 + $0x178] sm:$0xff] }
  0x5c   :  { %306 = vmatprep.mubr.f32.mxu0 %v62_v13  ;;  %486 = vmatprep.mubr.f32.mxu1 %v134_v15  ;;  %v91_v13 = vld [vmem:[%s14676_s0 + $0x160] sm:$0xff] }
  0x5d   :  { %v163_v15 = vld [vmem:[%s14676_s0 + $0x3a0] sm:$0xff] }
  0x5f   :  { %307 = vmatmul.mubr.f32.gmra.mrb[14].mxu0 %v61_v16  ;;  %487 = vmatmul.mubr.f32.gmra.mrb[14].mxu1 %v133_v18  ;;  %v166_v16 = vld [vmem:[%s14676_s0 + $0x3b8] sm:$0xff]  ;;  %v96_v18 = vld [vmem:[%s14676_s0 + $0x188] sm:$0xff] }
  0x60   :  { %311 = vmatprep.mubr.f32.mxu0 %v64_v17  ;;  %491 = vmatprep.mubr.f32.mxu1 %v136_v19  ;;  %v93_v17 = vld [vmem:[%s14676_s0 + $0x170] sm:$0xff] }
  0x61   :  { %v165_v19 = vld [vmem:[%s14676_s0 + $0x3b0] sm:$0xff] }
  0x63   :  { %312 = vmatmul.mubr.f32.gmra.mrb[16].mxu0 %v63_v20  ;;  %492 = vmatmul.mubr.f32.gmra.mrb[16].mxu1 %v135_v22  ;;  %v168_v20 = vld [vmem:[%s14676_s0 + $0x3c8] sm:$0xff]  ;;  %v98_v22 = vld [vmem:[%s14676_s0 + $0x198] sm:$0xff] }
  0x64   :  { %316 = vmatprep.mubr.f32.mxu0 %v66_v21  ;;  %496 = vmatprep.mubr.f32.mxu1 %v138_v23  ;;  %v95_v21 = vld [vmem:[%s14676_s0 + $0x180] sm:$0xff] }
  0x65   :  { %v167_v23 = vld [vmem:[%s14676_s0 + $0x3c0] sm:$0xff] }
  0x67   :  { %317 = vmatmul.mubr.f32.gmra.mrb[18].mxu0 %v65_v24  ;;  %497 = vmatmul.mubr.f32.gmra.mrb[18].mxu1 %v137_v26  ;;  %v170_v24 = vld [vmem:[%s14676_s0 + $0x3d8] sm:$0xff]  ;;  %v100_v26 = vld [vmem:[%s14676_s0 + $0x1a8] sm:$0xff] }
  0x68   :  { %321 = vmatprep.mubr.f32.mxu0 %v68_v25  ;;  %501 = vmatprep.mubr.f32.mxu1 %v140_v27  ;;  %v97_v25 = vld [vmem:[%s14676_s0 + $0x190] sm:$0xff] }
  0x69   :  { %v169_v27 = vld [vmem:[%s14676_s0 + $0x3d0] sm:$0xff] }
  0x6b   :  { %322 = vmatmul.mubr.f32.gmra.mrb[20].mxu0 %v67_v28  ;;  %502 = vmatmul.mubr.f32.gmra.mrb[20].mxu1 %v139_v30  ;;  %v172_v28 = vld [vmem:[%s14676_s0 + $0x3e8] sm:$0xff]  ;;  %v102_v30 = vld [vmem:[%s14676_s0 + $0x1b8] sm:$0xff] }
  0x6c   :  { %326 = vmatprep.mubr.f32.mxu0 %v70_v29  ;;  %506 = vmatprep.mubr.f32.mxu1 %v142_v31  ;;  %v99_v29 = vld [vmem:[%s14676_s0 + $0x1a0] sm:$0xff] }
  0x6d   :  { %v171_v31 = vld [vmem:[%s14676_s0 + $0x3e0] sm:$0xff] }
  0x6f   :  { %327 = vmatmul.mubr.f32.gmra.mrb[22].mxu0 %v69_v32  ;;  %507 = vmatmul.mubr.f32.gmra.mrb[22].mxu1 %v141_v34  ;;  %v174_v32 = vld [vmem:[%s14676_s0 + $0x3f8] sm:$0xff]  ;;  %v104_v34 = vld [vmem:[%s14676_s0 + $0x1c8] sm:$0xff] }
  0x70   :  { %331 = vmatprep.mubr.f32.mxu0 %v72_v33  ;;  %511 = vmatprep.mubr.f32.mxu1 %v144_v35  ;;  %v101_v33 = vld [vmem:[%s14676_s0 + $0x1b0] sm:$0xff] }
  0x71   :  { %v173_v35 = vld [vmem:[%s14676_s0 + $0x3f0] sm:$0xff] }
  0x73   :  { %332 = vmatmul.mubr.f32.gmra.mrb[24].mxu0 %v71_v36  ;;  %512 = vmatmul.mubr.f32.gmra.mrb[24].mxu1 %v143_v38  ;;  %v103_v36 = vld [vmem:[%s14676_s0 + $0x1c0] sm:$0xff]  ;;  %v105_v38 = vld [vmem:[%s14676_s0 + $0x1d0] sm:$0xff] }
  0x74   :  { %336 = vmatprep.mubr.f32.mxu0 %v74_v37  ;;  %516 = vmatprep.mubr.f32.mxu1 %v146_v39  ;;  %v106_v37 = vld [vmem:[%s14676_s0 + $0x1d8] sm:$0xff]  ;;  %v108_v39 = vld [vmem:[%s14676_s0 + $0x1e8] sm:$0xff] }
  0x77   :  { %337 = vmatmul.mubr.f32.gmra.mrb[26].mxu0 %v73_v40  ;;  %517 = vmatmul.mubr.f32.gmra.mrb[26].mxu1 %v145_v42  ;;  %v107_v40 = vld [vmem:[%s14676_s0 + $0x1e0] sm:$0xff]  ;;  %v109_v42 = vld [vmem:[%s14676_s0 + $0x1f0] sm:$0xff] }
  0x78   :  { %341 = vmatprep.mubr.f32.mxu0 %v76_v41  ;;  %521 = vmatprep.mubr.f32.mxu1 %v148_v43  ;;  %v110_v41 = vld [vmem:[%s14676_s0 + $0x1f8] sm:$0xff]  ;;  %v112_v43 = vld [vmem:[%s14676_s0 + $0x208] sm:$0xff] }
  0x7b   :  { %342 = vmatmul.mubr.f32.gmra.mrb[28].mxu0 %v75_v44  ;;  %522 = vmatmul.mubr.f32.gmra.mrb[28].mxu1 %v147_v46  ;;  %v111_v44 = vld [vmem:[%s14676_s0 + $0x200] sm:$0xff]  ;;  %v113_v46 = vld [vmem:[%s14676_s0 + $0x210] sm:$0xff] }
  0x7c   :  { %346 = vmatprep.mubr.f32.mxu0 %v78_v45  ;;  %526 = vmatprep.mubr.f32.mxu1 %v150_v47  ;;  %v114_v45 = vld [vmem:[%s14676_s0 + $0x218] sm:$0xff]  ;;  %v116_v47 = vld [vmem:[%s14676_s0 + $0x228] sm:$0xff] }
  0x7f   :  { %347 = vmatmul.mubr.f32.gmra.mrb[30].mxu0 %v77_v48  ;;  %527 = vmatmul.mubr.f32.gmra.mrb[30].mxu1 %v149_v50  ;;  %v115_v48 = vld [vmem:[%s14676_s0 + $0x220] sm:$0xff]  ;;  %v117_v50 = vld [vmem:[%s14676_s0 + $0x230] sm:$0xff] }
  0x80   :  { %351 = vmatprep.mubr.f32.mxu0 %v80_v49  ;;  %531 = vmatprep.mubr.f32.mxu1 %v152_v51  ;;  %v118_v49 = vld [vmem:[%s14676_s0 + $0x238] sm:$0xff] }
  0x83   :  { %352 = vmatmul.mubr.f32.gmra.mrb[32].mxu0 %v79_v52  ;;  %532 = vmatmul.mubr.f32.gmra.mrb[32].mxu1 %v151_v54 }
  0x84   :  { %356 = vmatprep.mubr.f32.mxu0 %v82_v53  ;;  %536 = vmatprep.mubr.f32.mxu1 %v154_v55 }
  0x87   :  { %357 = vmatmul.mubr.f32.gmra.mrb[34].mxu0 %v81_v56  ;;  %537 = vmatmul.mubr.f32.gmra.mrb[34].mxu1 %v153_v58 }
  0x88   :  { %361 = vmatprep.mubr.f32.mxu0 %v84_v57  ;;  %541 = vmatprep.mubr.f32.mxu1 %v156_v59 }
  0x8b   :  { %362 = vmatmul.mubr.f32.gmra.mrb[36].mxu0 %v83_v60  ;;  %542 = vmatmul.mubr.f32.gmra.mrb[36].mxu1 %v155_v62 }
  0x8c   :  { %366 = vmatprep.mubr.f32.mxu0 %v86_v61  ;;  %546 = vmatprep.mubr.f32.mxu1 %v158_v63 }
  0x8f   :  { %367 = vmatmul.mubr.f32.gmra.mrb[38].mxu0 %v85_v1  ;;  %547 = vmatmul.mubr.f32.gmra.mrb[38].mxu1 %v157_v3 }
  0x90   :  { %371 = vmatprep.mubr.f32.mxu0 %v88_v2  ;;  %551 = vmatprep.mubr.f32.mxu1 %v160_v4 }
  0x93   :  { %372 = vmatmul.mubr.f32.gmra.mrb[40].mxu0 %v87_v5  ;;  %552 = vmatmul.mubr.f32.gmra.mrb[40].mxu1 %v159_v7 }
  0x94   :  { %376 = vmatprep.mubr.f32.mxu0 %v90_v6  ;;  %556 = vmatprep.mubr.f32.mxu1 %v162_v8 }
  0x97   :  { %377 = vmatmul.mubr.f32.gmra.mrb[42].mxu0 %v89_v9  ;;  %557 = vmatmul.mubr.f32.gmra.mrb[42].mxu1 %v161_v11 }
  0x98   :  { %381 = vmatprep.mubr.f32.mxu0 %v92_v10  ;;  %561 = vmatprep.mubr.f32.mxu1 %v164_v12 }
  0x9b   :  { %382 = vmatmul.mubr.f32.gmra.mrb[44].mxu0 %v91_v13  ;;  %562 = vmatmul.mubr.f32.gmra.mrb[44].mxu1 %v163_v15 }
  0x9c   :  { %386 = vmatprep.mubr.f32.mxu0 %v94_v14  ;;  %566 = vmatprep.mubr.f32.mxu1 %v166_v16 }
  0x9f   :  { %387 = vmatmul.mubr.f32.gmra.mrb[46].mxu0 %v93_v17  ;;  %567 = vmatmul.mubr.f32.gmra.mrb[46].mxu1 %v165_v19 }
  0xa0   :  { %391 = vmatprep.mubr.f32.mxu0 %v96_v18  ;;  %571 = vmatprep.mubr.f32.mxu1 %v168_v20 }
  0xa3   :  { %392 = vmatmul.mubr.f32.gmra.mrb[48].mxu0 %v95_v21  ;;  %572 = vmatmul.mubr.f32.gmra.mrb[48].mxu1 %v167_v23 }
  0xa4   :  { %396 = vmatprep.mubr.f32.mxu0 %v98_v22  ;;  %576 = vmatprep.mubr.f32.mxu1 %v170_v24 }
  0xa7   :  { %397 = vmatmul.mubr.f32.gmra.mrb[50].mxu0 %v97_v25  ;;  %577 = vmatmul.mubr.f32.gmra.mrb[50].mxu1 %v169_v27 }
  0xa8   :  { %401 = vmatprep.mubr.f32.mxu0 %v100_v26  ;;  %581 = vmatprep.mubr.f32.mxu1 %v172_v28 }
  0xab   :  { %402 = vmatmul.mubr.f32.gmra.mrb[52].mxu0 %v99_v29  ;;  %582 = vmatmul.mubr.f32.gmra.mrb[52].mxu1 %v171_v31 }
  0xac   :  { %406 = vmatprep.mubr.f32.mxu0 %v102_v30  ;;  %586 = vmatprep.mubr.f32.mxu1 %v174_v32 }
  0xaf   :  { %407 = vmatmul.mubr.f32.gmra.mrb[54].mxu0 %v101_v33  ;;  %587 = vmatmul.mubr.f32.gmra.mrb[54].mxu1 %v173_v35 }
  0xb0   :  { %411 = vmatprep.mubr.f32.mxu0 %v104_v34 }
  0xb3   :  { %412 = vmatmul.mubr.f32.gmra.mrb[56].mxu0 %v103_v36 }
  0xb4   :  { %416 = vmatprep.mubr.f32.mxu0 %v106_v37 }
  0xb7   :  { %417 = vmatmul.mubr.f32.gmra.mrb[58].mxu0 %v105_v38 }
  0xb8   :  { %421 = vmatprep.mubr.f32.mxu0 %v108_v39 }
  0xbb   :  { %422 = vmatmul.mubr.f32.gmra.mrb[60].mxu0 %v107_v40 }
  0xbc   :  { %426 = vmatprep.mubr.f32.mxu0 %v110_v41 }
  0xbf   :  { %427 = vmatmul.mubr.f32.gmra.mrb[62].mxu0 %v109_v42 }
  0xc0   :  { %431 = vmatprep.mubr.f32.mxu0 %v112_v43 }
  0xc3   :  { %432 = vmatmul.mubr.f32.gmra.mrb[64].mxu0 %v111_v44 }
  0xc4   :  { %436 = vmatprep.mubr.f32.mxu0 %v114_v45 }
  0xc7   :  { %437 = vmatmul.mubr.f32.gmra.mrb[66].mxu0 %v113_v46 }
  0xc8   :  { %441 = vmatprep.mubr.f32.mxu0 %v116_v47 }
  0xcb   :  { %442 = vmatmul.mubr.f32.gmra.mrb[68].mxu0 %v115_v48 }
  0xcc   :  { %446 = vmatprep.mubr.f32.mxu0 %v118_v49 }
  0xcf   :  { %447 = vmatmul.mubr.f32.gmra.mrb[70].mxu0 %v117_v50 }
 0x116   :  { %v9938_v51 = vpop.f32.mrb[0].mxu0  ;;  %v9940_v53 = vpop.f32.mrb[0].mxu1 }
 0x117   :  { %v275_v52 = vpop.f32.mrb[1].mxu0  ;;  %v455_v54 = vpop.f32.mrb[1].mxu1 }
 0x11a   :  { %v9942_v55 = vpop.f32.mrb[2].mxu0  ;;  %v9946_v58 = vpop.f32.mrb[2].mxu1 }
 0x11b   :  { %v915_v56 = vadd.f32 %v9942_v55, %v9938_v51  ;;  %v280_v57 = vpop.f32.mrb[3].mxu0  ;;  %v460_v59 = vpop.f32.mrb[3].mxu1 }
 0x11e   :  { %v9948_v60 = vpop.f32.mrb[4].mxu0  ;;  %v9951_v63 = vpop.f32.mrb[4].mxu1 }
 0x11f   :  { %v916_v61 = vadd.f32 %v915_v56, %v9948_v60  ;;  %v285_v62 = vpop.f32.mrb[5].mxu0  ;;  %v465_v1 = vpop.f32.mrb[5].mxu1 }
 0x122   :  { %v9953_v2 = vpop.f32.mrb[6].mxu0  ;;  %v9956_v5 = vpop.f32.mrb[6].mxu1 }
 0x123   :  { %v917_v3 = vadd.f32 %v916_v61, %v9953_v2  ;;  %v290_v4 = vpop.f32.mrb[7].mxu0  ;;  %v470_v6 = vpop.f32.mrb[7].mxu1 }
 0x126   :  { %v9958_v7 = vpop.f32.mrb[8].mxu0  ;;  %v9961_v10 = vpop.f32.mrb[8].mxu1 }
 0x127   :  { %v918_v8 = vadd.f32 %v917_v3, %v9958_v7  ;;  %v295_v9 = vpop.f32.mrb[9].mxu0  ;;  %v475_v11 = vpop.f32.mrb[9].mxu1 }
 0x12a   :  { %v9963_v12 = vpop.f32.mrb[10].mxu0  ;;  %v9966_v15 = vpop.f32.mrb[10].mxu1 }
 0x12b   :  { %v919_v13 = vadd.f32 %v918_v8, %v9963_v12  ;;  %v300_v14 = vpop.f32.mrb[11].mxu0  ;;  %v480_v16 = vpop.f32.mrb[11].mxu1 }
 0x12e   :  { %v9968_v17 = vpop.f32.mrb[12].mxu0  ;;  %v9971_v20 = vpop.f32.mrb[12].mxu1 }
 0x12f   :  { %v920_v18 = vadd.f32 %v919_v13, %v9968_v17  ;;  %v305_v19 = vpop.f32.mrb[13].mxu0  ;;  %v485_v21 = vpop.f32.mrb[13].mxu1 }
 0x132   :  { %v9973_v22 = vpop.f32.mrb[14].mxu0  ;;  %v9976_v25 = vpop.f32.mrb[14].mxu1 }
 0x133   :  { %v921_v23 = vadd.f32 %v920_v18, %v9973_v22  ;;  %v310_v24 = vpop.f32.mrb[15].mxu0  ;;  %v490_v26 = vpop.f32.mrb[15].mxu1 }
 0x136   :  { %v9978_v27 = vpop.f32.mrb[16].mxu0  ;;  %v9981_v30 = vpop.f32.mrb[16].mxu1 }
 0x137   :  { %v922_v28 = vadd.f32 %v921_v23, %v9978_v27  ;;  %v315_v29 = vpop.f32.mrb[17].mxu0  ;;  %v495_v31 = vpop.f32.mrb[17].mxu1 }
 0x13a   :  { %v9983_v32 = vpop.f32.mrb[18].mxu0  ;;  %v9986_v35 = vpop.f32.mrb[18].mxu1 }
 0x13b   :  { %v923_v33 = vadd.f32 %v922_v28, %v9983_v32  ;;  %v320_v34 = vpop.f32.mrb[19].mxu0  ;;  %v500_v36 = vpop.f32.mrb[19].mxu1 }
 0x13e   :  { %v9988_v37 = vpop.f32.mrb[20].mxu0  ;;  %v9991_v40 = vpop.f32.mrb[20].mxu1 }
 0x13f   :  { %v924_v38 = vadd.f32 %v923_v33, %v9988_v37  ;;  %v325_v39 = vpop.f32.mrb[21].mxu0  ;;  %v505_v41 = vpop.f32.mrb[21].mxu1 }
 0x142   :  { %v9993_v42 = vpop.f32.mrb[22].mxu0  ;;  %v9996_v45 = vpop.f32.mrb[22].mxu1 }
 0x143   :  { %v925_v43 = vadd.f32 %v924_v38, %v9993_v42  ;;  %v330_v44 = vpop.f32.mrb[23].mxu0  ;;  %v510_v46 = vpop.f32.mrb[23].mxu1 }
 0x146   :  { %v9998_v47 = vpop.f32.mrb[24].mxu0  ;;  %v10001_v50 = vpop.f32.mrb[24].mxu1 }
 0x147   :  { %v926_v48 = vadd.f32 %v925_v43, %v9998_v47  ;;  %v335_v49 = vpop.f32.mrb[25].mxu0  ;;  %v515_v52 = vpop.f32.mrb[25].mxu1 }
 0x14a   :  { %v10003_v54 = vpop.f32.mrb[26].mxu0  ;;  %v10006_v59 = vpop.f32.mrb[26].mxu1 }
 0x14b   :  { %v927_v56 = vadd.f32 %v926_v48, %v10003_v54  ;;  %v340_v57 = vpop.f32.mrb[27].mxu0  ;;  %v520_v61 = vpop.f32.mrb[27].mxu1 }
 0x14e   :  { %v10008_v62 = vpop.f32.mrb[28].mxu0  ;;  %v10011_v4 = vpop.f32.mrb[28].mxu1 }
 0x14f   :  { %v928_v1 = vadd.f32 %v927_v56, %v10008_v62  ;;  %v345_v3 = vpop.f32.mrb[29].mxu0  ;;  %v525_v6 = vpop.f32.mrb[29].mxu1 }
 0x152   :  { %v10013_v8 = vpop.f32.mrb[30].mxu0  ;;  %v10016_v13 = vpop.f32.mrb[30].mxu1 }
 0x153   :  { %v929_v9 = vadd.f32 %v928_v1, %v10013_v8  ;;  %v350_v11 = vpop.f32.mrb[31].mxu0  ;;  %v530_v14 = vpop.f32.mrb[31].mxu1 }
 0x156   :  { %v10018_v16 = vpop.f32.mrb[32].mxu0  ;;  %v10021_v21 = vpop.f32.mrb[32].mxu1 }
 0x157   :  { %v930_v18 = vadd.f32 %v929_v9, %v10018_v16  ;;  %v355_v19 = vpop.f32.mrb[33].mxu0  ;;  %v535_v23 = vpop.f32.mrb[33].mxu1 }
 0x15a   :  { %v10023_v24 = vpop.f32.mrb[34].mxu0  ;;  %v10026_v29 = vpop.f32.mrb[34].mxu1 }
 0x15b   :  { %v931_v26 = vadd.f32 %v930_v18, %v10023_v24  ;;  %v360_v28 = vpop.f32.mrb[35].mxu0  ;;  %v540_v31 = vpop.f32.mrb[35].mxu1 }
 0x15e   :  { %v10028_v33 = vpop.f32.mrb[36].mxu0  ;;  %v10031_v38 = vpop.f32.mrb[36].mxu1 }
 0x15f   :  { %v932_v34 = vadd.f32 %v931_v26, %v10028_v33  ;;  %v365_v36 = vpop.f32.mrb[37].mxu0  ;;  %14820 = vst [vmem:[#allocation2_spill] sm:$0xff] %v10031_v38  ;;  %v545_v39 = vpop.f32.mrb[37].mxu1 }
 0x162   :  { %v10033_v41 = vpop.f32.mrb[38].mxu0  ;;  %v10036_v46 = vpop.f32.mrb[38].mxu1 }
 0x163   :  { %v933_v43 = vadd.f32 %v932_v34, %v10033_v41  ;;  %v370_v44 = vpop.f32.mrb[39].mxu0  ;;  %14821 = vst [vmem:[#allocation3_spill] sm:$0xff] %v10036_v46  ;;  %v550_v48 = vpop.f32.mrb[39].mxu1 }
 0x166   :  { %v10038_v49 = vpop.f32.mrb[40].mxu0  ;;  %v10041_v57 = vpop.f32.mrb[40].mxu1 }
 0x167   :  { %v934_v52 = vadd.f32 %v933_v43, %v10038_v49  ;;  %v375_v56 = vpop.f32.mrb[41].mxu0  ;;  %14822 = vst [vmem:[#allocation4_spill] sm:$0xff] %v10041_v57  ;;  %v555_v61 = vpop.f32.mrb[41].mxu1 }
 0x16a   :  { %v10043_v1 = vpop.f32.mrb[42].mxu0  ;;  %v10046_v9 = vpop.f32.mrb[42].mxu1 }
 0x16b   :  { %v935_v3 = vadd.f32 %v934_v52, %v10043_v1  ;;  %v380_v6 = vpop.f32.mrb[43].mxu0  ;;  %v560_v11 = vpop.f32.mrb[43].mxu1 }
 0x16e   :  { %v10048_v14 = vpop.f32.mrb[44].mxu0  ;;  %v10051_v23 = vpop.f32.mrb[44].mxu1 }
 0x16f   :  { %14823 = vst [vmem:[#allocation5_spill] sm:$0xff] %v10048_v14  ;;  %v936_v18 = vadd.f32 %v935_v3, %v10048_v14  ;;  %v385_v19 = vpop.f32.mrb[45].mxu0  ;;  %v565_v26 = vpop.f32.mrb[45].mxu1 }
 0x172   :  { %v10053_v28 = vpop.f32.mrb[46].mxu0  ;;  %v10056_v36 = vpop.f32.mrb[46].mxu1 }
 0x173   :  { %14824 = vst [vmem:[#allocation6_spill] sm:$0xff] %v10053_v28  ;;  %v937_v31 = vadd.f32 %v936_v18, %v10053_v28  ;;  %v390_v34 = vpop.f32.mrb[47].mxu0  ;;  %v570_v39 = vpop.f32.mrb[47].mxu1 }
 0x176   :  { %v10058_v43 = vpop.f32.mrb[48].mxu0  ;;  %v10061_v52 = vpop.f32.mrb[48].mxu1 }
 0x177   :  { %14825 = vst [vmem:[#allocation7_spill] sm:$0xff] %v10058_v43  ;;  %v938_v44 = vadd.f32 %v937_v31, %v10058_v43  ;;  %v395_v48 = vpop.f32.mrb[49].mxu0  ;;  %v575_v56 = vpop.f32.mrb[49].mxu1 }
 0x17a   :  { %v10063_v61 = vpop.f32.mrb[50].mxu0  ;;  %v10066_v11 = vpop.f32.mrb[50].mxu1 }
 0x17b   :  { %14826 = vst [vmem:[#allocation8_spill] sm:$0xff] %v10063_v61  ;;  %v939_v3 = vadd.f32 %v938_v44, %v10063_v61  ;;  %v400_v6 = vpop.f32.mrb[51].mxu0  ;;  %v580_v18 = vpop.f32.mrb[51].mxu1 }
 0x17e   :  { %v10068_v19 = vpop.f32.mrb[52].mxu0  ;;  %v10071_v39 = vpop.f32.mrb[52].mxu1 }
 0x17f   :  { %14827 = vst [vmem:[#allocation9_spill] sm:$0xff] %v10068_v19  ;;  %v940_v26 = vadd.f32 %v939_v3, %v10068_v19  ;;  %v405_v34 = vpop.f32.mrb[53].mxu0  ;;  %v585_v31 = vpop.f32.mrb[53].mxu1 }
 0x182   :  { %v10073_v48 = vpop.f32.mrb[54].mxu0  ;;  %v10076_v43 = vpop.f32.mrb[54].mxu1 }
 0x183   :  { %14828 = vst [vmem:[#allocation10_spill] sm:$0xff] %v10073_v48  ;;  %v941_v56 = vadd.f32 %v940_v26, %v10073_v48  ;;  %v410_v0 = vpop.f32.mrb[55].mxu0  ;;  %v590_v44 = vpop.f32.mrb[55].mxu1 }
 0x186   :  { %v10078_v6 = vpop.f32.mrb[56].mxu0 }
 0x187   :  { %14829 = vst [vmem:[#allocation11_spill] sm:$0xff] %v10078_v6  ;;  %v942_v18 = vadd.f32 %v941_v56, %v10078_v6  ;;  %v415_v61 = vpop.f32.mrb[57].mxu0 }
 0x18a   :  { %v10081_v28 = vpop.f32.mrb[58].mxu0 }
 0x18b   :  { %14830 = vst [vmem:[#allocation12_spill] sm:$0xff] %v10081_v28  ;;  %v943_v3 = vadd.f32 %v942_v18, %v10081_v28  ;;  %v420_v34 = vpop.f32.mrb[59].mxu0 }
 0x18e   :  { %v10084_v19 = vpop.f32.mrb[60].mxu0 }
 0x18f   :  { %14831 = vst [vmem:[#allocation13_spill] sm:$0xff] %v10084_v19  ;;  %v944_v31 = vadd.f32 %v943_v3, %v10084_v19  ;;  %v425_v14 = vpop.f32.mrb[61].mxu0 }
 0x192   :  { %v10087_v26 = vpop.f32.mrb[62].mxu0 }
 0x193   :  { %14832 = vst [vmem:[#allocation14_spill] sm:$0xff] %v10087_v26  ;;  %v945_v0 = vadd.f32 %v944_v31, %v10087_v26  ;;  %v430_v44 = vpop.f32.mrb[63].mxu0 }
 0x196   :  { %v10090_v48 = vpop.f32.mrb[64].mxu0 }
 0x197   :  { %14833 = vst [vmem:[#allocation15_spill] sm:$0xff] %v10090_v48  ;;  %v946_v56 = vadd.f32 %v945_v0, %v10090_v48  ;;  %v435_v61 = vpop.f32.mrb[65].mxu0 }
 0x19a   :  { %v10093_v6 = vpop.f32.mrb[66].mxu0 }
 0x19b   :  { %v947_v18 = vadd.f32 %v946_v56, %v10093_v6  ;;  %v440_v34 = vpop.f32.mrb[67].mxu0 }
 0x19e   :  { %v10096_v28 = vpop.f32.mrb[68].mxu0 }
 0x19f   :  { %14834 = vst [vmem:[#allocation16_spill] sm:$0xff] %v10096_v28  ;;  %v948_v3 = vadd.f32 %v947_v18, %v10096_v28  ;;  %v445_v14 = vpop.f32.mrb[69].mxu0 }
 0x1a2   :  { %v10099_v19 = vpop.f32.mrb[70].mxu0 }
 0x1a3   :  { %v949_v31 = vadd.f32 %v948_v3, %v10099_v19  ;;  %v450_v44 = vpop.f32.mrb[71].mxu0 }
 0x1a5   :  { %v950_v26 = vadd.f32 %v949_v31, %v9940_v53 }
 0x1a7   :  { %v951_v0 = vadd.f32 %v950_v26, %v9946_v58 }
 0x1a9   :  { %v952_v61 = vadd.f32 %v951_v0, %v9951_v63 }
 0x1ab   :  { %v953_v48 = vadd.f32 %v952_v61, %v9956_v5 }
 0x1ad   :  { %v954_v56 = vadd.f32 %v953_v48, %v9961_v10 }
 0x1af   :  { %v955_v34 = vadd.f32 %v954_v56, %v9966_v15 }
 0x1b1   :  { %v956_v18 = vadd.f32 %v955_v34, %v9971_v20 }
 0x1b3   :  { %v957_v14 = vadd.f32 %v956_v18, %v9976_v25 }
 0x1b5   :  { %v958_v28 = vadd.f32 %v957_v14, %v9981_v30 }
 0x1b7   :  { %v959_v3 = vadd.f32 %v958_v28, %v9986_v35 }
 0x1b9   :  { %v960_v31 = vadd.f32 %v959_v3, %v9991_v40 }
 0x1bb   :  { %v961_v26 = vadd.f32 %v960_v31, %v9996_v45 }
 0x1bd   :  { %v962_v44 = vadd.f32 %v961_v26, %v10001_v50 }
 0x1bf   :  { %v963_v0 = vadd.f32 %v962_v44, %v10006_v59 }
 0x1c1   :  { %v964_v48 = vadd.f32 %v963_v0, %v10011_v4 }
 0x1c3   :  { %v965_v61 = vadd.f32 %v964_v48, %v10016_v13 }
 0x1c5   :  { %v966_v56 = vadd.f32 %v965_v61, %v10021_v21 }
 0x1c7   :  { %v967_v34 = vadd.f32 %v966_v56, %v10026_v29 }
 0x1c9   :  { %v968_v18 = vadd.f32 %v967_v34, %v10031_v38 }
 0x1cb   :  { %v969_v28 = vadd.f32 %v968_v18, %v10036_v46 }
 0x1cd   :  { %v970_v14 = vadd.f32 %v969_v28, %v10041_v57 }
 0x1cf   :  { %v971_v3 = vadd.f32 %v970_v14, %v10046_v9 }
 0x1d1   :  { %v972_v31 = vadd.f32 %v971_v3, %v10051_v23 }
 0x1d3   :  { %v973_v26 = vadd.f32 %v972_v31, %v10056_v36 }
 0x1d5   :  { %v974_v44 = vadd.f32 %v973_v26, %v10061_v52 }
 0x1d7   :  { %v975_v0 = vadd.f32 %v974_v44, %v10066_v11  ;;  %v14848_v44 = vld [vmem:[#allocation6_spill] sm:$0xff] }
 0x1d9   :  { %v976_v48 = vadd.f32 %v975_v0, %v10071_v39  ;;  %v14849_v0 = vld [vmem:[#allocation7_spill] sm:$0xff] }
 0x1db   :  { %v977_v61 = vadd.f32 %v976_v48, %v10076_v43  ;;  %v14850_v48 = vld [vmem:[#allocation8_spill] sm:$0xff] }
 0x1dd   :  { %v978_v56 = vrot.slane %v977_v61, 4 }
 0x1df   :  { %v979_v34 = vadd.f32 %v978_v56, %v977_v61  ;;  %v14852_v61 = vld [vmem:[#allocation9_spill] sm:$0xff]  ;;  %v14854_v56 = vld [vmem:[#allocation10_spill] sm:$0xff] }
 0x1e1   :  { %v980_v38 = vrot.slane %v979_v34, 2 }
 0x1e3   :  { %v981_v18 = vadd.f32 %v980_v38, %v979_v34 }
 0x1e5   :  { %v982_v46 = vrot.slane %v981_v18, 1 }
 0x1e7   :  { %v983_v28 = vadd.f32 %v982_v46, %v981_v18  ;;  %v14847_v46 = vld [vmem:[#allocation5_spill] sm:$0xff]  ;;  %v14855_v18 = vld [vmem:[#allocation11_spill] sm:$0xff] }
 0x1e9   :  { %v10130_v57 = vmul.f32 0.0078125, %v983_v28 }
 0x1eb   :  { %v10134_v14 = vsub.f32 %v9938_v51, %v10130_v57  ;;  %v10138_v3 = vsub.f32 %v9942_v55, %v10130_v57  ;;  %v10142_v31 = vsub.f32 %v9948_v60, %v10130_v57  ;;  %v10146_v26 = vsub.f32 %v9953_v2, %v10130_v57 }
 0x1ec   :  { %v10150_v38 = vsub.f32 %v9958_v7, %v10130_v57  ;;  %v10154_v51 = vsub.f32 %v9963_v12, %v10130_v57  ;;  %v10158_v55 = vsub.f32 %v9968_v17, %v10130_v57  ;;  %v10162_v60 = vsub.f32 %v9973_v22, %v10130_v57 }
 0x1ed   :  { %14835 = vst [vmem:[#allocation17_spill] sm:$0xff] %v10134_v14  ;;  %14836 = vst [vmem:[#allocation18_spill] sm:$0xff] %v10138_v3  ;;  %v10166_v2 = vsub.f32 %v9978_v27, %v10130_v57  ;;  %v10170_v7 = vsub.f32 %v9983_v32, %v10130_v57  ;;  %v10174_v12 = vsub.f32 %v9988_v37, %v10130_v57 }
 0x1ee   :  { %14837 = vst [vmem:[#allocation19_spill] sm:$0xff] %v10142_v31  ;;  %14838 = vst [vmem:[#allocation20_spill] sm:$0xff] %v10146_v26  ;;  %v10178_v17 = vsub.f32 %v9993_v42, %v10130_v57  ;;  %v10182_v22 = vsub.f32 %v9998_v47, %v10130_v57  ;;  %v10186_v27 = vsub.f32 %v10003_v54, %v10130_v57 }
 0x1ef   :  { %14839 = vst [vmem:[#allocation21_spill] sm:$0xff] %v10150_v38  ;;  %14840 = vst [vmem:[#allocation22_spill] sm:$0xff] %v10154_v51  ;;  %v10190_v32 = vsub.f32 %v10008_v62, %v10130_v57  ;;  %v10194_v37 = vsub.f32 %v10013_v8, %v10130_v57  ;;  %v10198_v42 = vsub.f32 %v10018_v16, %v10130_v57 }
 0x1f0   :  { %v10202_v47 = vsub.f32 %v10023_v24, %v10130_v57  ;;  %v10206_v54 = vsub.f32 %v10028_v33, %v10130_v57  ;;  %v10210_v62 = vsub.f32 %v10033_v41, %v10130_v57  ;;  %v10214_v8 = vsub.f32 %v10038_v49, %v10130_v57 }
 0x1f1   :  { %14841 = vst [vmem:[#allocation23_spill] sm:$0xff] %v10198_v42  ;;  %v10218_v16 = vsub.f32 %v10043_v1, %v10130_v57  ;;  %v10222_v24 = vsub.f32 %v14847_v46, %v10130_v57  ;;  %v10226_v33 = vsub.f32 %v14848_v44, %v10130_v57  ;;  %v10230_v41 = vsub.f32 %v14849_v0, %v10130_v57  ;;  %v14857_v46 = vld [vmem:[#allocation12_spill] sm:$0xff]  ;;  %v14858_v0 = vld [vmem:[#allocation13_spill] sm:$0xff] }
 0x1f2   :  { %14842 = vst [vmem:[#allocation24_spill] sm:$0xff] %v10202_v47  ;;  %14843 = vst [vmem:[#allocation25_spill] sm:$0xff] %v10206_v54  ;;  %v10234_v49 = vsub.f32 %v14850_v48, %v10130_v57  ;;  %v10238_v1 = vsub.f32 %v14852_v61, %v10130_v57  ;;  %v10242_v34 = vsub.f32 %v14854_v56, %v10130_v57 }
 0x1f3   :  { %14844 = vst [vmem:[#allocation26_spill] sm:$0xff] %v10210_v62  ;;  %14845 = vst [vmem:[#allocation27_spill] sm:$0xff] %v10214_v8  ;;  %v10246_v28 = vsub.f32 %v14855_v18, %v10130_v57  ;;  %v10250_v44 = vsub.f32 %v14857_v46, %v10130_v57  ;;  %v10254_v48 = vsub.f32 %v14858_v0, %v10130_v57 }
 0x1f4   :  { %14846 = vst [vmem:[#allocation28_spill] sm:$0xff] %v10218_v16  ;;  %14851 = vst [vmem:[#allocation5_spill] sm:$0xff] %v10234_v49  ;;  %v14859_v49 = vld [vmem:[#allocation14_spill] sm:$0xff]  ;;  %v10266_v18 = vsub.f32 %v10093_v6, %v10130_v57  ;;  %v10274_v0 = vsub.f32 %v10099_v19, %v10130_v57  ;;  %v10286_v6 = vsub.f32 %v9951_v63, %v10130_v57 }
 0x1f5   :  { %14853 = vst [vmem:[#allocation6_spill] sm:$0xff] %v10238_v1  ;;  %14856 = vst [vmem:[#allocation7_spill] sm:$0xff] %v10246_v28  ;;  %v10258_v61 = vsub.f32 %v14859_v49, %v10130_v57  ;;  %v14860_v1 = vld [vmem:[#allocation15_spill] sm:$0xff]  ;;  %v14862_v28 = vld [vmem:[#allocation16_spill] sm:$0xff]  ;;  %v10278_v49 = vsub.f32 %v9940_v53, %v10130_v57  ;;  %v10294_v19 = vsub.f32 %v9961_v10, %v10130_v57 }
 0x1f6   :  { %v10262_v56 = vsub.f32 %v14860_v1, %v10130_v57  ;;  %14861 = vst [vmem:[#allocation8_spill] sm:$0xff] %v10266_v18  ;;  %v10270_v46 = vsub.f32 %v14862_v28, %v10130_v57  ;;  %14863 = vst [vmem:[#allocation9_spill] sm:$0xff] %v10274_v0  ;;  %v10282_v1 = vsub.f32 %v9946_v58, %v10130_v57 }
 0x1f7   :  { %v10290_v28 = vsub.f32 %v9956_v5, %v10130_v57  ;;  %v10298_v53 = vsub.f32 %v9966_v15, %v10130_v57  ;;  %v10302_v58 = vsub.f32 %v9971_v20, %v10130_v57  ;;  %v10306_v63 = vsub.f32 %v9976_v25, %v10130_v57 }
 0x1f8   :  { %14864 = vst [vmem:[#allocation10_spill] sm:$0xff] %v10282_v1  ;;  %v10310_v5 = vsub.f32 %v9981_v30, %v10130_v57  ;;  %v10314_v10 = vsub.f32 %v9986_v35, %v10130_v57  ;;  %v10318_v15 = vsub.f32 %v9991_v40, %v10130_v57  ;;  %v10322_v20 = vsub.f32 %v9996_v45, %v10130_v57 }
 0x1f9   :  { %v10326_v25 = vsub.f32 %v10001_v50, %v10130_v57  ;;  %v10330_v30 = vsub.f32 %v10006_v59, %v10130_v57  ;;  %v10334_v35 = vsub.f32 %v10011_v4, %v10130_v57  ;;  %v10338_v40 = vsub.f32 %v10016_v13, %v10130_v57 }
 0x1fa   :  { %v10342_v45 = vsub.f32 %v10021_v21, %v10130_v57  ;;  %v10346_v50 = vsub.f32 %v10026_v29, %v10130_v57  ;;  %v10362_v21 = vsub.f32 %v10046_v9, %v10130_v57  ;;  %v10366_v29 = vsub.f32 %v10051_v23, %v10130_v57 }
 0x1fb   :  { %14865 = vst [vmem:[#allocation11_spill] sm:$0xff] %v10326_v25  ;;  %14866 = vst [vmem:[#allocation12_spill] sm:$0xff] %v10330_v30  ;;  %v14871_v25 = vld [vmem:[#allocation2_spill] sm:$0xff]  ;;  %v14873_v30 = vld [vmem:[#allocation3_spill] sm:$0xff]  ;;  %v10382_v9 = vsub.f32 %v10071_v39, %v10130_v57  ;;  %v10386_v23 = vsub.f32 %v10076_v43, %v10130_v57 }
 0x1fc   :  { %14867 = vst [vmem:[#allocation13_spill] sm:$0xff] %v10334_v35  ;;  %14868 = vst [vmem:[#allocation14_spill] sm:$0xff] %v10338_v40  ;;  %v10350_v59 = vsub.f32 %v14871_v25, %v10130_v57  ;;  %v10354_v4 = vsub.f32 %v14873_v30, %v10130_v57  ;;  %v14875_v35 = vld [vmem:[#allocation4_spill] sm:$0xff]  ;;  %v10370_v25 = vsub.f32 %v10056_v36, %v10130_v57 }
 0x1fd   :  { %14869 = vst [vmem:[#allocation15_spill] sm:$0xff] %v10342_v45  ;;  %14870 = vst [vmem:[#allocation16_spill] sm:$0xff] %v10346_v50  ;;  %v10358_v13 = vsub.f32 %v14875_v35, %v10130_v57  ;;  %v10374_v30 = vsub.f32 %v10061_v52, %v10130_v57  ;;  %v10378_v35 = vsub.f32 %v10066_v11, %v10130_v57 }
 0x1fe   :  { %14872 = vst [vmem:[#allocation2_spill] sm:$0xff] %v10350_v59  ;;  %14874 = vst [vmem:[#allocation3_spill] sm:$0xff] %v10354_v4 }
 0x1ff   :  { %14876 = vst [vmem:[#allocation4_spill] sm:$0xff] %v10358_v13  ;;  %14877 = vst [vmem:[#allocation29_spill] sm:$0xff] %v10362_v21 }
 0x200   :  { %14878 = vst [vmem:[#allocation30_spill] sm:$0xff] %v10366_v29  ;;  %14879 = vst [vmem:[#allocation31_spill] sm:$0xff] %v10370_v25  ;;  %v594_v29 = vlaneseq }
 0x201   :  { %14880 = vst [vmem:[#allocation32_spill] sm:$0xff] %v10374_v30  ;;  %14881 = vst [vmem:[#allocation33_spill] sm:$0xff] %v10378_v35 }
 0x202   :  { %14882 = vst [vmem:[#allocation34_spill] sm:$0xff] %v10382_v9  ;;  %14883 = vst [vmem:[#allocation35_spill] sm:$0xff] %v10386_v23  ;;  %v10388_v21 = vshrl.u32 %v594_v29, 7  ;;  %v14815_v23 = vmov 0.0  }
 0x204   :  { %14884 = vst [vmem:[#allocation36_spill] sm:$0xff] %v10388_v21  ;;  %v596_v36 = vadd.s32 8, %v10388_v21  ;;  %v659_v52 = vand.u32 7, %v10388_v21  ;;  %v597_v25 = vadd.s32 16, %v10388_v21  ;;  %v598_v11 = vadd.s32 24, %v10388_v21 }
 0x205   :  { %v599_v9 = vadd.s32 32, %v10388_v21  ;;  %v600_v57 = vadd.s32 40, %v10388_v21  ;;  %v601_v13 = vadd.s32 48, %v10388_v21  ;;  %v603_v59 = vadd.s32 64, %v10388_v21 }
 0x206   :  { %v660_v30 = vand.u32 7, %v596_v36  ;;  %vm723_vm0 = vcmp.lt.s32.totalorder %v659_v52, 2  ;;  %v661_v39 = vand.u32 7, %v597_v25  ;;  %v662_v43 = vand.u32 7, %v598_v11 }
 0x207   :  { %v10397_v29 = vsel %vm723_vm0, 1.0, %v14815_v23  ;;  %v663_v36 = vand.u32 7, %v599_v9  ;;  %v664_v4 = vand.u32 7, %v600_v57  ;;  %v602_v25 = vadd.s32 56, %v10388_v21 }
 0x208   :  { %vm724_vm1 = vcmp.lt.s32.totalorder %v660_v30, 2  ;;  %14885 = vst [vmem:[#allocation37_spill] sm:$0xff] %v10397_v29  ;;  %vm725_vm2 = vcmp.lt.s32.totalorder %v661_v39, 2  ;;  %vm726_vm3 = vcmp.lt.s32.totalorder %v662_v43, 2  ;;  %v1049_v30 = vmul.f32 %v10397_v29, %v10134_v14 }
 0x209   :  { %v10400_v35 = vsel %vm724_vm1, 1.0, %v14815_v23  ;;  %v10409_v11 = vsel %vm725_vm2, 1.0, %v14815_v23  ;;  %vm727_vm4 = vcmp.lt.s32.totalorder %v663_v36, 2  ;;  %v665_v39 = vand.u32 7, %v601_v13 }
 0x20a   :  { %14886 = vst [vmem:[#allocation38_spill] sm:$0xff] %v10400_v35  ;;  %v1050_v52 = vmul.f32 %v10400_v35, %v10138_v3  ;;  %14887 = vst [vmem:[#allocation39_spill] sm:$0xff] %v10409_v11  ;;  %v10413_v9 = vsel %vm726_vm3, 1.0, %v14815_v23  ;;  %vm728_vm5 = vcmp.lt.s32.totalorder %v664_v4, 2  ;;  %v604_v57 = vadd.s32 72, %v10388_v21 }
 0x20b   :  { %14888 = vst [vmem:[#allocation40_spill] sm:$0xff] %v10413_v9  ;;  %v666_v43 = vand.u32 7, %v602_v25  ;;  %v1051_v29 = vmul.f32 %v10409_v11, %v10142_v31  ;;  %v1113_v14 = vmul.f32 %v1049_v30, %v1049_v30  ;;  %v10419_v35 = vsel %vm727_vm4, 1.0, %v14815_v23 }
 0x20c   :  { %v1114_v50 = vmul.f32 %v1050_v52, %v1050_v52  ;;  %14889 = vst [vmem:[#allocation41_spill] sm:$0xff] %v10419_v35  ;;  %v667_v3 = vand.u32 7, %v603_v59  ;;  %vm729_vm6 = vcmp.lt.s32.totalorder %v665_v39, 2  ;;  %v605_v36 = vadd.s32 80, %v10388_v21 }
 0x20d   :  { %v1052_v13 = vmul.f32 %v10413_v9, %v10146_v26  ;;  %v10425_v4 = vsel %vm728_vm5, 1.0, %v14815_v23  ;;  %v668_v45 = vand.u32 7, %v604_v57  ;;  %v606_v25 = vadd.s32 88, %v10388_v21 }
 0x20e   :  { %14890 = vst [vmem:[#allocation42_spill] sm:$0xff] %v10425_v4  ;;  %vm730_vm7 = vcmp.lt.s32.totalorder %v666_v43, 2  ;;  %v1053_v30 = vmul.f32 %v10419_v35, %v10150_v38  ;;  %v1115_v52 = vmul.f32 %v1051_v29, %v1051_v29  ;;  %v1177_v11 = vadd.f32 %v1114_v50, %v1113_v14 }
 0x20f   :  { %v10431_v59 = vsel %vm729_vm6, 1.0, %v14815_v23  ;;  %vm731_vm8 = vcmp.lt.s32.totalorder %v667_v3, 2  ;;  %v607_v39 = vadd.s32 96, %v10388_v21  ;;  %v669_v31 = vand.u32 7, %v605_v36 }
 0x210   :  { %14891 = vst [vmem:[#allocation43_spill] sm:$0xff] %v10431_v59  ;;  %v1054_v9 = vmul.f32 %v10425_v4, %v10154_v51  ;;  %v1116_v26 = vmul.f32 %v1052_v13, %v1052_v13  ;;  %v1178_v57 = vadd.f32 %v1177_v11, %v1115_v52  ;;  %v10437_v40 = vsel %vm730_vm7, 1.0, %v14815_v23 }
 0x211   :  { %14892 = vst [vmem:[#allocation44_spill] sm:$0xff] %v10437_v40  ;;  %vm732_vm9 = vcmp.lt.s32.totalorder %v668_v45, 2  ;;  %v670_v43 = vand.u32 7, %v606_v25  ;;  %v608_v29 = vadd.s32 104, %v10388_v21  ;;  %v1055_v14 = vmul.f32 %v10431_v59, %v10158_v55 }
 0x212   :  { %v1117_v50 = vmul.f32 %v1053_v30, %v1053_v30  ;;  %v1179_v3 = vadd.f32 %v1178_v57, %v1116_v26  ;;  %v10443_v35 = vsel %vm731_vm8, 1.0, %v14815_v23  ;;  %v671_v36 = vand.u32 7, %v607_v39 }
 0x213   :  { %14893 = vst [vmem:[#allocation45_spill] sm:$0xff] %v10443_v35  ;;  %v609_v38 = vadd.s32 112, %v10388_v21  ;;  %vm733_vm10 = vcmp.lt.s32.totalorder %v669_v31, 2  ;;  %v1056_v11 = vmul.f32 %v10437_v40, %v10162_v60  ;;  %v1118_v13 = vmul.f32 %v1054_v9, %v1054_v9 }
 0x214   :  { %v1180_v45 = vadd.f32 %v1179_v3, %v1117_v50  ;;  %v10449_v25 = vsel %vm732_vm9, 1.0, %v14815_v23  ;;  %vm734_vm11 = vcmp.lt.s32.totalorder %v670_v43, 2  ;;  %v610_v52 = vadd.s32 120, %v10388_v21 }
 0x215   :  { %14894 = vst [vmem:[#allocation46_spill] sm:$0xff] %v10449_v25  ;;  %v672_v30 = vand.u32 7, %v608_v29  ;;  %v1057_v26 = vmul.f32 %v10443_v35, %v10166_v2  ;;  %v1119_v57 = vmul.f32 %v1055_v14, %v1055_v14  ;;  %v10455_v59 = vsel %vm733_vm10, 1.0, %v14815_v23 }
 0x216   :  { %v1181_v39 = vadd.f32 %v1180_v45, %v1118_v13  ;;  %14895 = vst [vmem:[#allocation47_spill] sm:$0xff] %v10455_v59  ;;  %vm735_vm12 = vcmp.lt.s32.totalorder %v671_v36, 2  ;;  %v673_v31 = vand.u32 7, %v609_v38  ;;  %v611_v9 = vadd.s32 128, %v10388_v21 }
 0x217   :  { %v1058_v50 = vmul.f32 %v10449_v25, %v10170_v7  ;;  %v1120_v3 = vmul.f32 %v1056_v11, %v1056_v11  ;;  %v10461_v40 = vsel %vm734_vm11, 1.0, %v14815_v23  ;;  %v674_v29 = vand.u32 7, %v610_v52 }
 0x218   :  { %v1182_v43 = vadd.f32 %v1181_v39, %v1119_v57  ;;  %14896 = vst [vmem:[#allocation48_spill] sm:$0xff] %v10461_v40  ;;  %v612_v35 = vadd.s32 136, %v10388_v21  ;;  %vm736_vm13 = vcmp.lt.s32.totalorder %v672_v30, 2  ;;  %v1059_v14 = vmul.f32 %v10455_v59, %v10174_v12 }
 0x219   :  { %v1121_v13 = vmul.f32 %v1057_v26, %v1057_v26  ;;  %v10467_v38 = vsel %vm735_vm12, 1.0, %v14815_v23  ;;  %vm737_vm14 = vcmp.lt.s32.totalorder %v673_v31, 2  ;;  %v613_v45 = vadd.s32 144, %v10388_v21 }
 0x21a   :  { %v1183_v36 = vadd.f32 %v1182_v43, %v1120_v3  ;;  %14897 = vst [vmem:[#allocation49_spill] sm:$0xff] %v10467_v38  ;;  %v675_v11 = vand.u32 7, %v611_v9  ;;  %v1060_v57 = vmul.f32 %v10461_v40, %v10178_v17  ;;  %v1122_v39 = vmul.f32 %v1058_v50, %v1058_v50 }
 0x21b   :  { %v10473_v25 = vsel %vm736_vm13, 1.0, %v14815_v23  ;;  %vm738_vm15 = vcmp.lt.s32.totalorder %v674_v29, 2  ;;  %v676_v30 = vand.u32 7, %v612_v35  ;;  %v614_v26 = vadd.s32 152, %v10388_v21 }
 0x21c   :  { %v1184_v52 = vadd.f32 %v1183_v36, %v1121_v13  ;;  %14898 = vst [vmem:[#allocation50_spill] sm:$0xff] %v10473_v25  ;;  %v1061_v3 = vmul.f32 %v10467_v38, %v10182_v22  ;;  %v1123_v43 = vmul.f32 %v1059_v14, %v1059_v14  ;;  %v10479_v59 = vsel %vm737_vm14, 1.0, %v14815_v23 }
 0x21d   :  { %14899 = vst [vmem:[#allocation51_spill] sm:$0xff] %v10479_v59  ;;  %v677_v9 = vand.u32 7, %v613_v45  ;;  %v615_v40 = vadd.s32 160, %v10388_v21  ;;  %vm739_vm0 = vcmp.lt.s32.totalorder %v675_v11, 2  ;;  %v1062_v50 = vmul.f32 %v10473_v25, %v10186_v27 }
 0x21e   :  { %v1185_v31 = vadd.f32 %v1184_v52, %v1122_v39  ;;  %v1124_v13 = vmul.f32 %v1060_v57, %v1060_v57  ;;  %v10485_v35 = vsel %vm738_vm15, 1.0, %v14815_v23  ;;  %vm740_vm1 = vcmp.lt.s32.totalorder %v676_v30, 2 }
 0x21f   :  { %14900 = vst [vmem:[#allocation52_spill] sm:$0xff] %v10485_v35  ;;  %v616_v36 = vadd.s32 168, %v10388_v21  ;;  %v678_v14 = vand.u32 7, %v614_v26  ;;  %v1063_v39 = vmul.f32 %v10479_v59, %v10190_v32  ;;  %v1125_v52 = vmul.f32 %v1061_v3, %v1061_v3 }
 0x220   :  { %v1186_v29 = vadd.f32 %v1185_v31, %v1123_v43  ;;  %v10491_v38 = vsel %vm739_vm0, 1.0, %v14815_v23  ;;  %vm741_vm2 = vcmp.lt.s32.totalorder %v677_v9, 2  ;;  %v679_v11 = vand.u32 7, %v615_v40 }
 0x221   :  { %14901 = vst [vmem:[#allocation53_spill] sm:$0xff] %v10491_v38  ;;  %v617_v57 = vadd.s32 176, %v10388_v21  ;;  %v1064_v43 = vmul.f32 %v10485_v35, %v10194_v37  ;;  %v1126_v31 = vmul.f32 %v1062_v50, %v1062_v50  ;;  %v10497_v25 = vsel %vm740_vm1, 1.0, %v14815_v23 }
 0x222   :  { %v1187_v45 = vadd.f32 %v1186_v29, %v1124_v13  ;;  %14902 = vst [vmem:[#allocation54_spill] sm:$0xff] %v10497_v25  ;;  %v680_v26 = vand.u32 7, %v616_v36  ;;  %v618_v59 = vadd.s32 184, %v10388_v21  ;;  %vm742_vm3 = vcmp.lt.s32.totalorder %v678_v14, 2 }
 0x223   :  { %v1065_v3 = vmul.f32 %v10491_v38, %v10198_v42  ;;  %v1127_v13 = vmul.f32 %v1063_v39, %v1063_v39  ;;  %v10503_v40 = vsel %vm741_vm2, 1.0, %v14815_v23  ;;  %vm743_vm4 = vcmp.lt.s32.totalorder %v679_v11, 2 }
 0x224   :  { %v1188_v30 = vadd.f32 %v1187_v45, %v1125_v52  ;;  %14903 = vst [vmem:[#allocation55_spill] sm:$0xff] %v10503_v40  ;;  %v619_v29 = vadd.s32 192, %v10388_v21  ;;  %v681_v50 = vand.u32 7, %v617_v57  ;;  %v1066_v52 = vmul.f32 %v10497_v25, %v10202_v47 }
 0x225   :  { %v1128_v45 = vmul.f32 %v1064_v43, %v1064_v43  ;;  %v10509_v35 = vsel %vm742_vm3, 1.0, %v14815_v23  ;;  %vm744_vm5 = vcmp.lt.s32.totalorder %v680_v26, 2  ;;  %v682_v14 = vand.u32 7, %v618_v59 }
 0x226   :  { %v1189_v9 = vadd.f32 %v1188_v30, %v1126_v31  ;;  %14904 = vst [vmem:[#allocation56_spill] sm:$0xff] %v10509_v35  ;;  %v620_v39 = vadd.s32 200, %v10388_v21  ;;  %v1067_v31 = vmul.f32 %v10503_v40, %v10206_v54  ;;  %v1129_v30 = vmul.f32 %v1065_v3, %v1065_v3 }
 0x227   :  { %v10515_v38 = vsel %vm743_vm4, 1.0, %v14815_v23  ;;  %v683_v57 = vand.u32 7, %v619_v29  ;;  %v621_v42 = vadd.s32 208, %v10388_v21  ;;  %vm745_vm6 = vcmp.lt.s32.totalorder %v681_v50, 2 }
 0x228   :  { %v1190_v36 = vadd.f32 %v1189_v9, %v1127_v13  ;;  %14905 = vst [vmem:[#allocation57_spill] sm:$0xff] %v10515_v38  ;;  %v1068_v43 = vmul.f32 %v10509_v35, %v10210_v62  ;;  %v1130_v13 = vmul.f32 %v1066_v52, %v1066_v52  ;;  %v10521_v59 = vsel %vm744_vm5, 1.0, %v14815_v23  ;;  %v14918_v35 = vld [vmem:[#allocation5_spill] sm:$0xff] }
 0x229   :  { %14906 = vst [vmem:[#allocation58_spill] sm:$0xff] %v10521_v59  ;;  %vm746_vm7 = vcmp.lt.s32.totalorder %v682_v14, 2  ;;  %v622_v9 = vadd.s32 216, %v10388_v21  ;;  %v684_v3 = vand.u32 7, %v620_v39  ;;  %v10527_v40 = vsel %vm745_vm6, 1.0, %v14815_v23 }
 0x22a   :  { %v1191_v11 = vadd.f32 %v1190_v36, %v1128_v45  ;;  %v1069_v45 = vmul.f32 %v10515_v38, %v10214_v8  ;;  %v1131_v36 = vmul.f32 %v1067_v31, %v1067_v31  ;;  %14907 = vst [vmem:[#allocation59_spill] sm:$0xff] %v10527_v40  ;;  %vm747_vm8 = vcmp.lt.s32.totalorder %v683_v57, 2 }
 0x22b   :  { %v685_v50 = vand.u32 7, %v621_v42  ;;  %v623_v52 = vadd.s32 224, %v10388_v21  ;;  %v10533_v54 = vsel %vm746_vm7, 1.0, %v14815_v23  ;;  %v686_v39 = vand.u32 7, %v622_v9 }
 0x22c   :  { %v1192_v26 = vadd.f32 %v1191_v11, %v1129_v30  ;;  %v1070_v30 = vmul.f32 %v10521_v59, %v10218_v16  ;;  %v1132_v11 = vmul.f32 %v1068_v43, %v1068_v43  ;;  %14908 = vst [vmem:[#allocation60_spill] sm:$0xff] %v10533_v54  ;;  %v624_v38 = vadd.s32 232, %v10388_v21 }
 0x22d   :  { %vm748_vm9 = vcmp.lt.s32.totalorder %v684_v3, 2  ;;  %v1071_v31 = vmul.f32 %v10527_v40, %v10222_v24  ;;  %v10539_v42 = vsel %vm747_vm8, 1.0, %v14815_v23  ;;  %vm10541_vm10 = vcmp.lt.s32.totalorder %v685_v50, 2 }
 0x22e   :  { %v1193_v29 = vadd.f32 %v1192_v26, %v1130_v13  ;;  %v1133_v13 = vmul.f32 %v1069_v45, %v1069_v45  ;;  %14909 = vst [vmem:[#allocation61_spill] sm:$0xff] %v10539_v42  ;;  %v625_v43 = vadd.s32 240, %v10388_v21  ;;  %v1072_v9 = vmul.f32 %v10533_v54, %v10226_v33  ;;  %v14923_v45 = vld [vmem:[#allocation6_spill] sm:$0xff] }
 0x22f   :  { %v10549_v8 = vsel %vm748_vm9, 1.0, %v14815_v23  ;;  %vm10551_vm11 = vcmp.lt.s32.totalorder %v686_v39, 2  ;;  %v626_v50 = vadd.s32 248, %v10388_v21  ;;  %v627_v40 = vadd.s32 256, %v10388_v21 }
 0x230   :  { %v1194_v14 = vadd.f32 %v1193_v29, %v1131_v36  ;;  %v687_v36 = vand.u32 7, %v623_v52  ;;  %v1134_v29 = vmul.f32 %v1070_v30, %v1070_v30  ;;  %14912 = vst [vmem:[#allocation62_spill] sm:$0xff] %v10549_v8  ;;  %v5788_v52 = vld [vmem:[%s14677_s4 + $0x88] sm:$0xff]  ;;  %v1073_v30 = vmul.f32 %v10539_v42, %v10230_v41 }
 0x231   :  { %v689_v54 = vand.u32 7, %v625_v43  ;;  %v1074_v25 = vmul.f32 %v10549_v8, %v14918_v35  ;;  %v1136_v4 = vmul.f32 %v1072_v9, %v1072_v9  ;;  %v690_v43 = vand.u32 7, %v626_v50  ;;  %v5789_v9 = vld [vmem:[%s14677_s4 + $0x90] sm:$0xff] }
 0x232   :  { %v1195_v57 = vadd.f32 %v1194_v14, %v1132_v11  ;;  %v688_v11 = vand.u32 7, %v624_v38  ;;  %v5787_v14 = vld [vmem:[%s14677_s4 + $0x80] sm:$0xff]  ;;  %v10567_v38 = vsel %vm10541_vm10, 1.0, %v14815_v23  ;;  %vm10570_vm12 = vcmp.lt.s32.totalorder %v687_v36, 2 }
 0x233   :  { %v8020_v39 = vpack.c.bf16 %v5788_v52, %v5787_v14  ;;  %14915 = vst [vmem:[#allocation63_spill] sm:$0xff] %v10567_v38  ;;  %v628_v36 = vadd.s32 264, %v10388_v21  ;;  %v1075_v14 = vmul.f32 %v10567_v38, %v14923_v45  ;;  %v10598_v50 = vsel %vm10570_vm12, 1.0, %v14815_v23 }
 0x234   :  { %v1196_v3 = vadd.f32 %v1195_v57, %v1133_v13  ;;  %v1135_v13 = vmul.f32 %v1071_v31, %v1071_v31  ;;  %v10579_v31 = vsel %vm10551_vm11, 1.0, %v14815_v23  ;;  %vm10581_vm13 = vcmp.lt.s32.totalorder %v688_v11, 2  ;;  %14924 = vst [vmem:[#allocation6_spill] sm:$0xff] %v10598_v50 }
 0x235   :  { %8021 = vmatpush3.bf16.msra.mxu1 %v8020_v39  ;;  %14919 = vst [vmem:[#allocation5_spill] sm:$0xff] %v10579_v31  ;;  %v1137_v11 = vmul.f32 %v1073_v30, %v1073_v30  ;;  %vm10600_vm14 = vcmp.lt.s32.totalorder %v689_v54, 2  ;;  %v691_v39 = vand.u32 7, %v627_v40  ;;  %v629_v8 = vadd.s32 272, %v10388_v21  ;;  %v14930_v30 = vld [vmem:[#allocation7_spill] sm:$0xff] }
 0x236   :  { %v1197_v57 = vadd.f32 %v1196_v3, %v1134_v29  ;;  %v14922_v29 = vmov 0.0|0.0   ;;  %v5790_v3 = vld [vmem:[%s14677_s4 + $0x98] sm:$0xff]  ;;  %v1076_v16 = vmul.f32 %v10579_v31, %v10242_v34  ;;  %v1138_v62 = vmul.f32 %v1074_v25, %v1074_v25  ;;  %v5791_v25 = vld [vmem:[%s14677_s4 + $0xa0] sm:$0xff] }
 0x237   :  { %8022 = vmatprep.subr.bf16.mxu1 %v14922_v29  ;;  %vm10612_vm15 = vcmp.lt.s32.totalorder %v690_v43, 2  ;;  %v692_v54 = vand.u32 7, %v628_v36  ;;  %v630_v40 = vadd.s32 280, %v10388_v21  ;;  %v1077_v26 = vmul.f32 %v10598_v50, %v14930_v30 }
 0x238   :  { %v1198_v42 = vadd.f32 %v1197_v57, %v1135_v13  ;;  %v8023_v13 = vpack.c.bf16 %v5790_v3, %v5789_v9  ;;  %v1139_v43 = vmul.f32 %v1075_v14, %v1075_v14  ;;  %v631_v36 = vadd.s32 288, %v10388_v21 }
 0x239   :  { %vm10632_vm0 = vcmp.lt.s32.totalorder %v691_v39, 2  ;;  %v1140_v47 = vmul.f32 %v1076_v16, %v1076_v16  ;;  %vm10644_vm1 = vcmp.lt.s32.totalorder %v692_v54, 2  ;;  %v694_v57 = vand.u32 7, %v630_v40  ;;  %v5794_v16 = vld [vmem:[%s14677_s4 + $0xb8] sm:$0xff] }
 0x23a   :  { %v1199_v52 = vadd.f32 %v1198_v42, %v1136_v4  ;;  %8024 = vmatpush3.bf16.msra.mxu1 %v8023_v13  ;;  %v10610_v4 = vsel %vm10581_vm13, 1.0, %v14815_v23  ;;  %v5792_v42 = vld [vmem:[%s14677_s4 + $0xa8] sm:$0xff]  ;;  %v693_v13 = vand.u32 7, %v629_v8  ;;  %v5793_v8 = vld [vmem:[%s14677_s4 + $0xb0] sm:$0xff]  ;;  %v1141_v59 = vmul.f32 %v1077_v26, %v1077_v26 }
 0x23b   :  { %14927 = vst [vmem:[#allocation64_spill] sm:$0xff] %v10610_v4  ;;  %8025 = vmatprep.subr.bf16.mxu1 %v14922_v29  ;;  %v8026_v3 = vpack.c.bf16 %v5792_v42, %v5791_v25  ;;  %v1078_v31 = vmul.f32 %v10610_v4, %v10250_v44  ;;  %v8029_v54 = vpack.c.bf16 %v5794_v16, %v5793_v8  ;;  %v695_v42 = vand.u32 7, %v631_v36 }
 0x23c   :  { %v1200_v38 = vadd.f32 %v1199_v52, %v1137_v11  ;;  %v10630_v11 = vsel %vm10600_vm14, 1.0, %v14815_v23  ;;  %v10661_v40 = vsel %vm10632_vm0, 1.0, %v14815_v23  ;;  %vm10663_vm2 = vcmp.lt.s32.totalorder %v693_v13, 2  ;;  %v5796_v52 = vld [vmem:[%s14677_s4 + $0xc8] sm:$0xff] }
 0x23d   :  { %14931 = vst [vmem:[#allocation7_spill] sm:$0xff] %v10630_v11  ;;  %v1079_v39 = vmul.f32 %v10630_v11, %v10254_v48  ;;  %14937 = vst [vmem:[#allocation66_spill] sm:$0xff] %v10661_v40  ;;  %v1142_v4 = vmul.f32 %v1078_v31, %v1078_v31  ;;  %v10673_v26 = vsel %vm10644_vm1, 1.0, %v14815_v23  ;;  %vm10675_vm3 = vcmp.lt.s32.totalorder %v694_v57, 2  ;;  %v5795_v31 = vld [vmem:[%s14677_s4 + $0xc0] sm:$0xff] }
 0x23e   :  { %v1201_v9 = vadd.f32 %v1200_v38, %v1138_v62  ;;  %8027 = vmatpush3.bf16.msra.mxu1 %v8026_v3  ;;  %v632_v62 = vadd.s32 296, %v10388_v21  ;;  %v10642_v38 = vsel %vm10612_vm15, 1.0, %v14815_v23  ;;  %14940 = vst [vmem:[#allocation67_spill] sm:$0xff] %v10673_v26  ;;  %v1081_v13 = vmul.f32 %v10661_v40, %v10262_v56 }
 0x23f   :  { %14934 = vst [vmem:[#allocation65_spill] sm:$0xff] %v10642_v38  ;;  %8028 = vmatprep.subr.bf16.mxu1 %v14922_v29  ;;  %v1080_v3 = vmul.f32 %v10642_v38, %v10258_v61  ;;  %v8032_v8 = vpack.c.bf16 %v5796_v52, %v5795_v31  ;;  %vm10688_vm4 = vcmp.lt.s32.totalorder %v695_v42, 2  ;;  %v635_v16 = vadd.s32 320, %v10388_v21 }
 0x240   :  { %v1202_v50 = vadd.f32 %v1201_v9, %v1139_v43  ;;  %v633_v43 = vadd.s32 304, %v10388_v21  ;;  %v10708_v42 = vsel %vm10675_vm3, 1.0, %v14815_v23  ;;  %v5798_v9 = vld [vmem:[%s14677_s4 + $0xd8] sm:$0xff]  ;;  %v10722_v36 = vsel %vm10688_vm4, 1.0, %v14815_v23 }
 0x241   :  { %v1144_v38 = vmul.f32 %v1080_v3, %v1080_v3  ;;  %14948 = vst [vmem:[#allocation69_spill] sm:$0xff] %v10708_v42  ;;  %14949 = vst [vmem:[#allocation70_spill] sm:$0xff] %v10722_v36  ;;  %v699_v52 = vand.u32 7, %v635_v16  ;;  %v638_v57 = vadd.s32 344, %v10388_v21  ;;  %v5799_v16 = vld [vmem:[%s14677_s4 + $0xe0] sm:$0xff]  ;;  %vm9348_vm12 = vmmov 0  }
 0x242   :  { %v1203_v25 = vadd.f32 %v1202_v50, %v1140_v47  ;;  %8030 = vmatpush3.bf16.msra.mxu1 %v8029_v54  ;;  %v696_v47 = vand.u32 7, %v632_v62  ;;  %v634_v50 = vadd.s32 312, %v10388_v21  ;;  %v1143_v62 = vmul.f32 %v1079_v39, %v1079_v39  ;;  %6744 = vmatprep.mubr.msk.f32.mxu1 %vm9348_vm12, %v14815_v23 }
 0x243   :  { %8031 = vmatprep.subr.bf16.mxu1 %v14922_v29  ;;  %v1082_v54 = vmul.f32 %v10673_v26, %v10266_v18  ;;  %v636_v39 = vadd.s32 328, %v10388_v21  ;;  %vm10755_vm8 = vcmp.lt.s32.totalorder %v699_v52, 2  ;;  %v640_v52 = vadd.s32 360, %v10388_v21  ;;  %7688 = vmatprep.mubr.msk.f32.mxu0 %vm9348_vm12, %v14815_v23 }
 0x244   :  { %v1204_v11 = vadd.f32 %v1203_v25, %v1141_v59  ;;  %v10696_v59 = vsel %vm10663_vm2, 1.0, %v14815_v23  ;;  %v697_v25 = vand.u32 7, %v633_v43  ;;  %vm10700_vm5 = vcmp.lt.s32.totalorder %v696_v47, 2  ;;  %v5797_v43 = vld [vmem:[%s14677_s4 + $0xd0] sm:$0xff] }
 0x245   :  { %14945 = vst [vmem:[#allocation68_spill] sm:$0xff] %v10696_v59  ;;  %v1083_v3 = vmul.f32 %v10696_v59, %v10270_v46  ;;  %v1145_v47 = vmul.f32 %v1081_v13, %v1081_v13  ;;  %v8035_v31 = vpack.c.bf16 %v5798_v9, %v5797_v43  ;;  %v1146_v26 = vmul.f32 %v1082_v54, %v1082_v54 }
 0x246   :  { %v1205_v14 = vadd.f32 %v1204_v11, %v1142_v4  ;;  %8033 = vmatpush3.bf16.msra.mxu1 %v8032_v8  ;;  %v698_v11 = vand.u32 7, %v634_v50  ;;  %vm10725_vm6 = vcmp.lt.s32.totalorder %v697_v25, 2  ;;  %v1084_v8 = vmul.f32 %v10708_v42, %v10274_v0  ;;  %v5800_v25 = vld [vmem:[%s14677_s4 + $0xe8] sm:$0xff] }
 0x247   :  { %8034 = vmatprep.subr.bf16.mxu1 %v14922_v29  ;;  %v700_v13 = vand.u32 7, %v636_v39  ;;  %v1085_v54 = vmul.f32 %v10722_v36, %v10278_v49  ;;  %v1147_v4 = vmul.f32 %v1083_v3, %v1083_v3  ;;  %v8038_v43 = vpack.c.bf16 %v5800_v25, %v5799_v16 }
 0x248   :  { %v1206_v40 = vadd.f32 %v1205_v14, %v1143_v62  ;;  %v637_v62 = vadd.s32 336, %v10388_v21  ;;  %vm10736_vm7 = vcmp.lt.s32.totalorder %v698_v11, 2  ;;  %v10753_v39 = vsel %vm10725_vm6, 1.0, %v14815_v23  ;;  %v5802_v14 = vld [vmem:[%s14677_s4 + $0xf8] sm:$0xff] }
 0x249   :  { %14955 = vst [vmem:[#allocation72_spill] sm:$0xff] %v10753_v39  ;;  %v1148_v42 = vmul.f32 %v1084_v8, %v1084_v8  ;;  %vm10767_vm9 = vcmp.lt.s32.totalorder %v700_v13, 2  ;;  %v702_v3 = vand.u32 7, %v638_v57  ;;  %v1087_v8 = vmul.f32 %v10753_v39, %v10286_v6 }
 0x24a   :  { %v1207_v50 = vadd.f32 %v1206_v40, %v1144_v38  ;;  %8036 = vmatpush3.bf16.msra.mxu1 %v8035_v31  ;;  %v10734_v38 = vsel %vm10700_vm5, 1.0, %v14815_v23  ;;  %v1149_v40 = vmul.f32 %v1085_v54, %v1085_v54  ;;  %v10784_v57 = vsel %vm10755_vm8, 1.0, %v14815_v23 }
 0x24b   :  { %14952 = vst [vmem:[#allocation71_spill] sm:$0xff] %v10734_v38  ;;  %8037 = vmatprep.subr.bf16.mxu1 %v14922_v29  ;;  %v1086_v31 = vmul.f32 %v10734_v38, %v10282_v1  ;;  %14961 = vst [vmem:[#allocation74_spill] sm:$0xff] %v10784_v57  ;;  %vm10798_vm11 = vcmp.lt.s32.totalorder %v702_v3, 2  ;;  %v642_v54 = vadd.s32 376, %v10388_v21  ;;  %v704_v9 = vand.u32 7, %v640_v52 }
 0x24c   :  { %v1208_v59 = vadd.f32 %v1207_v50, %v1145_v47  ;;  %v701_v47 = vand.u32 7, %v637_v62  ;;  %v639_v50 = vadd.s32 352, %v10388_v21  ;;  %v5801_v62 = vld [vmem:[%s14677_s4 + $0xf0] sm:$0xff]  ;;  %v643_v52 = vadd.s32 384, %v10388_v21 }
 0x24d   :  { %v8041_v16 = vpack.c.bf16 %v5802_v14, %v5801_v62  ;;  %v1150_v38 = vmul.f32 %v1086_v31, %v1086_v31  ;;  %v10821_v14 = vsel %vm10798_vm11, 1.0, %v14815_v23  ;;  %vm768_vm14 = vcmp.lt.s32.totalorder %v704_v9, 2 }
 0x24e   :  { %v1209_v11 = vadd.f32 %v1208_v59, %v1146_v26  ;;  %8039 = vmatpush3.bf16.msra.mxu1 %v8038_v43  ;;  %v10765_v26 = vsel %vm10736_vm7, 1.0, %v14815_v23  ;;  %vm10786_vm10 = vcmp.lt.s32.totalorder %v701_v47, 2  ;;  %v1089_v47 = vmul.f32 %v10784_v57, %v10294_v19  ;;  %14968 = vst [vmem:[#allocation77_spill] sm:$0xff] %v10821_v14 }
 0x24f   :  { %14958 = vst [vmem:[#allocation73_spill] sm:$0xff] %v10765_v26  ;;  %8040 = vmatprep.subr.bf16.mxu1 %v14922_v29  ;;  %v1088_v43 = vmul.f32 %v10765_v26, %v10290_v28  ;;  %v10813_v59 = vsel %vm10786_vm10, 1.0, %v14815_v23 }
 0x250   :  { %v1210_v36 = vadd.f32 %v1209_v11, %v1147_v4  ;;  %v641_v4 = vadd.s32 368, %v10388_v21  ;;  %v703_v11 = vand.u32 7, %v639_v50  ;;  %v1151_v50 = vmul.f32 %v1087_v8, %v1087_v8  ;;  %14967 = vst [vmem:[#allocation76_spill] sm:$0xff] %v10813_v59 }
 0x251   :  { %v706_v8 = vand.u32 7, %v642_v54 }
 0x252   :  { %v1211_v13 = vadd.f32 %v1210_v36, %v1148_v42  ;;  %8042 = vmatpush3.bf16.msra.mxu1 %v8041_v16  ;;  %v10796_v42 = vsel %vm10767_vm9, 1.0, %v14815_v23  ;;  %v705_v3 = vand.u32 7, %v641_v4  ;;  %vm767_vm13 = vcmp.lt.s32.totalorder %v703_v11, 2 }
 0x253   :  { %14964 = vst [vmem:[#allocation75_spill] sm:$0xff] %v10796_v42  ;;  %8043 = vmatprep.subr.bf16.mxu1 %v14922_v29  ;;  %v1090_v62 = vmul.f32 %v10796_v42, %v10298_v53  ;;  %v1153_v16 = vmul.f32 %v1089_v47, %v1089_v47  ;;  %v10827_v4 = vsel %vm767_vm13, 1.0, %v14815_v23  ;;  %v707_v11 = vand.u32 7, %v643_v52 }
 0x254   :  { %v1212_v39 = vadd.f32 %v1211_v13, %v1149_v40  ;;  %v644_v40 = vadd.s32 392, %v10388_v21  ;;  %v1091_v13 = vmul.f32 %v10813_v59, %v10302_v58  ;;  %14969 = vst [vmem:[#allocation78_spill] sm:$0xff] %v10827_v4  ;;  %vm769_vm15 = vcmp.lt.s32.totalorder %v705_v3, 2 }
 0x255   :  { %v1092_v36 = vmul.f32 %v10821_v14, %v10306_v63  ;;  %vm770_vm0 = vcmp.lt.s32.totalorder %v706_v8, 2  ;;  %v646_v47 = vadd.s32 408, %v10388_v21  ;;  %v10839_v52 = vsel %vm769_vm15, 1.0, %v14815_v23 }
 0x256   :  { %v1213_v31 = vadd.f32 %v1212_v39, %v1150_v38  ;;  %v1152_v38 = vmul.f32 %v1088_v43, %v1088_v43  ;;  %v645_v43 = vadd.s32 400, %v10388_v21  ;;  %v708_v9 = vand.u32 7, %v644_v40  ;;  %14971 = vst [vmem:[#allocation80_spill] sm:$0xff] %v10839_v52 }
 0x257   :  { %vm771_vm1 = vcmp.lt.s32.totalorder %v707_v11, 2  ;;  %v647_v14 = vadd.s32 416, %v10388_v21  ;;  %v10845_v40 = vsel %vm770_vm0, 1.0, %v14815_v23  ;;  %v648_v42 = vadd.s32 424, %v10388_v21 }
 0x258   :  { %v1214_v39 = vadd.f32 %v1213_v31, %v1151_v50  ;;  %v1154_v50 = vmul.f32 %v1090_v62, %v1090_v62  ;;  %v10833_v31 = vsel %vm768_vm14, 1.0, %v14815_v23  ;;  %v709_v62 = vand.u32 7, %v645_v43  ;;  %14972 = vst [vmem:[#allocation81_spill] sm:$0xff] %v10845_v40 }
 0x259   :  { %14970 = vst [vmem:[#allocation79_spill] sm:$0xff] %v10833_v31  ;;  %vm772_vm2 = vcmp.lt.s32.totalorder %v708_v9, 2  ;;  %v711_v43 = vand.u32 7, %v647_v14 }
 0x25a   :  { %v1215_v25 = vadd.f32 %v1214_v39, %v1152_v38  ;;  %v1093_v38 = vmul.f32 %v10827_v4, %v10310_v5  ;;  %v1155_v39 = vmul.f32 %v1091_v13, %v1091_v13  ;;  %v710_v13 = vand.u32 7, %v646_v47 }
 0x25b   :  { %v10851_v4 = vsel %vm771_vm1, 1.0, %v14815_v23  ;;  %vm773_vm3 = vcmp.lt.s32.totalorder %v709_v62, 2  ;;  %v712_v47 = vand.u32 7, %v648_v42  ;;  %vm775_vm5 = vcmp.lt.s32.totalorder %v711_v43, 2 }
 0x25c   :  { %v1216_v54 = vadd.f32 %v1215_v25, %v1153_v16  ;;  %v1094_v16 = vmul.f32 %v10833_v31, %v10314_v10  ;;  %v1156_v25 = vmul.f32 %v1092_v36, %v1092_v36  ;;  %14973 = vst [vmem:[#allocation82_spill] sm:$0xff] %v10851_v4  ;;  %v649_v31 = vadd.s32 432, %v10388_v21 }
 0x25d   :  { %v1096_v36 = vmul.f32 %v10845_v40, %v10322_v20  ;;  %vm774_vm4 = vcmp.lt.s32.totalorder %v710_v13, 2  ;;  %v10863_v59 = vsel %vm773_vm3, 1.0, %v14815_v23  ;;  %vm776_vm6 = vcmp.lt.s32.totalorder %v712_v47, 2 }
 0x25e   :  { %v1217_v3 = vadd.f32 %v1216_v54, %v1154_v50  ;;  %v1095_v50 = vmul.f32 %v10839_v52, %v10318_v15  ;;  %v1157_v54 = vmul.f32 %v1093_v38, %v1093_v38  ;;  %v650_v52 = vadd.s32 440, %v10388_v21  ;;  %v14975_v38 = vld [vmem:[#allocation11_spill] sm:$0xff] }
 0x25f   :  { %14976 = vst [vmem:[#allocation11_spill] sm:$0xff] %v10863_v59  ;;  %v713_v62 = vand.u32 7, %v649_v31  ;;  %v1160_v40 = vmul.f32 %v1096_v36, %v1096_v36  ;;  %v10869_v57 = vsel %vm774_vm4, 1.0, %v14815_v23  ;;  %v10875_v31 = vsel %vm775_vm5, 1.0, %v14815_v23 }
 0x260   :  { %v1218_v8 = vadd.f32 %v1217_v3, %v1155_v39  ;;  %v1158_v39 = vmul.f32 %v1094_v16, %v1094_v16  ;;  %v10857_v3 = vsel %vm772_vm2, 1.0, %v14815_v23  ;;  %v651_v16 = vadd.s32 448, %v10388_v21 }
 0x261   :  { %14974 = vst [vmem:[#allocation83_spill] sm:$0xff] %v10857_v3  ;;  %v714_v13 = vand.u32 7, %v650_v52  ;;  %vm777_vm7 = vcmp.lt.s32.totalorder %v713_v62, 2  ;;  %v10881_v52 = vsel %vm776_vm6, 1.0, %v14815_v23 }
 0x262   :  { %v1219_v11 = vadd.f32 %v1218_v8, %v1156_v25  ;;  %v1097_v25 = vmul.f32 %v10851_v4, %v14975_v38  ;;  %v1159_v8 = vmul.f32 %v1095_v50, %v1095_v50  ;;  %v652_v50 = vadd.s32 456, %v10388_v21 }
 0x263   :  { %v715_v36 = vand.u32 7, %v651_v16  ;;  %vm778_vm8 = vcmp.lt.s32.totalorder %v714_v13, 2  ;;  %v10887_v0 = vsel %vm777_vm7, 1.0, %v14815_v23 }
 0x264   :  { %v1220_v9 = vadd.f32 %v1219_v11, %v1157_v54  ;;  %v14977_v54 = vld [vmem:[#allocation12_spill] sm:$0xff]  ;;  %v1161_v4 = vmul.f32 %v1097_v25, %v1097_v25  ;;  %v716_v25 = vand.u32 7, %v652_v50  ;;  %v10893_v18 = vsel %vm778_vm8, 1.0, %v14815_v23 }
 0x265   :  { %v1098_v11 = vmul.f32 %v10857_v3, %v14977_v54  ;;  %14978 = vst [vmem:[#allocation12_spill] sm:$0xff] %v10869_v57  ;;  %v653_v3 = vadd.s32 464, %v10388_v21  ;;  %vm779_vm9 = vcmp.lt.s32.totalorder %v715_v36, 2  ;;  %14986 = vst [vmem:[#allocation84_spill] sm:$0xff] %v10893_v18 }
 0x266   :  { %v1221_v14 = vadd.f32 %v1220_v9, %v1158_v39  ;;  %v14979_v39 = vld [vmem:[#allocation13_spill] sm:$0xff]  ;;  %vm780_vm10 = vcmp.lt.s32.totalorder %v716_v25, 2  ;;  %v10899_v29 = vsel %vm779_vm9, 1.0, %v14815_v23 }
 0x267   :  { %v1099_v9 = vmul.f32 %v10863_v59, %v14979_v39  ;;  %14980 = vst [vmem:[#allocation13_spill] sm:$0xff] %v10875_v31  ;;  %v1162_v26 = vmul.f32 %v1098_v11, %v1098_v11  ;;  %v654_v59 = vadd.s32 472, %v10388_v21  ;;  %v717_v16 = vand.u32 7, %v653_v3  ;;  %14988 = vst [vmem:[#allocation85_spill] sm:$0xff] %v10899_v29 }
 0x268   :  { %v1222_v42 = vadd.f32 %v1221_v14, %v1159_v8  ;;  %v14981_v8 = vld [vmem:[#allocation14_spill] sm:$0xff]  ;;  %v10905_v51 = vsel %vm780_vm10, 1.0, %v14815_v23 }
 0x269   :  { %v1100_v14 = vmul.f32 %v10869_v57, %v14981_v8  ;;  %14982 = vst [vmem:[#allocation14_spill] sm:$0xff] %v10881_v52  ;;  %v1163_v1 = vmul.f32 %v1099_v9, %v1099_v9  ;;  %v655_v57 = vadd.s32 480, %v10388_v21  ;;  %v718_v50 = vand.u32 7, %v654_v59  ;;  %14990 = vst [vmem:[#allocation86_spill] sm:$0xff] %v10905_v51 }
 0x26a   :  { %v1223_v43 = vadd.f32 %v1222_v42, %v1160_v40  ;;  %v14983_v40 = vld [vmem:[#allocation15_spill] sm:$0xff]  ;;  %vm781_vm11 = vcmp.lt.s32.totalorder %v717_v16, 2 }
 0x26b   :  { %v1101_v42 = vmul.f32 %v10875_v31, %v14983_v40  ;;  %14984 = vst [vmem:[#allocation15_spill] sm:$0xff] %v10887_v0  ;;  %v656_v31 = vadd.s32 488, %v10388_v21  ;;  %v719_v36 = vand.u32 7, %v655_v57  ;;  %vm782_vm13 = vcmp.lt.s32.totalorder %v718_v50, 2 }
 0x26c   :  { %v1224_v47 = vadd.f32 %v1223_v43, %v1161_v4  ;;  %v14985_v4 = vld [vmem:[#allocation16_spill] sm:$0xff]  ;;  %v1164_v43 = vmul.f32 %v1100_v14, %v1100_v14  ;;  %v657_v14 = vadd.s32 496, %v10388_v21  ;;  %v10911_v57 = vsel %vm781_vm11, 1.0, %v14815_v23 }
 0x26d   :  { %v1102_v11 = vmul.f32 %v10881_v52, %v14985_v4  ;;  %v720_v25 = vand.u32 7, %v656_v31  ;;  %14992 = vst [vmem:[#allocation87_spill] sm:$0xff] %v10911_v57  ;;  %vm783_vm14 = vcmp.lt.s32.totalorder %v719_v36, 2  ;;  %v10916_v50 = vsel %vm782_vm13, 1.0, %v14815_v23  ;;  %v14997_v36 = vld [vmem:[#allocation31_spill] sm:$0xff] }
 0x26e   :  { %v1225_v62 = vadd.f32 %v1224_v47, %v1162_v26  ;;  %v14987_v26 = vld [vmem:[#allocation2_spill] sm:$0xff]  ;;  %v1165_v47 = vmul.f32 %v1101_v42, %v1101_v42  ;;  %v658_v42 = vadd.s32 504, %v10388_v21  ;;  %14994 = vst [vmem:[#allocation88_spill] sm:$0xff] %v10916_v50 }
 0x26f   :  { %v1103_v9 = vmul.f32 %v10887_v0, %v14987_v26  ;;  %v1166_v52 = vmul.f32 %v1102_v11, %v1102_v11  ;;  %v721_v26 = vand.u32 7, %v657_v14  ;;  %vm784_vm15 = vcmp.lt.s32.totalorder %v720_v25, 2  ;;  %v14995_v21 = vld [vmem:[#allocation30_spill] sm:$0xff]  ;;  %v14999_v25 = vld [vmem:[#allocation32_spill] sm:$0xff] }
 0x270   :  { %v1226_v13 = vadd.f32 %v1225_v62, %v1163_v1  ;;  %v14989_v1 = vld [vmem:[#allocation3_spill] sm:$0xff]  ;;  %v722_v31 = vand.u32 7, %v658_v42  ;;  %v1108_v14 = vmul.f32 %v10916_v50, %v14997_v36 }
 0x271   :  { %v1104_v62 = vmul.f32 %v10893_v18, %v14989_v1  ;;  %v1167_v0 = vmul.f32 %v1103_v9, %v1103_v9  ;;  %v14993_v18 = vld [vmem:[#allocation29_spill] sm:$0xff]  ;;  %vm785_vm0 = vcmp.lt.s32.totalorder %v721_v26, 2  ;;  %v15004_v36 = vld [vmem:[#allocation35_spill] sm:$0xff] }
 0x272   :  { %v1227_v3 = vadd.f32 %v1226_v13, %v1164_v43  ;;  %v14991_v43 = vld [vmem:[#allocation4_spill] sm:$0xff]  ;;  %v1106_v11 = vmul.f32 %v10905_v51, %v14993_v18  ;;  %vm786_vm1 = vcmp.lt.s32.totalorder %v722_v31, 2 }
 0x273   :  { %v1105_v13 = vmul.f32 %v10899_v29, %v14991_v43  ;;  %v1107_v29 = vmul.f32 %v10911_v57, %v14995_v21 }
 0x274   :  { %v1228_v59 = vadd.f32 %v1227_v3, %v1165_v47  ;;  %v1168_v47 = vmul.f32 %v1104_v62, %v1104_v62  ;;  %v1170_v51 = vmul.f32 %v1106_v11, %v1106_v11  ;;  %v10936_v11 = vsel %vm786_vm1, 1.0, %v14815_v23 }
 0x275   :  { %v1169_v9 = vmul.f32 %v1105_v13, %v1105_v13  ;;  %v10931_v13 = vsel %vm785_vm0, 1.0, %v14815_v23  ;;  %15002 = vst [vmem:[#allocation92_spill] sm:$0xff] %v10936_v11 }
 0x276   :  { %v1229_v16 = vadd.f32 %v1228_v59, %v1166_v52  ;;  %v10921_v59 = vsel %vm783_vm14, 1.0, %v14815_v23  ;;  %15000 = vst [vmem:[#allocation91_spill] sm:$0xff] %v10931_v13 }
 0x277   :  { %14996 = vst [vmem:[#allocation89_spill] sm:$0xff] %v10921_v59  ;;  %v1109_v42 = vmul.f32 %v10921_v59, %v14999_v25 }
 0x278   :  { %v1230_v3 = vadd.f32 %v1229_v16, %v1167_v0  ;;  %v10926_v0 = vsel %vm784_vm15, 1.0, %v14815_v23  ;;  %v1171_v16 = vmul.f32 %v1107_v29, %v1107_v29  ;;  %v1112_v29 = vmul.f32 %v10936_v11, %v15004_v36 }
 0x279   :  { %14998 = vst [vmem:[#allocation90_spill] sm:$0xff] %v10926_v0  ;;  %v1173_v31 = vmul.f32 %v1109_v42, %v1109_v42 }
 0x27a   :  { %v1231_v52 = vadd.f32 %v1230_v3, %v1168_v47  ;;  %v15001_v47 = vld [vmem:[#allocation33_spill] sm:$0xff]  ;;  %v1172_v3 = vmul.f32 %v1108_v14, %v1108_v14  ;;  %v1176_v18 = vmul.f32 %v1112_v29, %v1112_v29 }
 0x27b   :  { %v1110_v26 = vmul.f32 %v10926_v0, %v15001_v47 }
 0x27c   :  { %v1232_v62 = vadd.f32 %v1231_v52, %v1169_v9  ;;  %v15003_v9 = vld [vmem:[#allocation34_spill] sm:$0xff] }
 0x27d   :  { %v1111_v52 = vmul.f32 %v10931_v13, %v15003_v9 }
 0x27e   :  { %v1233_v57 = vadd.f32 %v1232_v62, %v1170_v51  ;;  %v1174_v51 = vmul.f32 %v1110_v26, %v1110_v26  ;;  %v15007_v26 = vld [vmem:[#allocation2_spill] sm:$0xff] }
 0x27f   :  { %v1175_v59 = vmul.f32 %v1111_v52, %v1111_v52 }
 0x280   :  { %v1234_v21 = vadd.f32 %v1233_v57, %v1171_v16 }
 0x282   :  { %v1235_v50 = vadd.f32 %v1234_v21, %v1172_v3 }
 0x284   :  { %v1236_v62 = vadd.f32 %v1235_v50, %v1173_v31  ;;  %v10947_v50 = vld [vmem:[%s14678_s2] ss:$0 sm:$0xff] }
 0x286   :  { %v1237_v25 = vadd.f32 %v1236_v62, %v1174_v51  ;;  %v15008_v51 = vld [vmem:[#allocation3_spill] sm:$0xff] }
 0x288   :  { %v1238_v43 = vadd.f32 %v1237_v25, %v1175_v59 }
 0x28a   :  { %v1239_v0 = vadd.f32 %v1238_v43, %v1176_v18  ;;  %v15005_v43 = vld [vmem:[#allocation18_spill] sm:$0xff] }
 0x28c   :  { %v1240_v14 = vrot.slane %v1239_v0, 4 }
 0x28e   :  { %v1241_v57 = vadd.f32 %v1240_v14, %v1239_v0  ;;  %v15009_v14 = vld [vmem:[#allocation4_spill] sm:$0xff] }
 0x290   :  { %v1242_v16 = vrot.slane %v1241_v57, 2 }
 0x292   :  { %v1243_v23 = vadd.f32 %v1242_v16, %v1241_v57  ;;  %v15010_v16 = vld [vmem:[#allocation29_spill] sm:$0xff] }
 0x294   :  { %v1244_v47 = vrot.slane %v1243_v23, 1 }
 0x296   :  { %v1245_v1 = vadd.f32 %v1244_v47, %v1243_v23  ;;  %v15006_v47 = vld [vmem:[#allocation16_spill] sm:$0xff] }
 0x298   :  { %v1246_v4 = vmul.f32 0.0078125, %v1245_v1 }
 0x29a   :  { %v1247_v13 = vadd.f32 1e-05, %v1246_v4 }
 0x29c   :  { %9332 = vrsqrt.f32 %v1247_v13 }
 0x2a6   :  { %v10942_v21 = vpop.eup %9332 }
 0x2a7   :  { %v1312_v59 = vmul.f32 %v10942_v21, %v15004_v36  ;;  %v10956_v0 = vmul.f32 %v10942_v21, %v15005_v43  ;;  %v1255_v23 = vmul.f32 %v10942_v21, %v10158_v55  ;;  %v1256_v4 = vmul.f32 %v10942_v21, %v10162_v60 }
 0x2a8   :  { %v1257_v1 = vmul.f32 %v10942_v21, %v10166_v2  ;;  %v1258_v25 = vmul.f32 %v10942_v21, %v10170_v7  ;;  %v1259_v36 = vmul.f32 %v10942_v21, %v10174_v12  ;;  %v1260_v42 = vmul.f32 %v10942_v21, %v10178_v17 }
 0x2a9   :  { %v10952_v18 = vmul.f32 %v10947_v50, %v1312_v59  ;;  %v1261_v13 = vmul.f32 %v10942_v21, %v10182_v22  ;;  %v1262_v55 = vmul.f32 %v10942_v21, %v10186_v27  ;;  %v1263_v60 = vmul.f32 %v10942_v21, %v10190_v32 }
 0x2aa   :  { %v1264_v2 = vmul.f32 %v10942_v21, %v10194_v37  ;;  %v1271_v7 = vmul.f32 %v10942_v21, %v10222_v24  ;;  %v1272_v12 = vmul.f32 %v10942_v21, %v10226_v33  ;;  %v1273_v17 = vmul.f32 %v10942_v21, %v10230_v41 }
 0x2ab   :  { %v1274_v22 = vmul.f32 %v10942_v21, %v14918_v35  ;;  %v1275_v27 = vmul.f32 %v10942_v21, %v14923_v45  ;;  %v1276_v32 = vmul.f32 %v10942_v21, %v10242_v34  ;;  %v1277_v37 = vmul.f32 %v10942_v21, %v14930_v30 }
 0x2ac   :  { %v1278_v24 = vmul.f32 %v10942_v21, %v10250_v44  ;;  %v1279_v33 = vmul.f32 %v10942_v21, %v10254_v48  ;;  %v1280_v41 = vmul.f32 %v10942_v21, %v10258_v61  ;;  %v1281_v35 = vmul.f32 %v10942_v21, %v10262_v56 }
 0x2ad   :  { %v1283_v45 = vmul.f32 %v10942_v21, %v10270_v46  ;;  %v1285_v34 = vmul.f32 %v10942_v21, %v10278_v49  ;;  %v1287_v30 = vmul.f32 %v10942_v21, %v10286_v6  ;;  %v1288_v44 = vmul.f32 %v10942_v21, %v10290_v28 }
 0x2ae   :  { %v1289_v48 = vmul.f32 %v10942_v21, %v10294_v19  ;;  %v1290_v61 = vmul.f32 %v10942_v21, %v10298_v53  ;;  %v1291_v56 = vmul.f32 %v10942_v21, %v10302_v58  ;;  %v1292_v46 = vmul.f32 %v10942_v21, %v10306_v63 }
 0x2af   :  { %v1293_v49 = vmul.f32 %v10942_v21, %v10310_v5  ;;  %v1294_v6 = vmul.f32 %v10942_v21, %v10314_v10  ;;  %v1295_v28 = vmul.f32 %v10942_v21, %v10318_v15  ;;  %v1296_v19 = vmul.f32 %v10942_v21, %v10322_v20 }
 0x2b0   :  { %v1297_v53 = vmul.f32 %v10942_v21, %v14975_v38  ;;  %v1298_v58 = vmul.f32 %v10942_v21, %v14977_v54  ;;  %v1299_v63 = vmul.f32 %v10942_v21, %v14979_v39  ;;  %v1300_v5 = vmul.f32 %v10942_v21, %v14981_v8 }
 0x2b1   :  { %v1301_v10 = vmul.f32 %v10942_v21, %v14983_v40  ;;  %v1302_v15 = vmul.f32 %v10942_v21, %v15006_v47  ;;  %v1303_v20 = vmul.f32 %v10942_v21, %v15007_v26  ;;  %v11039_v38 = vmul.f32 %v10947_v50, %v1255_v23  ;;  %v15011_v23 = vld [vmem:[#allocation30_spill] sm:$0xff] }
 0x2b2   :  { %v11042_v54 = vmul.f32 %v10947_v50, %v1256_v4  ;;  %v1327_v39 = vmul.f32 %v10947_v50, %v1257_v1  ;;  %v1328_v3 = vmul.f32 %v10947_v50, %v1258_v25  ;;  %v11047_v8 = vmul.f32 %v10947_v50, %v1259_v36  ;;  %v15012_v1 = vld [vmem:[#allocation31_spill] sm:$0xff]  ;;  %v15013_v36 = vld [vmem:[#allocation32_spill] sm:$0xff] }
 0x2b3   :  { %v11050_v40 = vmul.f32 %v10947_v50, %v1260_v42  ;;  %v11053_v52 = vmul.f32 %v10947_v50, %v1261_v13  ;;  %v11056_v31 = vmul.f32 %v10947_v50, %v1262_v55  ;;  %v11059_v29 = vmul.f32 %v10947_v50, %v1263_v60 }
 0x2b4   :  { %v1304_v62 = vmul.f32 %v10942_v21, %v15008_v51  ;;  %v1305_v57 = vmul.f32 %v10942_v21, %v15009_v14  ;;  %v1306_v59 = vmul.f32 %v10942_v21, %v15010_v16  ;;  %v11068_v43 = vmul.f32 %v10947_v50, %v1264_v2  ;;  %v15014_v16 = vld [vmem:[#allocation33_spill] sm:$0xff] }
 0x2b5   :  { %v1307_v4 = vmul.f32 %v10942_v21, %v15011_v23  ;;  %v1308_v25 = vmul.f32 %v10942_v21, %v15012_v1  ;;  %v1309_v42 = vmul.f32 %v10942_v21, %v15013_v36  ;;  %v11077_v13 = vmul.f32 %v10947_v50, %v1271_v7 }
 0x2b6   :  { %v11080_v55 = vmul.f32 %v10947_v50, %v1272_v12  ;;  %v11083_v60 = vmul.f32 %v10947_v50, %v1273_v17  ;;  %v11086_v2 = vmul.f32 %v10947_v50, %v1274_v22  ;;  %v1345_v47 = vmul.f32 %v10947_v50, %v1275_v27 }
 0x2b7   :  { %v1346_v26 = vmul.f32 %v10947_v50, %v1276_v32  ;;  %v1347_v51 = vmul.f32 %v10947_v50, %v1277_v37  ;;  %v1348_v14 = vmul.f32 %v10947_v50, %v1278_v24  ;;  %v11093_v7 = vmul.f32 %v10947_v50, %v1279_v33 }
 0x2b8   :  { %v1310_v12 = vmul.f32 %v10942_v21, %v15014_v16  ;;  %v11098_v17 = vmul.f32 %v10947_v50, %v1280_v41  ;;  %v11101_v22 = vmul.f32 %v10947_v50, %v1281_v35  ;;  %v1353_v27 = vmul.f32 %v10947_v50, %v1283_v45 }
 0x2b9   :  { %v1311_v32 = vmul.f32 %v10942_v21, %v15003_v9  ;;  %v1320_v37 = vmul.f32 %v10947_v50, %v10956_v0  ;;  %v1355_v24 = vmul.f32 %v10947_v50, %v1285_v34  ;;  %v11110_v33 = vmul.f32 %v10947_v50, %v1287_v30 }
 0x2ba   :  { %v11113_v23 = vmul.f32 %v10947_v50, %v1288_v44  ;;  %v11116_v41 = vmul.f32 %v10947_v50, %v1289_v48  ;;  %v11119_v35 = vmul.f32 %v10947_v50, %v1290_v61  ;;  %v1361_v45 = vmul.f32 %v10947_v50, %v1291_v56 }
 0x2bb   :  { %v1362_v9 = vmul.f32 %v10947_v50, %v1292_v46  ;;  %v1363_v0 = vmul.f32 %v10947_v50, %v1293_v49  ;;  %v1364_v34 = vmul.f32 %v10947_v50, %v1294_v6  ;;  %v11126_v30 = vmul.f32 %v10947_v50, %v1295_v28  ;;  %v11143_v46 = vld [vmem:[%s14679_s3] ss:$0 sm:$0xff] }
 0x2bc   :  { %v11129_v44 = vmul.f32 %v10947_v50, %v1296_v19  ;;  %v11132_v48 = vmul.f32 %v10947_v50, %v1297_v53  ;;  %v11135_v61 = vmul.f32 %v10947_v50, %v1298_v58  ;;  %v11138_v56 = vmul.f32 %v10947_v50, %v1299_v63 }
 0x2bd   :  { %v11146_v49 = vmul.f32 %v10947_v50, %v1300_v5  ;;  %v11149_v6 = vmul.f32 %v10947_v50, %v1301_v10  ;;  %v11152_v28 = vmul.f32 %v10947_v50, %v1302_v15  ;;  %v11155_v19 = vmul.f32 %v10947_v50, %v1303_v20 }
 0x2be   :  { %v11158_v53 = vmul.f32 %v10947_v50, %v1304_v62  ;;  %v11161_v58 = vmul.f32 %v10947_v50, %v1305_v57  ;;  %v11164_v63 = vmul.f32 %v10947_v50, %v1306_v59  ;;  %v11167_v5 = vmul.f32 %v10947_v50, %v1307_v4 }
 0x2bf   :  { %v11170_v10 = vmul.f32 %v10947_v50, %v1308_v25  ;;  %v11173_v15 = vmul.f32 %v10947_v50, %v1309_v42  ;;  %v11176_v20 = vmul.f32 %v10947_v50, %v1310_v12  ;;  %v11179_v62 = vmul.f32 %v10947_v50, %v1311_v32  ;;  %v1581_v12 = vld [vmem:[%s14677_s4] sm:$0xff]  ;;  %v15023_v32 = vld [vmem:[#allocation20_spill] sm:$0xff] }
 0x2c0   :  { %v11182_v57 = vadd.f32 %v11143_v46, %v1327_v39  ;;  %v11185_v59 = vadd.f32 %v11143_v46, %v1328_v3  ;;  %v1390_v4 = vadd.f32 %v11143_v46, %v1320_v37  ;;  %v11189_v1 = vadd.f32 %v11143_v46, %v1345_v47 }
 0x2c1   :  { %v11192_v25 = vadd.f32 %v11143_v46, %v1346_v26  ;;  %v11195_v36 = vadd.f32 %v11143_v46, %v1347_v51  ;;  %v11198_v42 = vadd.f32 %v11143_v46, %v1348_v14  ;;  %v11201_v39 = vadd.f32 %v11143_v46, %v1353_v27  ;;  %v1582_v27 = vld [vmem:[%s14677_s4 + $0x8] sm:$0xff] }
 0x2c2   :  { %15015 = vst [vmem:[#allocation34_spill] sm:$0xff] %v11185_v59  ;;  %v11204_v3 = vadd.f32 %v11143_v46, %v1355_v24  ;;  %v11207_v16 = vadd.f32 %v11143_v46, %v1361_v45  ;;  %v11210_v47 = vadd.f32 %v11143_v46, %v1362_v9  ;;  %v11213_v26 = vadd.f32 %v11143_v46, %v1363_v0  ;;  %v15024_v24 = vld [vmem:[#allocation22_spill] sm:$0xff] }
 0x2c3   :  { %15016 = vst [vmem:[#allocation35_spill] sm:$0xff] %v11192_v25  ;;  %15017 = vst [vmem:[#allocation18_spill] sm:$0xff] %v11195_v36  ;;  %v11216_v51 = vadd.f32 %v11143_v46, %v1364_v34  ;;  %v1454_v14 = vmax.f32 %v1390_v4, 0.0  ;;  %v1252_v37 = vmul.f32 %v10942_v21, %v15023_v32  ;;  %v1254_v45 = vmul.f32 %v10942_v21, %v15024_v24  ;;  %v15025_v0 = vld [vmem:[#allocation38_spill] sm:$0xff]  ;;  %v1583_v34 = vld [vmem:[%s14677_s4 + $0x10] sm:$0xff] }
 0x2c4   :  { %15018 = vst [vmem:[#allocation16_spill] sm:$0xff] %v11198_v42  ;;  %15019 = vst [vmem:[#allocation2_spill] sm:$0xff] %v11207_v16  ;;  %v8044_v9 = vpack.c.bf16 %v1582_v27, %v1581_v12  ;;  %v1584_v4 = vld [vmem:[%s14677_s4 + $0x18] sm:$0xff]  ;;  %v15027_v27 = vmov 0.0   ;;  %v15029_v59 = vmov 0.0|0.0  }
 0x2c5   :  { %15020 = vst [vmem:[#allocation3_spill] sm:$0xff] %v11210_v47  ;;  %15021 = vst [vmem:[#allocation4_spill] sm:$0xff] %v11213_v26  ;;  %v1518_v11 = vmul.f32 %v15025_v0, %v1454_v14  ;;  %v1322_v42 = vmul.f32 %v10947_v50, %v1252_v37  ;;  %v1324_v32 = vmul.f32 %v10947_v50, %v1254_v45  ;;  %v15028_v14 = vld [vmem:[#allocation26_spill] sm:$0xff]  ;;  %v1586_v37 = vld [vmem:[%s14677_s4 + $0x28] sm:$0xff] }
 0x2c6   :  { %15022 = vst [vmem:[#allocation29_spill] sm:$0xff] %v11216_v51  ;;  %v15026_v51 = vld [vmem:[#allocation24_spill] sm:$0xff]  ;;  %v8047_v12 = vpack.c.bf16 %v1584_v4, %v1583_v34  ;;  %v1268_v24 = vmul.f32 %v10942_v21, %v15028_v14  ;;  %v11255_v45 = vadd.f32 %v11143_v46, %v11101_v22 }
 0x2c7   :  { %v1266_v47 = vmul.f32 %v10942_v21, %v15026_v51  ;;  %6745 = vmatmul.mubr.f32.vlgmr.msra.gmra.mrb[56].mxu1 %v1518_v11  ;;  %v1392_v25 = vadd.f32 %v11143_v46, %v1322_v42  ;;  %v1394_v51 = vadd.f32 %v11143_v46, %v1324_v32  ;;  %v1585_v11 = vld [vmem:[%s14677_s4 + $0x20] sm:$0xff]  ;;  %v1587_v4 = vld [vmem:[%s14677_s4 + $0x30] sm:$0xff]  ;;  %v1588_v32 = vld [vmem:[%s14677_s4 + $0x38] sm:$0xff] }
 0x2c8   :  { %8045 = vmatpush3.bf16.msra.mxu1 %v8044_v9  ;;  %6747 = vmatprep.mubr.msk.f32.mxu1 %vm9348_vm12, %v15027_v27  ;;  %v8050_v34 = vpack.c.bf16 %v1586_v37, %v1585_v11  ;;  %v1338_v14 = vmul.f32 %v10947_v50, %v1268_v24  ;;  %v15031_v22 = vld [vmem:[#allocation40_spill] sm:$0xff]  ;;  %v11274_v11 = vadd.f32 %v11143_v46, %v11039_v38  ;;  %v1590_v24 = vld [vmem:[%s14677_s4 + $0x48] sm:$0xff] }
 0x2c9   :  { %v1336_v0 = vmul.f32 %v10947_v50, %v1266_v47  ;;  %8046 = vmatprep.subr.bf16.mxu1 %v15029_v59  ;;  %v1456_v9 = vmax.f32 %v1392_v25, 0.0  ;;  %v15030_v47 = vld [vmem:[#allocation28_spill] sm:$0xff]  ;;  %v1458_v25 = vmax.f32 %v1394_v51, 0.0  ;;  %v11289_v38 = vadd.f32 %v11143_v46, %v11077_v13 }
 0x2ca   :  { %v1270_v42 = vmul.f32 %v10942_v21, %v15030_v47  ;;  %v8053_v47 = vpack.c.bf16 %v1588_v32, %v1587_v4  ;;  %v15032_v37 = vld [vmem:[#allocation8_spill] sm:$0xff]  ;;  %v1408_v51 = vadd.f32 %v11143_v46, %v1338_v14  ;;  %v11302_v32 = vadd.f32 %v11143_v46, %v11042_v54 }
 0x2cb   :  { %v11268_v26 = vmul.f32 %v15031_v22, %v1456_v9  ;;  %v1282_v16 = vmul.f32 %v10942_v21, %v15032_v37  ;;  %v15033_v9 = vld [vmem:[#allocation42_spill] sm:$0xff]  ;;  %v15034_v37 = vld [vmem:[#allocation9_spill] sm:$0xff] }
 0x2cc   :  { %8048 = vmatpush3.bf16.msra.mxu1 %v8047_v12  ;;  %v1406_v12 = vadd.f32 %v11143_v46, %v1336_v0  ;;  %v1340_v36 = vmul.f32 %v10947_v50, %v1270_v42  ;;  %v1589_v0 = vld [vmem:[%s14677_s4 + $0x40] sm:$0xff]  ;;  %v11293_v42 = vmul.f32 %v15033_v9, %v1458_v25  ;;  %v1284_v13 = vmul.f32 %v10942_v21, %v15034_v37  ;;  %v15038_v37 = vld [vmem:[#allocation56_spill] sm:$0xff] }
 0x2cd   :  { %8049 = vmatprep.subr.bf16.mxu1 %v15029_v59  ;;  %6748 = vmatmul.mubr.f32.gmra.mrb[58].mxu1 %v11268_v26  ;;  %v8056_v14 = vpack.c.bf16 %v1590_v24, %v1589_v0  ;;  %v1352_v25 = vmul.f32 %v10947_v50, %v1282_v16  ;;  %v1472_v54 = vmax.f32 %v1408_v51, 0.0  ;;  %v15035_v9 = vld [vmem:[#allocation54_spill] sm:$0xff]  ;;  %v1591_v16 = vld [vmem:[%s14677_s4 + $0x50] sm:$0xff]  ;;  %v11335_v0 = vadd.f32 %v11143_v46, %v11053_v52 }
 0x2ce   :  { %6750 = vmatprep.mubr.msk.f32.mxu1 %vm9348_vm12, %v15027_v27  ;;  %v1470_v4 = vmax.f32 %v1406_v12, 0.0  ;;  %v1410_v12 = vadd.f32 %v11143_v46, %v1340_v36  ;;  %v1592_v36 = vld [vmem:[%s14677_s4 + $0x58] sm:$0xff]  ;;  %v11339_v24 = vadd.f32 %v11143_v46, %v11083_v60  ;;  %v11344_v51 = vadd.f32 %v11143_v46, %v11116_v41  ;;  %v1594_v41 = vld [vmem:[%s14677_s4 + $0x68] sm:$0xff] }
 0x2cf   :  { %v1354_v52 = vmul.f32 %v10947_v50, %v1284_v13  ;;  %v8059_v60 = vpack.c.bf16 %v1592_v36, %v1591_v16  ;;  %v1422_v13 = vadd.f32 %v11143_v46, %v1352_v25  ;;  %v11372_v16 = vadd.f32 %v11143_v46, %v11086_v2  ;;  %v15039_v36 = vld [vmem:[#allocation17_spill] sm:$0xff]  ;;  %v1595_v2 = vld [vmem:[%s14677_s4 + $0x70] sm:$0xff] }
 0x2d0   :  { %8051 = vmatpush3.bf16.msra.mxu1 %v8050_v34  ;;  %v11298_v34 = vadd.f32 %v11143_v46, %v11110_v33  ;;  %v11313_v33 = vadd.f32 %v11143_v46, %v11080_v55  ;;  %v11316_v22 = vmul.f32 %v15035_v9, %v1470_v4  ;;  %v11331_v55 = vadd.f32 %v11143_v46, %v11047_v8  ;;  %v15037_v8 = vld [vmem:[#allocation10_spill] sm:$0xff] }
 0x2d1   :  { %8052 = vmatprep.subr.bf16.mxu1 %v15029_v59  ;;  %6751 = vmatmul.mubr.f32.gmra.mrb[60].mxu1 %v11293_v42  ;;  %v1286_v9 = vmul.f32 %v10942_v21, %v15037_v8  ;;  %v1593_v4 = vld [vmem:[%s14677_s4 + $0x60] sm:$0xff]  ;;  %v1249_v8 = vmul.f32 %v10942_v21, %v15039_v36  ;;  %v11383_v25 = vadd.f32 %v11143_v46, %v11059_v29 }
 0x2d2   :  { %6753 = vmatprep.mubr.msk.f32.mxu1 %vm9348_vm12, %v15027_v27  ;;  %15036 = vst [vmem:[#allocation30_spill] sm:$0xff] %v11316_v22  ;;  %v11397_v29 = vadd.f32 %v11143_v46, %v11093_v7  ;;  %v11413_v36 = vadd.f32 %v11143_v46, %v11098_v17  ;;  %v15043_v7 = vld [vmem:[#allocation19_spill] sm:$0xff] }
 0x2d4   :  { %8054 = vmatpush3.bf16.msra.mxu1 %v8053_v47  ;;  %v11327_v47 = vadd.f32 %v11143_v46, %v11113_v23  ;;  %v11348_v23 = vadd.f32 %v11143_v46, %v11050_v40  ;;  %v1474_v40 = vmax.f32 %v1410_v12, 0.0  ;;  %v8062_v12 = vpack.c.bf16 %v1594_v41, %v1593_v4  ;;  %15040 = vst [vmem:[#allocation31_spill] sm:$0xff] %v11397_v29  ;;  %v15041_v4 = vld [vmem:[#allocation58_spill] sm:$0xff] }
 0x2d5   :  { %8055 = vmatprep.subr.bf16.mxu1 %v15029_v59  ;;  %6754 = vmatmul.mubr.f32.gmra.mrb[62].mxu1 %v11316_v22  ;;  %v11362_v22 = vmul.f32 %v15038_v37, %v1472_v54  ;;  %v11379_v54 = vadd.f32 %v11143_v46, %v11119_v35  ;;  %v1424_v37 = vadd.f32 %v11143_v46, %v1354_v52  ;;  %v1596_v35 = vld [vmem:[%s14677_s4 + $0x78] sm:$0xff]  ;;  %v1486_v52 = vmax.f32 %v1422_v13, 0.0 }
 0x2d6   :  { %6756 = vmatprep.mubr.msk.f32.mxu1 %vm9348_vm12, %v15027_v27  ;;  %v11409_v41 = vadd.f32 %v11143_v46, %v11068_v43  ;;  %15042 = vst [vmem:[#allocation32_spill] sm:$0xff] %v11413_v36  ;;  %v1251_v29 = vmul.f32 %v10942_v21, %v15043_v7  ;;  %v1319_v13 = vmul.f32 %v10947_v50, %v1249_v8 }
 0x2d7   :  { %v11424_v43 = vadd.f32 %v11143_v46, %v11129_v44  ;;  %v1488_v17 = vmax.f32 %v1424_v37, 0.0  ;;  %v11436_v8 = vadd.f32 %v11143_v46, %v11138_v56  ;;  %v11444_v44 = vadd.f32 %v11143_v46, %v11135_v61  ;;  %v15045_v56 = vld [vmem:[#allocation21_spill] sm:$0xff] }
 0x2d8   :  { %8057 = vmatpush3.bf16.msra.mxu1 %v8056_v14  ;;  %v11368_v14 = vadd.f32 %v11143_v46, %v11056_v31  ;;  %v1356_v31 = vmul.f32 %v10947_v50, %v1286_v9  ;;  %v11400_v9 = vmul.f32 %v15041_v4, %v1474_v40  ;;  %v8065_v40 = vpack.c.bf16 %v1596_v35, %v1595_v2 }
 0x2d9   :  { %8058 = vmatprep.subr.bf16.mxu1 %v15029_v59  ;;  %6757 = vmatmul.mubr.f32.gmra.mrb[64].mxu1 %v11362_v22  ;;  %v11432_v2 = vadd.f32 %v11143_v46, %v11132_v48  ;;  %v11453_v48 = vadd.f32 %v11143_v46, %v11152_v28  ;;  %v1253_v37 = vmul.f32 %v10942_v21, %v15045_v56  ;;  %v5804_v56 = vld [vmem:[%s14677_s4 + $0x108] sm:$0xff] }
 0x2da   :  { %6759 = vmatprep.mubr.msk.f32.mxu1 %vm9348_vm12, %v15027_v27  ;;  %v1426_v4 = vadd.f32 %v11143_v46, %v1356_v31  ;;  %v11449_v31 = vadd.f32 %v11143_v46, %v11146_v49  ;;  %v1321_v61 = vmul.f32 %v10947_v50, %v1251_v29  ;;  %v11467_v49 = vadd.f32 %v11143_v46, %v11155_v19 }
 0x2db   :  { %v11471_v28 = vadd.f32 %v11143_v46, %v11158_v53  ;;  %v11480_v29 = vadd.f32 %v11143_v46, %v11167_v5  ;;  %v1323_v19 = vmul.f32 %v10947_v50, %v1253_v37  ;;  %v11489_v53 = vadd.f32 %v11143_v46, %v11173_v15  ;;  %v5803_v5 = vld [vmem:[%s14677_s4 + $0x100] sm:$0xff] }
 0x2dc   :  { %8060 = vmatpush3.bf16.msra.mxu1 %v8059_v60  ;;  %v11405_v60 = vadd.f32 %v11143_v46, %v11126_v30  ;;  %v15044_v30 = vld [vmem:[#allocation67_spill] sm:$0xff]  ;;  %v1490_v35 = vmax.f32 %v1426_v4, 0.0  ;;  %v1391_v37 = vadd.f32 %v11143_v46, %v1321_v61  ;;  %v11507_v15 = vadd.f32 %v11143_v46, %v11170_v10  ;;  %v15053_v10 = vld [vmem:[#allocation37_spill] sm:$0xff] }
 0x2dd   :  { %8061 = vmatprep.subr.bf16.mxu1 %v15029_v59  ;;  %6760 = vmatmul.mubr.f32.gmra.mrb[66].mxu1 %v11400_v9  ;;  %v11427_v36 = vmul.f32 %v15044_v30, %v1486_v52  ;;  %v15046_v52 = vld [vmem:[#allocation69_spill] sm:$0xff]  ;;  %v15048_v30 = vld [vmem:[#allocation71_spill] sm:$0xff]  ;;  %v11521_v61 = vadd.f32 %v11143_v46, %v11179_v62 }
 0x2de   :  { %6762 = vmatprep.mubr.msk.f32.mxu1 %vm9348_vm12, %v15027_v27  ;;  %v11462_v7 = vmul.f32 %v15046_v52, %v1488_v17  ;;  %15050 = vst [vmem:[#allocation20_spill] sm:$0xff] %v11507_v15  ;;  %v15051_v52 = vld [vmem:[#allocation25_spill] sm:$0xff]  ;;  %v15054_v62 = vld [vmem:[#allocation27_spill] sm:$0xff] }
 0x2df   :  { %15052 = vst [vmem:[#allocation22_spill] sm:$0xff] %v11521_v61 }
 0x2e0   :  { %8063 = vmatpush3.bf16.msra.mxu1 %v8062_v12  ;;  %v11440_v12 = vadd.f32 %v11143_v46, %v11149_v6  ;;  %v1389_v6 = vadd.f32 %v11143_v46, %v1319_v13  ;;  %v15047_v13 = vld [vmem:[#allocation23_spill] sm:$0xff] }
 0x2e1   :  { %8064 = vmatprep.subr.bf16.mxu1 %v15029_v59  ;;  %6763 = vmatmul.mubr.f32.gmra.mrb[68].mxu1 %v11427_v36  ;;  %v1265_v4 = vmul.f32 %v10942_v21, %v15047_v13  ;;  %v1267_v13 = vmul.f32 %v10942_v21, %v15051_v52  ;;  %v5806_v52 = vld [vmem:[%s14677_s4 + $0x118] sm:$0xff] }
 0x2e2   :  { %6765 = vmatprep.mubr.msk.f32.mxu1 %vm9348_vm12, %v15027_v27  ;;  %v1453_v17 = vmax.f32 %v1389_v6, 0.0  ;;  %v11503_v6 = vadd.f32 %v11143_v46, %v11164_v63  ;;  %v8068_v63 = vpack.c.bf16 %v5804_v56, %v5803_v5  ;;  %v11533_v5 = vadd.f32 %v11143_v46, %v10952_v18  ;;  %v5807_v18 = vld [vmem:[%s14677_s4 + $0x120] sm:$0xff] }
 0x2e3   :  { %v1269_v56 = vmul.f32 %v10942_v21, %v15054_v62  ;;  %v5808_v21 = vld [vmem:[%s14677_s4 + $0x128] sm:$0xff]  ;;  %v5810_v62 = vld [vmem:[%s14677_s4 + $0x138] sm:$0xff] }
 0x2e4   :  { %8066 = vmatpush3.bf16.msra.mxu1 %v8065_v40  ;;  %v11476_v40 = vadd.f32 %v11143_v46, %v11161_v58  ;;  %v11492_v58 = vmul.f32 %v15048_v30, %v1490_v35  ;;  %15049 = vst [vmem:[#allocation33_spill] sm:$0xff] %v11503_v6  ;;  %v11511_v35 = vadd.f32 %v11143_v46, %v11176_v20  ;;  %v1455_v6 = vmax.f32 %v1391_v37, 0.0  ;;  %v5805_v20 = vld [vmem:[%s14677_s4 + $0x110] sm:$0xff] }
 0x2e5   :  { %8067 = vmatprep.subr.bf16.mxu1 %v15029_v59  ;;  %6766 = vmatmul.mubr.f32.gmra.mrb[70].mxu1 %v11462_v7  ;;  %v1335_v30 = vmul.f32 %v10947_v50, %v1265_v4  ;;  %v1517_v15 = vmul.f32 %v15053_v10, %v1453_v17  ;;  %v1393_v4 = vadd.f32 %v11143_v46, %v1323_v19  ;;  %v15055_v10 = vld [vmem:[#allocation39_spill] sm:$0xff] }
 0x2e6   :  { %6768 = vmatprep.mubr.msk.f32.mxu1 %vm9348_vm12, %v15027_v27  ;;  %v8071_v17 = vpack.c.bf16 %v5806_v52, %v5805_v20  ;;  %v1337_v37 = vmul.f32 %v10947_v50, %v1267_v13  ;;  %v11541_v61 = vmul.f32 %v15055_v10, %v1455_v6  ;;  %v8074_v6 = vpack.c.bf16 %v5808_v21, %v5807_v18  ;;  %v15056_v20 = vld [vmem:[#allocation41_spill] sm:$0xff]  ;;  %v5811_v18 = vld [vmem:[%s14677_s4 + $0x140] sm:$0xff]  ;;  %v5812_v21 = vld [vmem:[%s14677_s4 + $0x148] sm:$0xff] }
 0x2e7   :  { %v1457_v19 = vmax.f32 %v1393_v4, 0.0  ;;  %v1339_v13 = vmul.f32 %v10947_v50, %v1269_v56 }
 0x2e9   :  { %6769 = vmatmul.mubr.f32.gmra.mrb[72].mxu1 %v11492_v58  ;;  %v11557_v52 = vmul.f32 %v15056_v20, %v1457_v19  ;;  %v1409_v56 = vadd.f32 %v11143_v46, %v1339_v13 }
 0x2ea   :  { %6803 = vmatprep.mubr.msk.f32.mxu1 %vm9348_vm12, %v15027_v27 }
 0x2ed   :  { %6804 = vmatmul.mubr.f32.vlgmr.msra.gmra.mrb[56].mxu1 %v1517_v15  ;;  %v1405_v15 = vadd.f32 %v11143_v46, %v1335_v30  ;;  %v5809_v30 = vld [vmem:[%s14677_s4 + $0x130] sm:$0xff] }
 0x2ee   :  { %8069 = vmatpush3.bf16.msra.mxu1 %v8068_v63  ;;  %6806 = vmatprep.mubr.msk.f32.mxu1 %vm9348_vm12, %v15027_v27  ;;  %v1407_v63 = vadd.f32 %v11143_v46, %v1337_v37  ;;  %v8077_v50 = vpack.c.bf16 %v5810_v62, %v5809_v30  ;;  %v15057_v37 = vld [vmem:[#allocation53_spill] sm:$0xff]  ;;  %v8080_v46 = vpack.c.bf16 %v5812_v21, %v5811_v18  ;;  %v1487_v21 = vmax.f32 %v11201_v39, 0.0 }
 0x2ef   :  { %8070 = vmatprep.subr.bf16.mxu1 %v15029_v59  ;;  %v1469_v4 = vmax.f32 %v1405_v15, 0.0  ;;  %v1473_v15 = vmax.f32 %v1409_v56, 0.0  ;;  %v15059_v62 = vld [vmem:[#allocation57_spill] sm:$0xff]  ;;  %v1485_v56 = vmax.f32 %v11255_v45, 0.0  ;;  %v5817_v45 = vld [vmem:[%s14677_s4 + $0x170] sm:$0xff] }
 0x2f1   :  { %6807 = vmatmul.mubr.f32.gmra.mrb[58].mxu1 %v11541_v61  ;;  %v11571_v19 = vmul.f32 %v15057_v37, %v1469_v4  ;;  %v5814_v4 = vld [vmem:[%s14677_s4 + $0x158] sm:$0xff]  ;;  %v5816_v37 = vld [vmem:[%s14677_s4 + $0x168] sm:$0xff] }
 0x2f2   :  { %8072 = vmatpush3.bf16.msra.mxu1 %v8071_v17  ;;  %6809 = vmatprep.mubr.msk.f32.mxu1 %vm9348_vm12, %v15027_v27  ;;  %v1471_v17 = vmax.f32 %v1407_v63, 0.0  ;;  %v5813_v63 = vld [vmem:[%s14677_s4 + $0x150] sm:$0xff] }
 0x2f3   :  { %8073 = vmatprep.subr.bf16.mxu1 %v15029_v59  ;;  %v8083_v30 = vpack.c.bf16 %v5814_v4, %v5813_v63  ;;  %v1489_v63 = vmax.f32 %v11204_v3, 0.0  ;;  %v15061_v4 = vld [vmem:[#allocation68_spill] sm:$0xff]  ;;  %v5819_v3 = vld [vmem:[%s14677_s4 + $0x180] sm:$0xff] }
 0x2f5   :  { %6810 = vmatmul.mubr.f32.gmra.mrb[60].mxu1 %v11557_v52 }
 0x2f6   :  { %8075 = vmatpush3.bf16.msra.mxu1 %v8074_v6  ;;  %6812 = vmatprep.mubr.msk.f32.mxu1 %vm9348_vm12, %v15027_v27  ;;  %v15058_v6 = vld [vmem:[#allocation55_spill] sm:$0xff] }
 0x2f7   :  { %8076 = vmatprep.subr.bf16.mxu1 %v15029_v59  ;;  %v11584_v13 = vmul.f32 %v15058_v6, %v1471_v17  ;;  %v5815_v17 = vld [vmem:[%s14677_s4 + $0x160] sm:$0xff]  ;;  %v5818_v6 = vld [vmem:[%s14677_s4 + $0x178] sm:$0xff] }
 0x2f8   :  { %v8086_v18 = vpack.c.bf16 %v5816_v37, %v5815_v17  ;;  %v8089_v39 = vpack.c.bf16 %v5818_v6, %v5817_v45  ;;  %v5820_v17 = vld [vmem:[%s14677_s4 + $0x188] sm:$0xff]  ;;  %v1459_v45 = vmax.f32 %v11274_v11, 0.0  ;;  %v5823_v6 = vld [vmem:[%s14677_s4 + $0x1a0] sm:$0xff]  ;;  %v5825_v11 = vld [vmem:[%s14677_s4 + $0x1b0] sm:$0xff] }
 0x2f9   :  { %6813 = vmatmul.mubr.f32.gmra.mrb[62].mxu1 %v11571_v19  ;;  %v8092_v37 = vpack.c.bf16 %v5820_v17, %v5819_v3  ;;  %v5827_v3 = vld [vmem:[%s14677_s4 + $0x1c0] sm:$0xff]  ;;  %v5828_v17 = vld [vmem:[%s14677_s4 + $0x1c8] sm:$0xff] }
 0x2fa   :  { %8078 = vmatpush3.bf16.msra.mxu1 %v8077_v50  ;;  %6815 = vmatprep.mubr.msk.f32.mxu1 %vm9348_vm12, %v15027_v27  ;;  %v11597_v50 = vmul.f32 %v15059_v62, %v1473_v15  ;;  %v15062_v62 = vld [vmem:[#allocation70_spill] sm:$0xff] }
 0x2fb   :  { %8079 = vmatprep.subr.bf16.mxu1 %v15029_v59 }
 0x2fd   :  { %6816 = vmatmul.mubr.f32.gmra.mrb[64].mxu1 %v11584_v13 }
 0x2fe   :  { %8081 = vmatpush3.bf16.msra.mxu1 %v8080_v46  ;;  %6818 = vmatprep.mubr.msk.f32.mxu1 %vm9348_vm12, %v15027_v27  ;;  %v15060_v46 = vld [vmem:[#allocation66_spill] sm:$0xff] }
 0x2ff   :  { %8082 = vmatprep.subr.bf16.mxu1 %v15029_v59  ;;  %v11612_v15 = vmul.f32 %v15060_v46, %v1485_v56  ;;  %v11633_v56 = vmul.f32 %v15062_v62, %v1489_v63  ;;  %v15063_v63 = vld [vmem:[#allocation43_spill] sm:$0xff]  ;;  %v5826_v62 = vld [vmem:[%s14677_s4 + $0x1b8] sm:$0xff] }
 0x301   :  { %6819 = vmatmul.mubr.f32.gmra.mrb[66].mxu1 %v11597_v50 }
 0x302   :  { %6821 = vmatprep.mubr.msk.f32.mxu1 %vm9348_vm12, %v15027_v27  ;;  %8084 = vmatpush3.bf16.msra.mxu1 %v8083_v30  ;;  %v11626_v30 = vmul.f32 %v15061_v4, %v1487_v21  ;;  %v5822_v21 = vld [vmem:[%s14677_s4 + $0x198] sm:$0xff]  ;;  %v1523_v4 = vmul.f32 %v15063_v63, %v1459_v45 }
 0x303   :  { %8085 = vmatprep.subr.bf16.mxu1 %v15029_v59 }
 0x305   :  { %6822 = vmatmul.mubr.f32.gmra.mrb[68].mxu1 %v11612_v15 }
 0x306   :  { %6824 = vmatprep.mubr.msk.f32.mxu1 %vm9348_vm12, %v15027_v27  ;;  %8087 = vmatpush3.bf16.msra.mxu1 %v8086_v18  ;;  %v5821_v18 = vld [vmem:[%s14677_s4 + $0x190] sm:$0xff] }
 0x307   :  { %8088 = vmatprep.subr.bf16.mxu1 %v15029_v59  ;;  %v8095_v46 = vpack.c.bf16 %v5822_v21, %v5821_v18  ;;  %v1475_v18 = vmax.f32 %v11289_v38, 0.0  ;;  %v5829_v21 = vld [vmem:[%s14677_s4 + $0x1d0] sm:$0xff]  ;;  %v5831_v38 = vld [vmem:[%s14677_s4 + $0x1e0] sm:$0xff] }
 0x309   :  { %6825 = vmatmul.mubr.f32.gmra.mrb[70].mxu1 %v11626_v30 }
 0x30a   :  { %6827 = vmatprep.mubr.msk.f32.mxu1 %vm9348_vm12, %v15027_v27  ;;  %8090 = vmatpush3.bf16.msra.mxu1 %v8089_v39  ;;  %v5824_v39 = vld [vmem:[%s14677_s4 + $0x1a8] sm:$0xff] }
 0x30b   :  { %8091 = vmatprep.subr.bf16.mxu1 %v15029_v59 }
 0x30d   :  { %6828 = vmatmul.mubr.f32.gmra.mrb[72].mxu1 %v11633_v56 }
 0x30e   :  { %6862 = vmatprep.mubr.msk.f32.mxu1 %vm9348_vm12, %v15027_v27 }
 0x311   :  { %6863 = vmatmul.mubr.f32.vlgmr.msra.gmra.mrb[56].mxu1 %v11541_v61  ;;  %v8098_v61 = vpack.c.bf16 %v5824_v39, %v5823_v6  ;;  %v15064_v6 = vld [vmem:[#allocation59_spill] sm:$0xff] }
 0x312   :  { %8093 = vmatpush3.bf16.msra.mxu1 %v8092_v37  ;;  %6865 = vmatprep.mubr.msk.f32.mxu1 %vm9348_vm12, %v15027_v27  ;;  %v8104_v37 = vpack.c.bf16 %v5828_v17, %v5827_v3  ;;  %v11697_v39 = vmul.f32 %v15064_v6, %v1475_v18  ;;  %v1491_v3 = vmax.f32 %v11298_v34, 0.0  ;;  %v15065_v17 = vld [vmem:[#allocation72_spill] sm:$0xff]  ;;  %v5835_v18 = vld [vmem:[%s14677_s4 + $0x200] sm:$0xff] }
 0x313   :  { %8094 = vmatprep.subr.bf16.mxu1 %v15029_v59 }
 0x315   :  { %6866 = vmatmul.mubr.f32.gmra.mrb[58].mxu1 %v11557_v52  ;;  %v8101_v52 = vpack.c.bf16 %v5826_v62, %v5825_v11  ;;  %v5833_v11 = vld [vmem:[%s14677_s4 + $0x1f0] sm:$0xff]  ;;  %v5834_v62 = vld [vmem:[%s14677_s4 + $0x1f8] sm:$0xff] }
 0x316   :  { %8096 = vmatpush3.bf16.msra.mxu1 %v8095_v46  ;;  %6868 = vmatprep.mubr.msk.f32.mxu1 %vm9348_vm12, %v15027_v27  ;;  %v5830_v46 = vld [vmem:[%s14677_s4 + $0x1d8] sm:$0xff] }
 0x317   :  { %8097 = vmatprep.subr.bf16.mxu1 %v15029_v59  ;;  %v8107_v45 = vpack.c.bf16 %v5830_v46, %v5829_v21  ;;  %v5836_v21 = vld [vmem:[%s14677_s4 + $0x208] sm:$0xff]  ;;  %v5837_v46 = vld [vmem:[%s14677_s4 + $0x210] sm:$0xff] }
 0x318   :  { %v8116_v34 = vpack.c.bf16 %v5836_v21, %v5835_v18  ;;  %v1476_v21 = vmax.f32 %v11313_v33, 0.0  ;;  %v5847_v33 = vld [vmem:[%s14677_s4 + $0x260] sm:$0xff] }
 0x319   :  { %6869 = vmatmul.mubr.f32.gmra.mrb[60].mxu1 %v1523_v4 }
 0x31a   :  { %8099 = vmatpush3.bf16.msra.mxu1 %v8098_v61  ;;  %6871 = vmatprep.mubr.msk.f32.mxu1 %vm9348_vm12, %v15027_v27  ;;  %v5832_v61 = vld [vmem:[%s14677_s4 + $0x1e8] sm:$0xff] }
 0x31b   :  { %8100 = vmatprep.subr.bf16.mxu1 %v15029_v59  ;;  %v8110_v4 = vpack.c.bf16 %v5832_v61, %v5831_v38  ;;  %v1460_v38 = vmax.f32 %v11302_v32, 0.0  ;;  %v5839_v61 = vld [vmem:[%s14677_s4 + $0x220] sm:$0xff]  ;;  %v5841_v32 = vld [vmem:[%s14677_s4 + $0x230] sm:$0xff] }
 0x31d   :  { %6872 = vmatmul.mubr.f32.gmra.mrb[62].mxu1 %v11584_v13 }
 0x31e   :  { %8102 = vmatpush3.bf16.msra.mxu1 %v8101_v52  ;;  %6874 = vmatprep.mubr.msk.f32.mxu1 %vm9348_vm12, %v15027_v27  ;;  %v8113_v52 = vpack.c.bf16 %v5834_v62, %v5833_v11  ;;  %v15066_v11 = vld [vmem:[#allocation44_spill] sm:$0xff] }
 0x31f   :  { %8103 = vmatprep.subr.bf16.mxu1 %v15029_v59  ;;  %v1524_v62 = vmul.f32 %v15066_v11, %v1460_v38 }
 0x321   :  { %6875 = vmatmul.mubr.f32.gmra.mrb[64].mxu1 %v11597_v50 }
 0x322   :  { %8105 = vmatpush3.bf16.msra.mxu1 %v8104_v37  ;;  %6877 = vmatprep.mubr.msk.f32.mxu1 %vm9348_vm12, %v15027_v27  ;;  %v11725_v37 = vmul.f32 %v15065_v17, %v1491_v3  ;;  %v5843_v3 = vld [vmem:[%s14677_s4 + $0x240] sm:$0xff]  ;;  %v5844_v17 = vld [vmem:[%s14677_s4 + $0x248] sm:$0xff] }
 0x323   :  { %8106 = vmatprep.subr.bf16.mxu1 %v15029_v59  ;;  %v8128_v18 = vpack.c.bf16 %v5844_v17, %v5843_v3  ;;  %v15068_v3 = vld [vmem:[#allocation73_spill] sm:$0xff] }
 0x325   :  { %6878 = vmatmul.mubr.f32.gmra.mrb[66].mxu1 %v11697_v39 }
 0x326   :  { %6880 = vmatprep.mubr.msk.f32.mxu1 %vm9348_vm12, %v15027_v27  ;;  %8108 = vmatpush3.bf16.msra.mxu1 %v8107_v45  ;;  %v5838_v45 = vld [vmem:[%s14677_s4 + $0x218] sm:$0xff] }
 0x327   :  { %8109 = vmatprep.subr.bf16.mxu1 %v15029_v59  ;;  %v8119_v6 = vpack.c.bf16 %v5838_v45, %v5837_v46  ;;  %v5846_v46 = vld [vmem:[%s14677_s4 + $0x258] sm:$0xff] }
 0x329   :  { %6881 = vmatmul.mubr.f32.gmra.mrb[68].mxu1 %v11626_v30 }
 0x32a   :  { %6883 = vmatprep.mubr.msk.f32.mxu1 %vm9348_vm12, %v15027_v27  ;;  %8111 = vmatpush3.bf16.msra.mxu1 %v8110_v4  ;;  %v5840_v4 = vld [vmem:[%s14677_s4 + $0x228] sm:$0xff] }
 0x32b   :  { %8112 = vmatprep.subr.bf16.mxu1 %v15029_v59 }
 0x32d   :  { %6884 = vmatmul.mubr.f32.gmra.mrb[70].mxu1 %v11633_v56 }
 0x32e   :  { %6886 = vmatprep.mubr.msk.f32.mxu1 %vm9348_vm12, %v15027_v27  ;;  %8114 = vmatpush3.bf16.msra.mxu1 %v8113_v52  ;;  %v5842_v52 = vld [vmem:[%s14677_s4 + $0x238] sm:$0xff] }
 0x32f   :  { %8115 = vmatprep.subr.bf16.mxu1 %v15029_v59 }
 0x331   :  { %6887 = vmatmul.mubr.f32.gmra.mrb[72].mxu1 %v11725_v37 }
 0x332   :  { %6921 = vmatprep.mubr.msk.f32.mxu1 %vm9348_vm12, %v15027_v27 }
 0x335   :  { %6922 = vmatmul.mubr.f32.vlgmr.msra.gmra.mrb[56].mxu1 %v11268_v26  ;;  %v8122_v26 = vpack.c.bf16 %v5840_v4, %v5839_v61  ;;  %v5848_v61 = vld [vmem:[%s14677_s4 + $0x268] sm:$0xff] }
 0x336   :  { %8117 = vmatpush3.bf16.msra.mxu1 %v8116_v34  ;;  %6924 = vmatprep.mubr.msk.f32.mxu1 %vm9348_vm12, %v15027_v27  ;;  %v5845_v34 = vld [vmem:[%s14677_s4 + $0x250] sm:$0xff]  ;;  %v8134_v4 = vpack.c.bf16 %v5848_v61, %v5847_v33  ;;  %v15070_v61 = vld [vmem:[#allocation47_spill] sm:$0xff] }
 0x337   :  { %8118 = vmatprep.subr.bf16.mxu1 %v15029_v59  ;;  %v8131_v45 = vpack.c.bf16 %v5846_v46, %v5845_v34  ;;  %v1463_v46 = vmax.f32 %v11331_v55, 0.0  ;;  %v1465_v55 = vmax.f32 %v11335_v0, 0.0  ;;  %v1477_v0 = vmax.f32 %v11339_v24, 0.0  ;;  %v5859_v24 = vld [vmem:[%s14677_s4 + $0x2c0] sm:$0xff] }
 0x339   :  { %6925 = vmatmul.mubr.f32.gmra.mrb[58].mxu1 %v11293_v42  ;;  %v8125_v42 = vpack.c.bf16 %v5842_v52, %v5841_v32  ;;  %v1492_v52 = vmax.f32 %v11327_v47, 0.0  ;;  %v5852_v47 = vld [vmem:[%s14677_s4 + $0x288] sm:$0xff] }
 0x33a   :  { %8120 = vmatpush3.bf16.msra.mxu1 %v8119_v6  ;;  %6927 = vmatprep.mubr.msk.f32.mxu1 %vm9348_vm12, %v15027_v27  ;;  %v15067_v6 = vld [vmem:[#allocation60_spill] sm:$0xff] }
 0x33b   :  { %8121 = vmatprep.subr.bf16.mxu1 %v15029_v59  ;;  %v11789_v38 = vmul.f32 %v15067_v6, %v1476_v21  ;;  %v11818_v17 = vmul.f32 %v15068_v3, %v1492_v52  ;;  %v5854_v6 = vld [vmem:[%s14677_s4 + $0x298] sm:$0xff]  ;;  %v5857_v3 = vld [vmem:[%s14677_s4 + $0x2b0] sm:$0xff] }
 0x33c   :  { %v15071_v52 = vld [vmem:[#allocation49_spill] sm:$0xff] }
 0x33d   :  { %6928 = vmatmul.mubr.f32.gmra.mrb[60].mxu1 %v1524_v62  ;;  %v5850_v62 = vld [vmem:[%s14677_s4 + $0x278] sm:$0xff] }
 0x33e   :  { %8123 = vmatpush3.bf16.msra.mxu1 %v8122_v26  ;;  %6930 = vmatprep.mubr.msk.f32.mxu1 %vm9348_vm12, %v15027_v27  ;;  %v5849_v26 = vld [vmem:[%s14677_s4 + $0x270] sm:$0xff] }
 0x33f   :  { %8124 = vmatprep.subr.bf16.mxu1 %v15029_v59  ;;  %v8137_v32 = vpack.c.bf16 %v5850_v62, %v5849_v26  ;;  %v5855_v26 = vld [vmem:[%s14677_s4 + $0x2a0] sm:$0xff]  ;;  %v5856_v62 = vld [vmem:[%s14677_s4 + $0x2a8] sm:$0xff] }
 0x341   :  { %6931 = vmatmul.mubr.f32.gmra.mrb[62].mxu1 %v11362_v22 }
 0x342   :  { %8126 = vmatpush3.bf16.msra.mxu1 %v8125_v42  ;;  %6933 = vmatprep.mubr.msk.f32.mxu1 %vm9348_vm12, %v15027_v27  ;;  %v1461_v42 = vmax.f32 %v11182_v57, 0.0  ;;  %v15069_v57 = vld [vmem:[#allocation45_spill] sm:$0xff] }
 0x343   :  { %8127 = vmatprep.subr.bf16.mxu1 %v15029_v59 }
 0x344   :  { %v1525_v34 = vmul.f32 %v15069_v57, %v1461_v42  ;;  %v11855_v42 = vmul.f32 %v15071_v52, %v1465_v55  ;;  %v15075_v52 = vld [vmem:[#allocation6_spill] sm:$0xff] }
 0x345   :  { %6934 = vmatmul.mubr.f32.gmra.mrb[64].mxu1 %v11400_v9 }
 0x346   :  { %8129 = vmatpush3.bf16.msra.mxu1 %v8128_v18  ;;  %6936 = vmatprep.mubr.msk.f32.mxu1 %vm9348_vm12, %v15027_v27  ;;  %v5851_v18 = vld [vmem:[%s14677_s4 + $0x280] sm:$0xff] }
 0x347   :  { %8130 = vmatprep.subr.bf16.mxu1 %v15029_v59  ;;  %v8140_v21 = vpack.c.bf16 %v5852_v47, %v5851_v18  ;;  %v5858_v18 = vld [vmem:[%s14677_s4 + $0x2b8] sm:$0xff] }
 0x348   :  { %v8149_v47 = vpack.c.bf16 %v5858_v18, %v5857_v3  ;;  %v1493_v3 = vmax.f32 %v11344_v51, 0.0  ;;  %v5863_v18 = vld [vmem:[%s14677_s4 + $0x2e0] sm:$0xff]  ;;  %v5865_v51 = vld [vmem:[%s14677_s4 + $0x2f0] sm:$0xff] }
 0x349   :  { %6937 = vmatmul.mubr.f32.gmra.mrb[66].mxu1 %v11789_v38 }
 0x34a   :  { %6939 = vmatprep.mubr.msk.f32.mxu1 %vm9348_vm12, %v15027_v27  ;;  %8132 = vmatpush3.bf16.msra.mxu1 %v8131_v45  ;;  %v5853_v45 = vld [vmem:[%s14677_s4 + $0x290] sm:$0xff] }
 0x34b   :  { %8133 = vmatprep.subr.bf16.mxu1 %v15029_v59  ;;  %v8143_v33 = vpack.c.bf16 %v5854_v6, %v5853_v45  ;;  %v5860_v45 = vld [vmem:[%s14677_s4 + $0x2c8] sm:$0xff]  ;;  %v15073_v6 = vld [vmem:[#allocation18_spill] sm:$0xff] }
 0x34d   :  { %6940 = vmatmul.mubr.f32.gmra.mrb[68].mxu1 %v11462_v7 }
 0x34e   :  { %6942 = vmatprep.mubr.msk.f32.mxu1 %vm9348_vm12, %v15027_v27  ;;  %8135 = vmatpush3.bf16.msra.mxu1 %v8134_v4  ;;  %v11841_v4 = vmul.f32 %v15070_v61, %v1463_v46  ;;  %v15074_v61 = vld [vmem:[#allocation63_spill] sm:$0xff] }
 0x34f   :  { %8136 = vmatprep.subr.bf16.mxu1 %v15029_v59 }
 0x351   :  { %6943 = vmatmul.mubr.f32.gmra.mrb[70].mxu1 %v11492_v58 }
 0x352   :  { %6945 = vmatprep.mubr.msk.f32.mxu1 %vm9348_vm12, %v15027_v27  ;;  %8138 = vmatpush3.bf16.msra.mxu1 %v8137_v32  ;;  %v8146_v32 = vpack.c.bf16 %v5856_v62, %v5855_v26  ;;  %v5861_v26 = vld [vmem:[%s14677_s4 + $0x2d0] sm:$0xff]  ;;  %v5862_v62 = vld [vmem:[%s14677_s4 + $0x2d8] sm:$0xff] }
 0x353   :  { %8139 = vmatprep.subr.bf16.mxu1 %v15029_v59 }
 0x355   :  { %6946 = vmatmul.mubr.f32.gmra.mrb[72].mxu1 %v11818_v17 }
 0x356   :  { %6980 = vmatprep.mubr.msk.f32.mxu1 %vm9348_vm12, %v15027_v27 }
 0x359   :  { %6981 = vmatmul.mubr.f32.vlgmr.msra.gmra.mrb[56].mxu1 %v1525_v34  ;;  %v15072_v34 = vld [vmem:[#allocation61_spill] sm:$0xff] }
 0x35a   :  { %8141 = vmatpush3.bf16.msra.mxu1 %v8140_v21  ;;  %6983 = vmatprep.mubr.msk.f32.mxu1 %vm9348_vm12, %v15027_v27  ;;  %v1479_v21 = vmax.f32 %v11189_v1, 0.0  ;;  %v11870_v46 = vmul.f32 %v15072_v34, %v1477_v0  ;;  %v8152_v1 = vpack.c.bf16 %v5860_v45, %v5859_v24  ;;  %v15076_v34 = vld [vmem:[#allocation2_spill] sm:$0xff] }
 0x35b   :  { %8142 = vmatprep.subr.bf16.mxu1 %v15029_v59  ;;  %v1495_v24 = vmax.f32 %v15076_v34, 0.0  ;;  %v15077_v45 = vld [vmem:[#allocation74_spill] sm:$0xff]  ;;  %v5868_v34 = vld [vmem:[%s14677_s4 + $0x308] sm:$0xff] }
 0x35c   :  { %v11884_v55 = vmul.f32 %v15074_v61, %v1479_v21  ;;  %v15078_v61 = vld [vmem:[#allocation4_spill] sm:$0xff] }
 0x35d   :  { %6984 = vmatmul.mubr.f32.gmra.mrb[58].mxu1 %v11841_v4 }
 0x35e   :  { %8144 = vmatpush3.bf16.msra.mxu1 %v8143_v33  ;;  %6986 = vmatprep.mubr.msk.f32.mxu1 %vm9348_vm12, %v15027_v27  ;;  %v1481_v33 = vmax.f32 %v15073_v6, 0.0  ;;  %v5866_v6 = vld [vmem:[%s14677_s4 + $0x2f8] sm:$0xff] }
 0x35f   :  { %8145 = vmatprep.subr.bf16.mxu1 %v15029_v59 }
 0x360   :  { %v11897_v0 = vmul.f32 %v15075_v52, %v1481_v33  ;;  %v8161_v33 = vpack.c.bf16 %v5866_v6, %v5865_v51  ;;  %v15080_v52 = vld [vmem:[#allocation34_spill] sm:$0xff]  ;;  %v1464_v6 = vmax.f32 %v11348_v23, 0.0  ;;  %v1466_v23 = vmax.f32 %v11368_v14, 0.0 }
 0x361   :  { %6987 = vmatmul.mubr.f32.gmra.mrb[60].mxu1 %v11855_v42  ;;  %v1478_v14 = vmax.f32 %v11372_v16, 0.0  ;;  %v5875_v16 = vld [vmem:[%s14677_s4 + $0x340] sm:$0xff] }
 0x362   :  { %8147 = vmatpush3.bf16.msra.mxu1 %v8146_v32  ;;  %6989 = vmatprep.mubr.msk.f32.mxu1 %vm9348_vm12, %v15027_v27  ;;  %v8155_v32 = vpack.c.bf16 %v5862_v62, %v5861_v26  ;;  %v1497_v26 = vmax.f32 %v15078_v61, 0.0  ;;  %v15079_v62 = vld [vmem:[#allocation76_spill] sm:$0xff]  ;;  %v5870_v61 = vld [vmem:[%s14677_s4 + $0x318] sm:$0xff] }
 0x363   :  { %8148 = vmatprep.subr.bf16.mxu1 %v15029_v59 }
 0x365   :  { %6990 = vmatmul.mubr.f32.gmra.mrb[62].mxu1 %v11870_v46 }
 0x366   :  { %8150 = vmatpush3.bf16.msra.mxu1 %v8149_v47  ;;  %6992 = vmatprep.mubr.msk.f32.mxu1 %vm9348_vm12, %v15027_v27  ;;  %v5864_v47 = vld [vmem:[%s14677_s4 + $0x2e8] sm:$0xff] }
 0x367   :  { %8151 = vmatprep.subr.bf16.mxu1 %v15029_v59  ;;  %v8158_v21 = vpack.c.bf16 %v5864_v47, %v5863_v18  ;;  %v15081_v18 = vld [vmem:[#allocation78_spill] sm:$0xff] }
 0x368   :  { %v11934_v47 = vmul.f32 %v15081_v18, %v1497_v26  ;;  %v5872_v18 = vld [vmem:[%s14677_s4 + $0x328] sm:$0xff] }
 0x369   :  { %6993 = vmatmul.mubr.f32.gmra.mrb[64].mxu1 %v11884_v55 }
 0x36a   :  { %8153 = vmatpush3.bf16.msra.mxu1 %v8152_v1  ;;  %6995 = vmatprep.mubr.msk.f32.mxu1 %vm9348_vm12, %v15027_v27  ;;  %v11912_v1 = vmul.f32 %v15077_v45, %v1493_v3  ;;  %v1462_v3 = vmax.f32 %v15080_v52, 0.0  ;;  %v15082_v45 = vld [vmem:[#allocation46_spill] sm:$0xff] }
 0x36b   :  { %8154 = vmatprep.subr.bf16.mxu1 %v15029_v59 }
 0x36c   :  { %v1526_v51 = vmul.f32 %v15082_v45, %v1462_v3  ;;  %v5871_v3 = vld [vmem:[%s14677_s4 + $0x320] sm:$0xff]  ;;  %v5873_v45 = vld [vmem:[%s14677_s4 + $0x330] sm:$0xff] }
 0x36d   :  { %6996 = vmatmul.mubr.f32.gmra.mrb[66].mxu1 %v11897_v0 }
 0x36e   :  { %6998 = vmatprep.mubr.msk.f32.mxu1 %vm9348_vm12, %v15027_v27  ;;  %8156 = vmatpush3.bf16.msra.mxu1 %v8155_v32  ;;  %v11926_v32 = vmul.f32 %v15079_v62, %v1495_v24  ;;  %v15083_v62 = vld [vmem:[#allocation48_spill] sm:$0xff] }
 0x36f   :  { %8157 = vmatprep.subr.bf16.mxu1 %v15029_v59  ;;  %v11957_v52 = vmul.f32 %v15083_v62, %v1464_v6 }
 0x371   :  { %6999 = vmatmul.mubr.f32.gmra.mrb[68].mxu1 %v11912_v1 }
 0x372   :  { %7001 = vmatprep.mubr.msk.f32.mxu1 %vm9348_vm12, %v15027_v27  ;;  %8159 = vmatpush3.bf16.msra.mxu1 %v8158_v21  ;;  %v5867_v21 = vld [vmem:[%s14677_s4 + $0x300] sm:$0xff] }
 0x373   :  { %8160 = vmatprep.subr.bf16.mxu1 %v15029_v59  ;;  %v8164_v24 = vpack.c.bf16 %v5868_v34, %v5867_v21  ;;  %v8170_v21 = vpack.c.bf16 %v5872_v18, %v5871_v3  ;;  %v15084_v34 = vld [vmem:[#allocation50_spill] sm:$0xff]  ;;  %v15087_v18 = vld [vmem:[#allocation16_spill] sm:$0xff] }
 0x375   :  { %7002 = vmatmul.mubr.f32.gmra.mrb[70].mxu1 %v11926_v32 }
 0x376   :  { %7004 = vmatprep.mubr.msk.f32.mxu1 %vm9348_vm12, %v15027_v27  ;;  %8162 = vmatpush3.bf16.msra.mxu1 %v8161_v33  ;;  %v5869_v33 = vld [vmem:[%s14677_s4 + $0x310] sm:$0xff] }
 0x377   :  { %8163 = vmatprep.subr.bf16.mxu1 %v15029_v59  ;;  %v8167_v26 = vpack.c.bf16 %v5870_v61, %v5869_v33  ;;  %v15085_v33 = vld [vmem:[#allocation35_spill] sm:$0xff] }
 0x378   :  { %v1480_v61 = vmax.f32 %v15085_v33, 0.0  ;;  %v15089_v33 = vld [vmem:[#allocation64_spill] sm:$0xff] }
 0x379   :  { %7005 = vmatmul.mubr.f32.gmra.mrb[72].mxu1 %v11934_v47 }
 0x37a   :  { %7039 = vmatprep.mubr.msk.f32.mxu1 %vm9348_vm12, %v15027_v27 }
 0x37d   :  { %7040 = vmatmul.mubr.f32.vlgmr.msra.gmra.mrb[56].mxu1 %v1526_v51  ;;  %v5874_v51 = vld [vmem:[%s14677_s4 + $0x338] sm:$0xff] }
 0x37e   :  { %8165 = vmatpush3.bf16.msra.mxu1 %v8164_v24  ;;  %7042 = vmatprep.mubr.msk.f32.mxu1 %vm9348_vm12, %v15027_v27  ;;  %v11971_v24 = vmul.f32 %v15084_v34, %v1466_v23  ;;  %v8173_v6 = vpack.c.bf16 %v5874_v51, %v5873_v45  ;;  %v5876_v23 = vld [vmem:[%s14677_s4 + $0x348] sm:$0xff]  ;;  %v15088_v34 = vld [vmem:[#allocation5_spill] sm:$0xff]  ;;  %v5877_v45 = vld [vmem:[%s14677_s4 + $0x350] sm:$0xff] }
 0x37f   :  { %8166 = vmatprep.subr.bf16.mxu1 %v15029_v59  ;;  %v8176_v3 = vpack.c.bf16 %v5876_v23, %v5875_v16  ;;  %v5878_v51 = vld [vmem:[%s14677_s4 + $0x358] sm:$0xff]  ;;  %v5879_v16 = vld [vmem:[%s14677_s4 + $0x360] sm:$0xff]  ;;  %v5880_v23 = vld [vmem:[%s14677_s4 + $0x368] sm:$0xff] }
 0x381   :  { %7043 = vmatmul.mubr.f32.gmra.mrb[58].mxu1 %v11957_v52 }
 0x382   :  { %8168 = vmatpush3.bf16.msra.mxu1 %v8167_v26  ;;  %7045 = vmatprep.mubr.msk.f32.mxu1 %vm9348_vm12, %v15027_v27  ;;  %v15086_v26 = vld [vmem:[#allocation62_spill] sm:$0xff] }
 0x383   :  { %8169 = vmatprep.subr.bf16.mxu1 %v15029_v59  ;;  %v11986_v62 = vmul.f32 %v15086_v26, %v1478_v14  ;;  %v12000_v14 = vmul.f32 %v15088_v34, %v1480_v61  ;;  %v1494_v26 = vmax.f32 %v11379_v54, 0.0  ;;  %v15091_v34 = vld [vmem:[#allocation75_spill] sm:$0xff]  ;;  %v5881_v54 = vld [vmem:[%s14677_s4 + $0x370] sm:$0xff] }
 0x385   :  { %7046 = vmatmul.mubr.f32.gmra.mrb[60].mxu1 %v11971_v24 }
 0x386   :  { %8171 = vmatpush3.bf16.msra.mxu1 %v8170_v21  ;;  %7048 = vmatprep.mubr.msk.f32.mxu1 %vm9348_vm12, %v15027_v27  ;;  %v1482_v21 = vmax.f32 %v15087_v18, 0.0  ;;  %v15090_v18 = vld [vmem:[#allocation3_spill] sm:$0xff] }
 0x387   :  { %8172 = vmatprep.subr.bf16.mxu1 %v15029_v59 }
 0x388   :  { %v12013_v61 = vmul.f32 %v15089_v33, %v1482_v21  ;;  %v1496_v21 = vmax.f32 %v15090_v18, 0.0  ;;  %v15092_v33 = vld [vmem:[#allocation29_spill] sm:$0xff]  ;;  %v15094_v18 = vld [vmem:[#allocation79_spill] sm:$0xff] }
 0x389   :  { %7049 = vmatmul.mubr.f32.gmra.mrb[62].mxu1 %v11986_v62 }
 0x38a   :  { %8174 = vmatpush3.bf16.msra.mxu1 %v8173_v6  ;;  %7051 = vmatprep.mubr.msk.f32.mxu1 %vm9348_vm12, %v15027_v27  ;;  %v8179_v6 = vpack.c.bf16 %v5878_v51, %v5877_v45  ;;  %v12028_v45 = vmul.f32 %v15091_v34, %v1494_v26  ;;  %v5882_v51 = vld [vmem:[%s14677_s4 + $0x378] sm:$0xff]  ;;  %v1498_v26 = vmax.f32 %v15092_v33, 0.0 }
 0x38b   :  { %8175 = vmatprep.subr.bf16.mxu1 %v15029_v59 }
 0x38c   :  { %v12049_v34 = vmul.f32 %v15094_v18, %v1498_v26  ;;  %v1467_v26 = vmax.f32 %v11383_v25, 0.0  ;;  %v5888_v18 = vld [vmem:[%s14677_s4 + $0x3a8] sm:$0xff]  ;;  %v5889_v25 = vld [vmem:[%s14677_s4 + $0x3b0] sm:$0xff] }
 0x38d   :  { %7052 = vmatmul.mubr.f32.gmra.mrb[64].mxu1 %v12000_v14 }
 0x38e   :  { %8177 = vmatpush3.bf16.msra.mxu1 %v8176_v3  ;;  %7054 = vmatprep.mubr.msk.f32.mxu1 %vm9348_vm12, %v15027_v27  ;;  %v8182_v3 = vpack.c.bf16 %v5880_v23, %v5879_v16  ;;  %v15093_v16 = vld [vmem:[#allocation77_spill] sm:$0xff] }
 0x38f   :  { %8178 = vmatprep.subr.bf16.mxu1 %v15029_v59  ;;  %v12042_v23 = vmul.f32 %v15093_v16, %v1496_v21  ;;  %v5884_v21 = vld [vmem:[%s14677_s4 + $0x388] sm:$0xff]  ;;  %v5887_v16 = vld [vmem:[%s14677_s4 + $0x3a0] sm:$0xff] }
 0x391   :  { %7055 = vmatmul.mubr.f32.gmra.mrb[66].mxu1 %v12013_v61 }
 0x392   :  { %7057 = vmatprep.mubr.msk.f32.mxu1 %vm9348_vm12, %v15027_v27  ;;  %8180 = vmatpush3.bf16.msra.mxu1 %v8179_v6  ;;  %v8185_v6 = vpack.c.bf16 %v5882_v51, %v5881_v54  ;;  %v5885_v51 = vld [vmem:[%s14677_s4 + $0x390] sm:$0xff] }
 0x393   :  { %8181 = vmatprep.subr.bf16.mxu1 %v15029_v59 }
 0x395   :  { %7058 = vmatmul.mubr.f32.gmra.mrb[68].mxu1 %v12028_v45 }
 0x396   :  { %7060 = vmatprep.mubr.msk.f32.mxu1 %vm9348_vm12, %v15027_v27  ;;  %8183 = vmatpush3.bf16.msra.mxu1 %v8182_v3  ;;  %v5883_v3 = vld [vmem:[%s14677_s4 + $0x380] sm:$0xff] }
 0x397   :  { %8184 = vmatprep.subr.bf16.mxu1 %v15029_v59  ;;  %v8188_v54 = vpack.c.bf16 %v5884_v21, %v5883_v3  ;;  %v15095_v3 = vld [vmem:[#allocation51_spill] sm:$0xff] }
 0x398   :  { %v1531_v21 = vmul.f32 %v15095_v3, %v1467_v26  ;;  %v15096_v26 = vld [vmem:[#allocation31_spill] sm:$0xff] }
 0x399   :  { %7061 = vmatmul.mubr.f32.gmra.mrb[70].mxu1 %v12042_v23 }
 0x39a   :  { %7063 = vmatprep.mubr.msk.f32.mxu1 %vm9348_vm12, %v15027_v27  ;;  %8186 = vmatpush3.bf16.msra.mxu1 %v8185_v6  ;;  %v5886_v6 = vld [vmem:[%s14677_s4 + $0x398] sm:$0xff] }
 0x39b   :  { %8187 = vmatprep.subr.bf16.mxu1 %v15029_v59  ;;  %v8191_v33 = vpack.c.bf16 %v5886_v6, %v5885_v51  ;;  %v5891_v51 = vld [vmem:[%s14677_s4 + $0x3c0] sm:$0xff]  ;;  %v5892_v6 = vld [vmem:[%s14677_s4 + $0x3c8] sm:$0xff] }
 0x39d   :  { %7064 = vmatmul.mubr.f32.gmra.mrb[72].mxu1 %v12049_v34 }
 0x39e   :  { %7098 = vmatprep.mubr.msk.f32.mxu1 %vm9348_vm12, %v15027_v27 }
 0x3a1   :  { %7099 = vmatmul.mubr.f32.vlgmr.msra.gmra.mrb[56].mxu1 %v11841_v4  ;;  %v8194_v4 = vpack.c.bf16 %v5888_v18, %v5887_v16  ;;  %v1483_v16 = vmax.f32 %v15096_v26, 0.0  ;;  %v5893_v18 = vld [vmem:[%s14677_s4 + $0x3d0] sm:$0xff] }
 0x3a2   :  { %8189 = vmatpush3.bf16.msra.mxu1 %v8188_v54  ;;  %7101 = vmatprep.mubr.msk.f32.mxu1 %vm9348_vm12, %v15027_v27  ;;  %v5890_v54 = vld [vmem:[%s14677_s4 + $0x3b8] sm:$0xff] }
 0x3a3   :  { %8190 = vmatprep.subr.bf16.mxu1 %v15029_v59 }
 0x3a5   :  { %7102 = vmatmul.mubr.f32.gmra.mrb[58].mxu1 %v11855_v42  ;;  %v8197_v42 = vpack.c.bf16 %v5890_v54, %v5889_v25  ;;  %v5895_v54 = vld [vmem:[%s14677_s4 + $0x3e0] sm:$0xff] }
 0x3a6   :  { %8192 = vmatpush3.bf16.msra.mxu1 %v8191_v33  ;;  %7104 = vmatprep.mubr.msk.f32.mxu1 %vm9348_vm12, %v15027_v27  ;;  %v8200_v33 = vpack.c.bf16 %v5892_v6, %v5891_v51  ;;  %v5897_v6 = vld [vmem:[%s14677_s4 + $0x3f0] sm:$0xff] }
 0x3a7   :  { %8193 = vmatprep.subr.bf16.mxu1 %v15029_v59 }
 0x3a9   :  { %7105 = vmatmul.mubr.f32.gmra.mrb[60].mxu1 %v1531_v21  ;;  %v15097_v21 = vld [vmem:[#allocation7_spill] sm:$0xff] }
 0x3aa   :  { %8195 = vmatpush3.bf16.msra.mxu1 %v8194_v4  ;;  %7107 = vmatprep.mubr.msk.f32.mxu1 %vm9348_vm12, %v15027_v27  ;;  %v5894_v4 = vld [vmem:[%s14677_s4 + $0x3d8] sm:$0xff]  ;;  %v12113_v25 = vmul.f32 %v15097_v21, %v1483_v16  ;;  %v1499_v16 = vmax.f32 %v11405_v60, 0.0  ;;  %v5900_v21 = vld [vmem:[%s14677_s4 + $0x408] sm:$0xff] }
 0x3ab   :  { %8196 = vmatprep.subr.bf16.mxu1 %v15029_v59  ;;  %v8203_v3 = vpack.c.bf16 %v5894_v4, %v5893_v18  ;;  %v15098_v18 = vld [vmem:[#allocation80_spill] sm:$0xff] }
 0x3ac   :  { %v12141_v4 = vmul.f32 %v15098_v18, %v1499_v16  ;;  %v15099_v16 = vld [vmem:[#allocation52_spill] sm:$0xff] }
 0x3ad   :  { %7108 = vmatmul.mubr.f32.gmra.mrb[62].mxu1 %v11884_v55 }
 0x3ae   :  { %8198 = vmatpush3.bf16.msra.mxu1 %v8197_v42  ;;  %7110 = vmatprep.mubr.msk.f32.mxu1 %vm9348_vm12, %v15027_v27  ;;  %v5896_v42 = vld [vmem:[%s14677_s4 + $0x3e8] sm:$0xff] }
 0x3af   :  { %8199 = vmatprep.subr.bf16.mxu1 %v15029_v59  ;;  %v8206_v51 = vpack.c.bf16 %v5896_v42, %v5895_v54  ;;  %v5901_v54 = vld [vmem:[%s14677_s4 + $0x410] sm:$0xff]  ;;  %v5902_v42 = vld [vmem:[%s14677_s4 + $0x418] sm:$0xff] }
 0x3b1   :  { %7111 = vmatmul.mubr.f32.gmra.mrb[64].mxu1 %v11897_v0 }
 0x3b2   :  { %8201 = vmatpush3.bf16.msra.mxu1 %v8200_v33  ;;  %7113 = vmatprep.mubr.msk.f32.mxu1 %vm9348_vm12, %v15027_v27  ;;  %v5898_v33 = vld [vmem:[%s14677_s4 + $0x3f8] sm:$0xff] }
 0x3b3   :  { %8202 = vmatprep.subr.bf16.mxu1 %v15029_v59  ;;  %v8209_v26 = vpack.c.bf16 %v5898_v33, %v5897_v6  ;;  %v1468_v6 = vmax.f32 %v11409_v41, 0.0  ;;  %v5903_v33 = vld [vmem:[%s14677_s4 + $0x420] sm:$0xff]  ;;  %v5905_v41 = vld [vmem:[%s14677_s4 + $0x430] sm:$0xff] }
 0x3b5   :  { %7114 = vmatmul.mubr.f32.gmra.mrb[66].mxu1 %v12113_v25  ;;  %v1532_v18 = vmul.f32 %v15099_v16, %v1468_v6  ;;  %v5909_v6 = vld [vmem:[%s14677_s4 + $0x450] sm:$0xff] }
 0x3b6   :  { %7116 = vmatprep.mubr.msk.f32.mxu1 %vm9348_vm12, %v15027_v27  ;;  %8204 = vmatpush3.bf16.msra.mxu1 %v8203_v3  ;;  %v5899_v3 = vld [vmem:[%s14677_s4 + $0x400] sm:$0xff] }
 0x3b7   :  { %8205 = vmatprep.subr.bf16.mxu1 %v15029_v59  ;;  %v8212_v60 = vpack.c.bf16 %v5900_v21, %v5899_v3  ;;  %v5906_v3 = vld [vmem:[%s14677_s4 + $0x438] sm:$0xff]  ;;  %v5907_v21 = vld [vmem:[%s14677_s4 + $0x440] sm:$0xff] }
 0x3b9   :  { %7117 = vmatmul.mubr.f32.gmra.mrb[68].mxu1 %v11926_v32 }
 0x3ba   :  { %7119 = vmatprep.mubr.msk.f32.mxu1 %vm9348_vm12, %v15027_v27  ;;  %8207 = vmatpush3.bf16.msra.mxu1 %v8206_v51  ;;  %v8215_v51 = vpack.c.bf16 %v5902_v42, %v5901_v54  ;;  %v15100_v42 = vld [vmem:[#allocation32_spill] sm:$0xff] }
 0x3bb   :  { %8208 = vmatprep.subr.bf16.mxu1 %v15029_v59 }
 0x3bd   :  { %7120 = vmatmul.mubr.f32.gmra.mrb[70].mxu1 %v11934_v47 }
 0x3be   :  { %7122 = vmatprep.mubr.msk.f32.mxu1 %vm9348_vm12, %v15027_v27  ;;  %8210 = vmatpush3.bf16.msra.mxu1 %v8209_v26  ;;  %v5904_v26 = vld [vmem:[%s14677_s4 + $0x428] sm:$0xff] }
 0x3bf   :  { %8211 = vmatprep.subr.bf16.mxu1 %v15029_v59 }
 0x3c1   :  { %7123 = vmatmul.mubr.f32.gmra.mrb[72].mxu1 %v12141_v4 }
 0x3c2   :  { %7157 = vmatprep.mubr.msk.f32.mxu1 %vm9348_vm12, %v15027_v27 }
 0x3c5   :  { %7158 = vmatmul.mubr.f32.vlgmr.msra.gmra.mrb[56].mxu1 %v11957_v52  ;;  %v8218_v52 = vpack.c.bf16 %v5904_v26, %v5903_v33  ;;  %v5910_v33 = vld [vmem:[%s14677_s4 + $0x458] sm:$0xff] }
 0x3c6   :  { %8213 = vmatpush3.bf16.msra.mxu1 %v8212_v60  ;;  %7160 = vmatprep.mubr.msk.f32.mxu1 %vm9348_vm12, %v15027_v27  ;;  %v5908_v60 = vld [vmem:[%s14677_s4 + $0x448] sm:$0xff]  ;;  %v8227_v26 = vpack.c.bf16 %v5910_v33, %v5909_v6  ;;  %v5915_v6 = vld [vmem:[%s14677_s4 + $0x480] sm:$0xff] }
 0x3c7   :  { %8214 = vmatprep.subr.bf16.mxu1 %v15029_v59  ;;  %v8224_v54 = vpack.c.bf16 %v5908_v60, %v5907_v21  ;;  %v5914_v21 = vld [vmem:[%s14677_s4 + $0x478] sm:$0xff]  ;;  %v5916_v33 = vld [vmem:[%s14677_s4 + $0x488] sm:$0xff] }
 0x3c9   :  { %7161 = vmatmul.mubr.f32.gmra.mrb[58].mxu1 %v11971_v24  ;;  %v8221_v24 = vpack.c.bf16 %v5906_v3, %v5905_v41  ;;  %v5912_v41 = vld [vmem:[%s14677_s4 + $0x468] sm:$0xff] }
 0x3ca   :  { %8216 = vmatpush3.bf16.msra.mxu1 %v8215_v51  ;;  %7163 = vmatprep.mubr.msk.f32.mxu1 %vm9348_vm12, %v15027_v27  ;;  %v1484_v51 = vmax.f32 %v15100_v42, 0.0  ;;  %v15102_v42 = vld [vmem:[#allocation81_spill] sm:$0xff] }
 0x3cb   :  { %8217 = vmatprep.subr.bf16.mxu1 %v15029_v59 }
 0x3cd   :  { %7164 = vmatmul.mubr.f32.gmra.mrb[60].mxu1 %v1532_v18  ;;  %v5911_v18 = vld [vmem:[%s14677_s4 + $0x460] sm:$0xff] }
 0x3ce   :  { %8219 = vmatpush3.bf16.msra.mxu1 %v8218_v52  ;;  %7166 = vmatprep.mubr.msk.f32.mxu1 %vm9348_vm12, %v15027_v27  ;;  %v15101_v52 = vld [vmem:[#allocation65_spill] sm:$0xff]  ;;  %v8230_v3 = vpack.c.bf16 %v5912_v41, %v5911_v18  ;;  %v5919_v41 = vld [vmem:[%s14677_s4 + $0x4a0] sm:$0xff] }
 0x3cf   :  { %8220 = vmatprep.subr.bf16.mxu1 %v15029_v59  ;;  %v12205_v16 = vmul.f32 %v15101_v52, %v1484_v51  ;;  %v5918_v52 = vld [vmem:[%s14677_s4 + $0x498] sm:$0xff] }
 0x3d1   :  { %7167 = vmatmul.mubr.f32.gmra.mrb[62].mxu1 %v12000_v14 }
 0x3d2   :  { %8222 = vmatpush3.bf16.msra.mxu1 %v8221_v24  ;;  %7169 = vmatprep.mubr.msk.f32.mxu1 %vm9348_vm12, %v15027_v27  ;;  %v5913_v24 = vld [vmem:[%s14677_s4 + $0x470] sm:$0xff] }
 0x3d3   :  { %8223 = vmatprep.subr.bf16.mxu1 %v15029_v59  ;;  %v8233_v60 = vpack.c.bf16 %v5914_v21, %v5913_v24  ;;  %v5921_v24 = vld [vmem:[%s14677_s4 + $0x4b0] sm:$0xff]  ;;  %v5922_v21 = vld [vmem:[%s14677_s4 + $0x4b8] sm:$0xff] }
 0x3d5   :  { %7170 = vmatmul.mubr.f32.gmra.mrb[64].mxu1 %v12013_v61 }
 0x3d6   :  { %8225 = vmatpush3.bf16.msra.mxu1 %v8224_v54  ;;  %7172 = vmatprep.mubr.msk.f32.mxu1 %vm9348_vm12, %v15027_v27  ;;  %v1500_v54 = vmax.f32 %v11424_v43, 0.0  ;;  %v8236_v43 = vpack.c.bf16 %v5916_v33, %v5915_v6  ;;  %v5925_v33 = vld [vmem:[%s14677_s4 + $0x4d0] sm:$0xff] }
 0x3d7   :  { %8226 = vmatprep.subr.bf16.mxu1 %v15029_v59 }
 0x3d8   :  { %v12233_v51 = vmul.f32 %v15102_v42, %v1500_v54  ;;  %v5923_v54 = vld [vmem:[%s14677_s4 + $0x4c0] sm:$0xff]  ;;  %v5924_v42 = vld [vmem:[%s14677_s4 + $0x4c8] sm:$0xff] }
 0x3d9   :  { %7173 = vmatmul.mubr.f32.gmra.mrb[66].mxu1 %v12205_v16  ;;  %v8248_v6 = vpack.c.bf16 %v5924_v42, %v5923_v54  ;;  %v15104_v54 = vld [vmem:[#allocation11_spill] sm:$0xff] }
 0x3da   :  { %7175 = vmatprep.mubr.msk.f32.mxu1 %vm9348_vm12, %v15027_v27  ;;  %8228 = vmatpush3.bf16.msra.mxu1 %v8227_v26  ;;  %v5917_v26 = vld [vmem:[%s14677_s4 + $0x490] sm:$0xff] }
 0x3db   :  { %8229 = vmatprep.subr.bf16.mxu1 %v15029_v59  ;;  %v8239_v18 = vpack.c.bf16 %v5918_v52, %v5917_v26  ;;  %v1501_v26 = vmax.f32 %v11432_v2, 0.0  ;;  %v5927_v52 = vld [vmem:[%s14677_s4 + $0x4e0] sm:$0xff]  ;;  %v1503_v2 = vmax.f32 %v11436_v8, 0.0  ;;  %v1505_v8 = vmax.f32 %v11440_v12, 0.0 }
 0x3dd   :  { %7176 = vmatmul.mubr.f32.gmra.mrb[68].mxu1 %v12042_v23  ;;  %v12317_v42 = vmul.f32 %v15104_v54, %v1503_v2  ;;  %v5939_v54 = vld [vmem:[%s14677_s4 + $0x540] sm:$0xff] }
 0x3de   :  { %7178 = vmatprep.mubr.msk.f32.mxu1 %vm9348_vm12, %v15027_v27  ;;  %8231 = vmatpush3.bf16.msra.mxu1 %v8230_v3  ;;  %v5920_v3 = vld [vmem:[%s14677_s4 + $0x4a8] sm:$0xff] }
 0x3df   :  { %8232 = vmatprep.subr.bf16.mxu1 %v15029_v59 }
 0x3e1   :  { %7179 = vmatmul.mubr.f32.gmra.mrb[70].mxu1 %v12049_v34 }
 0x3e2   :  { %7181 = vmatprep.mubr.msk.f32.mxu1 %vm9348_vm12, %v15027_v27  ;;  %8234 = vmatpush3.bf16.msra.mxu1 %v8233_v60  ;;  %v8245_v60 = vpack.c.bf16 %v5922_v21, %v5921_v24  ;;  %v5929_v24 = vld [vmem:[%s14677_s4 + $0x4f0] sm:$0xff]  ;;  %v5930_v21 = vld [vmem:[%s14677_s4 + $0x4f8] sm:$0xff] }
 0x3e3   :  { %8235 = vmatprep.subr.bf16.mxu1 %v15029_v59 }
 0x3e5   :  { %7182 = vmatmul.mubr.f32.gmra.mrb[72].mxu1 %v12233_v51 }
 0x3e6   :  { %7216 = vmatprep.mubr.msk.f32.mxu1 %vm9348_vm12, %v15027_v27 }
 0x3e9   :  { %7217 = vmatmul.mubr.f32.vlgmr.msra.gmra.mrb[56].mxu1 %v11571_v19  ;;  %v8242_v19 = vpack.c.bf16 %v5920_v3, %v5919_v41  ;;  %v15103_v3 = vld [vmem:[#allocation82_spill] sm:$0xff] }
 0x3ea   :  { %8237 = vmatpush3.bf16.msra.mxu1 %v8236_v43  ;;  %7219 = vmatprep.mubr.msk.f32.mxu1 %vm9348_vm12, %v15027_v27  ;;  %v5926_v43 = vld [vmem:[%s14677_s4 + $0x4d8] sm:$0xff] }
 0x3eb   :  { %8238 = vmatprep.subr.bf16.mxu1 %v15029_v59 }
 0x3ed   :  { %7220 = vmatmul.mubr.f32.gmra.mrb[58].mxu1 %v11584_v13 }
 0x3ee   :  { %8240 = vmatpush3.bf16.msra.mxu1 %v8239_v18  ;;  %7222 = vmatprep.mubr.msk.f32.mxu1 %vm9348_vm12, %v15027_v27  ;;  %v5928_v18 = vld [vmem:[%s14677_s4 + $0x4e8] sm:$0xff] }
 0x3ef   :  { %8241 = vmatprep.subr.bf16.mxu1 %v15029_v59  ;;  %v8254_v41 = vpack.c.bf16 %v5928_v18, %v5927_v52  ;;  %v5934_v52 = vld [vmem:[%s14677_s4 + $0x518] sm:$0xff]  ;;  %v15106_v18 = vld [vmem:[#allocation30_spill] sm:$0xff] }
 0x3f1   :  { %7223 = vmatmul.mubr.f32.gmra.mrb[60].mxu1 %v11597_v50 }
 0x3f2   :  { %8243 = vmatpush3.bf16.msra.mxu1 %v8242_v19  ;;  %7225 = vmatprep.mubr.msk.f32.mxu1 %vm9348_vm12, %v15027_v27  ;;  %v1565_v19 = vmul.f32 %v15103_v3, %v1501_v26  ;;  %v5933_v26 = vld [vmem:[%s14677_s4 + $0x510] sm:$0xff]  ;;  %v5935_v3 = vld [vmem:[%s14677_s4 + $0x520] sm:$0xff] }
 0x3f3   :  { %8244 = vmatprep.subr.bf16.mxu1 %v15029_v59 }
 0x3f5   :  { %7226 = vmatmul.mubr.f32.gmra.mrb[62].mxu1 %v11612_v15  ;;  %v8251_v15 = vpack.c.bf16 %v5926_v43, %v5925_v33  ;;  %v5931_v43 = vld [vmem:[%s14677_s4 + $0x500] sm:$0xff] }
 0x3f6   :  { %8246 = vmatpush3.bf16.msra.mxu1 %v8245_v60  ;;  %7228 = vmatprep.mubr.msk.f32.mxu1 %vm9348_vm12, %v15027_v27  ;;  %v8257_v60 = vpack.c.bf16 %v5930_v21, %v5929_v24  ;;  %v5937_v24 = vld [vmem:[%s14677_s4 + $0x530] sm:$0xff]  ;;  %v5938_v21 = vld [vmem:[%s14677_s4 + $0x538] sm:$0xff] }
 0x3f7   :  { %8247 = vmatprep.subr.bf16.mxu1 %v15029_v59 }
 0x3f9   :  { %7229 = vmatmul.mubr.f32.gmra.mrb[64].mxu1 %v11626_v30 }
 0x3fa   :  { %8249 = vmatpush3.bf16.msra.mxu1 %v8248_v6  ;;  %7231 = vmatprep.mubr.msk.f32.mxu1 %vm9348_vm12, %v15027_v27  ;;  %v15105_v6 = vld [vmem:[#allocation13_spill] sm:$0xff] }
 0x3fb   :  { %8250 = vmatprep.subr.bf16.mxu1 %v15029_v59  ;;  %v12325_v33 = vmul.f32 %v15105_v6, %v1505_v8  ;;  %v5940_v8 = vld [vmem:[%s14677_s4 + $0x548] sm:$0xff] }
 0x3fc   :  { %v8272_v6 = vpack.c.bf16 %v5940_v8, %v5939_v54  ;;  %v15109_v54 = vld [vmem:[#allocation14_spill] sm:$0xff] }
 0x3fd   :  { %7232 = vmatmul.mubr.f32.gmra.mrb[66].mxu1 %v11633_v56 }
 0x3fe   :  { %7234 = vmatprep.mubr.msk.f32.mxu1 %vm9348_vm12, %v15027_v27  ;;  %8252 = vmatpush3.bf16.msra.mxu1 %v8251_v15  ;;  %v5932_v15 = vld [vmem:[%s14677_s4 + $0x508] sm:$0xff] }
 0x3ff   :  { %8253 = vmatprep.subr.bf16.mxu1 %v15029_v59  ;;  %v8260_v12 = vpack.c.bf16 %v5932_v15, %v5931_v43  ;;  %v5941_v43 = vld [vmem:[%s14677_s4 + $0x550] sm:$0xff]  ;;  %v5942_v15 = vld [vmem:[%s14677_s4 + $0x558] sm:$0xff] }
 0x401   :  { %7235 = vmatmul.mubr.f32.gmra.mrb[68].mxu1 %v1565_v19  ;;  %v5936_v19 = vld [vmem:[%s14677_s4 + $0x528] sm:$0xff] }
 0x402   :  { %7237 = vmatprep.mubr.msk.f32.mxu1 %vm9348_vm12, %v15027_v27  ;;  %8255 = vmatpush3.bf16.msra.mxu1 %v8254_v41  ;;  %v8263_v41 = vpack.c.bf16 %v5934_v52, %v5933_v26  ;;  %v8266_v2 = vpack.c.bf16 %v5936_v19, %v5935_v3  ;;  %v5943_v26 = vld [vmem:[%s14677_s4 + $0x560] sm:$0xff]  ;;  %v5944_v52 = vld [vmem:[%s14677_s4 + $0x568] sm:$0xff]  ;;  %v5945_v19 = vld [vmem:[%s14677_s4 + $0x570] sm:$0xff] }
 0x403   :  { %8256 = vmatprep.subr.bf16.mxu1 %v15029_v59 }
 0x405   :  { %7238 = vmatmul.mubr.f32.gmra.mrb[70].mxu1 %v12317_v42 }
 0x406   :  { %7240 = vmatprep.mubr.msk.f32.mxu1 %vm9348_vm12, %v15027_v27  ;;  %8258 = vmatpush3.bf16.msra.mxu1 %v8257_v60  ;;  %v8269_v60 = vpack.c.bf16 %v5938_v21, %v5937_v24  ;;  %v15108_v21 = vld [vmem:[#allocation12_spill] sm:$0xff] }
 0x407   :  { %8259 = vmatprep.subr.bf16.mxu1 %v15029_v59 }
 0x409   :  { %7241 = vmatmul.mubr.f32.gmra.mrb[72].mxu1 %v12325_v33 }
 0x40a   :  { %7275 = vmatprep.mubr.msk.f32.mxu1 %vm9348_vm12, %v15027_v27 }
 0x40d   :  { %7276 = vmatmul.mubr.f32.vlgmr.msra.gmra.mrb[56].mxu1 %v15106_v18  ;;  %v8278_v18 = vpack.c.bf16 %v5944_v52, %v5943_v26  ;;  %v5951_v26 = vld [vmem:[%s14677_s4 + $0x5a0] sm:$0xff]  ;;  %v5952_v52 = vld [vmem:[%s14677_s4 + $0x5a8] sm:$0xff] }
 0x40e   :  { %8261 = vmatpush3.bf16.msra.mxu1 %v8260_v12  ;;  %7278 = vmatprep.mubr.msk.f32.mxu1 %vm9348_vm12, %v15027_v27  ;;  %v1502_v12 = vmax.f32 %v11444_v44, 0.0  ;;  %v1504_v44 = vmax.f32 %v11449_v31, 0.0  ;;  %v1506_v31 = vmax.f32 %v11453_v48, 0.0 }
 0x40f   :  { %8262 = vmatprep.subr.bf16.mxu1 %v15029_v59 }
 0x410   :  { %v12417_v8 = vmul.f32 %v15109_v54, %v1506_v31  ;;  %v5961_v31 = vld [vmem:[%s14677_s4 + $0x5f0] sm:$0xff]  ;;  %v5962_v54 = vld [vmem:[%s14677_s4 + $0x5f8] sm:$0xff] }
 0x411   :  { %7279 = vmatmul.mubr.f32.gmra.mrb[58].mxu1 %v11362_v22 }
 0x412   :  { %8264 = vmatpush3.bf16.msra.mxu1 %v8263_v41  ;;  %7281 = vmatprep.mubr.msk.f32.mxu1 %vm9348_vm12, %v15027_v27  ;;  %v15107_v41 = vld [vmem:[#allocation83_spill] sm:$0xff] }
 0x413   :  { %8265 = vmatprep.subr.bf16.mxu1 %v15029_v59  ;;  %v1566_v3 = vmul.f32 %v15107_v41, %v1502_v12  ;;  %v5954_v41 = vld [vmem:[%s14677_s4 + $0x5b8] sm:$0xff] }
 0x415   :  { %7282 = vmatmul.mubr.f32.gmra.mrb[60].mxu1 %v11400_v9 }
 0x416   :  { %8267 = vmatpush3.bf16.msra.mxu1 %v8266_v2  ;;  %7284 = vmatprep.mubr.msk.f32.mxu1 %vm9348_vm12, %v15027_v27  ;;  %v5946_v2 = vld [vmem:[%s14677_s4 + $0x578] sm:$0xff] }
 0x417   :  { %8268 = vmatprep.subr.bf16.mxu1 %v15029_v59  ;;  %v8281_v24 = vpack.c.bf16 %v5946_v2, %v5945_v19  ;;  %v5957_v19 = vld [vmem:[%s14677_s4 + $0x5d0] sm:$0xff]  ;;  %v5958_v2 = vld [vmem:[%s14677_s4 + $0x5d8] sm:$0xff] }
 0x419   :  { %7285 = vmatmul.mubr.f32.gmra.mrb[62].mxu1 %v11427_v36  ;;  %v8275_v36 = vpack.c.bf16 %v5942_v15, %v5941_v43  ;;  %v5948_v43 = vld [vmem:[%s14677_s4 + $0x588] sm:$0xff]  ;;  %v5949_v15 = vld [vmem:[%s14677_s4 + $0x590] sm:$0xff] }
 0x41a   :  { %8270 = vmatpush3.bf16.msra.mxu1 %v8269_v60  ;;  %7287 = vmatprep.mubr.msk.f32.mxu1 %vm9348_vm12, %v15027_v27  ;;  %v12409_v60 = vmul.f32 %v15108_v21, %v1504_v44  ;;  %v5956_v44 = vld [vmem:[%s14677_s4 + $0x5c8] sm:$0xff] }
 0x41b   :  { %8271 = vmatprep.subr.bf16.mxu1 %v15029_v59  ;;  %v5960_v21 = vld [vmem:[%s14677_s4 + $0x5e8] sm:$0xff] }
 0x41d   :  { %7288 = vmatmul.mubr.f32.gmra.mrb[64].mxu1 %v11462_v7 }
 0x41e   :  { %8273 = vmatpush3.bf16.msra.mxu1 %v8272_v6  ;;  %7290 = vmatprep.mubr.msk.f32.mxu1 %vm9348_vm12, %v15027_v27  ;;  %v5947_v6 = vld [vmem:[%s14677_s4 + $0x580] sm:$0xff] }
 0x41f   :  { %8274 = vmatprep.subr.bf16.mxu1 %v15029_v59  ;;  %v8284_v48 = vpack.c.bf16 %v5948_v43, %v5947_v6  ;;  %v1507_v6 = vmax.f32 %v11467_v49, 0.0  ;;  %v15110_v43 = vld [vmem:[#allocation15_spill] sm:$0xff] }
 0x421   :  { %7291 = vmatmul.mubr.f32.gmra.mrb[66].mxu1 %v11492_v58 }
 0x422   :  { %7293 = vmatprep.mubr.msk.f32.mxu1 %vm9348_vm12, %v15027_v27  ;;  %8276 = vmatpush3.bf16.msra.mxu1 %v8275_v36  ;;  %v5950_v36 = vld [vmem:[%s14677_s4 + $0x598] sm:$0xff] }
 0x423   :  { %8277 = vmatprep.subr.bf16.mxu1 %v15029_v59  ;;  %v8287_v12 = vpack.c.bf16 %v5950_v36, %v5949_v15  ;;  %v5964_v15 = vld [vmem:[%s14677_s4 + $0x608] sm:$0xff]  ;;  %v5966_v36 = vld [vmem:[%s14677_s4 + $0x618] sm:$0xff] }
 0x425   :  { %7294 = vmatmul.mubr.f32.gmra.mrb[68].mxu1 %v1566_v3  ;;  %v5955_v3 = vld [vmem:[%s14677_s4 + $0x5c0] sm:$0xff] }
 0x426   :  { %7296 = vmatprep.mubr.msk.f32.mxu1 %vm9348_vm12, %v15027_v27  ;;  %8279 = vmatpush3.bf16.msra.mxu1 %v8278_v18  ;;  %v5953_v18 = vld [vmem:[%s14677_s4 + $0x5b0] sm:$0xff] }
 0x427   :  { %8280 = vmatprep.subr.bf16.mxu1 %v15029_v59 }
 0x429   :  { %7297 = vmatmul.mubr.f32.gmra.mrb[70].mxu1 %v12409_v60 }
 0x42a   :  { %7299 = vmatprep.mubr.msk.f32.mxu1 %vm9348_vm12, %v15027_v27  ;;  %8282 = vmatpush3.bf16.msra.mxu1 %v8281_v24  ;;  %v5959_v24 = vld [vmem:[%s14677_s4 + $0x5e0] sm:$0xff] }
 0x42b   :  { %8283 = vmatprep.subr.bf16.mxu1 %v15029_v59 }
 0x42d   :  { %7300 = vmatmul.mubr.f32.gmra.mrb[72].mxu1 %v12417_v8 }
 0x42e   :  { %7334 = vmatprep.mubr.msk.f32.mxu1 %vm9348_vm12, %v15027_v27 }
 0x431   :  { %7335 = vmatmul.mubr.f32.vlgmr.msra.gmra.mrb[56].mxu1 %v11584_v13  ;;  %v8290_v13 = vpack.c.bf16 %v5952_v52, %v5951_v26  ;;  %v5967_v26 = vld [vmem:[%s14677_s4 + $0x620] sm:$0xff]  ;;  %v5968_v52 = vld [vmem:[%s14677_s4 + $0x628] sm:$0xff] }
 0x432   :  { %8285 = vmatpush3.bf16.msra.mxu1 %v8284_v48  ;;  %7337 = vmatprep.mubr.msk.f32.mxu1 %vm9348_vm12, %v15027_v27  ;;  %v1571_v48 = vmul.f32 %v15110_v43, %v1507_v6  ;;  %v5983_v6 = vld [vmem:[%s14677_s4 + $0x6a0] sm:$0xff]  ;;  %v5984_v43 = vld [vmem:[%s14677_s4 + $0x6a8] sm:$0xff] }
 0x433   :  { %8286 = vmatprep.subr.bf16.mxu1 %v15029_v59 }
 0x435   :  { %7338 = vmatmul.mubr.f32.gmra.mrb[58].mxu1 %v11597_v50  ;;  %v8293_v50 = vpack.c.bf16 %v5954_v41, %v5953_v18  ;;  %v5970_v18 = vld [vmem:[%s14677_s4 + $0x638] sm:$0xff]  ;;  %v5971_v41 = vld [vmem:[%s14677_s4 + $0x640] sm:$0xff] }
 0x436   :  { %8288 = vmatpush3.bf16.msra.mxu1 %v8287_v12  ;;  %7340 = vmatprep.mubr.msk.f32.mxu1 %vm9348_vm12, %v15027_v27 }
 0x437   :  { %8289 = vmatprep.subr.bf16.mxu1 %v15029_v59 }
 0x439   :  { %7341 = vmatmul.mubr.f32.gmra.mrb[60].mxu1 %v11697_v39  ;;  %v8296_v39 = vpack.c.bf16 %v5956_v44, %v5955_v3  ;;  %v5973_v3 = vld [vmem:[%s14677_s4 + $0x650] sm:$0xff]  ;;  %v5974_v44 = vld [vmem:[%s14677_s4 + $0x658] sm:$0xff] }
 0x43a   :  { %8291 = vmatpush3.bf16.msra.mxu1 %v8290_v13  ;;  %7343 = vmatprep.mubr.msk.f32.mxu1 %vm9348_vm12, %v15027_v27  ;;  %v5969_v13 = vld [vmem:[%s14677_s4 + $0x630] sm:$0xff] }
 0x43b   :  { %8292 = vmatprep.subr.bf16.mxu1 %v15029_v59 }
 0x43d   :  { %7344 = vmatmul.mubr.f32.gmra.mrb[62].mxu1 %v11626_v30  ;;  %v8299_v30 = vpack.c.bf16 %v5958_v2, %v5957_v19  ;;  %v5976_v19 = vld [vmem:[%s14677_s4 + $0x668] sm:$0xff]  ;;  %v5977_v2 = vld [vmem:[%s14677_s4 + $0x670] sm:$0xff] }
 0x43e   :  { %8294 = vmatpush3.bf16.msra.mxu1 %v8293_v50  ;;  %7346 = vmatprep.mubr.msk.f32.mxu1 %vm9348_vm12, %v15027_v27  ;;  %v5972_v50 = vld [vmem:[%s14677_s4 + $0x648] sm:$0xff] }
 0x43f   :  { %8295 = vmatprep.subr.bf16.mxu1 %v15029_v59 }
 0x441   :  { %7347 = vmatmul.mubr.f32.gmra.mrb[64].mxu1 %v11633_v56  ;;  %v8302_v56 = vpack.c.bf16 %v5960_v21, %v5959_v24  ;;  %v1508_v24 = vmax.f32 %v11471_v28, 0.0  ;;  %v15111_v21 = vld [vmem:[#allocation84_spill] sm:$0xff] }
 0x442   :  { %8297 = vmatpush3.bf16.msra.mxu1 %v8296_v39  ;;  %7349 = vmatprep.mubr.msk.f32.mxu1 %vm9348_vm12, %v15027_v27  ;;  %v5975_v39 = vld [vmem:[%s14677_s4 + $0x660] sm:$0xff] }
 0x443   :  { %8298 = vmatprep.subr.bf16.mxu1 %v15029_v59 }
 0x445   :  { %7350 = vmatmul.mubr.f32.gmra.mrb[66].mxu1 %v11725_v37  ;;  %v8305_v37 = vpack.c.bf16 %v5962_v54, %v5961_v31  ;;  %v5980_v31 = vld [vmem:[%s14677_s4 + $0x688] sm:$0xff]  ;;  %v5982_v54 = vld [vmem:[%s14677_s4 + $0x698] sm:$0xff] }
 0x446   :  { %7352 = vmatprep.mubr.msk.f32.mxu1 %vm9348_vm12, %v15027_v27  ;;  %8300 = vmatpush3.bf16.msra.mxu1 %v8299_v30  ;;  %v5978_v30 = vld [vmem:[%s14677_s4 + $0x678] sm:$0xff] }
 0x447   :  { %8301 = vmatprep.subr.bf16.mxu1 %v15029_v59 }
 0x449   :  { %7353 = vmatmul.mubr.f32.gmra.mrb[68].mxu1 %v12317_v42  ;;  %v5963_v42 = vld [vmem:[%s14677_s4 + $0x600] sm:$0xff] }
 0x44a   :  { %7355 = vmatprep.mubr.msk.f32.mxu1 %vm9348_vm12, %v15027_v27  ;;  %8303 = vmatpush3.bf16.msra.mxu1 %v8302_v56  ;;  %v8308_v49 = vpack.c.bf16 %v5964_v15, %v5963_v42  ;;  %v1572_v56 = vmul.f32 %v15111_v21, %v1508_v24  ;;  %v5986_v42 = vld [vmem:[%s14677_s4 + $0x6b8] sm:$0xff] }
 0x44b   :  { %8304 = vmatprep.subr.bf16.mxu1 %v15029_v59  ;;  %v15114_v24 = vld [vmem:[#allocation89_spill] sm:$0xff] }
 0x44d   :  { %7356 = vmatmul.mubr.f32.gmra.mrb[70].mxu1 %v12325_v33  ;;  %v5965_v33 = vld [vmem:[%s14677_s4 + $0x610] sm:$0xff] }
 0x44e   :  { %7358 = vmatprep.mubr.msk.f32.mxu1 %vm9348_vm12, %v15027_v27  ;;  %8306 = vmatpush3.bf16.msra.mxu1 %v8305_v37  ;;  %v8311_v12 = vpack.c.bf16 %v5966_v36, %v5965_v33  ;;  %v5988_v33 = vld [vmem:[%s14677_s4 + $0x6c8] sm:$0xff] }
 0x44f   :  { %8307 = vmatprep.subr.bf16.mxu1 %v15029_v59 }
 0x451   :  { %7359 = vmatmul.mubr.f32.gmra.mrb[72].mxu1 %v1571_v48  ;;  %v5985_v48 = vld [vmem:[%s14677_s4 + $0x6b0] sm:$0xff] }
 0x452   :  { %7393 = vmatprep.mubr.msk.f32.mxu1 %vm9348_vm12, %v15027_v27  ;;  %v8341_v15 = vpack.c.bf16 %v5986_v42, %v5985_v48  ;;  %v6003_v48 = vld [vmem:[%s14677_s4 + $0x740] sm:$0xff]  ;;  %v6004_v42 = vld [vmem:[%s14677_s4 + $0x748] sm:$0xff] }
 0x455   :  { %7394 = vmatmul.mubr.f32.vlgmr.msra.gmra.mrb[56].mxu1 %v11362_v22  ;;  %v8314_v22 = vpack.c.bf16 %v5968_v52, %v5967_v26  ;;  %v6030_v26 = vld [vmem:[%s14680_s7 + $0x88] sm:$0xff]  ;;  %v6031_v52 = vld [vmem:[%s14680_s7 + $0x90] sm:$0xff] }
 0x456   :  { %8309 = vmatpush3.bf16.msra.mxu1 %v8308_v49  ;;  %7396 = vmatprep.mubr.msk.f32.mxu1 %vm9348_vm12, %v15027_v27  ;;  %v5987_v49 = vld [vmem:[%s14677_s4 + $0x6c0] sm:$0xff] }
 0x457   :  { %8310 = vmatprep.subr.bf16.mxu1 %v15029_v59  ;;  %v8344_v36 = vpack.c.bf16 %v5988_v33, %v5987_v49  ;;  %v6005_v49 = vld [vmem:[%s14677_s4 + $0x750] sm:$0xff]  ;;  %v6006_v33 = vld [vmem:[%s14677_s4 + $0x758] sm:$0xff] }
 0x459   :  { %7397 = vmatmul.mubr.f32.gmra.mrb[58].mxu1 %v11400_v9  ;;  %v8317_v9 = vpack.c.bf16 %v5970_v18, %v5969_v13  ;;  %v6032_v18 = vld [vmem:[%s14680_s7 + $0x98] sm:$0xff] }
 0x45a   :  { %8312 = vmatpush3.bf16.msra.mxu1 %v8311_v12  ;;  %7399 = vmatprep.mubr.msk.f32.mxu1 %vm9348_vm12, %v15027_v27  ;;  %v6029_v12 = vld [vmem:[%s14680_s7 + $0x80] sm:$0xff] }
 0x45b   :  { %8313 = vmatprep.subr.bf16.mxu1 %v15029_v59  ;;  %v8404_v13 = vpack.c.bf16 %v6030_v26, %v6029_v12  ;;  %v6007_v26 = vld [vmem:[%s14677_s4 + $0x760] sm:$0xff] }
 0x45d   :  { %7400 = vmatmul.mubr.f32.gmra.mrb[60].mxu1 %v11789_v38  ;;  %v8320_v38 = vpack.c.bf16 %v5972_v50, %v5971_v41  ;;  %8405 = vmatpush3.bf16.msra.mxu0 %v8404_v13  ;;  %v1509_v50 = vmax.f32 %v11476_v40, 0.0 }
 0x45e   :  { %8315 = vmatpush3.bf16.msra.mxu1 %v8314_v22  ;;  %7402 = vmatprep.mubr.msk.f32.mxu1 %vm9348_vm12, %v15027_v27  ;;  %v5990_v22 = vld [vmem:[%s14677_s4 + $0x6d8] sm:$0xff] }
 0x45f   :  { %8316 = vmatprep.subr.bf16.mxu1 %v15029_v59  ;;  %8406 = vmatprep.subr.bf16.mxu0 %v15029_v59 }
 0x461   :  { %7403 = vmatmul.mubr.f32.gmra.mrb[62].mxu1 %v11462_v7  ;;  %v8323_v7 = vpack.c.bf16 %v5974_v44, %v5973_v3  ;;  %v5992_v3 = vld [vmem:[%s14677_s4 + $0x6e8] sm:$0xff] }
 0x462   :  { %8318 = vmatpush3.bf16.msra.mxu1 %v8317_v9  ;;  %7405 = vmatprep.mubr.msk.f32.mxu1 %vm9348_vm12, %v15027_v27  ;;  %v8407_v9 = vpack.c.bf16 %v6032_v18, %v6031_v52  ;;  %v6008_v52 = vld [vmem:[%s14677_s4 + $0x768] sm:$0xff]  ;;  %v15117_v18 = vld [vmem:[#allocation20_spill] sm:$0xff] }
 0x463   :  { %8319 = vmatprep.subr.bf16.mxu1 %v15029_v59 }
 0x464   :  { %8408 = vmatpush3.bf16.msra.mxu0 %v8407_v9  ;;  %v1512_v9 = vmax.f32 %v15117_v18, 0.0  ;;  %v6044_v18 = vld [vmem:[%s14680_s7 + $0xf8] sm:$0xff] }
 0x465   :  { %7406 = vmatmul.mubr.f32.gmra.mrb[64].mxu1 %v11492_v58  ;;  %v8326_v58 = vpack.c.bf16 %v5976_v19, %v5975_v39  ;;  %v1511_v39 = vmax.f32 %v11480_v29, 0.0  ;;  %v5993_v19 = vld [vmem:[%s14677_s4 + $0x6f0] sm:$0xff]  ;;  %8409 = vmatprep.subr.bf16.mxu0 %v15029_v59  ;;  %v1513_v29 = vmax.f32 %v11489_v53, 0.0 }
 0x466   :  { %8321 = vmatpush3.bf16.msra.mxu1 %v8320_v38  ;;  %7408 = vmatprep.mubr.msk.f32.mxu1 %vm9348_vm12, %v15027_v27  ;;  %v5991_v38 = vld [vmem:[%s14677_s4 + $0x6e0] sm:$0xff] }
 0x467   :  { %8322 = vmatprep.subr.bf16.mxu1 %v15029_v59  ;;  %v8350_v44 = vpack.c.bf16 %v5992_v3, %v5991_v38  ;;  %v12691_v21 = vmul.f32 %v15114_v24, %v1513_v29  ;;  %v15118_v3 = vld [vmem:[#allocation88_spill] sm:$0xff]  ;;  %v6015_v24 = vld [vmem:[%s14677_s4 + $0x7a0] sm:$0xff] }
 0x469   :  { %7409 = vmatmul.mubr.f32.gmra.mrb[66].mxu1 %v11818_v17  ;;  %v8329_v17 = vpack.c.bf16 %v5978_v30, %v5977_v2  ;;  %v15113_v30 = vld [vmem:[#allocation87_spill] sm:$0xff] }
 0x46a   :  { %7411 = vmatprep.mubr.msk.f32.mxu1 %vm9348_vm12, %v15027_v27  ;;  %8324 = vmatpush3.bf16.msra.mxu1 %v8323_v7  ;;  %v15112_v7 = vld [vmem:[#allocation85_spill] sm:$0xff] }
 0x46b   :  { %8325 = vmatprep.subr.bf16.mxu1 %v15029_v59  ;;  %v1573_v40 = vmul.f32 %v15112_v7, %v1509_v50  ;;  %v6010_v50 = vld [vmem:[%s14677_s4 + $0x778] sm:$0xff]  ;;  %v1514_v7 = vmax.f32 %v11511_v35, 0.0 }
 0x46d   :  { %7412 = vmatmul.mubr.f32.gmra.mrb[68].mxu1 %v12409_v60  ;;  %v5979_v60 = vld [vmem:[%s14677_s4 + $0x680] sm:$0xff] }
 0x46e   :  { %7414 = vmatprep.mubr.msk.f32.mxu1 %vm9348_vm12, %v15027_v27  ;;  %8327 = vmatpush3.bf16.msra.mxu1 %v8326_v58  ;;  %v8332_v28 = vpack.c.bf16 %v5980_v31, %v5979_v60  ;;  %v5994_v58 = vld [vmem:[%s14677_s4 + $0x6f8] sm:$0xff]  ;;  %v5996_v60 = vld [vmem:[%s14677_s4 + $0x708] sm:$0xff]  ;;  %v5997_v31 = vld [vmem:[%s14677_s4 + $0x710] sm:$0xff] }
 0x46f   :  { %8328 = vmatprep.subr.bf16.mxu1 %v15029_v59  ;;  %v8353_v2 = vpack.c.bf16 %v5994_v58, %v5993_v19  ;;  %v6011_v19 = vld [vmem:[%s14677_s4 + $0x780] sm:$0xff]  ;;  %v6012_v58 = vld [vmem:[%s14677_s4 + $0x788] sm:$0xff] }
 0x470   :  { %v8380_v35 = vpack.c.bf16 %v6012_v58, %v6011_v19 }
 0x471   :  { %7415 = vmatmul.mubr.f32.gmra.mrb[70].mxu1 %v12417_v8  ;;  %v5981_v8 = vld [vmem:[%s14677_s4 + $0x690] sm:$0xff] }
 0x472   :  { %7417 = vmatprep.mubr.msk.f32.mxu1 %vm9348_vm12, %v15027_v27  ;;  %8330 = vmatpush3.bf16.msra.mxu1 %v8329_v17  ;;  %v8335_v37 = vpack.c.bf16 %v5982_v54, %v5981_v8  ;;  %v12683_v17 = vmul.f32 %v15113_v30, %v1511_v39  ;;  %v5999_v54 = vld [vmem:[%s14677_s4 + $0x720] sm:$0xff]  ;;  %v6014_v30 = vld [vmem:[%s14677_s4 + $0x798] sm:$0xff] }
 0x473   :  { %8331 = vmatprep.subr.bf16.mxu1 %v15029_v59 }
 0x475   :  { %7418 = vmatmul.mubr.f32.gmra.mrb[72].mxu1 %v1572_v56  ;;  %v5995_v56 = vld [vmem:[%s14677_s4 + $0x700] sm:$0xff] }
 0x476   :  { %7452 = vmatprep.mubr.msk.f32.mxu1 %vm9348_vm12, %v15027_v27  ;;  %v8356_v53 = vpack.c.bf16 %v5996_v60, %v5995_v56  ;;  %v6016_v56 = vld [vmem:[%s14677_s4 + $0x7a8] sm:$0xff]  ;;  %v6017_v60 = vld [vmem:[%s14677_s4 + $0x7b0] sm:$0xff] }
 0x479   :  { %7453 = vmatmul.mubr.f32.vlgmr.msra.gmra.mrb[56].mxu1 %v11870_v46  ;;  %v8338_v46 = vpack.c.bf16 %v5984_v43, %v5983_v6  ;;  %v6001_v6 = vld [vmem:[%s14677_s4 + $0x730] sm:$0xff]  ;;  %v6002_v43 = vld [vmem:[%s14677_s4 + $0x738] sm:$0xff] }
 0x47a   :  { %8333 = vmatpush3.bf16.msra.mxu1 %v8332_v28  ;;  %7455 = vmatprep.mubr.msk.f32.mxu1 %vm9348_vm12, %v15027_v27  ;;  %v5998_v28 = vld [vmem:[%s14677_s4 + $0x718] sm:$0xff] }
 0x47b   :  { %8334 = vmatprep.subr.bf16.mxu1 %v15029_v59  ;;  %v8359_v8 = vpack.c.bf16 %v5998_v28, %v5997_v31  ;;  %v6019_v31 = vld [vmem:[%s14677_s4 + $0x7c0] sm:$0xff]  ;;  %v6020_v28 = vld [vmem:[%s14677_s4 + $0x7c8] sm:$0xff] }
 0x47d   :  { %7456 = vmatmul.mubr.f32.gmra.mrb[58].mxu1 %v11884_v55 }
 0x47e   :  { %8336 = vmatpush3.bf16.msra.mxu1 %v8335_v37  ;;  %7458 = vmatprep.mubr.msk.f32.mxu1 %vm9348_vm12, %v15027_v27  ;;  %v6000_v37 = vld [vmem:[%s14677_s4 + $0x728] sm:$0xff] }
 0x47f   :  { %8337 = vmatprep.subr.bf16.mxu1 %v15029_v59 }
 0x481   :  { %7459 = vmatmul.mubr.f32.gmra.mrb[60].mxu1 %v11897_v0 }
 0x482   :  { %8339 = vmatpush3.bf16.msra.mxu1 %v8338_v46  ;;  %7461 = vmatprep.mubr.msk.f32.mxu1 %vm9348_vm12, %v15027_v27  ;;  %v8365_v46 = vpack.c.bf16 %v6002_v43, %v6001_v6  ;;  %v6025_v6 = vld [vmem:[%s14677_s4 + $0x7f0] sm:$0xff]  ;;  %v6026_v43 = vld [vmem:[%s14677_s4 + $0x7f8] sm:$0xff] }
 0x483   :  { %8340 = vmatprep.subr.bf16.mxu1 %v15029_v59 }
 0x485   :  { %7462 = vmatmul.mubr.f32.gmra.mrb[62].mxu1 %v11912_v1  ;;  %v5989_v1 = vld [vmem:[%s14677_s4 + $0x6d0] sm:$0xff] }
 0x486   :  { %8342 = vmatpush3.bf16.msra.mxu1 %v8341_v15  ;;  %7464 = vmatprep.mubr.msk.f32.mxu1 %vm9348_vm12, %v15027_v27  ;;  %v8347_v41 = vpack.c.bf16 %v5990_v22, %v5989_v1  ;;  %v8368_v15 = vpack.c.bf16 %v6004_v42, %v6003_v48  ;;  %v8374_v1 = vpack.c.bf16 %v6008_v52, %v6007_v26  ;;  %v15116_v22 = vld [vmem:[#allocation86_spill] sm:$0xff]  ;;  %v15121_v42 = vld [vmem:[#allocation91_spill] sm:$0xff] }
 0x487   :  { %8343 = vmatprep.subr.bf16.mxu1 %v15029_v59  ;;  %v6041_v52 = vld [vmem:[%s14680_s7 + $0xe0] sm:$0xff] }
 0x489   :  { %7465 = vmatmul.mubr.f32.gmra.mrb[64].mxu1 %v11926_v32 }
 0x48a   :  { %8345 = vmatpush3.bf16.msra.mxu1 %v8344_v36  ;;  %7467 = vmatprep.mubr.msk.f32.mxu1 %vm9348_vm12, %v15027_v27  ;;  %v15115_v36 = vld [vmem:[#allocation33_spill] sm:$0xff] }
 0x48b   :  { %8346 = vmatprep.subr.bf16.mxu1 %v15029_v59  ;;  %v1510_v12 = vmax.f32 %v15115_v36, 0.0 }
 0x48d   :  { %7468 = vmatmul.mubr.f32.gmra.mrb[66].mxu1 %v11934_v47  ;;  %v1574_v13 = vmul.f32 %v15116_v22, %v1510_v12  ;;  %v6040_v12 = vld [vmem:[%s14680_s7 + $0xd8] sm:$0xff] }
 0x48e   :  { %7470 = vmatprep.mubr.msk.f32.mxu1 %vm9348_vm12, %v15027_v27  ;;  %8348 = vmatpush3.bf16.msra.mxu1 %v8347_v41  ;;  %v6009_v41 = vld [vmem:[%s14677_s4 + $0x770] sm:$0xff] }
 0x48f   :  { %8349 = vmatprep.subr.bf16.mxu1 %v15029_v59  ;;  %v8377_v38 = vpack.c.bf16 %v6010_v50, %v6009_v41 }
 0x491   :  { %7471 = vmatmul.mubr.f32.gmra.mrb[68].mxu1 %v1573_v40  ;;  %v15119_v40 = vld [vmem:[#allocation90_spill] sm:$0xff] }
 0x492   :  { %7473 = vmatprep.mubr.msk.f32.mxu1 %vm9348_vm12, %v15027_v27  ;;  %8351 = vmatpush3.bf16.msra.mxu1 %v8350_v44  ;;  %v12775_v44 = vmul.f32 %v15118_v3, %v1512_v9  ;;  %v12783_v39 = vmul.f32 %v15119_v40, %v1514_v7 }
 0x493   :  { %8352 = vmatprep.subr.bf16.mxu1 %v15029_v59 }
 0x495   :  { %7474 = vmatmul.mubr.f32.gmra.mrb[70].mxu1 %v12683_v17 }
 0x496   :  { %7476 = vmatprep.mubr.msk.f32.mxu1 %vm9348_vm12, %v15027_v27  ;;  %8354 = vmatpush3.bf16.msra.mxu1 %v8353_v2  ;;  %v6013_v2 = vld [vmem:[%s14677_s4 + $0x790] sm:$0xff] }
 0x497   :  { %8355 = vmatprep.subr.bf16.mxu1 %v15029_v59  ;;  %v8383_v29 = vpack.c.bf16 %v6014_v30, %v6013_v2 }
 0x499   :  { %7477 = vmatmul.mubr.f32.gmra.mrb[72].mxu1 %v12691_v21 }
 0x49a   :  { %7511 = vmatprep.mubr.msk.f32.mxu1 %vm9348_vm12, %v15027_v27 }
 0x49d   :  { %7512 = vmatmul.mubr.f32.vlgmr.msra.gmra.mrb[56].mxu1 %v11986_v62  ;;  %v8362_v62 = vpack.c.bf16 %v6000_v37, %v5999_v54  ;;  %v6022_v54 = vld [vmem:[%s14677_s4 + $0x7d8] sm:$0xff]  ;;  %v6023_v37 = vld [vmem:[%s14677_s4 + $0x7e0] sm:$0xff] }
 0x49e   :  { %8357 = vmatpush3.bf16.msra.mxu1 %v8356_v53  ;;  %7514 = vmatprep.mubr.msk.f32.mxu1 %vm9348_vm12, %v15027_v27  ;;  %v6018_v53 = vld [vmem:[%s14677_s4 + $0x7b8] sm:$0xff] }
 0x49f   :  { %8358 = vmatprep.subr.bf16.mxu1 %v15029_v59 }
 0x4a1   :  { %7515 = vmatmul.mubr.f32.gmra.mrb[58].mxu1 %v12000_v14 }
 0x4a2   :  { %8360 = vmatpush3.bf16.msra.mxu1 %v8359_v8  ;;  %7517 = vmatprep.mubr.msk.f32.mxu1 %vm9348_vm12, %v15027_v27  ;;  %v6021_v8 = vld [vmem:[%s14677_s4 + $0x7d0] sm:$0xff] }
 0x4a3   :  { %8361 = vmatprep.subr.bf16.mxu1 %v15029_v59 }
 0x4a5   :  { %7518 = vmatmul.mubr.f32.gmra.mrb[60].mxu1 %v12013_v61 }
 0x4a6   :  { %8363 = vmatpush3.bf16.msra.mxu1 %v8362_v62  ;;  %7520 = vmatprep.mubr.msk.f32.mxu1 %vm9348_vm12, %v15027_v27  ;;  %v6024_v62 = vld [vmem:[%s14677_s4 + $0x7e8] sm:$0xff] }
 0x4a7   :  { %8364 = vmatprep.subr.bf16.mxu1 %v15029_v59 }
 0x4a9   :  { %7521 = vmatmul.mubr.f32.gmra.mrb[62].mxu1 %v12028_v45  ;;  %v8371_v45 = vpack.c.bf16 %v6006_v33, %v6005_v49  ;;  %v6037_v49 = vld [vmem:[%s14680_s7 + $0xc0] sm:$0xff]  ;;  %v6038_v33 = vld [vmem:[%s14680_s7 + $0xc8] sm:$0xff] }
 0x4aa   :  { %8366 = vmatpush3.bf16.msra.mxu1 %v8365_v46  ;;  %7523 = vmatprep.mubr.msk.f32.mxu1 %vm9348_vm12, %v15027_v27  ;;  %v15120_v46 = vld [vmem:[#allocation22_spill] sm:$0xff]  ;;  %v8416_v36 = vpack.c.bf16 %v6038_v33, %v6037_v49 }
 0x4ab   :  { %8367 = vmatprep.subr.bf16.mxu1 %v15029_v59  ;;  %v1515_v48 = vmax.f32 %v15120_v46, 0.0 }
 0x4ad   :  { %7524 = vmatmul.mubr.f32.gmra.mrb[64].mxu1 %v12042_v23 }
 0x4ae   :  { %8369 = vmatpush3.bf16.msra.mxu1 %v8368_v15  ;;  %7526 = vmatprep.mubr.msk.f32.mxu1 %vm9348_vm12, %v15027_v27  ;;  %v1579_v15 = vmul.f32 %v15121_v42, %v1515_v48 }
 0x4af   :  { %8370 = vmatprep.subr.bf16.mxu1 %v15029_v59 }
 0x4b1   :  { %7527 = vmatmul.mubr.f32.gmra.mrb[66].mxu1 %v12049_v34 }
 0x4b2   :  { %7529 = vmatprep.mubr.msk.f32.mxu1 %vm9348_vm12, %v15027_v27  ;;  %8372 = vmatpush3.bf16.msra.mxu1 %v8371_v45  ;;  %v6039_v45 = vld [vmem:[%s14680_s7 + $0xd0] sm:$0xff] }
 0x4b3   :  { %8373 = vmatprep.subr.bf16.mxu1 %v15029_v59  ;;  %v8419_v26 = vpack.c.bf16 %v6040_v12, %v6039_v45  ;;  %v15125_v45 = vld [vmem:[#allocation40_spill] sm:$0xff] }
 0x4b5   :  { %7530 = vmatmul.mubr.f32.gmra.mrb[68].mxu1 %v1574_v13  ;;  %v6043_v13 = vld [vmem:[%s14680_s7 + $0xf0] sm:$0xff] }
 0x4b6   :  { %7532 = vmatprep.mubr.msk.f32.mxu1 %vm9348_vm12, %v15027_v27  ;;  %8375 = vmatpush3.bf16.msra.mxu1 %v8374_v1  ;;  %v6042_v1 = vld [vmem:[%s14680_s7 + $0xe8] sm:$0xff]  ;;  %v8425_v9 = vpack.c.bf16 %v6044_v18, %v6043_v13  ;;  %v15126_v13 = vld [vmem:[#allocation42_spill] sm:$0xff] }
 0x4b7   :  { %8376 = vmatprep.subr.bf16.mxu1 %v15029_v59  ;;  %v8422_v22 = vpack.c.bf16 %v6042_v1, %v6041_v52 }
 0x4b9   :  { %7533 = vmatmul.mubr.f32.gmra.mrb[70].mxu1 %v12775_v44 }
 0x4ba   :  { %7535 = vmatprep.mubr.msk.f32.mxu1 %vm9348_vm12, %v15027_v27  ;;  %8378 = vmatpush3.bf16.msra.mxu1 %v8377_v38 }
 0x4bb   :  { %8379 = vmatprep.subr.bf16.mxu1 %v15029_v59 }
 0x4bd   :  { %7536 = vmatmul.mubr.f32.gmra.mrb[72].mxu1 %v12783_v39 }
 0x4be   :  { %7570 = vmatprep.mubr.msk.f32.mxu1 %vm9348_vm12, %v15027_v27 }
 0x4c1   :  { %7571 = vmatmul.mubr.f32.vlgmr.msra.gmra.mrb[56].mxu1 %v11884_v55  ;;  %v8386_v55 = vpack.c.bf16 %v6016_v56, %v6015_v24 }
 0x4c2   :  { %8381 = vmatpush3.bf16.msra.mxu1 %v8380_v35  ;;  %7573 = vmatprep.mubr.msk.f32.mxu1 %vm9348_vm12, %v15027_v27 }
 0x4c3   :  { %8382 = vmatprep.subr.bf16.mxu1 %v15029_v59 }
 0x4c5   :  { %7574 = vmatmul.mubr.f32.gmra.mrb[58].mxu1 %v11897_v0  ;;  %v8389_v0 = vpack.c.bf16 %v6018_v53, %v6017_v60 }
 0x4c6   :  { %8384 = vmatpush3.bf16.msra.mxu1 %v8383_v29  ;;  %7576 = vmatprep.mubr.msk.f32.mxu1 %vm9348_vm12, %v15027_v27 }
 0x4c7   :  { %8385 = vmatprep.subr.bf16.mxu1 %v15029_v59 }
 0x4c9   :  { %7577 = vmatmul.mubr.f32.gmra.mrb[60].mxu1 %v12113_v25  ;;  %v8392_v25 = vpack.c.bf16 %v6020_v28, %v6019_v31 }
 0x4ca   :  { %8387 = vmatpush3.bf16.msra.mxu1 %v8386_v55  ;;  %7579 = vmatprep.mubr.msk.f32.mxu1 %vm9348_vm12, %v15027_v27 }
 0x4cb   :  { %8388 = vmatprep.subr.bf16.mxu1 %v15029_v59 }
 0x4cd   :  { %7580 = vmatmul.mubr.f32.gmra.mrb[62].mxu1 %v11926_v32  ;;  %v8395_v32 = vpack.c.bf16 %v6022_v54, %v6021_v8 }
 0x4ce   :  { %8390 = vmatpush3.bf16.msra.mxu1 %v8389_v0  ;;  %7582 = vmatprep.mubr.msk.f32.mxu1 %vm9348_vm12, %v15027_v27 }
 0x4cf   :  { %8391 = vmatprep.subr.bf16.mxu1 %v15029_v59 }
 0x4d1   :  { %7583 = vmatmul.mubr.f32.gmra.mrb[64].mxu1 %v11934_v47  ;;  %v8398_v47 = vpack.c.bf16 %v6024_v62, %v6023_v37 }
 0x4d2   :  { %8393 = vmatpush3.bf16.msra.mxu1 %v8392_v25  ;;  %7585 = vmatprep.mubr.msk.f32.mxu1 %vm9348_vm12, %v15027_v27 }
 0x4d3   :  { %8394 = vmatprep.subr.bf16.mxu1 %v15029_v59 }
 0x4d5   :  { %7586 = vmatmul.mubr.f32.gmra.mrb[66].mxu1 %v12141_v4  ;;  %v8401_v4 = vpack.c.bf16 %v6026_v43, %v6025_v6 }
 0x4d6   :  { %7588 = vmatprep.mubr.msk.f32.mxu1 %vm9348_vm12, %v15027_v27  ;;  %8396 = vmatpush3.bf16.msra.mxu1 %v8395_v32 }
 0x4d7   :  { %8397 = vmatprep.subr.bf16.mxu1 %v15029_v59 }
 0x4d9   :  { %7589 = vmatmul.mubr.f32.gmra.mrb[68].mxu1 %v12683_v17  ;;  %v6036_v17 = vld [vmem:[%s14680_s7 + $0xb8] sm:$0xff] }
 0x4da   :  { %7591 = vmatprep.mubr.msk.f32.mxu1 %vm9348_vm12, %v15027_v27  ;;  %8399 = vmatpush3.bf16.msra.mxu1 %v8398_v47 }
 0x4db   :  { %8400 = vmatprep.subr.bf16.mxu1 %v15029_v59 }
 0x4dd   :  { %7592 = vmatmul.mubr.f32.gmra.mrb[70].mxu1 %v12691_v21 }
 0x4de   :  { %7594 = vmatprep.mubr.msk.f32.mxu1 %vm9348_vm12, %v15027_v27  ;;  %8402 = vmatpush3.bf16.msra.mxu1 %v8401_v4 }
 0x4e1   :  { %7595 = vmatmul.mubr.f32.gmra.mrb[72].mxu1 %v1579_v15 }
 0x4e2   :  { %7629 = vmatprep.mubr.msk.f32.mxu1 %vm9348_vm12, %v15027_v27 }
 0x4e5   :  { %7630 = vmatmul.mubr.f32.vlgmr.msra.gmra.mrb[56].mxu1 %v12000_v14  ;;  %v1516_v14 = vmax.f32 %v11533_v5, 0.0  ;;  %v6035_v5 = vld [vmem:[%s14680_s7 + $0xb0] sm:$0xff] }
 0x4e6   :  { %7632 = vmatprep.mubr.msk.f32.mxu1 %vm9348_vm12, %v15027_v27  ;;  %v8413_v21 = vpack.c.bf16 %v6036_v17, %v6035_v5  ;;  %v15123_v5 = vld [vmem:[#allocation37_spill] sm:$0xff] }
 0x4e9   :  { %7633 = vmatmul.mubr.f32.gmra.mrb[58].mxu1 %v12013_v61  ;;  %v15122_v61 = vld [vmem:[#allocation92_spill] sm:$0xff] }
 0x4ea   :  { %7635 = vmatprep.mubr.msk.f32.mxu1 %vm9348_vm12, %v15027_v27 }
 0x4ed   :  { %7636 = vmatmul.mubr.f32.gmra.mrb[60].mxu1 %v12205_v16  ;;  %v6034_v16 = vld [vmem:[%s14680_s7 + $0xa8] sm:$0xff] }
 0x4ee   :  { %7638 = vmatprep.mubr.msk.f32.mxu1 %vm9348_vm12, %v15027_v27 }
 0x4f1   :  { %7639 = vmatmul.mubr.f32.gmra.mrb[62].mxu1 %v12042_v23  ;;  %v1580_v23 = vmul.f32 %v15122_v61, %v1516_v14 }
 0x4f2   :  { %7641 = vmatprep.mubr.msk.f32.mxu1 %vm9348_vm12, %v15027_v27 }
 0x4f5   :  { %7642 = vmatmul.mubr.f32.gmra.mrb[64].mxu1 %v12049_v34  ;;  %v6033_v34 = vld [vmem:[%s14680_s7 + $0xa0] sm:$0xff] }
 0x4f6   :  { %7644 = vmatprep.mubr.msk.f32.mxu1 %vm9348_vm12, %v15027_v27 }
 0x4f9   :  { %7645 = vmatmul.mubr.f32.gmra.mrb[66].mxu1 %v12233_v51  ;;  %v8410_v51 = vpack.c.bf16 %v6034_v16, %v6033_v34 }
 0x4fa   :  { %7647 = vmatprep.mubr.msk.f32.mxu1 %vm9348_vm12, %v15027_v27 }
 0x4fb   :  { %8411 = vmatpush3.bf16.msra.mxu0 %v8410_v51 }
 0x4fc   :  { %8412 = vmatprep.subr.bf16.mxu0 %v15029_v59 }
 0x4fd   :  { %7648 = vmatmul.mubr.f32.gmra.mrb[68].mxu1 %v12775_v44 }
 0x4fe   :  { %7650 = vmatprep.mubr.msk.f32.mxu1 %vm9348_vm12, %v15027_v27 }
 0x4ff   :  { %8414 = vmatpush3.bf16.msra.mxu0 %v8413_v21  ;;  %v15124_v21 = vld [vmem:[#allocation38_spill] sm:$0xff] }
 0x500   :  { %8415 = vmatprep.subr.bf16.mxu0 %v15029_v59 }
 0x501   :  { %7651 = vmatmul.mubr.f32.gmra.mrb[70].mxu1 %v12783_v39 }
 0x502   :  { %7653 = vmatprep.mubr.msk.f32.mxu1 %vm9348_vm12, %v15027_v27 }
 0x503   :  { %8417 = vmatpush3.bf16.msra.mxu0 %v8416_v36 }
 0x504   :  { %8418 = vmatprep.subr.bf16.mxu0 %v15029_v59 }
 0x505   :  { %7654 = vmatmul.mubr.f32.gmra.mrb[72].mxu1 %v1580_v23 }
 0x506   :  { %4988 = vmatprep.mubr.f32.mxu1 %v15027_v27 }
 0x507   :  { %8420 = vmatpush3.bf16.msra.mxu0 %v8419_v26 }
 0x508   :  { %8421 = vmatprep.subr.bf16.mxu0 %v15029_v59 }
 0x50b   :  { %8423 = vmatpush3.bf16.msra.mxu0 %v8422_v22 }
 0x50c   :  { %8424 = vmatprep.subr.bf16.mxu0 %v15029_v59 }
 0x50f   :  { %8426 = vmatpush3.bf16.msra.mxu0 %v8425_v9 }
 0x510   :  { %8427 = vmatprep.subr.bf16.mxu0 %v15029_v59 }
 0x5b8   :  { %v3685_v41 = vpop.f32.mrb[56].mxu1 }
 0x5b9   :  { %v7631_v50 = vpop.f32.mrb[57].mxu1 }
 0x5bc   :  { %v3690_v38 = vpop.f32.mrb[58].mxu1 }
 0x5bd   :  { %v3740_v3 = vadd.f32 %v3690_v38, %v3685_v41  ;;  %v7634_v44 = vpop.f32.mrb[59].mxu1 }
 0x5c0   :  { %v3695_v7 = vpop.f32.mrb[60].mxu1 }
 0x5c1   :  { %v3741_v40 = vadd.f32 %v3740_v3, %v3695_v7  ;;  %v7637_v39 = vpop.f32.mrb[61].mxu1 }
 0x5c4   :  { %v3700_v19 = vpop.f32.mrb[62].mxu1 }
 0x5c5   :  { %v3742_v58 = vadd.f32 %v3741_v40, %v3700_v19  ;;  %v7640_v35 = vpop.f32.mrb[63].mxu1 }
 0x5c8   :  { %v3705_v2 = vpop.f32.mrb[64].mxu1 }
 0x5c9   :  { %v3743_v30 = vadd.f32 %v3742_v58, %v3705_v2  ;;  %v7643_v29 = vpop.f32.mrb[65].mxu1 }
 0x5cc   :  { %v3710_v24 = vpop.f32.mrb[66].mxu1 }
 0x5cd   :  { %v3744_v56 = vadd.f32 %v3743_v30, %v3710_v24  ;;  %v7646_v55 = vpop.f32.mrb[67].mxu1 }
 0x5d0   :  { %v3715_v60 = vpop.f32.mrb[68].mxu1 }
 0x5d1   :  { %v3745_v53 = vadd.f32 %v3744_v56, %v3715_v60  ;;  %v7649_v0 = vpop.f32.mrb[69].mxu1 }
 0x5d4   :  { %v3720_v31 = vpop.f32.mrb[70].mxu1 }
 0x5d5   :  { %v3746_v28 = vadd.f32 %v3745_v53, %v3720_v31  ;;  %v7652_v25 = vpop.f32.mrb[71].mxu1 }
 0x5d8   :  { %v3725_v8 = vpop.f32.mrb[72].mxu1 }
 0x5d9   :  { %v3747_v54 = vadd.f32 %v3746_v28, %v3725_v8  ;;  %v7655_v32 = vpop.f32.mrb[73].mxu1 }
 0x5db   :  { %v3748_v37 = vrot.slane %v3747_v54, 4 }
 0x5dd   :  { %v3749_v62 = vadd.f32 %v3748_v37, %v3747_v54  ;;  %v6027_v54 = vld [vmem:[%s14681_s5] ss:$0 sm:$0xff] }
 0x5df   :  { %v3750_v47 = vrot.slane %v3749_v62, 2 }
 0x5e1   :  { %v3751_v6 = vadd.f32 %v3750_v47, %v3749_v62 }
 0x5e3   :  { %v3752_v43 = vrot.slane %v3751_v6, 1 }
 0x5e5   :  { %v3753_v4 = vadd.f32 %v3752_v43, %v3751_v6  ;;  %v6028_v6 = vld [vmem:[%s14682_s6] ss:$0 sm:$0xff] }
 0x5e7   :  { %v3754_v46 = vmul.f32 0.055555556, %v3753_v4 }
 0x5e9   :  { %v3755_v48 = vsub.f32 %v3685_v41, %v3754_v46  ;;  %v3756_v42 = vsub.f32 %v3690_v38, %v3754_v46  ;;  %v3757_v15 = vsub.f32 %v3695_v7, %v3754_v46  ;;  %v3758_v14 = vsub.f32 %v3700_v19, %v3754_v46 }
 0x5ea   :  { %v3759_v61 = vsub.f32 %v3705_v2, %v3754_v46  ;;  %v3760_v23 = vsub.f32 %v3710_v24, %v3754_v46  ;;  %v3761_v34 = vsub.f32 %v3715_v60, %v3754_v46  ;;  %v12941_v16 = vsub.f32 %v3720_v31, %v3754_v46 }
 0x5eb   :  { %v3763_v51 = vsub.f32 %v3725_v8, %v3754_v46  ;;  %v3764_v17 = vmul.f32 %v15123_v5, %v3755_v48  ;;  %v3765_v49 = vmul.f32 %v15124_v21, %v3756_v42  ;;  %v3766_v33 = vmul.f32 %v15055_v10, %v3757_v15 }
 0x5ec   :  { %v3767_v36 = vmul.f32 %v15125_v45, %v3758_v14  ;;  %v3768_v52 = vmul.f32 %v15056_v20, %v3759_v61  ;;  %v3769_v18 = vmul.f32 %v15126_v13, %v3760_v23  ;;  %v3770_v50 = vmul.f32 %v15063_v63, %v3761_v34 }
 0x5ed   :  { %v3773_v12 = vmul.f32 %v3764_v17, %v3764_v17  ;;  %v3774_v26 = vmul.f32 %v3765_v49, %v3765_v49  ;;  %v3775_v1 = vmul.f32 %v3766_v33, %v3766_v33  ;;  %v3771_v44 = vmul.f32 %v15066_v11, %v12941_v16 }
 0x5ee   :  { %v3776_v9 = vmul.f32 %v3767_v36, %v3767_v36  ;;  %v3777_v38 = vmul.f32 %v3768_v52, %v3768_v52  ;;  %v3778_v7 = vmul.f32 %v3769_v18, %v3769_v18  ;;  %v3772_v39 = vmul.f32 %v15069_v57, %v3763_v51 }
 0x5ef   :  { %v3782_v22 = vadd.f32 %v3774_v26, %v3773_v12  ;;  %v3779_v19 = vmul.f32 %v3770_v50, %v3770_v50  ;;  %v3780_v35 = vmul.f32 %v3771_v44, %v3771_v44  ;;  %v3859_v50 = vld [vmem:[%s14680_s7 + $0x18] sm:$0xff] }
 0x5f0   :  { %v3781_v30 = vmul.f32 %v3772_v39, %v3772_v39 }
 0x5f1   :  { %v3783_v41 = vadd.f32 %v3782_v22, %v3775_v1 }
 0x5f3   :  { %v3784_v3 = vadd.f32 %v3783_v41, %v3776_v9  ;;  %v3858_v41 = vld [vmem:[%s14680_s7 + $0x10] sm:$0xff] }
 0x5f5   :  { %v3785_v40 = vadd.f32 %v3784_v3, %v3777_v38 }
 0x5f7   :  { %v3786_v58 = vadd.f32 %v3785_v40, %v3778_v7  ;;  %v8431_v7 = vpack.c.bf16 %v3859_v50, %v3858_v41  ;;  %v3861_v40 = vld [vmem:[%s14680_s7 + $0x28] sm:$0xff]  ;;  %v6059_v50 = vld [vmem:[%s14680_s7 + $0x170] sm:$0xff] }
 0x5f9   :  { %v3787_v2 = vadd.f32 %v3786_v58, %v3779_v19  ;;  %v3862_v19 = vld [vmem:[%s14680_s7 + $0x30] sm:$0xff]  ;;  %v3863_v58 = vld [vmem:[%s14680_s7 + $0x38] sm:$0xff] }
 0x5fb   :  { %v3788_v29 = vadd.f32 %v3787_v2, %v3780_v35  ;;  %v8437_v35 = vpack.c.bf16 %v3863_v58, %v3862_v19  ;;  %v3864_v2 = vld [vmem:[%s14680_s7 + $0x40] sm:$0xff]  ;;  %v6063_v58 = vld [vmem:[%s14680_s7 + $0x190] sm:$0xff] }
 0x5fd   :  { %v3789_v24 = vadd.f32 %v3788_v29, %v3781_v30  ;;  %v3865_v30 = vld [vmem:[%s14680_s7 + $0x48] sm:$0xff] }
 0x5fe   :  { %v8440_v29 = vpack.c.bf16 %v3865_v30, %v3864_v2  ;;  %v6066_v2 = vld [vmem:[%s14680_s7 + $0x1a8] sm:$0xff] }
 0x5ff   :  { %v3790_v56 = vrot.slane %v3789_v24, 4 }
 0x601   :  { %v3791_v55 = vadd.f32 %v3790_v56, %v3789_v24  ;;  %v3866_v24 = vld [vmem:[%s14680_s7 + $0x50] sm:$0xff]  ;;  %v3867_v56 = vld [vmem:[%s14680_s7 + $0x58] sm:$0xff] }
 0x603   :  { %v3792_v60 = vrot.slane %v3791_v55, 2 }
 0x605   :  { %v3793_v53 = vadd.f32 %v3792_v60, %v3791_v55  ;;  %v8443_v55 = vpack.c.bf16 %v3867_v56, %v3866_v24  ;;  %v3868_v60 = vld [vmem:[%s14680_s7 + $0x60] sm:$0xff]  ;;  %v6068_v24 = vld [vmem:[%s14680_s7 + $0x1b8] sm:$0xff] }
 0x607   :  { %v3794_v0 = vrot.slane %v3793_v53, 1 }
 0x609   :  { %v3795_v31 = vadd.f32 %v3794_v0, %v3793_v53  ;;  %v3869_v53 = vld [vmem:[%s14680_s7 + $0x68] sm:$0xff] }
 0x60b   :  { %v3796_v28 = vmul.f32 0.055555556, %v3795_v31  ;;  %v8446_v31 = vpack.c.bf16 %v3869_v53, %v3868_v60  ;;  %v6070_v60 = vld [vmem:[%s14680_s7 + $0x1c8] sm:$0xff] }
 0x60d   :  { %v3797_v25 = vadd.f32 1e-05, %v3796_v28  ;;  %v3870_v28 = vld [vmem:[%s14680_s7 + $0x70] sm:$0xff] }
 0x60f   :  { %9334 = vrsqrt.f32 %v3797_v25  ;;  %v3871_v25 = vld [vmem:[%s14680_s7 + $0x78] sm:$0xff] }
 0x619   :  { %v9335_v8 = vpop.eup %9334 }
 0x61a   :  { %v3807_v32 = vmul.f32 %v9335_v8, %v3763_v51  ;;  %v3800_v37 = vmul.f32 %v9335_v8, %v3756_v42  ;;  %v3799_v62 = vmul.f32 %v9335_v8, %v3755_v48  ;;  %v3801_v47 = vmul.f32 %v9335_v8, %v3757_v15  ;;  %v3856_v48 = vld [vmem:[%s14680_s7] sm:$0xff]  ;;  %v3857_v42 = vld [vmem:[%s14680_s7 + $0x8] sm:$0xff] }
 0x61b   :  { %v3802_v43 = vmul.f32 %v9335_v8, %v3758_v14  ;;  %v3803_v4 = vmul.f32 %v9335_v8, %v3759_v61  ;;  %v3804_v46 = vmul.f32 %v9335_v8, %v3760_v23  ;;  %v3805_v52 = vmul.f32 %v9335_v8, %v3761_v34 }
 0x61c   :  { %v3822_v17 = vmul.f32 %v6027_v54, %v3807_v32  ;;  %v3815_v49 = vmul.f32 %v6027_v54, %v3800_v37  ;;  %v3816_v33 = vmul.f32 %v6027_v54, %v3801_v47  ;;  %v8428_v22 = vpack.c.bf16 %v3857_v42, %v3856_v48  ;;  %v6055_v42 = vld [vmem:[%s14680_s7 + $0x150] sm:$0xff] }
 0x61d   :  { %v3817_v36 = vmul.f32 %v6027_v54, %v3802_v43  ;;  %v3818_v12 = vmul.f32 %v6027_v54, %v3803_v4  ;;  %v3819_v26 = vmul.f32 %v6027_v54, %v3804_v46  ;;  %v3820_v18 = vmul.f32 %v6027_v54, %v3805_v52  ;;  %v6048_v4 = vld [vmem:[%s14680_s7 + $0x118] sm:$0xff]  ;;  %v6053_v52 = vld [vmem:[%s14680_s7 + $0x140] sm:$0xff] }
 0x61e   :  { %v12959_v1 = vadd.f32 %v6028_v6, %v3822_v17  ;;  %v3830_v51 = vadd.f32 %v6028_v6, %v3815_v49  ;;  %v12967_v15 = vadd.f32 %v6028_v6, %v3816_v33  ;;  %v3806_v38 = vmul.f32 %v9335_v8, %v12941_v16  ;;  %v6049_v17 = vld [vmem:[%s14680_s7 + $0x120] sm:$0xff]  ;;  %v6050_v49 = vld [vmem:[%s14680_s7 + $0x128] sm:$0xff] }
 0x61f   :  { %v12969_v14 = vadd.f32 %v6028_v6, %v3817_v36  ;;  %v12971_v61 = vadd.f32 %v6028_v6, %v3818_v12  ;;  %v12973_v23 = vadd.f32 %v6028_v6, %v3819_v26  ;;  %v12983_v3 = vadd.f32 %v6028_v6, %v3820_v18  ;;  %v6051_v36 = vld [vmem:[%s14680_s7 + $0x130] sm:$0xff]  ;;  %v6052_v12 = vld [vmem:[%s14680_s7 + $0x138] sm:$0xff]  ;;  %v6057_v18 = vld [vmem:[%s14680_s7 + $0x160] sm:$0xff] }
 0x620   :  { %v3839_v34 = vmax.f32 %v3830_v51, 0.0  ;;  %v3821_v44 = vmul.f32 %v6027_v54, %v3806_v38  ;;  %v3814_v0 = vmul.f32 %v6027_v54, %v3799_v62  ;;  %v8449_v32 = vpack.c.bf16 %v3871_v25, %v3870_v28  ;;  %v6045_v54 = vld [vmem:[%s14680_s7 + $0x100] sm:$0xff]  ;;  %v6046_v62 = vld [vmem:[%s14680_s7 + $0x108] sm:$0xff]  ;;  %v6060_v38 = vld [vmem:[%s14680_s7 + $0x178] sm:$0xff] }
 0x621   :  { %v8452_v47 = vpack.c.bf16 %v6046_v62, %v6045_v54  ;;  %v8458_v33 = vpack.c.bf16 %v6050_v49, %v6049_v17  ;;  %v8461_v26 = vpack.c.bf16 %v6052_v12, %v6051_v36  ;;  %v6054_v51 = vld [vmem:[%s14680_s7 + $0x148] sm:$0xff]  ;;  %v6073_v25 = vld [vmem:[%s14680_s7 + $0x1e0] sm:$0xff]  ;;  %v6076_v54 = vld [vmem:[%s14680_s7 + $0x1f8] sm:$0xff] }
 0x622   :  { %v3848_v9 = vmul.f32 %v15124_v21, %v3839_v34  ;;  %v3860_v21 = vld [vmem:[%s14680_s7 + $0x20] sm:$0xff]  ;;  %v12994_v16 = vadd.f32 %v6028_v6, %v3821_v44  ;;  %v3829_v8 = vadd.f32 %v6028_v6, %v3814_v0  ;;  %v6047_v6 = vld [vmem:[%s14680_s7 + $0x110] sm:$0xff]  ;;  %v8464_v48 = vpack.c.bf16 %v6054_v51, %v6053_v52  ;;  %v6056_v34 = vld [vmem:[%s14680_s7 + $0x158] sm:$0xff] }
 0x623   :  { %v8434_v39 = vpack.c.bf16 %v3861_v40, %v3860_v21  ;;  %v8455_v46 = vpack.c.bf16 %v6048_v4, %v6047_v6  ;;  %v8473_v44 = vpack.c.bf16 %v6060_v38, %v6059_v50  ;;  %v6061_v21 = vld [vmem:[%s14680_s7 + $0x180] sm:$0xff]  ;;  %v6062_v40 = vld [vmem:[%s14680_s7 + $0x188] sm:$0xff]  ;;  %v6071_v0 = vld [vmem:[%s14680_s7 + $0x1d0] sm:$0xff] }
 0x624   :  { %7689 = vmatmul.mubr.f32.vlgmr.msra.gmra.mrb[72].mxu0 %v3848_v9  ;;  %v3838_v37 = vmax.f32 %v3829_v8, 0.0  ;;  %v6058_v9 = vld [vmem:[%s14680_s7 + $0x168] sm:$0xff]  ;;  %v6079_v17 = vld [vmem:[%s14680_s7 + $0x210] sm:$0xff]  ;;  %v6085_v51 = vld [vmem:[%s14680_s7 + $0x240] sm:$0xff] }
 0x625   :  { %8429 = vmatpush3.bf16.msra.mxu0 %v8428_v22  ;;  %7723 = vmatprep.mubr.msk.f32.mxu0 %vm9348_vm12, %v15027_v27  ;;  %v8467_v22 = vpack.c.bf16 %v6056_v34, %v6055_v42  ;;  %v8470_v41 = vpack.c.bf16 %v6058_v9, %v6057_v18  ;;  %v6074_v8 = vld [vmem:[%s14680_s7 + $0x1e8] sm:$0xff]  ;;  %v6083_v12 = vld [vmem:[%s14680_s7 + $0x230] sm:$0xff]  ;;  %v6089_v9 = vld [vmem:[%s14680_s7 + $0x260] sm:$0xff] }
 0x626   :  { %8430 = vmatprep.subr.bf16.mxu0 %v15029_v59  ;;  %v3847_v43 = vmul.f32 %v15123_v5, %v3838_v37  ;;  %v6075_v37 = vld [vmem:[%s14680_s7 + $0x1f0] sm:$0xff]  ;;  %v6078_v6 = vld [vmem:[%s14680_s7 + $0x208] sm:$0xff] }
 0x627   :  { %v8497_v62 = vpack.c.bf16 %v6076_v54, %v6075_v37  ;;  %v6087_v34 = vld [vmem:[%s14680_s7 + $0x250] sm:$0xff]  ;;  %v6108_v37 = vld [vmem:[%s14680_s7 + $0x2f8] sm:$0xff] }
 0x628   :  { %v6091_v38 = vld [vmem:[%s14680_s7 + $0x270] sm:$0xff] }
 0x629   :  { %8432 = vmatpush3.bf16.msra.mxu0 %v8431_v7  ;;  %v3840_v7 = vmax.f32 %v12967_v15, 0.0  ;;  %v6064_v15 = vld [vmem:[%s14680_s7 + $0x198] sm:$0xff] }
 0x62a   :  { %8433 = vmatprep.subr.bf16.mxu0 %v15029_v59 }
 0x62b   :  { %v3849_v19 = vmul.f32 %v15055_v10, %v3840_v7  ;;  %v6065_v10 = vld [vmem:[%s14680_s7 + $0x1a0] sm:$0xff] }
 0x62c   :  { %v8482_v30 = vpack.c.bf16 %v6066_v2, %v6065_v10  ;;  %v6098_v10 = vld [vmem:[%s14680_s7 + $0x2a8] sm:$0xff] }
 0x62d   :  { %8435 = vmatpush3.bf16.msra.mxu0 %v8434_v39  ;;  %v8476_v39 = vpack.c.bf16 %v6062_v40, %v6061_v21  ;;  %v3842_v21 = vmax.f32 %v12971_v61, 0.0  ;;  %v6093_v40 = vld [vmem:[%s14680_s7 + $0x280] sm:$0xff]  ;;  %v6096_v61 = vld [vmem:[%s14680_s7 + $0x298] sm:$0xff] }
 0x62e   :  { %8436 = vmatprep.subr.bf16.mxu0 %v15029_v59 }
 0x631   :  { %8438 = vmatpush3.bf16.msra.mxu0 %v8437_v35  ;;  %v8479_v35 = vpack.c.bf16 %v6064_v15, %v6063_v58  ;;  %v3851_v58 = vmul.f32 %v15056_v20, %v3842_v21  ;;  %v6095_v15 = vld [vmem:[%s14680_s7 + $0x290] sm:$0xff]  ;;  %v6097_v20 = vld [vmem:[%s14680_s7 + $0x2a0] sm:$0xff] }
 0x632   :  { %8439 = vmatprep.subr.bf16.mxu0 %v15029_v59  ;;  %v8530_v2 = vpack.c.bf16 %v6098_v10, %v6097_v20  ;;  %v6133_v10 = vld [vmem:[%s14680_s7 + $0x3c0] sm:$0xff] }
 0x635   :  { %8441 = vmatpush3.bf16.msra.mxu0 %v8440_v29  ;;  %v6067_v29 = vld [vmem:[%s14680_s7 + $0x1b0] sm:$0xff] }
 0x636   :  { %8442 = vmatprep.subr.bf16.mxu0 %v15029_v59  ;;  %v8485_v56 = vpack.c.bf16 %v6068_v24, %v6067_v29  ;;  %v6100_v29 = vld [vmem:[%s14680_s7 + $0x2b8] sm:$0xff] }
 0x639   :  { %8444 = vmatpush3.bf16.msra.mxu0 %v8443_v55  ;;  %v6069_v55 = vld [vmem:[%s14680_s7 + $0x1c0] sm:$0xff] }
 0x63a   :  { %8445 = vmatprep.subr.bf16.mxu0 %v15029_v59  ;;  %v8488_v53 = vpack.c.bf16 %v6070_v60, %v6069_v55  ;;  %v6102_v55 = vld [vmem:[%s14680_s7 + $0x2c8] sm:$0xff] }
 0x63d   :  { %8447 = vmatpush3.bf16.msra.mxu0 %v8446_v31  ;;  %v6072_v31 = vld [vmem:[%s14680_s7 + $0x1d8] sm:$0xff] }
 0x63e   :  { %8448 = vmatprep.subr.bf16.mxu0 %v15029_v59  ;;  %v8491_v28 = vpack.c.bf16 %v6072_v31, %v6071_v0  ;;  %v6104_v0 = vld [vmem:[%s14680_s7 + $0x2d8] sm:$0xff] }
 0x641   :  { %8450 = vmatpush3.bf16.msra.mxu0 %v8449_v32  ;;  %v8494_v32 = vpack.c.bf16 %v6074_v8, %v6073_v25  ;;  %v6106_v25 = vld [vmem:[%s14680_s7 + $0x2e8] sm:$0xff] }
 0x642   :  { %8451 = vmatprep.subr.bf16.mxu0 %v15029_v59 }
 0x644   :  { %7724 = vmatmul.mubr.f32.vlgmr.msra.gmra.mrb[72].mxu0 %v3847_v43  ;;  %v6077_v43 = vld [vmem:[%s14680_s7 + $0x200] sm:$0xff] }
 0x645   :  { %8453 = vmatpush3.bf16.msra.mxu0 %v8452_v47  ;;  %7758 = vmatprep.mubr.msk.f32.mxu0 %vm9348_vm12, %v15027_v27  ;;  %v3841_v47 = vmax.f32 %v12969_v14, 0.0  ;;  %v8500_v4 = vpack.c.bf16 %v6078_v6, %v6077_v43  ;;  %v6080_v14 = vld [vmem:[%s14680_s7 + $0x218] sm:$0xff]  ;;  %v6110_v43 = vld [vmem:[%s14680_s7 + $0x308] sm:$0xff] }
 0x646   :  { %8454 = vmatprep.subr.bf16.mxu0 %v15029_v59  ;;  %v8503_v49 = vpack.c.bf16 %v6080_v14, %v6079_v17  ;;  %v6114_v14 = vld [vmem:[%s14680_s7 + $0x328] sm:$0xff] }
 0x649   :  { %8456 = vmatpush3.bf16.msra.mxu0 %v8455_v46  ;;  %v3850_v46 = vmul.f32 %v15125_v45, %v3841_v47  ;;  %v6081_v45 = vld [vmem:[%s14680_s7 + $0x220] sm:$0xff] }
 0x64a   :  { %8457 = vmatprep.subr.bf16.mxu0 %v15029_v59  ;;  %v6109_v47 = vld [vmem:[%s14680_s7 + $0x300] sm:$0xff] }
 0x64b   :  { %v8548_v6 = vpack.c.bf16 %v6110_v43, %v6109_v47  ;;  %v6146_v43 = vld [vmem:[%s14680_s7 + $0x428] sm:$0xff] }
 0x64d   :  { %8459 = vmatpush3.bf16.msra.mxu0 %v8458_v33  ;;  %v6082_v33 = vld [vmem:[%s14680_s7 + $0x228] sm:$0xff] }
 0x64e   :  { %8460 = vmatprep.subr.bf16.mxu0 %v15029_v59  ;;  %v8506_v36 = vpack.c.bf16 %v6082_v33, %v6081_v45  ;;  %v6115_v45 = vld [vmem:[%s14680_s7 + $0x330] sm:$0xff]  ;;  %v6116_v33 = vld [vmem:[%s14680_s7 + $0x338] sm:$0xff] }
 0x651   :  { %8462 = vmatpush3.bf16.msra.mxu0 %v8461_v26  ;;  %v6084_v26 = vld [vmem:[%s14680_s7 + $0x238] sm:$0xff] }
 0x652   :  { %8463 = vmatprep.subr.bf16.mxu0 %v15029_v59  ;;  %v8509_v52 = vpack.c.bf16 %v6084_v26, %v6083_v12  ;;  %v6117_v12 = vld [vmem:[%s14680_s7 + $0x340] sm:$0xff]  ;;  %v6118_v26 = vld [vmem:[%s14680_s7 + $0x348] sm:$0xff] }
 0x655   :  { %8465 = vmatpush3.bf16.msra.mxu0 %v8464_v48  ;;  %v6086_v48 = vld [vmem:[%s14680_s7 + $0x248] sm:$0xff] }
 0x656   :  { %8466 = vmatprep.subr.bf16.mxu0 %v15029_v59  ;;  %v8512_v42 = vpack.c.bf16 %v6086_v48, %v6085_v51  ;;  %v6119_v51 = vld [vmem:[%s14680_s7 + $0x350] sm:$0xff]  ;;  %v6120_v48 = vld [vmem:[%s14680_s7 + $0x358] sm:$0xff] }
 0x659   :  { %8468 = vmatpush3.bf16.msra.mxu0 %v8467_v22  ;;  %v6088_v22 = vld [vmem:[%s14680_s7 + $0x258] sm:$0xff] }
 0x65a   :  { %8469 = vmatprep.subr.bf16.mxu0 %v15029_v59  ;;  %v8515_v18 = vpack.c.bf16 %v6088_v22, %v6087_v34  ;;  %v6121_v34 = vld [vmem:[%s14680_s7 + $0x360] sm:$0xff]  ;;  %v6122_v22 = vld [vmem:[%s14680_s7 + $0x368] sm:$0xff] }
 0x65d   :  { %8471 = vmatpush3.bf16.msra.mxu0 %v8470_v41  ;;  %v6090_v41 = vld [vmem:[%s14680_s7 + $0x268] sm:$0xff] }
 0x65e   :  { %8472 = vmatprep.subr.bf16.mxu0 %v15029_v59  ;;  %v8518_v50 = vpack.c.bf16 %v6090_v41, %v6089_v9  ;;  %v6123_v9 = vld [vmem:[%s14680_s7 + $0x370] sm:$0xff]  ;;  %v6124_v41 = vld [vmem:[%s14680_s7 + $0x378] sm:$0xff] }
 0x661   :  { %8474 = vmatpush3.bf16.msra.mxu0 %v8473_v44  ;;  %v6092_v44 = vld [vmem:[%s14680_s7 + $0x278] sm:$0xff] }
 0x662   :  { %8475 = vmatprep.subr.bf16.mxu0 %v15029_v59  ;;  %v8521_v7 = vpack.c.bf16 %v6092_v44, %v6091_v38  ;;  %v3844_v38 = vmax.f32 %v12983_v3, 0.0  ;;  %v6125_v44 = vld [vmem:[%s14680_s7 + $0x380] sm:$0xff]  ;;  %v6128_v3 = vld [vmem:[%s14680_s7 + $0x398] sm:$0xff] }
 0x664   :  { %7759 = vmatmul.mubr.f32.vlgmr.msra.gmra.mrb[72].mxu0 %v3849_v19 }
 0x665   :  { %8477 = vmatpush3.bf16.msra.mxu0 %v8476_v39  ;;  %7793 = vmatprep.mubr.msk.f32.mxu0 %vm9348_vm12, %v15027_v27  ;;  %v6094_v39 = vld [vmem:[%s14680_s7 + $0x288] sm:$0xff] }
 0x666   :  { %8478 = vmatprep.subr.bf16.mxu0 %v15029_v59  ;;  %v8524_v19 = vpack.c.bf16 %v6094_v39, %v6093_v40  ;;  %v3853_v40 = vmul.f32 %v15063_v63, %v3844_v38  ;;  %v6127_v39 = vld [vmem:[%s14680_s7 + $0x390] sm:$0xff]  ;;  %v6129_v63 = vld [vmem:[%s14680_s7 + $0x3a0] sm:$0xff] }
 0x669   :  { %8480 = vmatpush3.bf16.msra.mxu0 %v8479_v35  ;;  %v8527_v35 = vpack.c.bf16 %v6096_v61, %v6095_v15  ;;  %v6131_v61 = vld [vmem:[%s14680_s7 + $0x3b0] sm:$0xff] }
 0x66a   :  { %8481 = vmatprep.subr.bf16.mxu0 %v15029_v59 }
 0x66d   :  { %8483 = vmatpush3.bf16.msra.mxu0 %v8482_v30  ;;  %v6099_v30 = vld [vmem:[%s14680_s7 + $0x2b0] sm:$0xff] }
 0x66e   :  { %8484 = vmatprep.subr.bf16.mxu0 %v15029_v59  ;;  %v8533_v24 = vpack.c.bf16 %v6100_v29, %v6099_v30  ;;  %v6135_v29 = vld [vmem:[%s14680_s7 + $0x3d0] sm:$0xff] }
 0x671   :  { %8486 = vmatpush3.bf16.msra.mxu0 %v8485_v56  ;;  %v6101_v56 = vld [vmem:[%s14680_s7 + $0x2c0] sm:$0xff] }
 0x672   :  { %8487 = vmatprep.subr.bf16.mxu0 %v15029_v59  ;;  %v8536_v60 = vpack.c.bf16 %v6102_v55, %v6101_v56  ;;  %v6137_v55 = vld [vmem:[%s14680_s7 + $0x3e0] sm:$0xff] }
 0x675   :  { %8489 = vmatpush3.bf16.msra.mxu0 %v8488_v53  ;;  %v6103_v53 = vld [vmem:[%s14680_s7 + $0x2d0] sm:$0xff] }
 0x676   :  { %8490 = vmatprep.subr.bf16.mxu0 %v15029_v59  ;;  %v8539_v31 = vpack.c.bf16 %v6104_v0, %v6103_v53  ;;  %v6139_v0 = vld [vmem:[%s14680_s7 + $0x3f0] sm:$0xff] }
 0x679   :  { %8492 = vmatpush3.bf16.msra.mxu0 %v8491_v28  ;;  %v6105_v28 = vld [vmem:[%s14680_s7 + $0x2e0] sm:$0xff] }
 0x67a   :  { %8493 = vmatprep.subr.bf16.mxu0 %v15029_v59  ;;  %v8542_v8 = vpack.c.bf16 %v6106_v25, %v6105_v28  ;;  %v3845_v25 = vmax.f32 %v12994_v16, 0.0  ;;  %v6144_v16 = vld [vmem:[%s14680_s7 + $0x418] sm:$0xff] }
 0x67d   :  { %8495 = vmatpush3.bf16.msra.mxu0 %v8494_v32  ;;  %v6107_v32 = vld [vmem:[%s14680_s7 + $0x2f0] sm:$0xff] }
 0x67e   :  { %8496 = vmatprep.subr.bf16.mxu0 %v15029_v59  ;;  %v8545_v54 = vpack.c.bf16 %v6108_v37, %v6107_v32  ;;  %v6142_v32 = vld [vmem:[%s14680_s7 + $0x408] sm:$0xff] }
 0x681   :  { %8498 = vmatpush3.bf16.msra.mxu0 %v8497_v62  ;;  %v3843_v62 = vmax.f32 %v12973_v23, 0.0  ;;  %v6112_v23 = vld [vmem:[%s14680_s7 + $0x318] sm:$0xff] }
 0x682   :  { %8499 = vmatprep.subr.bf16.mxu0 %v15029_v59 }
 0x684   :  { %7794 = vmatmul.mubr.f32.vlgmr.msra.gmra.mrb[72].mxu0 %v3850_v46  ;;  %v6111_v46 = vld [vmem:[%s14680_s7 + $0x310] sm:$0xff] }
 0x685   :  { %8501 = vmatpush3.bf16.msra.mxu0 %v8500_v4  ;;  %7828 = vmatprep.mubr.msk.f32.mxu0 %vm9348_vm12, %v15027_v27  ;;  %v3852_v4 = vmul.f32 %v15126_v13, %v3843_v62  ;;  %v8551_v17 = vpack.c.bf16 %v6112_v23, %v6111_v46  ;;  %v6113_v13 = vld [vmem:[%s14680_s7 + $0x320] sm:$0xff]  ;;  %v6143_v62 = vld [vmem:[%s14680_s7 + $0x410] sm:$0xff]  ;;  %v6148_v46 = vld [vmem:[%s14680_s7 + $0x438] sm:$0xff] }
 0x686   :  { %8502 = vmatprep.subr.bf16.mxu0 %v15029_v59  ;;  %v8599_v47 = vpack.c.bf16 %v6144_v16, %v6143_v62  ;;  %v4742_v16 = vld [vmem:[%s14683_s10 + $0x1d8] sm:$0xff] }
 0x689   :  { %8504 = vmatpush3.bf16.msra.mxu0 %v8503_v49  ;;  %v8554_v49 = vpack.c.bf16 %v6114_v14, %v6113_v13  ;;  %v6150_v13 = vld [vmem:[%s14680_s7 + $0x448] sm:$0xff] }
 0x68a   :  { %8505 = vmatprep.subr.bf16.mxu0 %v15029_v59 }
 0x68d   :  { %8507 = vmatpush3.bf16.msra.mxu0 %v8506_v36  ;;  %v8557_v36 = vpack.c.bf16 %v6116_v33, %v6115_v45  ;;  %v6152_v45 = vld [vmem:[%s14680_s7 + $0x458] sm:$0xff] }
 0x68e   :  { %8508 = vmatprep.subr.bf16.mxu0 %v15029_v59 }
 0x691   :  { %8510 = vmatpush3.bf16.msra.mxu0 %v8509_v52  ;;  %v8560_v52 = vpack.c.bf16 %v6118_v26, %v6117_v12  ;;  %v6154_v12 = vld [vmem:[%s14680_s7 + $0x468] sm:$0xff] }
 0x692   :  { %8511 = vmatprep.subr.bf16.mxu0 %v15029_v59 }
 0x695   :  { %8513 = vmatpush3.bf16.msra.mxu0 %v8512_v42  ;;  %v8563_v42 = vpack.c.bf16 %v6120_v48, %v6119_v51  ;;  %v6156_v51 = vld [vmem:[%s14680_s7 + $0x478] sm:$0xff] }
 0x696   :  { %8514 = vmatprep.subr.bf16.mxu0 %v15029_v59 }
 0x699   :  { %8516 = vmatpush3.bf16.msra.mxu0 %v8515_v18  ;;  %v8566_v18 = vpack.c.bf16 %v6122_v22, %v6121_v34  ;;  %v4684_v22 = vld [vmem:[%s14683_s10 + $0x8] sm:$0xff] }
 0x69a   :  { %8517 = vmatprep.subr.bf16.mxu0 %v15029_v59 }
 0x69d   :  { %8519 = vmatpush3.bf16.msra.mxu0 %v8518_v50  ;;  %v8569_v50 = vpack.c.bf16 %v6124_v41, %v6123_v9  ;;  %v4691_v41 = vld [vmem:[%s14683_s10 + $0x40] sm:$0xff] }
 0x69e   :  { %8520 = vmatprep.subr.bf16.mxu0 %v15029_v59 }
 0x6a1   :  { %8522 = vmatpush3.bf16.msra.mxu0 %v8521_v7  ;;  %v6126_v7 = vld [vmem:[%s14680_s7 + $0x388] sm:$0xff] }
 0x6a2   :  { %8523 = vmatprep.subr.bf16.mxu0 %v15029_v59  ;;  %v8572_v21 = vpack.c.bf16 %v6126_v7, %v6125_v44  ;;  %v4685_v44 = vld [vmem:[%s14683_s10 + $0x10] sm:$0xff] }
 0x6a3   :  { %v4693_v7 = vld [vmem:[%s14683_s10 + $0x50] sm:$0xff] }
 0x6a4   :  { %7829 = vmatmul.mubr.f32.vlgmr.msra.gmra.mrb[72].mxu0 %v3851_v58  ;;  %v6130_v58 = vld [vmem:[%s14680_s7 + $0x3a8] sm:$0xff] }
 0x6a5   :  { %8525 = vmatpush3.bf16.msra.mxu0 %v8524_v19  ;;  %7863 = vmatprep.mubr.msk.f32.mxu0 %vm9348_vm12, %v15027_v27  ;;  %v8575_v19 = vpack.c.bf16 %v6128_v3, %v6127_v39  ;;  %v8578_v15 = vpack.c.bf16 %v6130_v58, %v6129_v63  ;;  %v4708_v39 = vld [vmem:[%s14683_s10 + $0xc8] sm:$0xff]  ;;  %v4702_v3 = vld [vmem:[%s14683_s10 + $0x98] sm:$0xff] }
 0x6a6   :  { %8526 = vmatprep.subr.bf16.mxu0 %v15029_v59 }
 0x6a9   :  { %8528 = vmatpush3.bf16.msra.mxu0 %v8527_v35  ;;  %v6132_v35 = vld [vmem:[%s14680_s7 + $0x3b8] sm:$0xff] }
 0x6aa   :  { %8529 = vmatprep.subr.bf16.mxu0 %v15029_v59  ;;  %v8581_v20 = vpack.c.bf16 %v6132_v35, %v6131_v61  ;;  %v4707_v61 = vld [vmem:[%s14683_s10 + $0xc0] sm:$0xff]  ;;  %v4701_v35 = vld [vmem:[%s14683_s10 + $0x90] sm:$0xff] }
 0x6ad   :  { %8531 = vmatpush3.bf16.msra.mxu0 %v8530_v2  ;;  %v6134_v2 = vld [vmem:[%s14680_s7 + $0x3c8] sm:$0xff] }
 0x6ae   :  { %8532 = vmatprep.subr.bf16.mxu0 %v15029_v59  ;;  %v8584_v30 = vpack.c.bf16 %v6134_v2, %v6133_v10  ;;  %v4709_v10 = vld [vmem:[%s14683_s10 + $0xd0] sm:$0xff]  ;;  %v4716_v2 = vld [vmem:[%s14683_s10 + $0x108] sm:$0xff] }
 0x6b1   :  { %8534 = vmatpush3.bf16.msra.mxu0 %v8533_v24  ;;  %v6136_v24 = vld [vmem:[%s14680_s7 + $0x3d8] sm:$0xff] }
 0x6b2   :  { %8535 = vmatprep.subr.bf16.mxu0 %v15029_v59  ;;  %v8587_v56 = vpack.c.bf16 %v6136_v24, %v6135_v29  ;;  %v8657_v29 = vpack.c.bf16 %v4709_v10, %v4701_v35  ;;  %v4796_v35 = vld [vmem:[%s14683_s10 + $0x388] sm:$0xff]  ;;  %v4798_v10 = vld [vmem:[%s14683_s10 + $0x398] sm:$0xff] }
 0x6b5   :  { %8537 = vmatpush3.bf16.msra.mxu0 %v8536_v60  ;;  %v6138_v60 = vld [vmem:[%s14680_s7 + $0x3e8] sm:$0xff] }
 0x6b6   :  { %8538 = vmatprep.subr.bf16.mxu0 %v15029_v59  ;;  %v8590_v53 = vpack.c.bf16 %v6138_v60, %v6137_v55  ;;  %v4726_v55 = vld [vmem:[%s14683_s10 + $0x158] sm:$0xff]  ;;  %v4715_v60 = vld [vmem:[%s14683_s10 + $0x100] sm:$0xff] }
 0x6b9   :  { %8540 = vmatpush3.bf16.msra.mxu0 %v8539_v31  ;;  %v6140_v31 = vld [vmem:[%s14680_s7 + $0x3f8] sm:$0xff] }
 0x6ba   :  { %8541 = vmatprep.subr.bf16.mxu0 %v15029_v59  ;;  %v8593_v28 = vpack.c.bf16 %v6140_v31, %v6139_v0  ;;  %v4723_v0 = vld [vmem:[%s14683_s10 + $0x140] sm:$0xff]  ;;  %v4717_v31 = vld [vmem:[%s14683_s10 + $0x110] sm:$0xff] }
 0x6bd   :  { %8543 = vmatpush3.bf16.msra.mxu0 %v8542_v8  ;;  %v6141_v8 = vld [vmem:[%s14680_s7 + $0x400] sm:$0xff] }
 0x6be   :  { %8544 = vmatprep.subr.bf16.mxu0 %v15029_v59  ;;  %v8596_v37 = vpack.c.bf16 %v6142_v32, %v6141_v8  ;;  %v4732_v8 = vld [vmem:[%s14683_s10 + $0x188] sm:$0xff] }
 0x6bf   :  { %v4740_v32 = vld [vmem:[%s14683_s10 + $0x1c8] sm:$0xff] }
 0x6c0   :  { %v8631_v62 = vpack.c.bf16 %v4740_v32, %v4732_v8  ;;  %v4698_v8 = vld [vmem:[%s14683_s10 + $0x78] sm:$0xff] }
 0x6c1   :  { %8546 = vmatpush3.bf16.msra.mxu0 %v8545_v54  ;;  %v3854_v54 = vmul.f32 %v15066_v11, %v3845_v25  ;;  %v6145_v11 = vld [vmem:[%s14680_s7 + $0x420] sm:$0xff]  ;;  %v8629_v25 = vpack.c.bf16 %v4723_v0, %v4715_v60  ;;  %v4797_v60 = vld [vmem:[%s14683_s10 + $0x390] sm:$0xff] }
 0x6c2   :  { %8547 = vmatprep.subr.bf16.mxu0 %v15029_v59  ;;  %v4805_v0 = vld [vmem:[%s14683_s10 + $0x3d0] sm:$0xff] }
 0x6c4   :  { %7864 = vmatmul.mubr.f32.vlgmr.msra.gmra.mrb[72].mxu0 %v3852_v4  ;;  %v6147_v4 = vld [vmem:[%s14680_s7 + $0x430] sm:$0xff] }
 0x6c5   :  { %8549 = vmatpush3.bf16.msra.mxu0 %v8548_v6  ;;  %7898 = vmatprep.mubr.msk.f32.mxu0 %vm9348_vm12, %v15027_v27  ;;  %v8602_v6 = vpack.c.bf16 %v6146_v43, %v6145_v11  ;;  %v8605_v23 = vpack.c.bf16 %v6148_v46, %v6147_v4  ;;  %v4739_v11 = vld [vmem:[%s14683_s10 + $0x1c0] sm:$0xff]  ;;  %v4741_v4 = vld [vmem:[%s14683_s10 + $0x1d0] sm:$0xff]  ;;  %v4748_v46 = vld [vmem:[%s14683_s10 + $0x208] sm:$0xff] }
 0x6c6   :  { %8550 = vmatprep.subr.bf16.mxu0 %v15029_v59 }
 0x6c9   :  { %8552 = vmatpush3.bf16.msra.mxu0 %v8551_v17  ;;  %v6149_v17 = vld [vmem:[%s14680_s7 + $0x440] sm:$0xff] }
 0x6ca   :  { %8553 = vmatprep.subr.bf16.mxu0 %v15029_v59  ;;  %v8608_v14 = vpack.c.bf16 %v6150_v13, %v6149_v17  ;;  %v4750_v17 = vld [vmem:[%s14683_s10 + $0x218] sm:$0xff] }
 0x6cb   :  { %v4758_v13 = vld [vmem:[%s14683_s10 + $0x258] sm:$0xff] }
 0x6cd   :  { %8555 = vmatpush3.bf16.msra.mxu0 %v8554_v49  ;;  %v6151_v49 = vld [vmem:[%s14680_s7 + $0x450] sm:$0xff] }
 0x6ce   :  { %8556 = vmatprep.subr.bf16.mxu0 %v15029_v59  ;;  %v8611_v33 = vpack.c.bf16 %v6152_v45, %v6151_v49 }
 0x6d1   :  { %8558 = vmatpush3.bf16.msra.mxu0 %v8557_v36  ;;  %v6153_v36 = vld [vmem:[%s14680_s7 + $0x460] sm:$0xff] }
 0x6d2   :  { %8559 = vmatprep.subr.bf16.mxu0 %v15029_v59  ;;  %v8614_v26 = vpack.c.bf16 %v6154_v12, %v6153_v36  ;;  %v4755_v36 = vld [vmem:[%s14683_s10 + $0x240] sm:$0xff]  ;;  %v4749_v12 = vld [vmem:[%s14683_s10 + $0x210] sm:$0xff] }
 0x6d5   :  { %8561 = vmatpush3.bf16.msra.mxu0 %v8560_v52  ;;  %v6155_v52 = vld [vmem:[%s14680_s7 + $0x470] sm:$0xff] }
 0x6d6   :  { %8562 = vmatprep.subr.bf16.mxu0 %v15029_v59  ;;  %v8617_v48 = vpack.c.bf16 %v6156_v51, %v6155_v52  ;;  %v4757_v52 = vld [vmem:[%s14683_s10 + $0x250] sm:$0xff]  ;;  %v4764_v51 = vld [vmem:[%s14683_s10 + $0x288] sm:$0xff] }
 0x6d9   :  { %8564 = vmatpush3.bf16.msra.mxu0 %v8563_v42  ;;  %v3846_v42 = vmax.f32 %v12959_v1, 0.0  ;;  %v4686_v1 = vld [vmem:[%s14683_s10 + $0x18] sm:$0xff] }
 0x6da   :  { %8565 = vmatprep.subr.bf16.mxu0 %v15029_v59 }
 0x6db   :  { %v3855_v34 = vmul.f32 %v15069_v57, %v3846_v42  ;;  %v4683_v57 = vld [vmem:[%s14683_s10] sm:$0xff]  ;;  %v4766_v42 = vld [vmem:[%s14683_s10 + $0x298] sm:$0xff] }
 0x6dc   :  { %v8621_v38 = vpack.c.bf16 %v4691_v41, %v4683_v57  ;;  %v4765_v57 = vld [vmem:[%s14683_s10 + $0x290] sm:$0xff] }
 0x6dd   :  { %8567 = vmatpush3.bf16.msra.mxu0 %v8566_v18  ;;  %v4692_v18 = vld [vmem:[%s14683_s10 + $0x48] sm:$0xff] }
 0x6de   :  { %8568 = vmatprep.subr.bf16.mxu0 %v15029_v59  ;;  %v8619_v9 = vpack.c.bf16 %v4692_v18, %v4684_v22  ;;  %v8669_v18 = vpack.c.bf16 %v4757_v52, %v4749_v12 }
 0x6e1   :  { %8570 = vmatpush3.bf16.msra.mxu0 %v8569_v50 }
 0x6e2   :  { %8571 = vmatprep.subr.bf16.mxu0 %v15029_v59 }
 0x6e4   :  { %7899 = vmatmul.mubr.f32.vlgmr.msra.gmra.mrb[72].mxu0 %v3853_v40  ;;  %v8653_v40 = vpack.c.bf16 %v4693_v7, %v4685_v44  ;;  %v4788_v44 = vld [vmem:[%s14683_s10 + $0x348] sm:$0xff]  ;;  %v4782_v7 = vld [vmem:[%s14683_s10 + $0x318] sm:$0xff] }
 0x6e5   :  { %8573 = vmatpush3.bf16.msra.mxu0 %v8572_v21  ;;  %7933 = vmatprep.mubr.msk.f32.mxu0 %vm9348_vm12, %v15027_v27  ;;  %v4700_v21 = vld [vmem:[%s14683_s10 + $0x88] sm:$0xff] }
 0x6e6   :  { %8574 = vmatprep.subr.bf16.mxu0 %v15029_v59  ;;  %v8623_v63 = vpack.c.bf16 %v4708_v39, %v4700_v21  ;;  %v4790_v21 = vld [vmem:[%s14683_s10 + $0x358] sm:$0xff] }
 0x6e9   :  { %8576 = vmatpush3.bf16.msra.mxu0 %v8575_v19  ;;  %v4710_v19 = vld [vmem:[%s14683_s10 + $0xd8] sm:$0xff] }
 0x6ea   :  { %8577 = vmatprep.subr.bf16.mxu0 %v15029_v59  ;;  %v8655_v58 = vpack.c.bf16 %v4710_v19, %v4702_v3  ;;  %v4779_v19 = vld [vmem:[%s14683_s10 + $0x300] sm:$0xff] }
 0x6ed   :  { %8579 = vmatpush3.bf16.msra.mxu0 %v8578_v15  ;;  %v4699_v15 = vld [vmem:[%s14683_s10 + $0x80] sm:$0xff] }
 0x6ee   :  { %8580 = vmatprep.subr.bf16.mxu0 %v15029_v59 }
 0x6f1   :  { %8582 = vmatpush3.bf16.msra.mxu0 %v8581_v20  ;;  %v8625_v20 = vpack.c.bf16 %v4707_v61, %v4699_v15  ;;  %v8675_v15 = vpack.c.bf16 %v4790_v21, %v4782_v7  ;;  %v4789_v61 = vld [vmem:[%s14683_s10 + $0x350] sm:$0xff]  ;;  %v4706_v7 = vld [vmem:[%s14683_s10 + $0xb8] sm:$0xff] }
 0x6f2   :  { %8583 = vmatprep.subr.bf16.mxu0 %v15029_v59  ;;  %v4714_v21 = vld [vmem:[%s14683_s10 + $0xf8] sm:$0xff] }
 0x6f5   :  { %8585 = vmatpush3.bf16.msra.mxu0 %v8584_v30  ;;  %v4724_v30 = vld [vmem:[%s14683_s10 + $0x148] sm:$0xff] }
 0x6f6   :  { %8586 = vmatprep.subr.bf16.mxu0 %v15029_v59  ;;  %v8627_v24 = vpack.c.bf16 %v4724_v30, %v4716_v2  ;;  %v4806_v2 = vld [vmem:[%s14683_s10 + $0x3d8] sm:$0xff] }
 0x6f9   :  { %8588 = vmatpush3.bf16.msra.mxu0 %v8587_v56  ;;  %v4718_v56 = vld [vmem:[%s14683_s10 + $0x118] sm:$0xff] }
 0x6fa   :  { %8589 = vmatprep.subr.bf16.mxu0 %v15029_v59 }
 0x6fd   :  { %8591 = vmatpush3.bf16.msra.mxu0 %v8590_v53  ;;  %v8659_v53 = vpack.c.bf16 %v4726_v55, %v4718_v56  ;;  %v4795_v56 = vld [vmem:[%s14683_s10 + $0x380] sm:$0xff] }
 0x6fe   :  { %8592 = vmatprep.subr.bf16.mxu0 %v15029_v59  ;;  %v4803_v55 = vld [vmem:[%s14683_s10 + $0x3c0] sm:$0xff] }
 0x6ff   :  { %v8649_v32 = vpack.c.bf16 %v4803_v55, %v4795_v56  ;;  %v4719_v56 = vld [vmem:[%s14683_s10 + $0x120] sm:$0xff] }
 0x700   :  { %v4727_v55 = vld [vmem:[%s14683_s10 + $0x160] sm:$0xff] }
 0x701   :  { %8594 = vmatpush3.bf16.msra.mxu0 %v8593_v28  ;;  %v4725_v28 = vld [vmem:[%s14683_s10 + $0x150] sm:$0xff] }
 0x702   :  { %8595 = vmatprep.subr.bf16.mxu0 %v15029_v59 }
 0x704   :  { %7934 = vmatmul.mubr.f32.vlgmr.msra.gmra.mrb[72].mxu0 %v3854_v54  ;;  %v8661_v54 = vpack.c.bf16 %v4725_v28, %v4717_v31  ;;  %v4688_v31 = vld [vmem:[%s14683_s10 + $0x28] sm:$0xff] }
 0x705   :  { %8597 = vmatpush3.bf16.msra.mxu0 %v8596_v37  ;;  %7968 = vmatprep.mubr.msk.f32.mxu0 %vm9348_vm12, %v15027_v27  ;;  %v4734_v37 = vld [vmem:[%s14683_s10 + $0x198] sm:$0xff]  ;;  %v4696_v28 = vld [vmem:[%s14683_s10 + $0x68] sm:$0xff] }
 0x706   :  { %8598 = vmatprep.subr.bf16.mxu0 %v15029_v59  ;;  %v8663_v43 = vpack.c.bf16 %v4742_v16, %v4734_v37  ;;  %v8681_v37 = vpack.c.bf16 %v4805_v0, %v4797_v60  ;;  %v4721_v0 = vld [vmem:[%s14683_s10 + $0x130] sm:$0xff] }
 0x709   :  { %8600 = vmatpush3.bf16.msra.mxu0 %v8599_v47  ;;  %v4731_v47 = vld [vmem:[%s14683_s10 + $0x180] sm:$0xff] }
 0x70a   :  { %8601 = vmatprep.subr.bf16.mxu0 %v15029_v59 }
 0x70d   :  { %8603 = vmatpush3.bf16.msra.mxu0 %v8602_v6  ;;  %v4733_v6 = vld [vmem:[%s14683_s10 + $0x190] sm:$0xff] }
 0x70e   :  { %8604 = vmatprep.subr.bf16.mxu0 %v15029_v59  ;;  %v8665_v49 = vpack.c.bf16 %v4741_v4, %v4733_v6 }
 0x711   :  { %8606 = vmatpush3.bf16.msra.mxu0 %v8605_v23  ;;  %v4756_v23 = vld [vmem:[%s14683_s10 + $0x248] sm:$0xff] }
 0x712   :  { %8607 = vmatprep.subr.bf16.mxu0 %v15029_v59  ;;  %v8635_v45 = vpack.c.bf16 %v4756_v23, %v4748_v46 }
 0x715   :  { %8609 = vmatpush3.bf16.msra.mxu0 %v8608_v14  ;;  %v8633_v14 = vpack.c.bf16 %v4739_v11, %v4731_v47 }
 0x716   :  { %8610 = vmatprep.subr.bf16.mxu0 %v15029_v59 }
 0x719   :  { %8612 = vmatpush3.bf16.msra.mxu0 %v8611_v33  ;;  %v4747_v33 = vld [vmem:[%s14683_s10 + $0x200] sm:$0xff] }
 0x71a   :  { %8613 = vmatprep.subr.bf16.mxu0 %v15029_v59  ;;  %v8637_v22 = vpack.c.bf16 %v4755_v36, %v4747_v33 }
 0x71d   :  { %8615 = vmatpush3.bf16.msra.mxu0 %v8614_v26  ;;  %v8667_v26 = vpack.c.bf16 %v4758_v13, %v4750_v17 }
 0x71e   :  { %8616 = vmatprep.subr.bf16.mxu0 %v15029_v59  ;;  %v4694_v59 = vld [vmem:[%s14683_s10 + $0x58] sm:$0xff] }
 0x71f   :  { %v8651_v50 = vpack.c.bf16 %v4694_v59, %v4686_v1  ;;  %v4771_v59 = vld [vmem:[%s14683_s10 + $0x2c0] sm:$0xff] }
 0x721   :  { %8618 = vmatpush3.bf16.msra.mxu0 %v8617_v48  ;;  %8652 = vmatprep.subr.bf16.mxu1 %v8651_v50  ;;  %v4772_v48 = vld [vmem:[%s14683_s10 + $0x2c8] sm:$0xff]  ;;  %v4773_v50 = vld [vmem:[%s14683_s10 + $0x2d0] sm:$0xff] }
 0x722   :  { %8620 = vmatprep.subr.bf16.mxu0 %v8619_v9  ;;  %8654 = vmatpush1.bf16.msra.mxu1 %v8653_v40  ;;  %v8639_v1 = vpack.c.bf16 %v4772_v48, %v4764_v51  ;;  %v4763_v9 = vld [vmem:[%s14683_s10 + $0x280] sm:$0xff]  ;;  %v8673_v39 = vpack.c.bf16 %v4773_v50, %v4765_v57  ;;  %v4697_v50 = vld [vmem:[%s14683_s10 + $0x70] sm:$0xff] }
 0x723   :  { %8656 = vmatprep.subr.bf16.mxu1 %v8655_v58  ;;  %v8641_v40 = vpack.c.bf16 %v4771_v59, %v4763_v9  ;;  %v4781_v58 = vld [vmem:[%s14683_s10 + $0x310] sm:$0xff]  ;;  %v4687_v9 = vld [vmem:[%s14683_s10 + $0x20] sm:$0xff] }
 0x724   :  { %7969 = vmatmul.mubr.f32.vlgmr.msra.gmra.mrb[72].mxu0 %v3855_v34  ;;  %v4774_v34 = vld [vmem:[%s14683_s10 + $0x2d8] sm:$0xff]  ;;  %v4695_v59 = vld [vmem:[%s14683_s10 + $0x60] sm:$0xff] }
 0x725   :  { %4917 = vmatprep.mubr.f32.mxu0 %v15027_v27  ;;  %8622 = vmatpush1.bf16.msra.mxu0 %v8621_v38  ;;  %v8671_v41 = vpack.c.bf16 %v4774_v34, %v4766_v42  ;;  %v4780_v38 = vld [vmem:[%s14683_s10 + $0x308] sm:$0xff]  ;;  %v6157_v34 = vld [vmem:[%s14684_s8] ss:$0 sm:$0xff] }
 0x726   :  { %8624 = vmatprep.subr.bf16.mxu0 %v8623_v63  ;;  %8658 = vmatpush1.bf16.msra.mxu1 %v8657_v29  ;;  %v8643_v3 = vpack.c.bf16 %v4788_v44, %v4780_v38  ;;  %v4787_v63 = vld [vmem:[%s14683_s10 + $0x340] sm:$0xff]  ;;  %v8677_v29 = vpack.c.bf16 %v4789_v61, %v4781_v58  ;;  %v4704_v38 = vld [vmem:[%s14683_s10 + $0xa8] sm:$0xff]  ;;  %v8719_v61 = vpack.c.bf16 %v4714_v21, %v4706_v7 }
 0x727   :  { %8660 = vmatprep.subr.bf16.mxu1 %v8659_v53  ;;  %v8645_v30 = vpack.c.bf16 %v4787_v63, %v4779_v19  ;;  %v8679_v53 = vpack.c.bf16 %v4806_v2, %v4798_v10  ;;  %v4712_v44 = vld [vmem:[%s14683_s10 + $0xe8] sm:$0xff]  ;;  %v4703_v19 = vld [vmem:[%s14683_s10 + $0xa0] sm:$0xff] }
 0x728   :  { %v4711_v63 = vld [vmem:[%s14683_s10 + $0xe0] sm:$0xff]  ;;  %v4720_v10 = vld [vmem:[%s14683_s10 + $0x128] sm:$0xff] }
 0x729   :  { %8626 = vmatpush1.bf16.msra.mxu0 %v8625_v20  ;;  %v4804_v20 = vld [vmem:[%s14683_s10 + $0x3c8] sm:$0xff] }
 0x72a   :  { %8628 = vmatprep.subr.bf16.mxu0 %v8627_v24  ;;  %8662 = vmatpush1.bf16.msra.mxu1 %v8661_v54  ;;  %v8647_v24 = vpack.c.bf16 %v4804_v20, %v4796_v35  ;;  %v8683_v54 = vpack.c.bf16 %v4696_v28, %v4688_v31  ;;  %v4705_v35 = vld [vmem:[%s14683_s10 + $0xb0] sm:$0xff]  ;;  %v4728_v2 = vld [vmem:[%s14683_s10 + $0x168] sm:$0xff] }
 0x72b   :  { %8664 = vmatprep.subr.bf16.mxu1 %v8663_v43  ;;  %v4713_v20 = vld [vmem:[%s14683_s10 + $0xf0] sm:$0xff]  ;;  %v8691_v60 = vpack.c.bf16 %v4728_v2, %v4720_v10  ;;  %v4736_v28 = vld [vmem:[%s14683_s10 + $0x1a8] sm:$0xff]  ;;  %v4810_v10 = vld [vmem:[%s14683_s10 + $0x3f8] sm:$0xff] }
 0x72c   :  { %v4729_v31 = vld [vmem:[%s14683_s10 + $0x170] sm:$0xff] }
 0x72d   :  { %8630 = vmatpush1.bf16.msra.mxu0 %v8629_v25  ;;  %v4690_v25 = vld [vmem:[%s14683_s10 + $0x38] sm:$0xff] }
 0x72e   :  { %8632 = vmatprep.subr.bf16.mxu0 %v8631_v62  ;;  %8666 = vmatpush1.bf16.msra.mxu1 %v8665_v49  ;;  %v8715_v62 = vpack.c.bf16 %v4698_v8, %v4690_v25  ;;  %v4744_v25 = vld [vmem:[%s14683_s10 + $0x1e8] sm:$0xff]  ;;  %v4738_v8 = vld [vmem:[%s14683_s10 + $0x1b8] sm:$0xff] }
 0x72f   :  { %8668 = vmatprep.subr.bf16.mxu1 %v8667_v26 }
 0x731   :  { %8634 = vmatpush1.bf16.msra.mxu0 %v8633_v14 }
 0x732   :  { %8636 = vmatprep.subr.bf16.mxu0 %v8635_v45  ;;  %8670 = vmatpush1.bf16.msra.mxu1 %v8669_v18  ;;  %v6158_v18 = vld [vmem:[%s14685_s9] ss:$0 sm:$0xff] }
 0x733   :  { %8672 = vmatprep.subr.bf16.mxu1 %v8671_v41  ;;  %v4689_v41 = vld [vmem:[%s14683_s10 + $0x30] sm:$0xff] }
 0x735   :  { %8638 = vmatpush1.bf16.msra.mxu0 %v8637_v22 }
 0x736   :  { %8640 = vmatprep.subr.bf16.mxu0 %v8639_v1  ;;  %8674 = vmatpush1.bf16.msra.mxu1 %v8673_v39  ;;  %v8685_v39 = vpack.c.bf16 %v4695_v59, %v4687_v9  ;;  %v4769_v59 = vld [vmem:[%s14683_s10 + $0x2b0] sm:$0xff] }
 0x737   :  { %8676 = vmatprep.subr.bf16.mxu1 %v8675_v15  ;;  %v8687_v15 = vpack.c.bf16 %v4712_v44, %v4704_v38  ;;  %v4786_v38 = vld [vmem:[%s14683_s10 + $0x338] sm:$0xff] }
 0x738   :  { %v4794_v44 = vld [vmem:[%s14683_s10 + $0x378] sm:$0xff] }
 0x739   :  { %8642 = vmatpush1.bf16.msra.mxu0 %v8641_v40 }
 0x73a   :  { %8644 = vmatprep.subr.bf16.mxu0 %v8643_v3  ;;  %8678 = vmatpush1.bf16.msra.mxu1 %v8677_v29  ;;  %v8717_v3 = vpack.c.bf16 %v4697_v50, %v4689_v41  ;;  %v8689_v29 = vpack.c.bf16 %v4711_v63, %v4703_v19  ;;  %v4784_v41 = vld [vmem:[%s14683_s10 + $0x328] sm:$0xff]  ;;  %v8739_v19 = vpack.c.bf16 %v4794_v44, %v4786_v38  ;;  %v4785_v63 = vld [vmem:[%s14683_s10 + $0x330] sm:$0xff] }
 0x73b   :  { %8680 = vmatprep.subr.bf16.mxu1 %v8679_v53  ;;  %v4792_v50 = vld [vmem:[%s14683_s10 + $0x368] sm:$0xff]  ;;  %v5171_v38 = vld [vmem:[%s14686_s12 + $0xd0] sm:$0xff] }
 0x73c   :  { %v5174_v44 = vld [vmem:[%s14686_s12 + $0xe8] sm:$0xff] }
 0x73d   :  { %8646 = vmatpush1.bf16.msra.mxu0 %v8645_v30  ;;  %v4730_v30 = vld [vmem:[%s14683_s10 + $0x178] sm:$0xff] }
 0x73e   :  { %8648 = vmatprep.subr.bf16.mxu0 %v8647_v24  ;;  %8682 = vmatpush1.bf16.msra.mxu1 %v8681_v37  ;;  %v8721_v24 = vpack.c.bf16 %v4713_v20, %v4705_v35  ;;  %v8693_v37 = vpack.c.bf16 %v4727_v55, %v4719_v56  ;;  %v4808_v35 = vld [vmem:[%s14683_s10 + $0x3e8] sm:$0xff]  ;;  %v4802_v20 = vld [vmem:[%s14683_s10 + $0x3b8] sm:$0xff]  ;;  %v4807_v56 = vld [vmem:[%s14683_s10 + $0x3e0] sm:$0xff] }
 0x73f   :  { %8716 = vmatprep.subr.bf16.mxu1 %v8715_v62  ;;  %v4735_v62 = vld [vmem:[%s14683_s10 + $0x1a0] sm:$0xff]  ;;  %v4801_v55 = vld [vmem:[%s14683_s10 + $0x3b0] sm:$0xff] }
 0x741   :  { %8650 = vmatpush1.bf16.msra.mxu0 %v8649_v32  ;;  %v4746_v32 = vld [vmem:[%s14683_s10 + $0x1f8] sm:$0xff] }
 0x742   :  { %8684 = vmatprep.subr.bf16.mxu0 %v8683_v54  ;;  %v8725_v54 = vpack.c.bf16 %v4729_v31, %v4721_v0  ;;  %v5148_v0 = vld [vmem:[%s14686_s12 + $0x18] sm:$0xff] }
 0x7f7   :  { %v4640_v16 = vpop.f32.mrb[72].mxu0 }
 0x7f8   :  { %v4647_v47 = vrot.slane %v4640_v16, 4  ;;  %v7970_v11 = vpop.f32.mrb[73].mxu0 }
 0x7f9   :  { %v8727_v11 = vpack.c.bf16 %v4746_v32, %v4738_v8  ;;  %v5145_v8 = vld [vmem:[%s14686_s12] sm:$0xff]  ;;  %v5147_v32 = vld [vmem:[%s14686_s12 + $0x10] sm:$0xff] }
 0x7fa   :  { %v4648_v43 = vadd.f32 %v4647_v47, %v4640_v16  ;;  %v8695_v47 = vpack.c.bf16 %v4744_v25, %v4736_v28 }
 0x7fc   :  { %v4649_v6 = vrot.slane %v4648_v43, 2 }
 0x7fe   :  { %v4650_v4 = vadd.f32 %v4649_v6, %v4648_v43  ;;  %v4745_v43 = vld [vmem:[%s14683_s10 + $0x1f0] sm:$0xff]  ;;  %v4752_v6 = vld [vmem:[%s14683_s10 + $0x228] sm:$0xff] }
 0x800   :  { %v4651_v46 = vrot.slane %v4650_v4, 1 }
 0x802   :  { %v4652_v23 = vadd.f32 %v4651_v46, %v4650_v4  ;;  %v4760_v4 = vld [vmem:[%s14683_s10 + $0x268] sm:$0xff]  ;;  %v4754_v46 = vld [vmem:[%s14683_s10 + $0x238] sm:$0xff] }
 0x804   :  { %v4653_v17 = vmul.f32 0.5, %v4652_v23  ;;  %v4762_v23 = vld [vmem:[%s14683_s10 + $0x278] sm:$0xff] }
 0x806   :  { %v4654_v13 = vsub.f32 %v4640_v16, %v4653_v17  ;;  %v4743_v16 = vld [vmem:[%s14683_s10 + $0x1e0] sm:$0xff] }
 0x807   :  { %v8697_v17 = vpack.c.bf16 %v4743_v16, %v4735_v62  ;;  %v8749_v62 = vpack.c.bf16 %v5147_v32, %v5145_v8 }
 0x808   :  { %v4655_v14 = vmul.f32 %v15123_v5, %v4654_v13 }
 0x80a   :  { %v4656_v49 = vmul.f32 %v4655_v14, %v4655_v14  ;;  %v4751_v14 = vld [vmem:[%s14683_s10 + $0x220] sm:$0xff] }
 0x80c   :  { %v4657_v45 = vrot.slane %v4656_v49, 4 }
 0x80e   :  { %v4658_v33 = vadd.f32 %v4657_v45, %v4656_v49  ;;  %v4759_v49 = vld [vmem:[%s14683_s10 + $0x260] sm:$0xff]  ;;  %v8699_v45 = vpack.c.bf16 %v4760_v4, %v4752_v6 }
 0x810   :  { %v4659_v36 = vrot.slane %v4658_v33, 2 }
 0x812   :  { %v4660_v12 = vadd.f32 %v4659_v36, %v4658_v33  ;;  %v8731_v33 = vpack.c.bf16 %v4762_v23, %v4754_v46  ;;  %v4753_v36 = vld [vmem:[%s14683_s10 + $0x230] sm:$0xff]  ;;  %v5153_v46 = vld [vmem:[%s14686_s12 + $0x40] sm:$0xff] }
 0x813   :  { %v5155_v23 = vld [vmem:[%s14686_s12 + $0x50] sm:$0xff] }
 0x814   :  { %v4661_v26 = vrot.slane %v4660_v12, 1 }
 0x816   :  { %v4662_v52 = vadd.f32 %v4661_v26, %v4660_v12  ;;  %v4761_v12 = vld [vmem:[%s14683_s10 + $0x270] sm:$0xff]  ;;  %v4768_v26 = vld [vmem:[%s14683_s10 + $0x2a8] sm:$0xff] }
 0x818   :  { %v4663_v51 = vmul.f32 0.5, %v4662_v52  ;;  %v4776_v52 = vld [vmem:[%s14683_s10 + $0x2e8] sm:$0xff] }
 0x81a   :  { %v4664_v48 = vadd.f32 1e-05, %v4663_v51  ;;  %v4770_v51 = vld [vmem:[%s14683_s10 + $0x2b8] sm:$0xff] }
 0x81c   :  { %9336 = vrsqrt.f32 %v4664_v48  ;;  %v4778_v48 = vld [vmem:[%s14683_s10 + $0x2f8] sm:$0xff] }
 0x81d   :  { %v8735_v9 = vpack.c.bf16 %v4778_v48, %v4770_v51  ;;  %v5163_v51 = vld [vmem:[%s14686_s12 + $0x90] sm:$0xff]  ;;  %v5166_v48 = vld [vmem:[%s14686_s12 + $0xa8] sm:$0xff] }
 0x826   :  { %v9337_v42 = vpop.eup %9336 }
 0x827   :  { %v4666_v22 = vmul.f32 %v9337_v42, %v4654_v13  ;;  %v8701_v42 = vpack.c.bf16 %v4759_v49, %v4751_v14  ;;  %v5157_v49 = vld [vmem:[%s14686_s12 + $0x60] sm:$0xff] }
 0x829   :  { %v4673_v1 = vmul.f32 %v6157_v34, %v4666_v22  ;;  %v8733_v34 = vpack.c.bf16 %v4761_v12, %v4753_v36  ;;  %v4767_v22 = vld [vmem:[%s14683_s10 + $0x2a0] sm:$0xff]  ;;  %v5164_v36 = vld [vmem:[%s14686_s12 + $0x98] sm:$0xff] }
 0x82b   :  { %v4680_v57 = vadd.f32 %v6158_v18, %v4673_v1  ;;  %v4775_v18 = vld [vmem:[%s14683_s10 + $0x2e0] sm:$0xff]  ;;  %v8703_v1 = vpack.c.bf16 %v4776_v52, %v4768_v26 }
 0x82c   :  { %v8705_v7 = vpack.c.bf16 %v4775_v18, %v4767_v22  ;;  %v5161_v52 = vld [vmem:[%s14686_s12 + $0x80] sm:$0xff] }
 0x82d   :  { %v4681_v40 = vmax.f32 %v4680_v57, 0.0  ;;  %v4777_v57 = vld [vmem:[%s14683_s10 + $0x2f0] sm:$0xff]  ;;  %v5165_v18 = vld [vmem:[%s14686_s12 + $0xa0] sm:$0xff] }
 0x82e   :  { %v8737_v21 = vpack.c.bf16 %v4777_v57, %v4769_v59  ;;  %v5172_v59 = vld [vmem:[%s14686_s12 + $0xd8] sm:$0xff] }
 0x82f   :  { %v13696_v58 = vmul.f32 %v15123_v5, %v4681_v40  ;;  %v4722_v5 = vld [vmem:[%s14683_s10 + $0x138] sm:$0xff]  ;;  %v4783_v40 = vld [vmem:[%s14683_s10 + $0x320] sm:$0xff] }
 0x830   :  { %v8723_v53 = vpack.c.bf16 %v4730_v30, %v4722_v5  ;;  %v4799_v30 = vld [vmem:[%s14683_s10 + $0x3a0] sm:$0xff] }
 0x831   :  { %4918 = vmatmul.mubr.f32.vlgmr.msra.gmra.mrb[74].mxu0 %v13696_v58  ;;  %4989 = vmatmul.mubr.f32.vlgmr.msra.gmra.mrb[74].mxu1 %v13696_v58  ;;  %v8713_v31 = vpack.c.bf16 %v4807_v56, %v4799_v30  ;;  %v5186_v56 = vld [vmem:[%s14686_s12 + $0x148] sm:$0xff] }
 0x832   :  { %8686 = vmatpush1.bf16.msra.mxu0 %v8685_v39  ;;  %8718 = vmatpush1.bf16.msra.mxu1 %v8717_v3  ;;  %v4791_v39 = vld [vmem:[%s14683_s10 + $0x360] sm:$0xff]  ;;  %v8707_v3 = vpack.c.bf16 %v4792_v50, %v4784_v41 }
 0x833   :  { %8688 = vmatprep.subr.bf16.mxu0 %v8687_v15  ;;  %8720 = vmatprep.subr.bf16.mxu1 %v8719_v61  ;;  %v4793_v15 = vld [vmem:[%s14683_s10 + $0x370] sm:$0xff]  ;;  %v4800_v61 = vld [vmem:[%s14683_s10 + $0x3a8] sm:$0xff]  ;;  %v8709_v2 = vpack.c.bf16 %v4791_v39, %v4783_v40  ;;  %v5169_v50 = vld [vmem:[%s14686_s12 + $0xc0] sm:$0xff] }
 0x834   :  { %5059 = vmatprep.mubr.f32.mxu0 %v15027_v27  ;;  %5130 = vmatprep.mubr.f32.mxu1 %v15027_v27  ;;  %v4737_v27 = vld [vmem:[%s14683_s10 + $0x1b0] sm:$0xff]  ;;  %v8741_v5 = vpack.c.bf16 %v4793_v15, %v4785_v63  ;;  %v5173_v39 = vld [vmem:[%s14686_s12 + $0xe0] sm:$0xff]  ;;  %v5180_v63 = vld [vmem:[%s14686_s12 + $0x118] sm:$0xff] }
 0x835   :  { %v8729_v13 = vpack.c.bf16 %v4745_v43, %v4737_v27  ;;  %v5154_v27 = vld [vmem:[%s14686_s12 + $0x48] sm:$0xff]  ;;  %v5156_v43 = vld [vmem:[%s14686_s12 + $0x58] sm:$0xff] }
 0x836   :  { %8690 = vmatpush1.bf16.msra.mxu0 %v8689_v29  ;;  %8722 = vmatpush1.bf16.msra.mxu1 %v8721_v24  ;;  %v8711_v29 = vpack.c.bf16 %v4808_v35, %v4800_v61  ;;  %v8743_v24 = vpack.c.bf16 %v4810_v10, %v4802_v20  ;;  %v8755_v4 = vpack.c.bf16 %v5156_v43, %v5154_v27  ;;  %v5177_v35 = vld [vmem:[%s14686_s12 + $0x100] sm:$0xff]  ;;  %v5179_v20 = vld [vmem:[%s14686_s12 + $0x110] sm:$0xff]  ;;  %v5182_v10 = vld [vmem:[%s14686_s12 + $0x128] sm:$0xff] }
 0x837   :  { %8692 = vmatprep.subr.bf16.mxu0 %v8691_v60  ;;  %8724 = vmatprep.subr.bf16.mxu1 %v8723_v53  ;;  %v4809_v60 = vld [vmem:[%s14683_s10 + $0x3f0] sm:$0xff]  ;;  %v5146_v53 = vld [vmem:[%s14686_s12 + $0x8] sm:$0xff]  ;;  %v5193_v27 = vld [vmem:[%s14686_s12 + $0x180] sm:$0xff] }
 0x838   :  { %v8745_v28 = vpack.c.bf16 %v4809_v60, %v4801_v55  ;;  %v8747_v25 = vpack.c.bf16 %v5148_v0, %v5146_v53  ;;  %v5188_v55 = vld [vmem:[%s14686_s12 + $0x158] sm:$0xff]  ;;  %v5185_v0 = vld [vmem:[%s14686_s12 + $0x140] sm:$0xff]  ;;  %v5195_v43 = vld [vmem:[%s14686_s12 + $0x190] sm:$0xff] }
 0x839   :  { %v8787_v53 = vpack.c.bf16 %v5188_v55, %v5186_v56  ;;  %v5215_v56 = vld [vmem:[%s14686_s12 + $0x230] sm:$0xff] }
 0x83a   :  { %8694 = vmatpush1.bf16.msra.mxu0 %v8693_v37  ;;  %8726 = vmatpush1.bf16.msra.mxu1 %v8725_v54  ;;  %v5150_v37 = vld [vmem:[%s14686_s12 + $0x28] sm:$0xff]  ;;  %v5152_v54 = vld [vmem:[%s14686_s12 + $0x38] sm:$0xff] }
 0x83b   :  { %8696 = vmatprep.subr.bf16.mxu0 %v8695_v47  ;;  %8728 = vmatprep.subr.bf16.mxu1 %v8727_v11  ;;  %v8751_v16 = vpack.c.bf16 %v5152_v54, %v5150_v37  ;;  %v5149_v47 = vld [vmem:[%s14686_s12 + $0x20] sm:$0xff]  ;;  %v5151_v11 = vld [vmem:[%s14686_s12 + $0x30] sm:$0xff] }
 0x83c   :  { %v8753_v6 = vpack.c.bf16 %v5151_v11, %v5149_v47  ;;  %v5189_v37 = vld [vmem:[%s14686_s12 + $0x160] sm:$0xff]  ;;  %v5191_v54 = vld [vmem:[%s14686_s12 + $0x170] sm:$0xff] }
 0x83d   :  { %v8793_v47 = vpack.c.bf16 %v5191_v54, %v5189_v37 }
 0x83e   :  { %8698 = vmatpush1.bf16.msra.mxu0 %v8697_v17  ;;  %8730 = vmatpush1.bf16.msra.mxu1 %v8729_v13  ;;  %v5158_v17 = vld [vmem:[%s14686_s12 + $0x68] sm:$0xff]  ;;  %v8757_v13 = vpack.c.bf16 %v5155_v23, %v5153_v46  ;;  %v8797_v46 = vpack.c.bf16 %v5195_v43, %v5193_v27 }
 0x83f   :  { %8700 = vmatprep.subr.bf16.mxu0 %v8699_v45  ;;  %8732 = vmatprep.subr.bf16.mxu1 %v8731_v33  ;;  %v5159_v45 = vld [vmem:[%s14686_s12 + $0x70] sm:$0xff]  ;;  %v5162_v33 = vld [vmem:[%s14686_s12 + $0x88] sm:$0xff] }
 0x840   :  { %v8761_v12 = vpack.c.bf16 %v5159_v45, %v5157_v49  ;;  %v8763_v26 = vpack.c.bf16 %v5164_v36, %v5162_v33  ;;  %v5201_v33 = vld [vmem:[%s14686_s12 + $0x1c0] sm:$0xff]  ;;  %v5203_v36 = vld [vmem:[%s14686_s12 + $0x1d0] sm:$0xff] }
 0x842   :  { %8702 = vmatpush1.bf16.msra.mxu0 %v8701_v42  ;;  %8734 = vmatpush1.bf16.msra.mxu1 %v8733_v34  ;;  %v5168_v42 = vld [vmem:[%s14686_s12 + $0xb8] sm:$0xff]  ;;  %v8765_v34 = vpack.c.bf16 %v5163_v51, %v5161_v52  ;;  %v5205_v51 = vld [vmem:[%s14686_s12 + $0x1e0] sm:$0xff] }
 0x843   :  { %8704 = vmatprep.subr.bf16.mxu0 %v8703_v1  ;;  %8736 = vmatprep.subr.bf16.mxu1 %v8735_v9  ;;  %v8767_v22 = vpack.c.bf16 %v5168_v42, %v5166_v48  ;;  %v5167_v1 = vld [vmem:[%s14686_s12 + $0xb0] sm:$0xff]  ;;  %v5170_v9 = vld [vmem:[%s14686_s12 + $0xc8] sm:$0xff]  ;;  %v5208_v52 = vld [vmem:[%s14686_s12 + $0x1f8] sm:$0xff] }
 0x844   :  { %v8769_v57 = vpack.c.bf16 %v5167_v1, %v5165_v18  ;;  %v8771_v41 = vpack.c.bf16 %v5172_v59, %v5170_v9  ;;  %v5207_v42 = vld [vmem:[%s14686_s12 + $0x1f0] sm:$0xff]  ;;  %v5212_v18 = vld [vmem:[%s14686_s12 + $0x218] sm:$0xff] }
 0x845   :  { %v15127_v9 = vld [vmem:[#allocation36_spill] sm:$0xff] }
 0x846   :  { %8706 = vmatpush1.bf16.msra.mxu0 %v8705_v7  ;;  %8738 = vmatpush1.bf16.msra.mxu1 %v8737_v21  ;;  %v5176_v7 = vld [vmem:[%s14686_s12 + $0xf8] sm:$0xff]  ;;  %v8773_v21 = vpack.c.bf16 %v5171_v38, %v5169_v50  ;;  %v4815_v59 = vsub.s32 0, %v15127_v9  ;;  %v4827_v50 = vsub.s32 3, %v15127_v9 }
 0x847   :  { %8708 = vmatprep.subr.bf16.mxu0 %v8707_v3  ;;  %8740 = vmatprep.subr.bf16.mxu1 %v8739_v19  ;;  %v8775_v40 = vpack.c.bf16 %v5176_v7, %v5174_v44  ;;  %v5175_v3 = vld [vmem:[%s14686_s12 + $0xf0] sm:$0xff]  ;;  %v5178_v19 = vld [vmem:[%s14686_s12 + $0x108] sm:$0xff] }
 0x848   :  { %v8777_v15 = vpack.c.bf16 %v5175_v3, %v5173_v39  ;;  %v8779_v61 = vpack.c.bf16 %v5180_v63, %v5178_v19  ;;  %v5209_v63 = vld [vmem:[%s14686_s12 + $0x200] sm:$0xff] }
 0x84a   :  { %8710 = vmatpush1.bf16.msra.mxu0 %v8709_v2  ;;  %8742 = vmatpush1.bf16.msra.mxu1 %v8741_v5  ;;  %v5184_v2 = vld [vmem:[%s14686_s12 + $0x138] sm:$0xff]  ;;  %v8781_v5 = vpack.c.bf16 %v5179_v20, %v5177_v35  ;;  %v5214_v20 = vld [vmem:[%s14686_s12 + $0x228] sm:$0xff] }
 0x84b   :  { %8712 = vmatprep.subr.bf16.mxu0 %v8711_v29  ;;  %8744 = vmatprep.subr.bf16.mxu1 %v8743_v24  ;;  %v8783_v30 = vpack.c.bf16 %v5184_v2, %v5182_v10  ;;  %v5181_v29 = vld [vmem:[%s14686_s12 + $0x120] sm:$0xff]  ;;  %v5183_v24 = vld [vmem:[%s14686_s12 + $0x130] sm:$0xff]  ;;  %v5216_v10 = vld [vmem:[%s14686_s12 + $0x238] sm:$0xff] }
 0x84c   :  { %v8785_v60 = vpack.c.bf16 %v5183_v24, %v5181_v29  ;;  %v8815_v29 = vpack.c.bf16 %v5216_v10, %v5214_v20  ;;  %v5213_v24 = vld [vmem:[%s14686_s12 + $0x220] sm:$0xff]  ;;  %v5247_v10 = vld [vmem:[%s14686_s12 + $0x330] sm:$0xff] }
 0x84d   :  { %v5245_v20 = vld [vmem:[%s14686_s12 + $0x320] sm:$0xff] }
 0x84e   :  { %8714 = vmatpush1.bf16.msra.mxu0 %v8713_v31  ;;  %8746 = vmatpush1.bf16.msra.mxu1 %v8745_v28  ;;  %v5187_v31 = vld [vmem:[%s14686_s12 + $0x150] sm:$0xff]  ;;  %v5190_v28 = vld [vmem:[%s14686_s12 + $0x168] sm:$0xff] }
 0x84f   :  { %8748 = vmatprep.subr.bf16.mxu0 %v8747_v25  ;;  %v5192_v25 = vld [vmem:[%s14686_s12 + $0x178] sm:$0xff]  ;;  %v8789_v8 = vpack.c.bf16 %v5187_v31, %v5185_v0  ;;  %v8817_v0 = vpack.c.bf16 %v5215_v56, %v5213_v24  ;;  %v5249_v24 = vld [vmem:[%s14686_s12 + $0x340] sm:$0xff]  ;;  %v5251_v56 = vld [vmem:[%s14686_s12 + $0x350] sm:$0xff] }
 0x850   :  { %v8791_v32 = vpack.c.bf16 %v5192_v25, %v5190_v28  ;;  %v5217_v28 = vld [vmem:[%s14686_s12 + $0x240] sm:$0xff]  ;;  %v5219_v25 = vld [vmem:[%s14686_s12 + $0x250] sm:$0xff] }
 0x851   :  { %5060 = vmatmul.mubr.f32.vlgmr.msra.gmra.mrb[76].mxu0 %v13696_v58  ;;  %5131 = vmatmul.mubr.f32.vlgmr.msra.gmra.mrb[76].mxu1 %v13696_v58  ;;  %v5160_v58 = vld [vmem:[%s14686_s12 + $0x78] sm:$0xff]  ;;  %v8821_v37 = vpack.c.bf16 %v5219_v25, %v5217_v28  ;;  %v5255_v28 = vld [vmem:[%s14686_s12 + $0x370] sm:$0xff]  ;;  %v5258_v25 = vld [vmem:[%s14686_s12 + $0x388] sm:$0xff] }
 0x852   :  { %8750 = vmatpush1.bf16.msra.mxu0 %v8749_v62  ;;  %v8759_v14 = vpack.c.bf16 %v5160_v58, %v5158_v17  ;;  %v5194_v62 = vld [vmem:[%s14686_s12 + $0x188] sm:$0xff]  ;;  %v5197_v17 = vld [vmem:[%s14686_s12 + $0x1a0] sm:$0xff]  ;;  %v5199_v58 = vld [vmem:[%s14686_s12 + $0x1b0] sm:$0xff] }
 0x853   :  { %8752 = vmatprep.subr.bf16.mxu0 %v8751_v16  ;;  %v5196_v16 = vld [vmem:[%s14686_s12 + $0x198] sm:$0xff]  ;;  %v8801_v49 = vpack.c.bf16 %v5199_v58, %v5197_v17 }
 0x854   :  { %v8795_v11 = vpack.c.bf16 %v5196_v16, %v5194_v62  ;;  %v5221_v62 = vld [vmem:[%s14686_s12 + $0x260] sm:$0xff]  ;;  %v5223_v16 = vld [vmem:[%s14686_s12 + $0x270] sm:$0xff] }
 0x855   :  { %v8825_v27 = vpack.c.bf16 %v5223_v16, %v5221_v62  ;;  %v5259_v62 = vld [vmem:[%s14686_s12 + $0x390] sm:$0xff]  ;;  %v5262_v16 = vld [vmem:[%s14686_s12 + $0x3a8] sm:$0xff] }
 0x856   :  { %8754 = vmatpush1.bf16.msra.mxu0 %v8753_v6  ;;  %v5198_v6 = vld [vmem:[%s14686_s12 + $0x1a8] sm:$0xff] }
 0x857   :  { %8756 = vmatprep.subr.bf16.mxu0 %v8755_v4  ;;  %v5200_v4 = vld [vmem:[%s14686_s12 + $0x1b8] sm:$0xff] }
 0x858   :  { %v8799_v23 = vpack.c.bf16 %v5200_v4, %v5198_v6  ;;  %v5225_v6 = vld [vmem:[%s14686_s12 + $0x280] sm:$0xff]  ;;  %v5227_v4 = vld [vmem:[%s14686_s12 + $0x290] sm:$0xff] }
 0x859   :  { %v8829_v17 = vpack.c.bf16 %v5227_v4, %v5225_v6  ;;  %v5263_v6 = vld [vmem:[%s14686_s12 + $0x3b0] sm:$0xff]  ;;  %v5266_v4 = vld [vmem:[%s14686_s12 + $0x3c8] sm:$0xff] }
 0x85a   :  { %8758 = vmatpush1.bf16.msra.mxu0 %v8757_v13  ;;  %v5202_v13 = vld [vmem:[%s14686_s12 + $0x1c8] sm:$0xff] }
 0x85b   :  { %8760 = vmatprep.subr.bf16.mxu0 %v8759_v14  ;;  %v5204_v14 = vld [vmem:[%s14686_s12 + $0x1d8] sm:$0xff] }
 0x85c   :  { %v8803_v45 = vpack.c.bf16 %v5204_v14, %v5202_v13  ;;  %v5229_v13 = vld [vmem:[%s14686_s12 + $0x2a0] sm:$0xff]  ;;  %v5231_v14 = vld [vmem:[%s14686_s12 + $0x2b0] sm:$0xff] }
 0x85e   :  { %8762 = vmatpush1.bf16.msra.mxu0 %v8761_v12  ;;  %v8805_v12 = vpack.c.bf16 %v5203_v36, %v5201_v33  ;;  %v8833_v33 = vpack.c.bf16 %v5231_v14, %v5229_v13  ;;  %v5265_v13 = vld [vmem:[%s14686_s12 + $0x3c0] sm:$0xff]  ;;  %v5267_v14 = vld [vmem:[%s14686_s12 + $0x3d0] sm:$0xff] }
 0x85f   :  { %8764 = vmatprep.subr.bf16.mxu0 %v8763_v26  ;;  %v5206_v26 = vld [vmem:[%s14686_s12 + $0x1e8] sm:$0xff] }
 0x860   :  { %v8807_v48 = vpack.c.bf16 %v5208_v52, %v5206_v26  ;;  %v5235_v26 = vld [vmem:[%s14686_s12 + $0x2d0] sm:$0xff]  ;;  %v5238_v52 = vld [vmem:[%s14686_s12 + $0x2e8] sm:$0xff] }
 0x862   :  { %8766 = vmatpush1.bf16.msra.mxu0 %v8765_v34  ;;  %v8809_v34 = vpack.c.bf16 %v5207_v42, %v5205_v51  ;;  %v5240_v51 = vld [vmem:[%s14686_s12 + $0x2f8] sm:$0xff] }
 0x863   :  { %8768 = vmatprep.subr.bf16.mxu0 %v8767_v22  ;;  %v5210_v22 = vld [vmem:[%s14686_s12 + $0x208] sm:$0xff]  ;;  %v8839_v42 = vpack.c.bf16 %v5240_v51, %v5238_v52  ;;  %v5269_v52 = vld [vmem:[%s14686_s12 + $0x3e0] sm:$0xff]  ;;  %v5271_v51 = vld [vmem:[%s14686_s12 + $0x3f0] sm:$0xff] }
 0x864   :  { %v8811_v1 = vpack.c.bf16 %v5212_v18, %v5210_v22  ;;  %v5239_v22 = vld [vmem:[%s14686_s12 + $0x2f0] sm:$0xff]  ;;  %v5242_v18 = vld [vmem:[%s14686_s12 + $0x308] sm:$0xff] }
 0x866   :  { %8770 = vmatpush1.bf16.msra.mxu0 %v8769_v57  ;;  %v14056_v57 = vld [vmem:[%s14687_s11] sm:$0xff] }
 0x867   :  { %8772 = vmatprep.subr.bf16.mxu0 %v8771_v41  ;;  %v4819_v41 = vsub.s32 1, %v15127_v9  ;;  %v4816_v38 = vrot.slane %v14056_v57, %v4815_v59  ;;  %v4828_v7 = vrot.slane %v14056_v57, %v4827_v50 }
 0x869   :  { %v4820_v44 = vrot.slane %v14056_v57, %v4819_v41 }
 0x86a   :  { %8774 = vmatpush1.bf16.msra.mxu0 %v8773_v21 }
 0x86b   :  { %8776 = vmatprep.subr.bf16.mxu0 %v8775_v40 }
 0x86e   :  { %8778 = vmatpush1.bf16.msra.mxu0 %v8777_v15  ;;  %v5211_v15 = vld [vmem:[%s14686_s12 + $0x210] sm:$0xff] }
 0x86f   :  { %8780 = vmatprep.subr.bf16.mxu0 %v8779_v61 }
 0x872   :  { %8782 = vmatpush1.bf16.msra.mxu0 %v8781_v5  ;;  %v8813_v5 = vpack.c.bf16 %v5211_v15, %v5209_v63  ;;  %v5246_v63 = vld [vmem:[%s14686_s12 + $0x328] sm:$0xff]  ;;  %v5248_v15 = vld [vmem:[%s14686_s12 + $0x338] sm:$0xff] }
 0x873   :  { %8784 = vmatprep.subr.bf16.mxu0 %v8783_v30 }
 0x876   :  { %8786 = vmatpush1.bf16.msra.mxu0 %v8785_v60  ;;  %v5218_v60 = vld [vmem:[%s14686_s12 + $0x248] sm:$0xff] }
 0x877   :  { %8788 = vmatprep.subr.bf16.mxu0 %v8787_v53  ;;  %v5220_v53 = vld [vmem:[%s14686_s12 + $0x258] sm:$0xff] }
 0x878   :  { %v8819_v31 = vpack.c.bf16 %v5220_v53, %v5218_v60  ;;  %v5256_v60 = vld [vmem:[%s14686_s12 + $0x378] sm:$0xff]  ;;  %v8853_v53 = vpack.c.bf16 %v5251_v56, %v5249_v24  ;;  %v5283_v24 = vld [vmem:[%s14686_s12 + $0x450] sm:$0xff]  ;;  %v5286_v56 = vld [vmem:[%s14686_s12 + $0x468] sm:$0xff] }
 0x87a   :  { %8790 = vmatpush1.bf16.msra.mxu0 %v8789_v8  ;;  %v5222_v8 = vld [vmem:[%s14686_s12 + $0x268] sm:$0xff] }
 0x87b   :  { %8792 = vmatprep.subr.bf16.mxu0 %v8791_v32  ;;  %v5224_v32 = vld [vmem:[%s14686_s12 + $0x278] sm:$0xff] }
 0x87c   :  { %v8823_v54 = vpack.c.bf16 %v5224_v32, %v5222_v8  ;;  %v5260_v8 = vld [vmem:[%s14686_s12 + $0x398] sm:$0xff] }
 0x87e   :  { %8794 = vmatpush1.bf16.msra.mxu0 %v8793_v47  ;;  %v5226_v47 = vld [vmem:[%s14686_s12 + $0x288] sm:$0xff] }
 0x87f   :  { %8796 = vmatprep.subr.bf16.mxu0 %v8795_v11  ;;  %v5228_v11 = vld [vmem:[%s14686_s12 + $0x298] sm:$0xff] }
 0x880   :  { %v8827_v43 = vpack.c.bf16 %v5228_v11, %v5226_v47  ;;  %v5264_v47 = vld [vmem:[%s14686_s12 + $0x3b8] sm:$0xff] }
 0x882   :  { %8798 = vmatpush1.bf16.msra.mxu0 %v8797_v46  ;;  %v5230_v46 = vld [vmem:[%s14686_s12 + $0x2a8] sm:$0xff] }
 0x883   :  { %8800 = vmatprep.subr.bf16.mxu0 %v8799_v23  ;;  %v5232_v23 = vld [vmem:[%s14686_s12 + $0x2b8] sm:$0xff] }
 0x884   :  { %v8831_v58 = vpack.c.bf16 %v5232_v23, %v5230_v46  ;;  %v5268_v46 = vld [vmem:[%s14686_s12 + $0x3d8] sm:$0xff] }
 0x886   :  { %8802 = vmatpush1.bf16.msra.mxu0 %v8801_v49  ;;  %v5234_v49 = vld [vmem:[%s14686_s12 + $0x2c8] sm:$0xff] }
 0x887   :  { %8804 = vmatprep.subr.bf16.mxu0 %v8803_v45  ;;  %v5236_v45 = vld [vmem:[%s14686_s12 + $0x2d8] sm:$0xff] }
 0x888   :  { %v8835_v36 = vpack.c.bf16 %v5236_v45, %v5234_v49  ;;  %v4835_v49 = vsub.s32 5, %v15127_v9  ;;  %v5270_v45 = vld [vmem:[%s14686_s12 + $0x3e8] sm:$0xff] }
 0x88a   :  { %8806 = vmatpush1.bf16.msra.mxu0 %v8805_v12  ;;  %v5233_v12 = vld [vmem:[%s14686_s12 + $0x2c0] sm:$0xff] }
 0x88b   :  { %8808 = vmatprep.subr.bf16.mxu0 %v8807_v48  ;;  %v8837_v48 = vpack.c.bf16 %v5235_v26, %v5233_v12 }
 0x88e   :  { %8810 = vmatpush1.bf16.msra.mxu0 %v8809_v34  ;;  %v5237_v34 = vld [vmem:[%s14686_s12 + $0x2e0] sm:$0xff] }
 0x88f   :  { %8812 = vmatprep.subr.bf16.mxu0 %v8811_v1  ;;  %v5244_v1 = vld [vmem:[%s14686_s12 + $0x318] sm:$0xff] }
 0x904   :  { %v4919_v21 = vpop.f32.mrb[74].mxu0  ;;  %v14067_v40 = vpop.f32.mrb[74].mxu1 }
 0x905   :  { %v4920_v39 = vadd.f32 %v4919_v21, %v4816_v38  ;;  %v4921_v3 = vpop.f32.mrb[75].mxu0  ;;  %v4992_v19 = vpop.f32.mrb[75].mxu1 }
 0x906   :  { %v4922_v61 = vadd.f32 %v4921_v3, %v4820_v44  ;;  %v4993_v35 = vadd.f32 %v4992_v19, %v4828_v7  ;;  %v8841_v44 = vpack.c.bf16 %v5239_v22, %v5237_v34  ;;  %v5241_v3 = vld [vmem:[%s14686_s12 + $0x300] sm:$0xff]  ;;  %v5243_v19 = vld [vmem:[%s14686_s12 + $0x310] sm:$0xff]  ;;  %v5276_v34 = vld [vmem:[%s14686_s12 + $0x418] sm:$0xff]  ;;  %v8873_v22 = vpack.c.bf16 %v5271_v51, %v5269_v52 }
 0x907   :  { %v5137_v30 = vmax.f32 %v4920_v39, 0.0  ;;  %v8843_v39 = vpack.c.bf16 %v5244_v1, %v5242_v18 }
 0x908   :  { %v5138_v2 = vmax.f32 %v4922_v61, 0.0  ;;  %v5140_v55 = vmax.f32 %v4993_v35, 0.0  ;;  %v8845_v61 = vpack.c.bf16 %v5243_v19, %v5241_v3  ;;  %v8847_v35 = vpack.c.bf16 %v5248_v15, %v5246_v63  ;;  %v5278_v19 = vld [vmem:[%s14686_s12 + $0x428] sm:$0xff] }
 0x90a   :  { %5477 = vmatprep.mubr.f32.mxu0 %v5138_v2  ;;  %v5250_v2 = vld [vmem:[%s14686_s12 + $0x348] sm:$0xff] }
 0x90b   :  { %5478 = vmatmul.mubr.f32.vlgmr.msra.gmra.mrb[78].mxu0 %v5137_v30  ;;  %v8849_v30 = vpack.c.bf16 %v5247_v10, %v5245_v20  ;;  %v5282_v10 = vld [vmem:[%s14686_s12 + $0x448] sm:$0xff] }
 0x90c   :  { %8814 = vmatpush1.bf16.msra.mxu0 %v8813_v5  ;;  %5548 = vmatprep.mubr.f32.mxu0 %v5140_v55  ;;  %v5252_v5 = vld [vmem:[%s14686_s12 + $0x358] sm:$0xff]  ;;  %v5254_v55 = vld [vmem:[%s14686_s12 + $0x368] sm:$0xff] }
 0x90d   :  { %8816 = vmatprep.subr.bf16.mxu0 %v8815_v29  ;;  %v8851_v29 = vpack.c.bf16 %v5252_v5, %v5250_v2  ;;  %v5284_v2 = vld [vmem:[%s14686_s12 + $0x458] sm:$0xff] }
 0x910   :  { %8818 = vmatpush1.bf16.msra.mxu0 %v8817_v0  ;;  %v8855_v0 = vpack.c.bf16 %v5256_v60, %v5254_v55  ;;  %v5288_v55 = vld [vmem:[%s14686_s12 + $0x478] sm:$0xff] }
 0x911   :  { %8820 = vmatprep.subr.bf16.mxu0 %v8819_v31  ;;  %v5253_v31 = vld [vmem:[%s14686_s12 + $0x360] sm:$0xff] }
 0x912   :  { %v8857_v32 = vpack.c.bf16 %v5255_v28, %v5253_v31  ;;  %v5287_v31 = vld [vmem:[%s14686_s12 + $0x470] sm:$0xff]  ;;  %v5290_v28 = vld [vmem:[%s14686_s12 + $0x488] sm:$0xff] }
 0x914   :  { %8822 = vmatpush1.bf16.msra.mxu0 %v8821_v37  ;;  %v8859_v37 = vpack.c.bf16 %v5260_v8, %v5258_v25  ;;  %v5292_v25 = vld [vmem:[%s14686_s12 + $0x498] sm:$0xff] }
 0x915   :  { %8824 = vmatprep.subr.bf16.mxu0 %v8823_v54  ;;  %v5257_v54 = vld [vmem:[%s14686_s12 + $0x380] sm:$0xff] }
 0x916   :  { %v8861_v11 = vpack.c.bf16 %v5259_v62, %v5257_v54  ;;  %v5291_v54 = vld [vmem:[%s14686_s12 + $0x490] sm:$0xff]  ;;  %v5294_v62 = vld [vmem:[%s14686_s12 + $0x4a8] sm:$0xff] }
 0x918   :  { %8826 = vmatpush1.bf16.msra.mxu0 %v8825_v27  ;;  %v8863_v27 = vpack.c.bf16 %v5264_v47, %v5262_v16  ;;  %v5296_v16 = vld [vmem:[%s14686_s12 + $0x4b8] sm:$0xff] }
 0x919   :  { %8828 = vmatprep.subr.bf16.mxu0 %v8827_v43  ;;  %v5261_v43 = vld [vmem:[%s14686_s12 + $0x3a0] sm:$0xff] }
 0x91a   :  { %v8865_v23 = vpack.c.bf16 %v5263_v6, %v5261_v43  ;;  %v5295_v43 = vld [vmem:[%s14686_s12 + $0x4b0] sm:$0xff]  ;;  %v5298_v6 = vld [vmem:[%s14686_s12 + $0x4c8] sm:$0xff] }
 0x91c   :  { %8830 = vmatpush1.bf16.msra.mxu0 %v8829_v17  ;;  %v4823_v17 = vsub.s32 2, %v15127_v9 }
 0x91d   :  { %8832 = vmatprep.subr.bf16.mxu0 %v8831_v58  ;;  %v8867_v58 = vpack.c.bf16 %v5268_v46, %v5266_v4  ;;  %v5300_v4 = vld [vmem:[%s14686_s12 + $0x4d8] sm:$0xff] }
 0x91e   :  { %v4824_v12 = vrot.slane %v14056_v57, %v4823_v17  ;;  %v5297_v17 = vld [vmem:[%s14686_s12 + $0x4c0] sm:$0xff] }
 0x920   :  { %8834 = vmatpush1.bf16.msra.mxu0 %v8833_v33  ;;  %v5272_v33 = vld [vmem:[%s14686_s12 + $0x3f8] sm:$0xff]  ;;  %v4991_v18 = vadd.f32 %v14067_v40, %v4824_v12  ;;  %v5306_v12 = vld [vmem:[%s14686_s12 + $0x508] sm:$0xff] }
 0x921   :  { %8836 = vmatprep.subr.bf16.mxu0 %v8835_v36  ;;  %v8869_v36 = vpack.c.bf16 %v5267_v14, %v5265_v13  ;;  %v8871_v26 = vpack.c.bf16 %v5272_v33, %v5270_v45  ;;  %v5280_v40 = vld [vmem:[%s14686_s12 + $0x438] sm:$0xff]  ;;  %v5302_v13 = vld [vmem:[%s14686_s12 + $0x4e8] sm:$0xff]  ;;  %v5301_v33 = vld [vmem:[%s14686_s12 + $0x4e0] sm:$0xff] }
 0x922   :  { %v5139_v15 = vmax.f32 %v4991_v18, 0.0  ;;  %v5304_v14 = vld [vmem:[%s14686_s12 + $0x4f8] sm:$0xff] }
 0x923   :  { %v8903_v45 = vpack.c.bf16 %v5304_v14, %v5302_v13  ;;  %v5338_v14 = vld [vmem:[%s14686_s12 + $0x608] sm:$0xff] }
 0x924   :  { %v14165_v50 = vpop.f32.mrb[76].mxu0  ;;  %v14167_v38 = vpop.f32.mrb[76].mxu1  ;;  %8838 = vmatpush1.bf16.msra.mxu0 %v8837_v48  ;;  %v4836_v48 = vrot.slane %v14056_v57, %v4835_v49 }
 0x925   :  { %v14169_v7 = vpop.f32.mrb[77].mxu0  ;;  %v14171_v21 = vpop.f32.mrb[77].mxu1  ;;  %8840 = vmatprep.subr.bf16.mxu0 %v8839_v42  ;;  %v5274_v42 = vld [vmem:[%s14686_s12 + $0x408] sm:$0xff] }
 0x926   :  { %v8875_v1 = vpack.c.bf16 %v5276_v34, %v5274_v42  ;;  %v5064_v3 = vadd.f32 %v14169_v7, %v4836_v48  ;;  %v5279_v7 = vld [vmem:[%s14686_s12 + $0x430] sm:$0xff]  ;;  %v5305_v48 = vld [vmem:[%s14686_s12 + $0x500] sm:$0xff]  ;;  %v5310_v34 = vld [vmem:[%s14686_s12 + $0x528] sm:$0xff] }
 0x927   :  { %v5307_v42 = vld [vmem:[%s14686_s12 + $0x510] sm:$0xff] }
 0x928   :  { %8842 = vmatpush1.bf16.msra.mxu0 %v8841_v44  ;;  %v5273_v44 = vld [vmem:[%s14686_s12 + $0x400] sm:$0xff]  ;;  %v5142_v20 = vmax.f32 %v5064_v3, 0.0  ;;  %v8909_v18 = vpack.c.bf16 %v5307_v42, %v5305_v48  ;;  %v5314_v3 = vld [vmem:[%s14686_s12 + $0x548] sm:$0xff] }
 0x929   :  { %8844 = vmatprep.subr.bf16.mxu0 %v8843_v39  ;;  %v5275_v39 = vld [vmem:[%s14686_s12 + $0x410] sm:$0xff] }
 0x92a   :  { %v8877_v63 = vpack.c.bf16 %v5275_v39, %v5273_v44  ;;  %v5309_v44 = vld [vmem:[%s14686_s12 + $0x520] sm:$0xff]  ;;  %v5311_v39 = vld [vmem:[%s14686_s12 + $0x530] sm:$0xff] }
 0x92c   :  { %8846 = vmatpush1.bf16.msra.mxu0 %v8845_v61  ;;  %v8879_v61 = vpack.c.bf16 %v5280_v40, %v5278_v19  ;;  %v5316_v19 = vld [vmem:[%s14686_s12 + $0x558] sm:$0xff]  ;;  %v8913_v40 = vpack.c.bf16 %v5311_v39, %v5309_v44 }
 0x92d   :  { %8848 = vmatprep.subr.bf16.mxu0 %v8847_v35  ;;  %v5277_v35 = vld [vmem:[%s14686_s12 + $0x420] sm:$0xff]  ;;  %v5348_v44 = vld [vmem:[%s14686_s12 + $0x658] sm:$0xff] }
 0x92e   :  { %v8881_v5 = vpack.c.bf16 %v5279_v7, %v5277_v35  ;;  %v5318_v35 = vld [vmem:[%s14686_s12 + $0x568] sm:$0xff]  ;;  %v5320_v7 = vld [vmem:[%s14686_s12 + $0x578] sm:$0xff] }
 0x930   :  { %8850 = vmatpush1.bf16.msra.mxu0 %v8849_v30  ;;  %v8883_v30 = vpack.c.bf16 %v5284_v2, %v5282_v10  ;;  %v8919_v10 = vpack.c.bf16 %v5320_v7, %v5318_v35  ;;  %v5317_v2 = vld [vmem:[%s14686_s12 + $0x560] sm:$0xff] }
 0x931   :  { %8852 = vmatprep.subr.bf16.mxu0 %v8851_v29  ;;  %v5281_v29 = vld [vmem:[%s14686_s12 + $0x440] sm:$0xff] }
 0x932   :  { %v8885_v60 = vpack.c.bf16 %v5283_v24, %v5281_v29  ;;  %v5324_v29 = vld [vmem:[%s14686_s12 + $0x598] sm:$0xff]  ;;  %v5349_v7 = vld [vmem:[%s14686_s12 + $0x660] sm:$0xff] }
 0x934   :  { %8854 = vmatpush1.bf16.msra.mxu0 %v8853_v53  ;;  %v8887_v53 = vpack.c.bf16 %v5288_v55, %v5286_v56  ;;  %v5321_v55 = vld [vmem:[%s14686_s12 + $0x580] sm:$0xff] }
 0x935   :  { %8856 = vmatprep.subr.bf16.mxu0 %v8855_v0  ;;  %v5285_v0 = vld [vmem:[%s14686_s12 + $0x460] sm:$0xff] }
 0x936   :  { %v8889_v8 = vpack.c.bf16 %v5287_v31, %v5285_v0  ;;  %v5328_v0 = vld [vmem:[%s14686_s12 + $0x5b8] sm:$0xff] }
 0x938   :  { %8858 = vmatpush1.bf16.msra.mxu0 %v8857_v32  ;;  %v8891_v32 = vpack.c.bf16 %v5292_v25, %v5290_v28  ;;  %v5325_v25 = vld [vmem:[%s14686_s12 + $0x5a0] sm:$0xff] }
 0x939   :  { %8860 = vmatprep.subr.bf16.mxu0 %v8859_v37  ;;  %v5289_v37 = vld [vmem:[%s14686_s12 + $0x480] sm:$0xff] }
 0x93a   :  { %v8893_v47 = vpack.c.bf16 %v5291_v54, %v5289_v37  ;;  %v5332_v37 = vld [vmem:[%s14686_s12 + $0x5d8] sm:$0xff] }
 0x93c   :  { %8862 = vmatpush1.bf16.msra.mxu0 %v8861_v11  ;;  %v8895_v11 = vpack.c.bf16 %v5296_v16, %v5294_v62  ;;  %v4831_v62 = vsub.s32 4, %v15127_v9 }
 0x93d   :  { %8864 = vmatprep.subr.bf16.mxu0 %v8863_v27  ;;  %v5293_v27 = vld [vmem:[%s14686_s12 + $0x4a0] sm:$0xff] }
 0x93e   :  { %v8897_v46 = vpack.c.bf16 %v5295_v43, %v5293_v27  ;;  %v4843_v27 = vsub.s32 7, %v15127_v9  ;;  %v5334_v43 = vld [vmem:[%s14686_s12 + $0x5e8] sm:$0xff] }
 0x940   :  { %8866 = vmatpush1.bf16.msra.mxu0 %v8865_v23  ;;  %v8899_v23 = vpack.c.bf16 %v5300_v4, %v5298_v6  ;;  %v5336_v6 = vld [vmem:[%s14686_s12 + $0x5f8] sm:$0xff]  ;;  %v4844_v13 = vrot.slane %v14056_v57, %v4843_v27  ;;  %v5365_v27 = vld [vmem:[%s14686_s12 + $0x6e0] sm:$0xff] }
 0x941   :  { %8868 = vmatprep.subr.bf16.mxu0 %v8867_v58  ;;  %v5299_v58 = vld [vmem:[%s14686_s12 + $0x4d0] sm:$0xff] }
 0x942   :  { %v8901_v49 = vpack.c.bf16 %v5299_v58, %v5297_v17  ;;  %v5333_v17 = vld [vmem:[%s14686_s12 + $0x5e0] sm:$0xff]  ;;  %v5335_v58 = vld [vmem:[%s14686_s12 + $0x5f0] sm:$0xff] }
 0x944   :  { %8870 = vmatpush1.bf16.msra.mxu0 %v8869_v36  ;;  %v5303_v36 = vld [vmem:[%s14686_s12 + $0x4f0] sm:$0xff] }
 0x945   :  { %8872 = vmatprep.subr.bf16.mxu0 %v8871_v26  ;;  %v5308_v26 = vld [vmem:[%s14686_s12 + $0x518] sm:$0xff]  ;;  %v8905_v52 = vpack.c.bf16 %v5303_v36, %v5301_v33 }
 0x946   :  { %v8907_v51 = vpack.c.bf16 %v5308_v26, %v5306_v12  ;;  %v5337_v12 = vld [vmem:[%s14686_s12 + $0x600] sm:$0xff]  ;;  %v5339_v26 = vld [vmem:[%s14686_s12 + $0x610] sm:$0xff] }
 0x947   :  { %v8941_v48 = vpack.c.bf16 %v5339_v26, %v5337_v12  ;;  %v5378_v12 = vld [vmem:[%s14686_s12 + $0x748] sm:$0xff]  ;;  %v5380_v26 = vld [vmem:[%s14686_s12 + $0x758] sm:$0xff] }
 0x948   :  { %8874 = vmatpush1.bf16.msra.mxu0 %v8873_v22  ;;  %v5312_v22 = vld [vmem:[%s14686_s12 + $0x538] sm:$0xff] }
 0x949   :  { %8876 = vmatprep.subr.bf16.mxu0 %v8875_v1  ;;  %v8911_v1 = vpack.c.bf16 %v5312_v22, %v5310_v34  ;;  %v5341_v22 = vld [vmem:[%s14686_s12 + $0x620] sm:$0xff] }
 0x94b   :  { %5549 = vmatmul.mubr.f32.vlgmr.msra.gmra.mrb[78].mxu0 %v5139_v15  ;;  %v5313_v15 = vld [vmem:[%s14686_s12 + $0x540] sm:$0xff] }
 0x94c   :  { %8878 = vmatpush1.bf16.msra.mxu0 %v8877_v63  ;;  %5619 = vmatprep.mubr.f32.mxu0 %v5142_v20  ;;  %v8915_v63 = vpack.c.bf16 %v5316_v19, %v5314_v3  ;;  %v5345_v19 = vld [vmem:[%s14686_s12 + $0x640] sm:$0xff] }
 0x94d   :  { %8880 = vmatprep.subr.bf16.mxu0 %v8879_v61  ;;  %v5315_v61 = vld [vmem:[%s14686_s12 + $0x550] sm:$0xff] }
 0x94e   :  { %v8917_v20 = vpack.c.bf16 %v5315_v61, %v5313_v15  ;;  %v5352_v15 = vld [vmem:[%s14686_s12 + $0x678] sm:$0xff] }
 0x950   :  { %8882 = vmatpush1.bf16.msra.mxu0 %v8881_v5  ;;  %v5319_v5 = vld [vmem:[%s14686_s12 + $0x570] sm:$0xff] }
 0x951   :  { %8884 = vmatprep.subr.bf16.mxu0 %v8883_v30  ;;  %v5322_v30 = vld [vmem:[%s14686_s12 + $0x588] sm:$0xff]  ;;  %v8921_v24 = vpack.c.bf16 %v5319_v5, %v5317_v2  ;;  %v5356_v2 = vld [vmem:[%s14686_s12 + $0x698] sm:$0xff] }
 0x952   :  { %v8923_v56 = vpack.c.bf16 %v5324_v29, %v5322_v30  ;;  %v5353_v29 = vld [vmem:[%s14686_s12 + $0x680] sm:$0xff] }
 0x954   :  { %8886 = vmatpush1.bf16.msra.mxu0 %v8885_v60  ;;  %v5323_v60 = vld [vmem:[%s14686_s12 + $0x590] sm:$0xff] }
 0x955   :  { %8888 = vmatprep.subr.bf16.mxu0 %v8887_v53  ;;  %v5326_v53 = vld [vmem:[%s14686_s12 + $0x5a8] sm:$0xff]  ;;  %v8925_v31 = vpack.c.bf16 %v5323_v60, %v5321_v55  ;;  %v5360_v55 = vld [vmem:[%s14686_s12 + $0x6b8] sm:$0xff] }
 0x956   :  { %v8927_v28 = vpack.c.bf16 %v5328_v0, %v5326_v53  ;;  %v5357_v0 = vld [vmem:[%s14686_s12 + $0x6a0] sm:$0xff] }
 0x958   :  { %8890 = vmatpush1.bf16.msra.mxu0 %v8889_v8  ;;  %v5327_v8 = vld [vmem:[%s14686_s12 + $0x5b0] sm:$0xff] }
 0x959   :  { %8892 = vmatprep.subr.bf16.mxu0 %v8891_v32  ;;  %v5330_v32 = vld [vmem:[%s14686_s12 + $0x5c8] sm:$0xff]  ;;  %v8929_v54 = vpack.c.bf16 %v5327_v8, %v5325_v25  ;;  %v5364_v25 = vld [vmem:[%s14686_s12 + $0x6d8] sm:$0xff] }
 0x95a   :  { %v8931_v16 = vpack.c.bf16 %v5332_v37, %v5330_v32  ;;  %v5361_v37 = vld [vmem:[%s14686_s12 + $0x6c0] sm:$0xff] }
 0x95c   :  { %8894 = vmatpush1.bf16.msra.mxu0 %v8893_v47  ;;  %v5329_v47 = vld [vmem:[%s14686_s12 + $0x5c0] sm:$0xff] }
 0x95d   :  { %8896 = vmatprep.subr.bf16.mxu0 %v8895_v11  ;;  %v5331_v11 = vld [vmem:[%s14686_s12 + $0x5d0] sm:$0xff] }
 0x95e   :  { %v8933_v4 = vpack.c.bf16 %v5331_v11, %v5329_v47 }
 0x960   :  { %8898 = vmatpush1.bf16.msra.mxu0 %v8897_v46  ;;  %v4832_v46 = vrot.slane %v14056_v57, %v4831_v62  ;;  %v5366_v62 = vld [vmem:[%s14686_s12 + $0x6e8] sm:$0xff] }
 0x961   :  { %8900 = vmatprep.subr.bf16.mxu0 %v8899_v23  ;;  %v8935_v23 = vpack.c.bf16 %v5336_v6, %v5334_v43  ;;  %v5367_v43 = vld [vmem:[%s14686_s12 + $0x6f0] sm:$0xff]  ;;  %v5370_v6 = vld [vmem:[%s14686_s12 + $0x708] sm:$0xff] }
 0x962   :  { %v5062_v33 = vadd.f32 %v14165_v50, %v4832_v46  ;;  %v5344_v50 = vld [vmem:[%s14686_s12 + $0x638] sm:$0xff]  ;;  %v8969_v46 = vpack.c.bf16 %v5367_v43, %v5365_v27 }
 0x964   :  { %8902 = vmatpush1.bf16.msra.mxu0 %v8901_v49  ;;  %v5340_v49 = vld [vmem:[%s14686_s12 + $0x618] sm:$0xff]  ;;  %v5141_v42 = vmax.f32 %v5062_v33, 0.0  ;;  %v5373_v33 = vld [vmem:[%s14686_s12 + $0x720] sm:$0xff] }
 0x965   :  { %8904 = vmatprep.subr.bf16.mxu0 %v8903_v45  ;;  %v8937_v45 = vpack.c.bf16 %v5335_v58, %v5333_v17  ;;  %v8939_v36 = vpack.c.bf16 %v5340_v49, %v5338_v14  ;;  %v5369_v17 = vld [vmem:[%s14686_s12 + $0x700] sm:$0xff]  ;;  %v5371_v58 = vld [vmem:[%s14686_s12 + $0x710] sm:$0xff]  ;;  %v5376_v14 = vld [vmem:[%s14686_s12 + $0x738] sm:$0xff] }
 0x966   :  { %v8973_v49 = vpack.c.bf16 %v5371_v58, %v5369_v17 }
 0x968   :  { %8906 = vmatpush1.bf16.msra.mxu0 %v8905_v52  ;;  %v5135_v52 = vadd.f32 %v14171_v21, %v4844_v13  ;;  %v5343_v21 = vld [vmem:[%s14686_s12 + $0x630] sm:$0xff]  ;;  %v5374_v13 = vld [vmem:[%s14686_s12 + $0x728] sm:$0xff] }
 0x969   :  { %8908 = vmatprep.subr.bf16.mxu0 %v8907_v51  ;;  %v5342_v51 = vld [vmem:[%s14686_s12 + $0x628] sm:$0xff]  ;;  %v8945_v39 = vpack.c.bf16 %v5343_v21, %v5341_v22 }
 0x96a   :  { %v8943_v34 = vpack.c.bf16 %v5344_v50, %v5342_v51  ;;  %v8979_v51 = vpack.c.bf16 %v5380_v26, %v5378_v12  ;;  %v5377_v50 = vld [vmem:[%s14686_s12 + $0x740] sm:$0xff] }
 0x96c   :  { %8910 = vmatpush1.bf16.msra.mxu0 %v8909_v18  ;;  %v5144_v18 = vmax.f32 %v5135_v52, 0.0 }
 0x96d   :  { %8912 = vmatprep.subr.bf16.mxu0 %v8911_v1  ;;  %v5346_v1 = vld [vmem:[%s14686_s12 + $0x648] sm:$0xff] }
 0x96e   :  { %v8947_v3 = vpack.c.bf16 %v5348_v44, %v5346_v1  ;;  %v5383_v1 = vld [vmem:[%s14686_s12 + $0x770] sm:$0xff]  ;;  %v5386_v44 = vld [vmem:[%s14686_s12 + $0x788] sm:$0xff] }
 0x970   :  { %8914 = vmatpush1.bf16.msra.mxu0 %v8913_v40  ;;  %v5347_v40 = vld [vmem:[%s14686_s12 + $0x650] sm:$0xff] }
 0x971   :  { %8916 = vmatprep.subr.bf16.mxu0 %v8915_v63  ;;  %v5350_v63 = vld [vmem:[%s14686_s12 + $0x668] sm:$0xff]  ;;  %v8949_v61 = vpack.c.bf16 %v5347_v40, %v5345_v19  ;;  %v5385_v40 = vld [vmem:[%s14686_s12 + $0x780] sm:$0xff] }
 0x972   :  { %v8951_v35 = vpack.c.bf16 %v5352_v15, %v5350_v63  ;;  %v5387_v63 = vld [vmem:[%s14686_s12 + $0x790] sm:$0xff]  ;;  %v5390_v15 = vld [vmem:[%s14686_s12 + $0x7a8] sm:$0xff] }
 0x974   :  { %8918 = vmatpush1.bf16.msra.mxu0 %v8917_v20  ;;  %v5351_v20 = vld [vmem:[%s14686_s12 + $0x670] sm:$0xff] }
 0x975   :  { %8920 = vmatprep.subr.bf16.mxu0 %v8919_v10  ;;  %v5354_v10 = vld [vmem:[%s14686_s12 + $0x688] sm:$0xff]  ;;  %v8953_v5 = vpack.c.bf16 %v5351_v20, %v5349_v7  ;;  %v5389_v20 = vld [vmem:[%s14686_s12 + $0x7a0] sm:$0xff] }
 0x976   :  { %v8955_v30 = vpack.c.bf16 %v5356_v2, %v5354_v10  ;;  %v5391_v10 = vld [vmem:[%s14686_s12 + $0x7b0] sm:$0xff]  ;;  %v5394_v2 = vld [vmem:[%s14686_s12 + $0x7c8] sm:$0xff] }
 0x978   :  { %8922 = vmatpush1.bf16.msra.mxu0 %v8921_v24  ;;  %v5355_v24 = vld [vmem:[%s14686_s12 + $0x690] sm:$0xff] }
 0x979   :  { %8924 = vmatprep.subr.bf16.mxu0 %v8923_v56  ;;  %v5358_v56 = vld [vmem:[%s14686_s12 + $0x6a8] sm:$0xff]  ;;  %v8957_v60 = vpack.c.bf16 %v5355_v24, %v5353_v29  ;;  %v4839_v29 = vsub.s32 6, %v15127_v9 }
 0x97a   :  { %v8959_v53 = vpack.c.bf16 %v5360_v55, %v5358_v56  ;;  %v5393_v56 = vld [vmem:[%s14686_s12 + $0x7c0] sm:$0xff]  ;;  %v5395_v55 = vld [vmem:[%s14686_s12 + $0x7d0] sm:$0xff] }
 0x97c   :  { %8926 = vmatpush1.bf16.msra.mxu0 %v8925_v31  ;;  %v5359_v31 = vld [vmem:[%s14686_s12 + $0x6b0] sm:$0xff] }
 0x97d   :  { %8928 = vmatprep.subr.bf16.mxu0 %v8927_v28  ;;  %v5362_v28 = vld [vmem:[%s14686_s12 + $0x6c8] sm:$0xff]  ;;  %v8961_v8 = vpack.c.bf16 %v5359_v31, %v5357_v0  ;;  %v8997_v0 = vpack.c.bf16 %v5395_v55, %v5393_v56  ;;  %v4840_v31 = vrot.slane %v14056_v57, %v4839_v29  ;;  %v5401_v57 = vld [vmem:[%s14688_s13] sm:$0x3] }
 0x97e   :  { %v8963_v32 = vpack.c.bf16 %v5364_v25, %v5362_v28  ;;  %v5397_v25 = vld [vmem:[%s14686_s12 + $0x7e0] sm:$0xff] }
 0x980   :  { %8930 = vmatpush1.bf16.msra.mxu0 %v8929_v54  ;;  %v5363_v54 = vld [vmem:[%s14686_s12 + $0x6d0] sm:$0xff] }
 0x981   :  { %8932 = vmatprep.subr.bf16.mxu0 %v8931_v16  ;;  %v5368_v16 = vld [vmem:[%s14686_s12 + $0x6f8] sm:$0xff]  ;;  %v8965_v47 = vpack.c.bf16 %v5363_v54, %v5361_v37  ;;  %v5133_v37 = vadd.f32 %v14167_v38, %v4840_v31 }
 0x982   :  { %v8967_v11 = vpack.c.bf16 %v5368_v16, %v5366_v62  ;;  %v5406_v62 = vrot.slane %v5401_v57, %v4815_v59 }
 0x983   :  { %v5143_v54 = vmax.f32 %v5133_v37, 0.0 }
 0x984   :  { %8934 = vmatpush1.bf16.msra.mxu0 %v8933_v4  ;;  %v5372_v4 = vld [vmem:[%s14686_s12 + $0x718] sm:$0xff] }
 0x985   :  { %8936 = vmatprep.subr.bf16.mxu0 %v8935_v23  ;;  %v8971_v23 = vpack.c.bf16 %v5372_v4, %v5370_v6 }
 0x988   :  { %8938 = vmatpush1.bf16.msra.mxu0 %v8937_v45  ;;  %v8975_v45 = vpack.c.bf16 %v5376_v14, %v5374_v13 }
 0x989   :  { %8940 = vmatprep.subr.bf16.mxu0 %v8939_v36  ;;  %v5375_v36 = vld [vmem:[%s14686_s12 + $0x730] sm:$0xff] }
 0x98a   :  { %v8977_v52 = vpack.c.bf16 %v5375_v36, %v5373_v33 }
 0x98b   :  { %5620 = vmatmul.mubr.f32.vlgmr.msra.gmra.mrb[78].mxu0 %v5141_v42  ;;  %v5382_v42 = vld [vmem:[%s14686_s12 + $0x768] sm:$0xff] }
 0x98c   :  { %8942 = vmatpush1.bf16.msra.mxu0 %v8941_v48  ;;  %5690 = vmatprep.mubr.f32.mxu0 %v5144_v18  ;;  %v5379_v48 = vld [vmem:[%s14686_s12 + $0x750] sm:$0xff]  ;;  %v5381_v18 = vld [vmem:[%s14686_s12 + $0x760] sm:$0xff] }
 0x98d   :  { %8944 = vmatprep.subr.bf16.mxu0 %v8943_v34  ;;  %v5384_v34 = vld [vmem:[%s14686_s12 + $0x778] sm:$0xff]  ;;  %v8981_v22 = vpack.c.bf16 %v5379_v48, %v5377_v50 }
 0x98e   :  { %v8983_v21 = vpack.c.bf16 %v5384_v34, %v5382_v42 }
 0x990   :  { %8946 = vmatpush1.bf16.msra.mxu0 %v8945_v39  ;;  %v5388_v39 = vld [vmem:[%s14686_s12 + $0x798] sm:$0xff] }
 0x991   :  { %8948 = vmatprep.subr.bf16.mxu0 %v8947_v3  ;;  %v8985_v3 = vpack.c.bf16 %v5383_v1, %v5381_v18  ;;  %v8987_v19 = vpack.c.bf16 %v5388_v39, %v5386_v44 }
 0x994   :  { %8950 = vmatpush1.bf16.msra.mxu0 %v8949_v61  ;;  %v5392_v61 = vld [vmem:[%s14686_s12 + $0x7b8] sm:$0xff] }
 0x995   :  { %8952 = vmatprep.subr.bf16.mxu0 %v8951_v35  ;;  %v8989_v35 = vpack.c.bf16 %v5387_v63, %v5385_v40  ;;  %v8991_v7 = vpack.c.bf16 %v5392_v61, %v5390_v15 }
 0x998   :  { %8954 = vmatpush1.bf16.msra.mxu0 %v8953_v5  ;;  %v5396_v5 = vld [vmem:[%s14686_s12 + $0x7d8] sm:$0xff] }
 0x999   :  { %8956 = vmatprep.subr.bf16.mxu0 %v8955_v30  ;;  %v8993_v30 = vpack.c.bf16 %v5391_v10, %v5389_v20  ;;  %v8995_v24 = vpack.c.bf16 %v5396_v5, %v5394_v2 }
 0x99c   :  { %8958 = vmatpush1.bf16.msra.mxu0 %v8957_v60  ;;  %v5398_v60 = vld [vmem:[%s14686_s12 + $0x7e8] sm:$0xff] }
 0x99d   :  { %8960 = vmatprep.subr.bf16.mxu0 %v8959_v53  ;;  %v5400_v53 = vld [vmem:[%s14686_s12 + $0x7f8] sm:$0xff] }
 0x99e   :  { %v8999_v28 = vpack.c.bf16 %v5400_v53, %v5398_v60 }
 0x9a0   :  { %8962 = vmatpush1.bf16.msra.mxu0 %v8961_v8  ;;  %v5399_v8 = vld [vmem:[%s14686_s12 + $0x7f0] sm:$0xff] }
 0x9a1   :  { %8964 = vmatprep.subr.bf16.mxu0 %v8963_v32  ;;  %v9001_v32 = vpack.c.bf16 %v5399_v8, %v5397_v25 }
 0x9a4   :  { %8966 = vmatpush1.bf16.msra.mxu0 %v8965_v47 }
 0x9a5   :  { %8968 = vmatprep.subr.bf16.mxu0 %v8967_v11  ;;  %v5410_v11 = vrot.slane %v5401_v57, %v4819_v41 }
 0x9a8   :  { %8970 = vmatpush1.bf16.msra.mxu0 %v8969_v46 }
 0x9a9   :  { %8972 = vmatprep.subr.bf16.mxu0 %v8971_v23 }
 0x9ac   :  { %8974 = vmatpush1.bf16.msra.mxu0 %v8973_v49 }
 0x9ad   :  { %8976 = vmatprep.subr.bf16.mxu0 %v8975_v45 }
 0x9b0   :  { %8978 = vmatpush1.bf16.msra.mxu0 %v8977_v52 }
 0x9b1   :  { %8980 = vmatprep.subr.bf16.mxu0 %v8979_v51 }
 0x9b4   :  { %8982 = vmatpush1.bf16.msra.mxu0 %v8981_v22 }
 0x9b5   :  { %8984 = vmatprep.subr.bf16.mxu0 %v8983_v21 }
 0x9b8   :  { %8986 = vmatpush1.bf16.msra.mxu0 %v8985_v3 }
 0x9b9   :  { %8988 = vmatprep.subr.bf16.mxu0 %v8987_v19 }
 0x9bc   :  { %8990 = vmatpush1.bf16.msra.mxu0 %v8989_v35 }
 0x9bd   :  { %8992 = vmatprep.subr.bf16.mxu0 %v8991_v7 }
 0x9c0   :  { %8994 = vmatpush1.bf16.msra.mxu0 %v8993_v30 }
 0x9c1   :  { %8996 = vmatprep.subr.bf16.mxu0 %v8995_v24 }
 0x9c4   :  { %8998 = vmatpush1.bf16.msra.mxu0 %v8997_v0 }
 0x9c5   :  { %9000 = vmatprep.subr.bf16.mxu0 %v8999_v28 }
 0x9c8   :  { %9002 = vmatpush1.bf16.msra.mxu0 %v9001_v32 }
 0x9cb   :  { %5691 = vmatmul.mubr.f32.vlgmr.msra.gmra.mrb[78].mxu0 %v5143_v54 }
 0xa9e   :  { %v5692_v16 = vpop.f32.mrb[78].mxu0 }
 0xa9f   :  { %v9035_v47 = vadd.f32 %v5692_v16, %v5406_v62  ;;  %v5694_v27 = vpop.f32.mrb[79].mxu0 }
 0xaa0   :  { %v9036_v43 = vadd.f32 %v5694_v27, %v5410_v11 }
 0xaa1   :  { %5697 = vmax.xlane.f32.xlu0 %v9035_v47 }
 0xaa5   :  { %5707 = vmax.xlane.f32.xlu0 %v9036_v43 }
 0xb2e   :  { %v5698_v38 = vpop.xlane.xlu0 %5697 }
 0xb2f   :  { %v5699_v6 = vsub.f32 %v9035_v47, %v5698_v38 }
 0xb31   :  { %v5700_v4 = vmul.f32 1.442695, %v5699_v6 }
 0xb32   :  { %v5708_v46 = vpop.xlane.xlu0 %5707 }
 0xb33   :  { %9338 = vpow2.f32 %v5700_v4  ;;  %v5709_v23 = vsub.f32 %v9036_v43, %v5708_v46 }
 0xb35   :  { %v5710_v17 = vmul.f32 1.442695, %v5709_v23 }
 0xb37   :  { %9340 = vpow2.f32 %v5710_v17 }
 0xb3d   :  { %v9339_v58 = vpop.eup %9338 }
 0xb3e   :  { %5702 = vadd.xlane.f32.xlu1 %v9339_v58 }
 0xb41   :  { %v9341_v59 = vpop.eup %9340 }
 0xb42   :  { %5712 = vadd.xlane.f32.xlu1 %v9341_v59 }
 0xbcb   :  { %v5703_v13 = vpop.xlane.xlu1 %5702 }
 0xbcc   :  { %9342 = vrcp.f32 %v5703_v13 }
 0xbcf   :  { %v5713_v9 = vpop.xlane.xlu1 %5712 }
 0xbd0   :  { %9344 = vrcp.f32 %v5713_v9 }
 0xbd6   :  { %v9343_v41 = vpop.eup %9342 }
 0xbd7   :  { %v5705_v14 = vmul.f32 %v9343_v41, %v9339_v58 }
 0xbd9   :  { %5706 = vst [vmem:[%s14689_s14] sm:$0xff] %v5705_v14 }
 0xbda   :  { %v9345_v49 = vpop.eup %9344 }
 0xbdb   :  { %v5715_v45 = vmul.f32 %v9345_v49, %v9341_v59 }
 0xbdd   :  { %5716 = vst [vmem:[%s14689_s14 + $0x8] sm:$0xff] %v5715_v45 }

</bundles_post_ra>
